<compile_context>
chip_gen: v5e
topology: v5e:2x2
jax: 0.10.0
libtpu: 0.0.40
codegen_flags: <defaults>
</compile_context>

<pallas_src>
from functools import partial

import jax
import jax.numpy as jnp
from jax.experimental import pallas as pl
from jax.experimental.pallas import tpu as pltpu


# ----------------------------------------------------------------------------
# Fused conv3x3 (pre-lowered to tap matmuls) + bias + ReLU + maxpool 2x2.
# ----------------------------------------------------------------------------
def _conv_relu_pool_kernel(x_ref, w_ref, b_ref, o_ref, h_ref, *, taps):
    # x_ref: (Bblk, H + taps - 1, W, Kt)   im2col / kw-stacked input slab
    # w_ref: (taps, Kt, Cout)              weights, K ordering matches the slab
    # b_ref: (1, Cout)
    # o_ref: (Bblk, H//2, W//2, Cout)      pooled output
    # h_ref: VMEM scratch (H//2, W, Cout)  f32, result after pooling over H
    Bblk = x_ref.shape[0]
    W, Kt = x_ref.shape[2], x_ref.shape[3]
    H = x_ref.shape[1] - (taps - 1)
    Cout = o_ref.shape[3]
    Hh, Wh = H // 2, W // 2

    for b in range(Bblk):
        acc = jnp.zeros((H * W, Cout), jnp.float32)
        for t in range(taps):
            patch = x_ref[b, pl.ds(t, H), :, :]                      # (H, W, Kt)
            acc = acc + jnp.dot(
                patch.reshape(H * W, Kt).astype(jnp.bfloat16),
                w_ref[t].astype(jnp.bfloat16),
                preferred_element_type=jnp.float32)
        acc = jnp.maximum(acc + b_ref[...], 0.0)                     # bias + ReLU (f32)

        # 2x2 max pool.  H-pairs: split the leading dim (W stays the sublane
        # dim, lane dim unchanged -> cheap), then max over W-pairs with
        # stride-2 sublane reads from VMEM scratch.
        y = acc.reshape(Hh, 2, W, Cout)
        h_ref[...] = jnp.maximum(y[:, 0], y[:, 1])                   # (Hh, W, Cout)
        o_ref[b, :, :, :] = jnp.maximum(
            h_ref[:, pl.ds(0, Wh, 2), :],
            h_ref[:, pl.ds(1, Wh, 2), :]).astype(o_ref.dtype)        # (Hh, Wh, Cout)


def conv_relu_pool(x_slab, w_taps, b, block_b):
    Bp, Hp, W, Kt = x_slab.shape
    T, _, Cout = w_taps.shape
    H = Hp - (T - 1)
    Hh, Wh = H // 2, W // 2
    return pl.pallas_call(
        partial(_conv_relu_pool_kernel, taps=T),
        out_shape=jax.ShapeDtypeStruct((Bp, Hh, Wh, Cout), x_slab.dtype),
        grid=(Bp // block_b,),
        in_specs=[
            pl.BlockSpec((block_b, Hp, W, Kt), lambda i: (i, 0, 0, 0)),
            pl.BlockSpec((T, Kt, Cout), lambda i: (0, 0, 0)),
            pl.BlockSpec((1, Cout), lambda i: (0, 0)),
        ],
        out_specs=pl.BlockSpec((block_b, Hh, Wh, Cout), lambda i: (i, 0, 0, 0)),
        scratch_shapes=[pltpu.VMEM((Hh, W, Cout), jnp.float32)],
        compiler_params=pltpu.CompilerParams(dimension_semantics=("parallel",)),
    )(x_slab, w_taps, b.reshape(1, Cout))


# ----------------------------------------------------------------------------
# Fused MLP head: y = relu(x @ W1 + b1) @ W2 + b2  (one pallas_call).
# ----------------------------------------------------------------------------
def _mlp_kernel(x_ref, w1_ref, b1_ref, w2_ref, b2_ref, o_ref):
    h = jnp.dot(x_ref[...].astype(jnp.bfloat16),
                w1_ref[...].astype(jnp.bfloat16),
                preferred_element_type=jnp.float32)
    h = jnp.maximum(h + b1_ref[...], 0.0)
    y = jnp.dot(h.astype(jnp.bfloat16),
                w2_ref[...].astype(jnp.bfloat16),
                preferred_element_type=jnp.float32)
    o_ref[...] = (y + b2_ref[...]).astype(o_ref.dtype)


def mlp(x, w1, b1, w2, b2):
    B, K = x.shape
    N1, N2 = w1.shape[1], w2.shape[1]
    return pl.pallas_call(
        _mlp_kernel,
        out_shape=jax.ShapeDtypeStruct((B, N2), x.dtype),
        grid=(1,),
        in_specs=[
            pl.BlockSpec((B, K), lambda i: (0, 0)),
            pl.BlockSpec((K, N1), lambda i: (0, 0)),
            pl.BlockSpec((1, N1), lambda i: (0, 0)),
            pl.BlockSpec((N1, N2), lambda i: (0, 0)),
            pl.BlockSpec((1, N2), lambda i: (0, 0)),
        ],
        out_specs=pl.BlockSpec((B, N2), lambda i: (0, 0)),
        compiler_params=pltpu.CompilerParams(dimension_semantics=("arbitrary",)),
    )(x, w1, b1.reshape(1, N1), w2, b2.reshape(1, N2))


# ----------------------------------------------------------------------------
# Wrapper-side layout prep (cheap XLA ops on small activations).
# ----------------------------------------------------------------------------
def _im2col_3x3_full(x_nhwc):
    # (B, H, W, Cin) -> (B, H, W, 9*Cin), feature order (kh, kw, cin).
    B, H, W, Cin = x_nhwc.shape
    xp = jnp.pad(x_nhwc, ((0, 0), (1, 1), (1, 1), (0, 0)))
    cols = [xp[:, kh:kh + H, kw:kw + W, :] for kh in range(3) for kw in range(3)]
    return jnp.concatenate(cols, axis=-1)


def _stack_kw_taps(x_nhwc):
    # (B, H, W, Cin) -> (B, H+2, W, 3*Cin), feature order (kw, cin).
    B, H, W, Cin = x_nhwc.shape
    xp = jnp.pad(x_nhwc, ((0, 0), (1, 1), (1, 1), (0, 0)))
    cols = [xp[:, :, kw:kw + W, :] for kw in range(3)]
    return jnp.concatenate(cols, axis=-1)


# ----------------------------------------------------------------------------
# Full Classifier forward pass (inference).
# ----------------------------------------------------------------------------
def classifier_forward(params, x_nchw):
    x = jnp.transpose(x_nchw, (0, 2, 3, 1))        # NCHW -> NHWC
    B = x.shape[0]
    block_b = min(B, 8)
    B_pad = -(-B // block_b) * block_b
    if B_pad != B:
        x = jnp.pad(x, ((0, B_pad - B), (0, 0), (0, 0), (0, 0)))

    c1in = x.shape[-1]
    # layer 1: full im2col in the wrapper -> one K=27 matmul per image in-kernel.
    x = conv_relu_pool(_im2col_3x3_full(x),
                       params["w1"].reshape(1, 9 * c1in, 32),
                       params["b1"], block_b)                       # (B,16,16, 32)
    # layers 2/3: kw taps stacked on channels -> 3 matmuls, K = 3*Cin.
    x = conv_relu_pool(_stack_kw_taps(x),
                       params["w2"].reshape(3, 3 * 32, 64),
                       params["b2"], block_b)                       # (B, 8, 8, 64)
    x = conv_relu_pool(_stack_kw_taps(x),
                       params["w3"].reshape(3, 3 * 64, 128),
                       params["b3"], block_b)                       # (B, 4, 4,128)

    # PyTorch flattens NCHW: (B,128,4,4) -> (B, 2048); tiny activation transpose.
    x = jnp.transpose(x, (0, 3, 1, 2)).reshape(B_pad, 128 * 4 * 4)
    # nn.Dropout(0.2) is identity at inference time.
    # TODO(synk): training-mode dropout (RNG masking) not implemented.
    out = mlp(x, params["wf1"], params["bf1"], params["wf2"], params["bf2"])
    return out[:B]


# Pure-JAX reference for validation.
def reference_forward(params, x_nchw):
    x = jnp.transpose(x_nchw, (0, 2, 3, 1))

    def conv(x, w, b):
        y = jax.lax.conv_general_dilated(
            x, w, window_strides=(1, 1), padding="SAME",
            dimension_numbers=("NHWC", "HWIO", "NHWC"))
        return jax.nn.relu(y + b)

    def pool(x):
        return jax.lax.reduce_window(
            x, -jnp.inf, jax.lax.max, (1, 2, 2, 1), (1, 2, 2, 1), "VALID")

    x = pool(conv(x, params["w1"], params["b1"]))
    x = pool(conv(x, params["w2"], params["b2"]))
    x = pool(conv(x, params["w3"], params["b3"]))
    x = jnp.transpose(x, (0, 3, 1, 2)).reshape(x.shape[0], -1)
    x = jax.nn.relu(x @ params["wf1"] + params["bf1"])
    return x @ params["wf2"] + params["bf2"]


def init_params(key):
    def uniform(k, shape, fan_in):
        bound = 1.0 / jnp.sqrt(float(fan_in))
        return jax.random.uniform(k, shape, jnp.float32, -bound, bound)

    ks = jax.random.split(key, 10)
    return {
        # conv weights in HWIO layout (3,3,Cin,Cout)
        "w1": uniform(ks[0], (3, 3, 3, 32), 3 * 9),
        "b1": uniform(ks[1], (32,), 3 * 9),
        "w2": uniform(ks[2], (3, 3, 32, 64), 32 * 9),
        "b2": uniform(ks[3], (64,), 32 * 9),
        "w3": uniform(ks[4], (3, 3, 64, 128), 64 * 9),
        "b3": uniform(ks[5], (128,), 64 * 9),
        "wf1": uniform(ks[6], (128 * 4 * 4, 512), 128 * 4 * 4),
        "bf1": uniform(ks[7], (512,), 128 * 4 * 4),
        "wf2": uniform(ks[8], (512, 5), 512),
        "bf2": uniform(ks[9], (5,), 512),
    }


if __name__ == "__main__":
    key = jax.random.PRNGKey(0)
    k_param, k_x = jax.random.split(key)
    params = init_params(k_param)
    # Spatial 32x32 is implied by fc1's 128*4*4 input after three 2x2 pools.
    x = jax.random.normal(k_x, (2, 3, 32, 32), jnp.float32)

    out = jax.block_until_ready(jax.jit(classifier_forward)(params, x))
    ref = jax.block_until_ready(jax.jit(reference_forward)(params, x))

    assert out.shape == (2, 5), out.shape
    max_err = jnp.max(jnp.abs(out - ref))
    # bf16 MXU operands (f32 accumulation) vs the pure-f32 reference.
    assert jnp.allclose(out, ref, rtol=5e-2, atol=5e-2), (
        f"mismatch: max abs err {max_err}")

    print("KERNEL_OK")
</pallas_src>

<mosaic_0001>
module attributes {stable_mosaic.version = 11 : i64} {
  func.func @_conv_relu_pool_kernel(%arg0: i32, %arg1: memref<2x32x32x27xf32, #tpu.memory_space<vmem>>, %arg2: memref<1x27x32xf32, #tpu.memory_space<vmem>>, %arg3: memref<1x32xf32, #tpu.memory_space<vmem>>, %arg4: memref<2x16x16x32xf32, #tpu.memory_space<vmem>>, %arg5: memref<16x32x32xf32, #tpu.memory_space<vmem>>) attributes {dimension_semantics = [#tpu.dimension_semantics<parallel>], iteration_bounds = array<i64: 1>, scalar_prefetch = 0 : i64, scratch_operands = 1 : i64, tpu.core_type = #tpu.core_type<tc>, window_params = [{transform_indices = @transform_0, window_bounds = array<i64: 2, 32, 32, 27>}, {pipeline_mode = #tpu.pipeline_mode<synchronous>, transform_indices = @transform_1, window_bounds = array<i64: 1, 27, 32>}, {pipeline_mode = #tpu.pipeline_mode<synchronous>, transform_indices = @transform_2, window_bounds = array<i64: 1, 32>}, {transform_indices = @transform_3, window_bounds = array<i64: 2, 16, 16, 32>}]} {
    %cst = arith.constant 0.000000e+00 : f32
    %0 = vector.broadcast %cst : f32 to vector<1024x32xf32>
    %c0 = arith.constant 0 : index
    %c0_0 = arith.constant 0 : index
    %c0_1 = arith.constant 0 : index
    %c0_2 = arith.constant 0 : index
    %1 = vector.load %arg1[%c0, %c0_0, %c0_1, %c0_2] : memref<2x32x32x27xf32, #tpu.memory_space<vmem>>, vector<1x32x32x27xf32>
    %2 = vector.shape_cast %1 : vector<1x32x32x27xf32> to vector<32x32x27xf32>
    %3 = vector.shape_cast %2 : vector<32x32x27xf32> to vector<1024x27xf32>
    %4 = arith.truncf %3 : vector<1024x27xf32> to vector<1024x27xbf16>
    %c0_3 = arith.constant 0 : index
    %c0_4 = arith.constant 0 : index
    %c0_5 = arith.constant 0 : index
    %5 = vector.load %arg2[%c0_3, %c0_4, %c0_5] : memref<1x27x32xf32, #tpu.memory_space<vmem>>, vector<1x27x32xf32>
    %6 = vector.shape_cast %5 : vector<1x27x32xf32> to vector<27x32xf32>
    %7 = arith.truncf %6 : vector<27x32xf32> to vector<27x32xbf16>
    %cst_6 = arith.constant dense<0.000000e+00> : vector<1024x32xf32>
    %8 = tpu.matmul %4, %7, %cst_6 {dimension_numbers = #tpu.dot_dimension_numbers<[1], [0], [0], [1], [0, 0, 1, 1], [], []>} : vector<1024x27xbf16>, vector<27x32xbf16>, vector<1024x32xf32> -> vector<1024x32xf32>
    %9 = arith.addf %0, %8 : vector<1024x32xf32>
    %c0_7 = arith.constant 0 : index
    %c0_8 = arith.constant 0 : index
    %10 = vector.load %arg3[%c0_7, %c0_8] : memref<1x32xf32, #tpu.memory_space<vmem>>, vector<1x32xf32>
    %11 = vector.broadcast %10 : vector<1x32xf32> to vector<1024x32xf32>
    %12 = arith.addf %9, %11 : vector<1024x32xf32>
    %cst_9 = arith.constant 0.000000e+00 : f32
    %13 = vector.broadcast %cst_9 : f32 to vector<1024x32xf32>
    %14 = arith.maximumf %12, %13 : vector<1024x32xf32>
    %15 = vector.shape_cast %14 : vector<1024x32xf32> to vector<16x2x32x32xf32>
    %16 = vector.extract_strided_slice %15 {offsets = [0, 0, 0, 0], sizes = [16, 1, 32, 32], strides = [1, 1, 1, 1]} : vector<16x2x32x32xf32> to vector<16x1x32x32xf32>
    %17 = vector.shape_cast %16 : vector<16x1x32x32xf32> to vector<16x32x32xf32>
    %18 = vector.extract_strided_slice %15 {offsets = [0, 1, 0, 0], sizes = [16, 1, 32, 32], strides = [1, 1, 1, 1]} : vector<16x2x32x32xf32> to vector<16x1x32x32xf32>
    %19 = vector.shape_cast %18 : vector<16x1x32x32xf32> to vector<16x32x32xf32>
    %20 = arith.maximumf %17, %19 : vector<16x32x32xf32>
    %c0_10 = arith.constant 0 : index
    %c0_11 = arith.constant 0 : index
    %c0_12 = arith.constant 0 : index
    %21 = vector.load %arg5[%c0_10, %c0_11, %c0_12] : memref<16x32x32xf32, #tpu.memory_space<vmem>>, vector<16x32x32xf32>
    tpu.vector_store %arg5[%c0_10, %c0_11, %c0_12], %20 {strides = array<i32>} : memref<16x32x32xf32, #tpu.memory_space<vmem>>, vector<16x32x32xf32>,
    %c0_13 = arith.constant 0 : index
    %c0_14 = arith.constant 0 : index
    %c0_15 = arith.constant 0 : index
    %22 = tpu.strided_load %arg5[%c0_13, %c0_14, %c0_15] {strides = array<i32: 1, 2, 1>} : memref<16x32x32xf32, #tpu.memory_space<vmem>>, vector<16x16x32xf32>
    %c0_16 = arith.constant 0 : index
    %c1 = arith.constant 1 : index
    %c0_17 = arith.constant 0 : index
    %23 = tpu.strided_load %arg5[%c0_16, %c1, %c0_17] {strides = array<i32: 1, 2, 1>} : memref<16x32x32xf32, #tpu.memory_space<vmem>>, vector<16x16x32xf32>
    %24 = arith.maximumf %22, %23 : vector<16x16x32xf32>
    %c0_18 = arith.constant 0 : index
    %c0_19 = arith.constant 0 : index
    %c0_20 = arith.constant 0 : index
    %c0_21 = arith.constant 0 : index
    %25 = vector.load %arg4[%c0_18, %c0_19, %c0_20, %c0_21] : memref<2x16x16x32xf32, #tpu.memory_space<vmem>>, vector<1x16x16x32xf32>
    %26 = vector.shape_cast %25 : vector<1x16x16x32xf32> to vector<16x16x32xf32>
    %27 = vector.shape_cast %24 : vector<16x16x32xf32> to vector<1x16x16x32xf32>
    tpu.vector_store %arg4[%c0_18, %c0_19, %c0_20, %c0_21], %27 {strides = array<i32>} : memref<2x16x16x32xf32, #tpu.memory_space<vmem>>, vector<1x16x16x32xf32>,
    %cst_22 = arith.constant 0.000000e+00 : f32
    %28 = vector.broadcast %cst_22 : f32 to vector<1024x32xf32>
    %c1_23 = arith.constant 1 : index
    %c0_24 = arith.constant 0 : index
    %c0_25 = arith.constant 0 : index
    %c0_26 = arith.constant 0 : index
    %29 = vector.load %arg1[%c1_23, %c0_24, %c0_25, %c0_26] : memref<2x32x32x27xf32, #tpu.memory_space<vmem>>, vector<1x32x32x27xf32>
    %30 = vector.shape_cast %29 : vector<1x32x32x27xf32> to vector<32x32x27xf32>
    %31 = vector.shape_cast %30 : vector<32x32x27xf32> to vector<1024x27xf32>
    %32 = arith.truncf %31 : vector<1024x27xf32> to vector<1024x27xbf16>
    %c0_27 = arith.constant 0 : index
    %c0_28 = arith.constant 0 : index
    %c0_29 = arith.constant 0 : index
    %33 = vector.load %arg2[%c0_27, %c0_28, %c0_29] : memref<1x27x32xf32, #tpu.memory_space<vmem>>, vector<1x27x32xf32>
    %34 = vector.shape_cast %33 : vector<1x27x32xf32> to vector<27x32xf32>
    %35 = arith.truncf %34 : vector<27x32xf32> to vector<27x32xbf16>
    %cst_30 = arith.constant dense<0.000000e+00> : vector<1024x32xf32>
    %36 = tpu.matmul %32, %35, %cst_30 {dimension_numbers = #tpu.dot_dimension_numbers<[1], [0], [0], [1], [0, 0, 1, 1], [], []>} : vector<1024x27xbf16>, vector<27x32xbf16>, vector<1024x32xf32> -> vector<1024x32xf32>
    %37 = arith.addf %28, %36 : vector<1024x32xf32>
    %c0_31 = arith.constant 0 : index
    %c0_32 = arith.constant 0 : index
    %38 = vector.load %arg3[%c0_31, %c0_32] : memref<1x32xf32, #tpu.memory_space<vmem>>, vector<1x32xf32>
    %39 = vector.broadcast %38 : vector<1x32xf32> to vector<1024x32xf32>
    %40 = arith.addf %37, %39 : vector<1024x32xf32>
    %cst_33 = arith.constant 0.000000e+00 : f32
    %41 = vector.broadcast %cst_33 : f32 to vector<1024x32xf32>
    %42 = arith.maximumf %40, %41 : vector<1024x32xf32>
    %43 = vector.shape_cast %42 : vector<1024x32xf32> to vector<16x2x32x32xf32>
    %44 = vector.extract_strided_slice %43 {offsets = [0, 0, 0, 0], sizes = [16, 1, 32, 32], strides = [1, 1, 1, 1]} : vector<16x2x32x32xf32> to vector<16x1x32x32xf32>
    %45 = vector.shape_cast %44 : vector<16x1x32x32xf32> to vector<16x32x32xf32>
    %46 = vector.extract_strided_slice %43 {offsets = [0, 1, 0, 0], sizes = [16, 1, 32, 32], strides = [1, 1, 1, 1]} : vector<16x2x32x32xf32> to vector<16x1x32x32xf32>
    %47 = vector.shape_cast %46 : vector<16x1x32x32xf32> to vector<16x32x32xf32>
    %48 = arith.maximumf %45, %47 : vector<16x32x32xf32>
    %c0_34 = arith.constant 0 : index
    %c0_35 = arith.constant 0 : index
    %c0_36 = arith.constant 0 : index
    %49 = vector.load %arg5[%c0_34, %c0_35, %c0_36] : memref<16x32x32xf32, #tpu.memory_space<vmem>>, vector<16x32x32xf32>
    tpu.vector_store %arg5[%c0_34, %c0_35, %c0_36], %48 {strides = array<i32>} : memref<16x32x32xf32, #tpu.memory_space<vmem>>, vector<16x32x32xf32>,
    %c0_37 = arith.constant 0 : index
    %c0_38 = arith.constant 0 : index
    %c0_39 = arith.constant 0 : index
    %50 = tpu.strided_load %arg5[%c0_37, %c0_38, %c0_39] {strides = array<i32: 1, 2, 1>} : memref<16x32x32xf32, #tpu.memory_space<vmem>>, vector<16x16x32xf32>
    %c0_40 = arith.constant 0 : index
    %c1_41 = arith.constant 1 : index
    %c0_42 = arith.constant 0 : index
    %51 = tpu.strided_load %arg5[%c0_40, %c1_41, %c0_42] {strides = array<i32: 1, 2, 1>} : memref<16x32x32xf32, #tpu.memory_space<vmem>>, vector<16x16x32xf32>
    %52 = arith.maximumf %50, %51 : vector<16x16x32xf32>
    %c1_43 = arith.constant 1 : index
    %c0_44 = arith.constant 0 : index
    %c0_45 = arith.constant 0 : index
    %c0_46 = arith.constant 0 : index
    %53 = vector.load %arg4[%c1_43, %c0_44, %c0_45, %c0_46] : memref<2x16x16x32xf32, #tpu.memory_space<vmem>>, vector<1x16x16x32xf32>
    %54 = vector.shape_cast %53 : vector<1x16x16x32xf32> to vector<16x16x32xf32>
    %55 = vector.shape_cast %52 : vector<16x16x32xf32> to vector<1x16x16x32xf32>
    tpu.vector_store %arg4[%c1_43, %c0_44, %c0_45, %c0_46], %55 {strides = array<i32>} : memref<2x16x16x32xf32, #tpu.memory_space<vmem>>, vector<1x16x16x32xf32>,
    return
  }
  func.func @transform_0(%arg0: i32) -> (i32, i32, i32, i32) {
    %c0_i32 = arith.constant 0 : i32
    %c0_i32_0 = arith.constant 0 : i32
    %c0_i32_1 = arith.constant 0 : i32
    %c0_i32_2 = arith.constant 0 : i32
    return %arg0, %c0_i32, %c0_i32_0, %c0_i32_1 : i32, i32, i32, i32
  }
  func.func @transform_1(%arg0: i32) -> (i32, i32, i32) {
    %c0_i32 = arith.constant 0 : i32
    %c0_i32_0 = arith.constant 0 : i32
    %c0_i32_1 = arith.constant 0 : i32
    %c0_i32_2 = arith.constant 0 : i32
    return %c0_i32, %c0_i32_0, %c0_i32_1 : i32, i32, i32
  }
  func.func @transform_2(%arg0: i32) -> (i32, i32) {
    %c0_i32 = arith.constant 0 : i32
    %c0_i32_0 = arith.constant 0 : i32
    %c0_i32_1 = arith.constant 0 : i32
    return %c0_i32, %c0_i32_0 : i32, i32
  }
  func.func @transform_3(%arg0: i32) -> (i32, i32, i32, i32) {
    %c0_i32 = arith.constant 0 : i32
    %c0_i32_0 = arith.constant 0 : i32
    %c0_i32_1 = arith.constant 0 : i32
    %c0_i32_2 = arith.constant 0 : i32
    return %arg0, %c0_i32, %c0_i32_0, %c0_i32_1 : i32, i32, i32, i32
  }
}

module attributes {stable_mosaic.version = 11 : i64} {
  func.func @_conv_relu_pool_kernel(%arg0: i32, %arg1: memref<2x18x16x96xf32, #tpu.memory_space<vmem>>, %arg2: memref<3x96x64xf32, #tpu.memory_space<vmem>>, %arg3: memref<1x64xf32, #tpu.memory_space<vmem>>, %arg4: memref<2x8x8x64xf32, #tpu.memory_space<vmem>>, %arg5: memref<8x16x64xf32, #tpu.memory_space<vmem>>) attributes {dimension_semantics = [#tpu.dimension_semantics<parallel>], iteration_bounds = array<i64: 1>, scalar_prefetch = 0 : i64, scratch_operands = 1 : i64, tpu.core_type = #tpu.core_type<tc>, window_params = [{transform_indices = @transform_0, window_bounds = array<i64: 2, 18, 16, 96>}, {pipeline_mode = #tpu.pipeline_mode<synchronous>, transform_indices = @transform_1, window_bounds = array<i64: 3, 96, 64>}, {pipeline_mode = #tpu.pipeline_mode<synchronous>, transform_indices = @transform_2, window_bounds = array<i64: 1, 64>}, {transform_indices = @transform_3, window_bounds = array<i64: 2, 8, 8, 64>}]} {
    %cst = arith.constant 0.000000e+00 : f32
    %0 = vector.broadcast %cst : f32 to vector<256x64xf32>
    %c0 = arith.constant 0 : index
    %c0_0 = arith.constant 0 : index
    %c0_1 = arith.constant 0 : index
    %c0_2 = arith.constant 0 : index
    %1 = vector.load %arg1[%c0, %c0_0, %c0_1, %c0_2] : memref<2x18x16x96xf32, #tpu.memory_space<vmem>>, vector<1x16x16x96xf32>
    %2 = vector.shape_cast %1 : vector<1x16x16x96xf32> to vector<16x16x96xf32>
    %3 = vector.shape_cast %2 : vector<16x16x96xf32> to vector<256x96xf32>
    %4 = arith.truncf %3 : vector<256x96xf32> to vector<256x96xbf16>
    %c0_3 = arith.constant 0 : index
    %c0_4 = arith.constant 0 : index
    %c0_5 = arith.constant 0 : index
    %5 = vector.load %arg2[%c0_3, %c0_4, %c0_5] : memref<3x96x64xf32, #tpu.memory_space<vmem>>, vector<1x96x64xf32>
    %6 = vector.shape_cast %5 : vector<1x96x64xf32> to vector<96x64xf32>
    %7 = arith.truncf %6 : vector<96x64xf32> to vector<96x64xbf16>
    %cst_6 = arith.constant dense<0.000000e+00> : vector<256x64xf32>
    %8 = tpu.matmul %4, %7, %cst_6 {dimension_numbers = #tpu.dot_dimension_numbers<[1], [0], [0], [1], [0, 0, 1, 1], [], []>} : vector<256x96xbf16>, vector<96x64xbf16>, vector<256x64xf32> -> vector<256x64xf32>
    %9 = arith.addf %0, %8 : vector<256x64xf32>
    %c0_7 = arith.constant 0 : index
    %c1 = arith.constant 1 : index
    %c0_8 = arith.constant 0 : index
    %c0_9 = arith.constant 0 : index
    %10 = vector.load %arg1[%c0_7, %c1, %c0_8, %c0_9] : memref<2x18x16x96xf32, #tpu.memory_space<vmem>>, vector<1x16x16x96xf32>
    %11 = vector.shape_cast %10 : vector<1x16x16x96xf32> to vector<16x16x96xf32>
    %12 = vector.shape_cast %11 : vector<16x16x96xf32> to vector<256x96xf32>
    %13 = arith.truncf %12 : vector<256x96xf32> to vector<256x96xbf16>
    %c1_10 = arith.constant 1 : index
    %c0_11 = arith.constant 0 : index
    %c0_12 = arith.constant 0 : index
    %14 = vector.load %arg2[%c1_10, %c0_11, %c0_12] : memref<3x96x64xf32, #tpu.memory_space<vmem>>, vector<1x96x64xf32>
    %15 = vector.shape_cast %14 : vector<1x96x64xf32> to vector<96x64xf32>
    %16 = arith.truncf %15 : vector<96x64xf32> to vector<96x64xbf16>
    %cst_13 = arith.constant dense<0.000000e+00> : vector<256x64xf32>
    %17 = tpu.matmul %13, %16, %cst_13 {dimension_numbers = #tpu.dot_dimension_numbers<[1], [0], [0], [1], [0, 0, 1, 1], [], []>} : vector<256x96xbf16>, vector<96x64xbf16>, vector<256x64xf32> -> vector<256x64xf32>
    %18 = arith.addf %9, %17 : vector<256x64xf32>
    %c0_14 = arith.constant 0 : index
    %c2 = arith.constant 2 : index
    %c0_15 = arith.constant 0 : index
    %c0_16 = arith.constant 0 : index
    %19 = vector.load %arg1[%c0_14, %c2, %c0_15, %c0_16] : memref<2x18x16x96xf32, #tpu.memory_space<vmem>>, vector<1x16x16x96xf32>
    %20 = vector.shape_cast %19 : vector<1x16x16x96xf32> to vector<16x16x96xf32>
    %21 = vector.shape_cast %20 : vector<16x16x96xf32> to vector<256x96xf32>
    %22 = arith.truncf %21 : vector<256x96xf32> to vector<256x96xbf16>
    %c2_17 = arith.constant 2 : index
    %c0_18 = arith.constant 0 : index
    %c0_19 = arith.constant 0 : index
    %23 = vector.load %arg2[%c2_17, %c0_18, %c0_19] : memref<3x96x64xf32, #tpu.memory_space<vmem>>, vector<1x96x64xf32>
    %24 = vector.shape_cast %23 : vector<1x96x64xf32> to vector<96x64xf32>
    %25 = arith.truncf %24 : vector<96x64xf32> to vector<96x64xbf16>
    %cst_20 = arith.constant dense<0.000000e+00> : vector<256x64xf32>
    %26 = tpu.matmul %22, %25, %cst_20 {dimension_numbers = #tpu.dot_dimension_numbers<[1], [0], [0], [1], [0, 0, 1, 1], [], []>} : vector<256x96xbf16>, vector<96x64xbf16>, vector<256x64xf32> -> vector<256x64xf32>
    %27 = arith.addf %18, %26 : vector<256x64xf32>
    %c0_21 = arith.constant 0 : index
    %c0_22 = arith.constant 0 : index
    %28 = vector.load %arg3[%c0_21, %c0_22] : memref<1x64xf32, #tpu.memory_space<vmem>>, vector<1x64xf32>
    %29 = vector.broadcast %28 : vector<1x64xf32> to vector<256x64xf32>
    %30 = arith.addf %27, %29 : vector<256x64xf32>
    %cst_23 = arith.constant 0.000000e+00 : f32
    %31 = vector.broadcast %cst_23 : f32 to vector<256x64xf32>
    %32 = arith.maximumf %30, %31 : vector<256x64xf32>
    %33 = vector.shape_cast %32 : vector<256x64xf32> to vector<8x2x16x64xf32>
    %34 = vector.extract_strided_slice %33 {offsets = [0, 0, 0, 0], sizes = [8, 1, 16, 64], strides = [1, 1, 1, 1]} : vector<8x2x16x64xf32> to vector<8x1x16x64xf32>
    %35 = vector.shape_cast %34 : vector<8x1x16x64xf32> to vector<8x16x64xf32>
    %36 = vector.extract_strided_slice %33 {offsets = [0, 1, 0, 0], sizes = [8, 1, 16, 64], strides = [1, 1, 1, 1]} : vector<8x2x16x64xf32> to vector<8x1x16x64xf32>
    %37 = vector.shape_cast %36 : vector<8x1x16x64xf32> to vector<8x16x64xf32>
    %38 = arith.maximumf %35, %37 : vector<8x16x64xf32>
    %c0_24 = arith.constant 0 : index
    %c0_25 = arith.constant 0 : index
    %c0_26 = arith.constant 0 : index
    %39 = vector.load %arg5[%c0_24, %c0_25, %c0_26] : memref<8x16x64xf32, #tpu.memory_space<vmem>>, vector<8x16x64xf32>
    tpu.vector_store %arg5[%c0_24, %c0_25, %c0_26], %38 {strides = array<i32>} : memref<8x16x64xf32, #tpu.memory_space<vmem>>, vector<8x16x64xf32>,
    %c0_27 = arith.constant 0 : index
    %c0_28 = arith.constant 0 : index
    %c0_29 = arith.constant 0 : index
    %40 = tpu.strided_load %arg5[%c0_27, %c0_28, %c0_29] {strides = array<i32: 1, 2, 1>} : memref<8x16x64xf32, #tpu.memory_space<vmem>>, vector<8x8x64xf32>
    %c0_30 = arith.constant 0 : index
    %c1_31 = arith.constant 1 : index
    %c0_32 = arith.constant 0 : index
    %41 = tpu.strided_load %arg5[%c0_30, %c1_31, %c0_32] {strides = array<i32: 1, 2, 1>} : memref<8x16x64xf32, #tpu.memory_space<vmem>>, vector<8x8x64xf32>
    %42 = arith.maximumf %40, %41 : vector<8x8x64xf32>
    %c0_33 = arith.constant 0 : index
    %c0_34 = arith.constant 0 : index
    %c0_35 = arith.constant 0 : index
    %c0_36 = arith.constant 0 : index
    %43 = vector.load %arg4[%c0_33, %c0_34, %c0_35, %c0_36] : memref<2x8x8x64xf32, #tpu.memory_space<vmem>>, vector<1x8x8x64xf32>
    %44 = vector.shape_cast %43 : vector<1x8x8x64xf32> to vector<8x8x64xf32>
    %45 = vector.shape_cast %42 : vector<8x8x64xf32> to vector<1x8x8x64xf32>
    tpu.vector_store %arg4[%c0_33, %c0_34, %c0_35, %c0_36], %45 {strides = array<i32>} : memref<2x8x8x64xf32, #tpu.memory_space<vmem>>, vector<1x8x8x64xf32>,
    %cst_37 = arith.constant 0.000000e+00 : f32
    %46 = vector.broadcast %cst_37 : f32 to vector<256x64xf32>
    %c1_38 = arith.constant 1 : index
    %c0_39 = arith.constant 0 : index
    %c0_40 = arith.constant 0 : index
    %c0_41 = arith.constant 0 : index
    %47 = vector.load %arg1[%c1_38, %c0_39, %c0_40, %c0_41] : memref<2x18x16x96xf32, #tpu.memory_space<vmem>>, vector<1x16x16x96xf32>
    %48 = vector.shape_cast %47 : vector<1x16x16x96xf32> to vector<16x16x96xf32>
    %49 = vector.shape_cast %48 : vector<16x16x96xf32> to vector<256x96xf32>
    %50 = arith.truncf %49 : vector<256x96xf32> to vector<256x96xbf16>
    %c0_42 = arith.constant 0 : index
    %c0_43 = arith.constant 0 : index
    %c0_44 = arith.constant 0 : index
    %51 = vector.load %arg2[%c0_42, %c0_43, %c0_44] : memref<3x96x64xf32, #tpu.memory_space<vmem>>, vector<1x96x64xf32>
    %52 = vector.shape_cast %51 : vector<1x96x64xf32> to vector<96x64xf32>
    %53 = arith.truncf %52 : vector<96x64xf32> to vector<96x64xbf16>
    %cst_45 = arith.constant dense<0.000000e+00> : vector<256x64xf32>
    %54 = tpu.matmul %50, %53, %cst_45 {dimension_numbers = #tpu.dot_dimension_numbers<[1], [0], [0], [1], [0, 0, 1, 1], [], []>} : vector<256x96xbf16>, vector<96x64xbf16>, vector<256x64xf32> -> vector<256x64xf32>
    %55 = arith.addf %46, %54 : vector<256x64xf32>
    %c1_46 = arith.constant 1 : index
    %c1_47 = arith.constant 1 : index
    %c0_48 = arith.constant 0 : index
    %c0_49 = arith.constant 0 : index
    %56 = vector.load %arg1[%c1_46, %c1_47, %c0_48, %c0_49] : memref<2x18x16x96xf32, #tpu.memory_space<vmem>>, vector<1x16x16x96xf32>
    %57 = vector.shape_cast %56 : vector<1x16x16x96xf32> to vector<16x16x96xf32>
    %58 = vector.shape_cast %57 : vector<16x16x96xf32> to vector<256x96xf32>
    %59 = arith.truncf %58 : vector<256x96xf32> to vector<256x96xbf16>
    %c1_50 = arith.constant 1 : index
    %c0_51 = arith.constant 0 : index
    %c0_52 = arith.constant 0 : index
    %60 = vector.load %arg2[%c1_50, %c0_51, %c0_52] : memref<3x96x64xf32, #tpu.memory_space<vmem>>, vector<1x96x64xf32>
    %61 = vector.shape_cast %60 : vector<1x96x64xf32> to vector<96x64xf32>
    %62 = arith.truncf %61 : vector<96x64xf32> to vector<96x64xbf16>
    %cst_53 = arith.constant dense<0.000000e+00> : vector<256x64xf32>
    %63 = tpu.matmul %59, %62, %cst_53 {dimension_numbers = #tpu.dot_dimension_numbers<[1], [0], [0], [1], [0, 0, 1, 1], [], []>} : vector<256x96xbf16>, vector<96x64xbf16>, vector<256x64xf32> -> vector<256x64xf32>
    %64 = arith.addf %55, %63 : vector<256x64xf32>
    %c1_54 = arith.constant 1 : index
    %c2_55 = arith.constant 2 : index
    %c0_56 = arith.constant 0 : index
    %c0_57 = arith.constant 0 : index
    %65 = vector.load %arg1[%c1_54, %c2_55, %c0_56, %c0_57] : memref<2x18x16x96xf32, #tpu.memory_space<vmem>>, vector<1x16x16x96xf32>
    %66 = vector.shape_cast %65 : vector<1x16x16x96xf32> to vector<16x16x96xf32>
    %67 = vector.shape_cast %66 : vector<16x16x96xf32> to vector<256x96xf32>
    %68 = arith.truncf %67 : vector<256x96xf32> to vector<256x96xbf16>
    %c2_58 = arith.constant 2 : index
    %c0_59 = arith.constant 0 : index
    %c0_60 = arith.constant 0 : index
    %69 = vector.load %arg2[%c2_58, %c0_59, %c0_60] : memref<3x96x64xf32, #tpu.memory_space<vmem>>, vector<1x96x64xf32>
    %70 = vector.shape_cast %69 : vector<1x96x64xf32> to vector<96x64xf32>
    %71 = arith.truncf %70 : vector<96x64xf32> to vector<96x64xbf16>
    %cst_61 = arith.constant dense<0.000000e+00> : vector<256x64xf32>
    %72 = tpu.matmul %68, %71, %cst_61 {dimension_numbers = #tpu.dot_dimension_numbers<[1], [0], [0], [1], [0, 0, 1, 1], [], []>} : vector<256x96xbf16>, vector<96x64xbf16>, vector<256x64xf32> -> vector<256x64xf32>
    %73 = arith.addf %64, %72 : vector<256x64xf32>
    %c0_62 = arith.constant 0 : index
    %c0_63 = arith.constant 0 : index
    %74 = vector.load %arg3[%c0_62, %c0_63] : memref<1x64xf32, #tpu.memory_space<vmem>>, vector<1x64xf32>
    %75 = vector.broadcast %74 : vector<1x64xf32> to vector<256x64xf32>
    %76 = arith.addf %73, %75 : vector<256x64xf32>
    %cst_64 = arith.constant 0.000000e+00 : f32
    %77 = vector.broadcast %cst_64 : f32 to vector<256x64xf32>
    %78 = arith.maximumf %76, %77 : vector<256x64xf32>
    %79 = vector.shape_cast %78 : vector<256x64xf32> to vector<8x2x16x64xf32>
    %80 = vector.extract_strided_slice %79 {offsets = [0, 0, 0, 0], sizes = [8, 1, 16, 64], strides = [1, 1, 1, 1]} : vector<8x2x16x64xf32> to vector<8x1x16x64xf32>
    %81 = vector.shape_cast %80 : vector<8x1x16x64xf32> to vector<8x16x64xf32>
    %82 = vector.extract_strided_slice %79 {offsets = [0, 1, 0, 0], sizes = [8, 1, 16, 64], strides = [1, 1, 1, 1]} : vector<8x2x16x64xf32> to vector<8x1x16x64xf32>
    %83 = vector.shape_cast %82 : vector<8x1x16x64xf32> to vector<8x16x64xf32>
    %84 = arith.maximumf %81, %83 : vector<8x16x64xf32>
    %c0_65 = arith.constant 0 : index
    %c0_66 = arith.constant 0 : index
    %c0_67 = arith.constant 0 : index
    %85 = vector.load %arg5[%c0_65, %c0_66, %c0_67] : memref<8x16x64xf32, #tpu.memory_space<vmem>>, vector<8x16x64xf32>
    tpu.vector_store %arg5[%c0_65, %c0_66, %c0_67], %84 {strides = array<i32>} : memref<8x16x64xf32, #tpu.memory_space<vmem>>, vector<8x16x64xf32>,
    %c0_68 = arith.constant 0 : index
    %c0_69 = arith.constant 0 : index
    %c0_70 = arith.constant 0 : index
    %86 = tpu.strided_load %arg5[%c0_68, %c0_69, %c0_70] {strides = array<i32: 1, 2, 1>} : memref<8x16x64xf32, #tpu.memory_space<vmem>>, vector<8x8x64xf32>
    %c0_71 = arith.constant 0 : index
    %c1_72 = arith.constant 1 : index
    %c0_73 = arith.constant 0 : index
    %87 = tpu.strided_load %arg5[%c0_71, %c1_72, %c0_73] {strides = array<i32: 1, 2, 1>} : memref<8x16x64xf32, #tpu.memory_space<vmem>>, vector<8x8x64xf32>
    %88 = arith.maximumf %86, %87 : vector<8x8x64xf32>
    %c1_74 = arith.constant 1 : index
    %c0_75 = arith.constant 0 : index
    %c0_76 = arith.constant 0 : index
    %c0_77 = arith.constant 0 : index
    %89 = vector.load %arg4[%c1_74, %c0_75, %c0_76, %c0_77] : memref<2x8x8x64xf32, #tpu.memory_space<vmem>>, vector<1x8x8x64xf32>
    %90 = vector.shape_cast %89 : vector<1x8x8x64xf32> to vector<8x8x64xf32>
    %91 = vector.shape_cast %88 : vector<8x8x64xf32> to vector<1x8x8x64xf32>
    tpu.vector_store %arg4[%c1_74, %c0_75, %c0_76, %c0_77], %91 {strides = array<i32>} : memref<2x8x8x64xf32, #tpu.memory_space<vmem>>, vector<1x8x8x64xf32>,
    return
  }
  func.func @transform_0(%arg0: i32) -> (i32, i32, i32, i32) {
    %c0_i32 = arith.constant 0 : i32
    %c0_i32_0 = arith.constant 0 : i32
    %c0_i32_1 = arith.constant 0 : i32
    %c0_i32_2 = arith.constant 0 : i32
    return %arg0, %c0_i32, %c0_i32_0, %c0_i32_1 : i32, i32, i32, i32
  }
  func.func @transform_1(%arg0: i32) -> (i32, i32, i32) {
    %c0_i32 = arith.constant 0 : i32
    %c0_i32_0 = arith.constant 0 : i32
    %c0_i32_1 = arith.constant 0 : i32
    %c0_i32_2 = arith.constant 0 : i32
    return %c0_i32, %c0_i32_0, %c0_i32_1 : i32, i32, i32
  }
  func.func @transform_2(%arg0: i32) -> (i32, i32) {
    %c0_i32 = arith.constant 0 : i32
    %c0_i32_0 = arith.constant 0 : i32
    %c0_i32_1 = arith.constant 0 : i32
    return %c0_i32, %c0_i32_0 : i32, i32
  }
  func.func @transform_3(%arg0: i32) -> (i32, i32, i32, i32) {
    %c0_i32 = arith.constant 0 : i32
    %c0_i32_0 = arith.constant 0 : i32
    %c0_i32_1 = arith.constant 0 : i32
    %c0_i32_2 = arith.constant 0 : i32
    return %arg0, %c0_i32, %c0_i32_0, %c0_i32_1 : i32, i32, i32, i32
  }
}

module attributes {stable_mosaic.version = 11 : i64} {
  func.func @_conv_relu_pool_kernel(%arg0: i32, %arg1: memref<2x10x8x192xf32, #tpu.memory_space<vmem>>, %arg2: memref<3x192x128xf32, #tpu.memory_space<vmem>>, %arg3: memref<1x128xf32, #tpu.memory_space<vmem>>, %arg4: memref<2x4x4x128xf32, #tpu.memory_space<vmem>>, %arg5: memref<4x8x128xf32, #tpu.memory_space<vmem>>) attributes {dimension_semantics = [#tpu.dimension_semantics<parallel>], iteration_bounds = array<i64: 1>, scalar_prefetch = 0 : i64, scratch_operands = 1 : i64, tpu.core_type = #tpu.core_type<tc>, window_params = [{transform_indices = @transform_0, window_bounds = array<i64: 2, 10, 8, 192>}, {pipeline_mode = #tpu.pipeline_mode<synchronous>, transform_indices = @transform_1, window_bounds = array<i64: 3, 192, 128>}, {pipeline_mode = #tpu.pipeline_mode<synchronous>, transform_indices = @transform_2, window_bounds = array<i64: 1, 128>}, {transform_indices = @transform_3, window_bounds = array<i64: 2, 4, 4, 128>}]} {
    %cst = arith.constant 0.000000e+00 : f32
    %0 = vector.broadcast %cst : f32 to vector<64x128xf32>
    %c0 = arith.constant 0 : index
    %c0_0 = arith.constant 0 : index
    %c0_1 = arith.constant 0 : index
    %c0_2 = arith.constant 0 : index
    %1 = vector.load %arg1[%c0, %c0_0, %c0_1, %c0_2] : memref<2x10x8x192xf32, #tpu.memory_space<vmem>>, vector<1x8x8x192xf32>
    %2 = vector.shape_cast %1 : vector<1x8x8x192xf32> to vector<8x8x192xf32>
    %3 = vector.shape_cast %2 : vector<8x8x192xf32> to vector<64x192xf32>
    %4 = arith.truncf %3 : vector<64x192xf32> to vector<64x192xbf16>
    %c0_3 = arith.constant 0 : index
    %c0_4 = arith.constant 0 : index
    %c0_5 = arith.constant 0 : index
    %5 = vector.load %arg2[%c0_3, %c0_4, %c0_5] : memref<3x192x128xf32, #tpu.memory_space<vmem>>, vector<1x192x128xf32>
    %6 = vector.shape_cast %5 : vector<1x192x128xf32> to vector<192x128xf32>
    %7 = arith.truncf %6 : vector<192x128xf32> to vector<192x128xbf16>
    %cst_6 = arith.constant dense<0.000000e+00> : vector<64x128xf32>
    %8 = tpu.matmul %4, %7, %cst_6 {dimension_numbers = #tpu.dot_dimension_numbers<[1], [0], [0], [1], [0, 0, 1, 1], [], []>} : vector<64x192xbf16>, vector<192x128xbf16>, vector<64x128xf32> -> vector<64x128xf32>
    %9 = arith.addf %0, %8 : vector<64x128xf32>
    %c0_7 = arith.constant 0 : index
    %c1 = arith.constant 1 : index
    %c0_8 = arith.constant 0 : index
    %c0_9 = arith.constant 0 : index
    %10 = vector.load %arg1[%c0_7, %c1, %c0_8, %c0_9] : memref<2x10x8x192xf32, #tpu.memory_space<vmem>>, vector<1x8x8x192xf32>
    %11 = vector.shape_cast %10 : vector<1x8x8x192xf32> to vector<8x8x192xf32>
    %12 = vector.shape_cast %11 : vector<8x8x192xf32> to vector<64x192xf32>
    %13 = arith.truncf %12 : vector<64x192xf32> to vector<64x192xbf16>
    %c1_10 = arith.constant 1 : index
    %c0_11 = arith.constant 0 : index
    %c0_12 = arith.constant 0 : index
    %14 = vector.load %arg2[%c1_10, %c0_11, %c0_12] : memref<3x192x128xf32, #tpu.memory_space<vmem>>, vector<1x192x128xf32>
    %15 = vector.shape_cast %14 : vector<1x192x128xf32> to vector<192x128xf32>
    %16 = arith.truncf %15 : vector<192x128xf32> to vector<192x128xbf16>
    %cst_13 = arith.constant dense<0.000000e+00> : vector<64x128xf32>
    %17 = tpu.matmul %13, %16, %cst_13 {dimension_numbers = #tpu.dot_dimension_numbers<[1], [0], [0], [1], [0, 0, 1, 1], [], []>} : vector<64x192xbf16>, vector<192x128xbf16>, vector<64x128xf32> -> vector<64x128xf32>
    %18 = arith.addf %9, %17 : vector<64x128xf32>
    %c0_14 = arith.constant 0 : index
    %c2 = arith.constant 2 : index
    %c0_15 = arith.constant 0 : index
    %c0_16 = arith.constant 0 : index
    %19 = vector.load %arg1[%c0_14, %c2, %c0_15, %c0_16] : memref<2x10x8x192xf32, #tpu.memory_space<vmem>>, vector<1x8x8x192xf32>
    %20 = vector.shape_cast %19 : vector<1x8x8x192xf32> to vector<8x8x192xf32>
    %21 = vector.shape_cast %20 : vector<8x8x192xf32> to vector<64x192xf32>
    %22 = arith.truncf %21 : vector<64x192xf32> to vector<64x192xbf16>
    %c2_17 = arith.constant 2 : index
    %c0_18 = arith.constant 0 : index
    %c0_19 = arith.constant 0 : index
    %23 = vector.load %arg2[%c2_17, %c0_18, %c0_19] : memref<3x192x128xf32, #tpu.memory_space<vmem>>, vector<1x192x128xf32>
    %24 = vector.shape_cast %23 : vector<1x192x128xf32> to vector<192x128xf32>
    %25 = arith.truncf %24 : vector<192x128xf32> to vector<192x128xbf16>
    %cst_20 = arith.constant dense<0.000000e+00> : vector<64x128xf32>
    %26 = tpu.matmul %22, %25, %cst_20 {dimension_numbers = #tpu.dot_dimension_numbers<[1], [0], [0], [1], [0, 0, 1, 1], [], []>} : vector<64x192xbf16>, vector<192x128xbf16>, vector<64x128xf32> -> vector<64x128xf32>
    %27 = arith.addf %18, %26 : vector<64x128xf32>
    %c0_21 = arith.constant 0 : index
    %c0_22 = arith.constant 0 : index
    %28 = vector.load %arg3[%c0_21, %c0_22] : memref<1x128xf32, #tpu.memory_space<vmem>>, vector<1x128xf32>
    %29 = vector.broadcast %28 : vector<1x128xf32> to vector<64x128xf32>
    %30 = arith.addf %27, %29 : vector<64x128xf32>
    %cst_23 = arith.constant 0.000000e+00 : f32
    %31 = vector.broadcast %cst_23 : f32 to vector<64x128xf32>
    %32 = arith.maximumf %30, %31 : vector<64x128xf32>
    %33 = vector.shape_cast %32 : vector<64x128xf32> to vector<4x2x8x128xf32>
    %34 = vector.extract_strided_slice %33 {offsets = [0, 0, 0, 0], sizes = [4, 1, 8, 128], strides = [1, 1, 1, 1]} : vector<4x2x8x128xf32> to vector<4x1x8x128xf32>
    %35 = vector.shape_cast %34 : vector<4x1x8x128xf32> to vector<4x8x128xf32>
    %36 = vector.extract_strided_slice %33 {offsets = [0, 1, 0, 0], sizes = [4, 1, 8, 128], strides = [1, 1, 1, 1]} : vector<4x2x8x128xf32> to vector<4x1x8x128xf32>
    %37 = vector.shape_cast %36 : vector<4x1x8x128xf32> to vector<4x8x128xf32>
    %38 = arith.maximumf %35, %37 : vector<4x8x128xf32>
    %c0_24 = arith.constant 0 : index
    %c0_25 = arith.constant 0 : index
    %c0_26 = arith.constant 0 : index
    %39 = vector.load %arg5[%c0_24, %c0_25, %c0_26] : memref<4x8x128xf32, #tpu.memory_space<vmem>>, vector<4x8x128xf32>
    tpu.vector_store %arg5[%c0_24, %c0_25, %c0_26], %38 {strides = array<i32>} : memref<4x8x128xf32, #tpu.memory_space<vmem>>, vector<4x8x128xf32>,
    %c0_27 = arith.constant 0 : index
    %c0_28 = arith.constant 0 : index
    %c0_29 = arith.constant 0 : index
    %40 = tpu.strided_load %arg5[%c0_27, %c0_28, %c0_29] {strides = array<i32: 1, 2, 1>} : memref<4x8x128xf32, #tpu.memory_space<vmem>>, vector<4x4x128xf32>
    %c0_30 = arith.constant 0 : index
    %c1_31 = arith.constant 1 : index
    %c0_32 = arith.constant 0 : index
    %41 = tpu.strided_load %arg5[%c0_30, %c1_31, %c0_32] {strides = array<i32: 1, 2, 1>} : memref<4x8x128xf32, #tpu.memory_space<vmem>>, vector<4x4x128xf32>
    %42 = arith.maximumf %40, %41 : vector<4x4x128xf32>
    %c0_33 = arith.constant 0 : index
    %c0_34 = arith.constant 0 : index
    %c0_35 = arith.constant 0 : index
    %c0_36 = arith.constant 0 : index
    %43 = vector.load %arg4[%c0_33, %c0_34, %c0_35, %c0_36] : memref<2x4x4x128xf32, #tpu.memory_space<vmem>>, vector<1x4x4x128xf32>
    %44 = vector.shape_cast %43 : vector<1x4x4x128xf32> to vector<4x4x128xf32>
    %45 = vector.shape_cast %42 : vector<4x4x128xf32> to vector<1x4x4x128xf32>
    tpu.vector_store %arg4[%c0_33, %c0_34, %c0_35, %c0_36], %45 {strides = array<i32>} : memref<2x4x4x128xf32, #tpu.memory_space<vmem>>, vector<1x4x4x128xf32>,
    %cst_37 = arith.constant 0.000000e+00 : f32
    %46 = vector.broadcast %cst_37 : f32 to vector<64x128xf32>
    %c1_38 = arith.constant 1 : index
    %c0_39 = arith.constant 0 : index
    %c0_40 = arith.constant 0 : index
    %c0_41 = arith.constant 0 : index
    %47 = vector.load %arg1[%c1_38, %c0_39, %c0_40, %c0_41] : memref<2x10x8x192xf32, #tpu.memory_space<vmem>>, vector<1x8x8x192xf32>
    %48 = vector.shape_cast %47 : vector<1x8x8x192xf32> to vector<8x8x192xf32>
    %49 = vector.shape_cast %48 : vector<8x8x192xf32> to vector<64x192xf32>
    %50 = arith.truncf %49 : vector<64x192xf32> to vector<64x192xbf16>
    %c0_42 = arith.constant 0 : index
    %c0_43 = arith.constant 0 : index
    %c0_44 = arith.constant 0 : index
    %51 = vector.load %arg2[%c0_42, %c0_43, %c0_44] : memref<3x192x128xf32, #tpu.memory_space<vmem>>, vector<1x192x128xf32>
    %52 = vector.shape_cast %51 : vector<1x192x128xf32> to vector<192x128xf32>
    %53 = arith.truncf %52 : vector<192x128xf32> to vector<192x128xbf16>
    %cst_45 = arith.constant dense<0.000000e+00> : vector<64x128xf32>
    %54 = tpu.matmul %50, %53, %cst_45 {dimension_numbers = #tpu.dot_dimension_numbers<[1], [0], [0], [1], [0, 0, 1, 1], [], []>} : vector<64x192xbf16>, vector<192x128xbf16>, vector<64x128xf32> -> vector<64x128xf32>
    %55 = arith.addf %46, %54 : vector<64x128xf32>
    %c1_46 = arith.constant 1 : index
    %c1_47 = arith.constant 1 : index
    %c0_48 = arith.constant 0 : index
    %c0_49 = arith.constant 0 : index
    %56 = vector.load %arg1[%c1_46, %c1_47, %c0_48, %c0_49] : memref<2x10x8x192xf32, #tpu.memory_space<vmem>>, vector<1x8x8x192xf32>
    %57 = vector.shape_cast %56 : vector<1x8x8x192xf32> to vector<8x8x192xf32>
    %58 = vector.shape_cast %57 : vector<8x8x192xf32> to vector<64x192xf32>
    %59 = arith.truncf %58 : vector<64x192xf32> to vector<64x192xbf16>
    %c1_50 = arith.constant 1 : index
    %c0_51 = arith.constant 0 : index
    %c0_52 = arith.constant 0 : index
    %60 = vector.load %arg2[%c1_50, %c0_51, %c0_52] : memref<3x192x128xf32, #tpu.memory_space<vmem>>, vector<1x192x128xf32>
    %61 = vector.shape_cast %60 : vector<1x192x128xf32> to vector<192x128xf32>
    %62 = arith.truncf %61 : vector<192x128xf32> to vector<192x128xbf16>
    %cst_53 = arith.constant dense<0.000000e+00> : vector<64x128xf32>
    %63 = tpu.matmul %59, %62, %cst_53 {dimension_numbers = #tpu.dot_dimension_numbers<[1], [0], [0], [1], [0, 0, 1, 1], [], []>} : vector<64x192xbf16>, vector<192x128xbf16>, vector<64x128xf32> -> vector<64x128xf32>
    %64 = arith.addf %55, %63 : vector<64x128xf32>
    %c1_54 = arith.constant 1 : index
    %c2_55 = arith.constant 2 : index
    %c0_56 = arith.constant 0 : index
    %c0_57 = arith.constant 0 : index
    %65 = vector.load %arg1[%c1_54, %c2_55, %c0_56, %c0_57] : memref<2x10x8x192xf32, #tpu.memory_space<vmem>>, vector<1x8x8x192xf32>
    %66 = vector.shape_cast %65 : vector<1x8x8x192xf32> to vector<8x8x192xf32>
    %67 = vector.shape_cast %66 : vector<8x8x192xf32> to vector<64x192xf32>
    %68 = arith.truncf %67 : vector<64x192xf32> to vector<64x192xbf16>
    %c2_58 = arith.constant 2 : index
    %c0_59 = arith.constant 0 : index
    %c0_60 = arith.constant 0 : index
    %69 = vector.load %arg2[%c2_58, %c0_59, %c0_60] : memref<3x192x128xf32, #tpu.memory_space<vmem>>, vector<1x192x128xf32>
    %70 = vector.shape_cast %69 : vector<1x192x128xf32> to vector<192x128xf32>
    %71 = arith.truncf %70 : vector<192x128xf32> to vector<192x128xbf16>
    %cst_61 = arith.constant dense<0.000000e+00> : vector<64x128xf32>
    %72 = tpu.matmul %68, %71, %cst_61 {dimension_numbers = #tpu.dot_dimension_numbers<[1], [0], [0], [1], [0, 0, 1, 1], [], []>} : vector<64x192xbf16>, vector<192x128xbf16>, vector<64x128xf32> -> vector<64x128xf32>
    %73 = arith.addf %64, %72 : vector<64x128xf32>
    %c0_62 = arith.constant 0 : index
    %c0_63 = arith.constant 0 : index
    %74 = vector.load %arg3[%c0_62, %c0_63] : memref<1x128xf32, #tpu.memory_space<vmem>>, vector<1x128xf32>
    %75 = vector.broadcast %74 : vector<1x128xf32> to vector<64x128xf32>
    %76 = arith.addf %73, %75 : vector<64x128xf32>
    %cst_64 = arith.constant 0.000000e+00 : f32
    %77 = vector.broadcast %cst_64 : f32 to vector<64x128xf32>
    %78 = arith.maximumf %76, %77 : vector<64x128xf32>
    %79 = vector.shape_cast %78 : vector<64x128xf32> to vector<4x2x8x128xf32>
    %80 = vector.extract_strided_slice %79 {offsets = [0, 0, 0, 0], sizes = [4, 1, 8, 128], strides = [1, 1, 1, 1]} : vector<4x2x8x128xf32> to vector<4x1x8x128xf32>
    %81 = vector.shape_cast %80 : vector<4x1x8x128xf32> to vector<4x8x128xf32>
    %82 = vector.extract_strided_slice %79 {offsets = [0, 1, 0, 0], sizes = [4, 1, 8, 128], strides = [1, 1, 1, 1]} : vector<4x2x8x128xf32> to vector<4x1x8x128xf32>
    %83 = vector.shape_cast %82 : vector<4x1x8x128xf32> to vector<4x8x128xf32>
    %84 = arith.maximumf %81, %83 : vector<4x8x128xf32>
    %c0_65 = arith.constant 0 : index
    %c0_66 = arith.constant 0 : index
    %c0_67 = arith.constant 0 : index
    %85 = vector.load %arg5[%c0_65, %c0_66, %c0_67] : memref<4x8x128xf32, #tpu.memory_space<vmem>>, vector<4x8x128xf32>
    tpu.vector_store %arg5[%c0_65, %c0_66, %c0_67], %84 {strides = array<i32>} : memref<4x8x128xf32, #tpu.memory_space<vmem>>, vector<4x8x128xf32>,
    %c0_68 = arith.constant 0 : index
    %c0_69 = arith.constant 0 : index
    %c0_70 = arith.constant 0 : index
    %86 = tpu.strided_load %arg5[%c0_68, %c0_69, %c0_70] {strides = array<i32: 1, 2, 1>} : memref<4x8x128xf32, #tpu.memory_space<vmem>>, vector<4x4x128xf32>
    %c0_71 = arith.constant 0 : index
    %c1_72 = arith.constant 1 : index
    %c0_73 = arith.constant 0 : index
    %87 = tpu.strided_load %arg5[%c0_71, %c1_72, %c0_73] {strides = array<i32: 1, 2, 1>} : memref<4x8x128xf32, #tpu.memory_space<vmem>>, vector<4x4x128xf32>
    %88 = arith.maximumf %86, %87 : vector<4x4x128xf32>
    %c1_74 = arith.constant 1 : index
    %c0_75 = arith.constant 0 : index
    %c0_76 = arith.constant 0 : index
    %c0_77 = arith.constant 0 : index
    %89 = vector.load %arg4[%c1_74, %c0_75, %c0_76, %c0_77] : memref<2x4x4x128xf32, #tpu.memory_space<vmem>>, vector<1x4x4x128xf32>
    %90 = vector.shape_cast %89 : vector<1x4x4x128xf32> to vector<4x4x128xf32>
    %91 = vector.shape_cast %88 : vector<4x4x128xf32> to vector<1x4x4x128xf32>
    tpu.vector_store %arg4[%c1_74, %c0_75, %c0_76, %c0_77], %91 {strides = array<i32>} : memref<2x4x4x128xf32, #tpu.memory_space<vmem>>, vector<1x4x4x128xf32>,
    return
  }
  func.func @transform_0(%arg0: i32) -> (i32, i32, i32, i32) {
    %c0_i32 = arith.constant 0 : i32
    %c0_i32_0 = arith.constant 0 : i32
    %c0_i32_1 = arith.constant 0 : i32
    %c0_i32_2 = arith.constant 0 : i32
    return %arg0, %c0_i32, %c0_i32_0, %c0_i32_1 : i32, i32, i32, i32
  }
  func.func @transform_1(%arg0: i32) -> (i32, i32, i32) {
    %c0_i32 = arith.constant 0 : i32
    %c0_i32_0 = arith.constant 0 : i32
    %c0_i32_1 = arith.constant 0 : i32
    %c0_i32_2 = arith.constant 0 : i32
    return %c0_i32, %c0_i32_0, %c0_i32_1 : i32, i32, i32
  }
  func.func @transform_2(%arg0: i32) -> (i32, i32) {
    %c0_i32 = arith.constant 0 : i32
    %c0_i32_0 = arith.constant 0 : i32
    %c0_i32_1 = arith.constant 0 : i32
    return %c0_i32, %c0_i32_0 : i32, i32
  }
  func.func @transform_3(%arg0: i32) -> (i32, i32, i32, i32) {
    %c0_i32 = arith.constant 0 : i32
    %c0_i32_0 = arith.constant 0 : i32
    %c0_i32_1 = arith.constant 0 : i32
    %c0_i32_2 = arith.constant 0 : i32
    return %arg0, %c0_i32, %c0_i32_0, %c0_i32_1 : i32, i32, i32, i32
  }
}

module attributes {stable_mosaic.version = 11 : i64} {
  func.func @_mlp_kernel(%arg0: i32, %arg1: memref<2x2048xf32, #tpu.memory_space<vmem>>, %arg2: memref<2048x512xf32, #tpu.memory_space<vmem>>, %arg3: memref<1x512xf32, #tpu.memory_space<vmem>>, %arg4: memref<512x5xf32, #tpu.memory_space<vmem>>, %arg5: memref<1x5xf32, #tpu.memory_space<vmem>>, %arg6: memref<2x5xf32, #tpu.memory_space<vmem>>) attributes {dimension_semantics = [#tpu.dimension_semantics<arbitrary>], iteration_bounds = array<i64: 1>, scalar_prefetch = 0 : i64, scratch_operands = 0 : i64, tpu.core_type = #tpu.core_type<tc>, window_params = [{pipeline_mode = #tpu.pipeline_mode<synchronous>, transform_indices = @transform_0, window_bounds = array<i64: 2, 2048>}, {pipeline_mode = #tpu.pipeline_mode<synchronous>, transform_indices = @transform_1, window_bounds = array<i64: 2048, 512>}, {pipeline_mode = #tpu.pipeline_mode<synchronous>, transform_indices = @transform_2, window_bounds = array<i64: 1, 512>}, {pipeline_mode = #tpu.pipeline_mode<synchronous>, transform_indices = @transform_3, window_bounds = array<i64: 512, 5>}, {pipeline_mode = #tpu.pipeline_mode<synchronous>, transform_indices = @transform_4, window_bounds = array<i64: 1, 5>}, {pipeline_mode = #tpu.pipeline_mode<synchronous>, transform_indices = @transform_5, window_bounds = array<i64: 2, 5>}]} {
    %c0 = arith.constant 0 : index
    %c0_0 = arith.constant 0 : index
    %0 = vector.load %arg1[%c0, %c0_0] : memref<2x2048xf32, #tpu.memory_space<vmem>>, vector<2x2048xf32>
    %1 = arith.truncf %0 : vector<2x2048xf32> to vector<2x2048xbf16>
    %c0_1 = arith.constant 0 : index
    %c0_2 = arith.constant 0 : index
    %2 = vector.load %arg2[%c0_1, %c0_2] : memref<2048x512xf32, #tpu.memory_space<vmem>>, vector<2048x512xf32>
    %3 = arith.truncf %2 : vector<2048x512xf32> to vector<2048x512xbf16>
    %cst = arith.constant dense<0.000000e+00> : vector<2x512xf32>
    %4 = tpu.matmul %1, %3, %cst {dimension_numbers = #tpu.dot_dimension_numbers<[1], [0], [0], [1], [0, 0, 1, 1], [], []>} : vector<2x2048xbf16>, vector<2048x512xbf16>, vector<2x512xf32> -> vector<2x512xf32>
    %c0_3 = arith.constant 0 : index
    %c0_4 = arith.constant 0 : index
    %5 = vector.load %arg3[%c0_3, %c0_4] : memref<1x512xf32, #tpu.memory_space<vmem>>, vector<1x512xf32>
    %6 = vector.broadcast %5 : vector<1x512xf32> to vector<2x512xf32>
    %7 = arith.addf %4, %6 : vector<2x512xf32>
    %cst_5 = arith.constant 0.000000e+00 : f32
    %8 = vector.broadcast %cst_5 : f32 to vector<2x512xf32>
    %9 = arith.maximumf %7, %8 : vector<2x512xf32>
    %10 = arith.truncf %9 : vector<2x512xf32> to vector<2x512xbf16>
    %c0_6 = arith.constant 0 : index
    %c0_7 = arith.constant 0 : index
    %11 = vector.load %arg4[%c0_6, %c0_7] : memref<512x5xf32, #tpu.memory_space<vmem>>, vector<512x5xf32>
    %12 = arith.truncf %11 : vector<512x5xf32> to vector<512x5xbf16>
    %cst_8 = arith.constant dense<0.000000e+00> : vector<2x5xf32>
    %13 = tpu.matmul %10, %12, %cst_8 {dimension_numbers = #tpu.dot_dimension_numbers<[1], [0], [0], [1], [0, 0, 1, 1], [], []>} : vector<2x512xbf16>, vector<512x5xbf16>, vector<2x5xf32> -> vector<2x5xf32>
    %c0_9 = arith.constant 0 : index
    %c0_10 = arith.constant 0 : index
    %14 = vector.load %arg5[%c0_9, %c0_10] : memref<1x5xf32, #tpu.memory_space<vmem>>, vector<1x5xf32>
    %15 = vector.broadcast %14 : vector<1x5xf32> to vector<2x5xf32>
    %16 = arith.addf %13, %15 : vector<2x5xf32>
    %c0_11 = arith.constant 0 : index
    %c0_12 = arith.constant 0 : index
    %17 = vector.load %arg6[%c0_11, %c0_12] : memref<2x5xf32, #tpu.memory_space<vmem>>, vector<2x5xf32>
    tpu.vector_store %arg6[%c0_11, %c0_12], %16 {strides = array<i32>} : memref<2x5xf32, #tpu.memory_space<vmem>>, vector<2x5xf32>,
    return
  }
  func.func @transform_0(%arg0: i32) -> (i32, i32) {
    %c0_i32 = arith.constant 0 : i32
    %c0_i32_0 = arith.constant 0 : i32
    %c0_i32_1 = arith.constant 0 : i32
    return %c0_i32, %c0_i32_0 : i32, i32
  }
  func.func @transform_1(%arg0: i32) -> (i32, i32) {
    %c0_i32 = arith.constant 0 : i32
    %c0_i32_0 = arith.constant 0 : i32
    %c0_i32_1 = arith.constant 0 : i32
    return %c0_i32, %c0_i32_0 : i32, i32
  }
  func.func @transform_2(%arg0: i32) -> (i32, i32) {
    %c0_i32 = arith.constant 0 : i32
    %c0_i32_0 = arith.constant 0 : i32
    %c0_i32_1 = arith.constant 0 : i32
    return %c0_i32, %c0_i32_0 : i32, i32
  }
  func.func @transform_3(%arg0: i32) -> (i32, i32) {
    %c0_i32 = arith.constant 0 : i32
    %c0_i32_0 = arith.constant 0 : i32
    %c0_i32_1 = arith.constant 0 : i32
    return %c0_i32, %c0_i32_0 : i32, i32
  }
  func.func @transform_4(%arg0: i32) -> (i32, i32) {
    %c0_i32 = arith.constant 0 : i32
    %c0_i32_0 = arith.constant 0 : i32
    %c0_i32_1 = arith.constant 0 : i32
    return %c0_i32, %c0_i32_0 : i32, i32
  }
  func.func @transform_5(%arg0: i32) -> (i32, i32) {
    %c0_i32 = arith.constant 0 : i32
    %c0_i32_0 = arith.constant 0 : i32
    %c0_i32_1 = arith.constant 0 : i32
    return %c0_i32, %c0_i32_0 : i32, i32
  }
}

</mosaic_0001>

<bundles_post_ra>
// kernel: classifier_forward.6
= control target key start
LH: loop header
LB: loop body
LE: loop exit
PB: predicated region body
PF: predicated region fallthrough
CT: control target
= control target key end

     0   :  { %vm137_vm0 = vcmask 523264   ;;  %s1793_s1 = inlined_call_operand.vmem [shape: f32[3,192,128], index: 1, kind: input, shape index: {}]   ;;  %s1794_s0 = inlined_call_operand.vmem [shape: f32[2,10,8,192], index: 0, kind: input, shape index: {}]   ;;  %s1795_s2 = inlined_call_operand.vmem [shape: f32[1,128], index: 2, kind: input, shape index: {}]   ;;  %s1796_s3 = inlined_call_operand.vmem [shape: f32[2,4,4,128], index: 3, kind: output, shape index: {}]  }
   0x1   :  { %v949_v0 = vld [vmem:[%s1793_s1 + $0x130] sm:$0xff]  ;;  %v950_v1 = vld [vmem:[%s1793_s1 + $0x138] sm:$0xff]  ;;  %v947_v11 = vld [vmem:[%s1793_s1 + $0x120] sm:$0xff] }
   0x2   :  { %v957_v2 = vld [vmem:[%s1793_s1 + $0x170] sm:$0xff]  ;;  %v1154_v3 = vpack.c.bf16 %v950_v1, %v949_v0  ;;  %v958_v4 = vld [vmem:[%s1793_s1 + $0x178] sm:$0xff]  ;;  %v948_v13 = vld [vmem:[%s1793_s1 + $0x128] sm:$0xff] }
   0x3   :  { %v53_v5 = vld [vmem:[%s1793_s1 + $0x70] sm:$0xff]  ;;  %v54_v6 = vld [vmem:[%s1793_s1 + $0x78] sm:$0xff]  ;;  %v1165_v7 = vpack.c.bf16 %v958_v4, %v957_v2  ;;  %v955_v14 = vld [vmem:[%s1793_s1 + $0x160] sm:$0xff]  ;;  %v1192_v16 = vpack.c.bf16 %v948_v13, %v947_v11 }
   0x4   :  { %v1167_v8 = vpack.c.bf16 %v54_v6, %v53_v5  ;;  %v61_v9 = vld [vmem:[%s1793_s1 + $0xb0] sm:$0xff]  ;;  %v62_v10 = vld [vmem:[%s1793_s1 + $0xb8] sm:$0xff]  ;;  %150 = vmatpush.bf16.msra.mxu0 %v1154_v3  ;;  %v956_v15 = vld [vmem:[%s1793_s1 + $0x168] sm:$0xff] }
   0x5   :  { %v1179_v12 = vpack.c.bf16 %v62_v10, %v61_v9  ;;  %183 = vmatpush.bf16.msra.mxu1 %v1165_v7  ;;  %v1194_v17 = vpack.c.bf16 %v956_v15, %v955_v14  ;;  %v51_v18 = vld [vmem:[%s1793_s1 + $0x60] sm:$0xff]  ;;  %v52_v19 = vld [vmem:[%s1793_s1 + $0x68] sm:$0xff]  ;;  %v945_v23 = vld [vmem:[%s1793_s1 + $0x110] sm:$0xff] }
   0x6   :  { %220 = vmatpush.bf16.msra.mxu2 %v1167_v8  ;;  %v59_v20 = vld [vmem:[%s1793_s1 + $0xa0] sm:$0xff]  ;;  %v1206_v21 = vpack.c.bf16 %v52_v19, %v51_v18  ;;  %v60_v22 = vld [vmem:[%s1793_s1 + $0xa8] sm:$0xff]  ;;  %v946_v24 = vld [vmem:[%s1793_s1 + $0x118] sm:$0xff] }
   0x7   :  { %253 = vmatpush.bf16.msra.mxu3 %v1179_v12  ;;  %v1217_v25 = vpack.c.bf16 %v60_v22, %v59_v20  ;;  %v953_v26 = vld [vmem:[%s1793_s1 + $0x150] sm:$0xff]  ;;  %v954_v27 = vld [vmem:[%s1793_s1 + $0x158] sm:$0xff]  ;;  %v1229_v29 = vpack.c.bf16 %v946_v24, %v945_v23  ;;  %v943_v35 = vld [vmem:[%s1793_s1 + $0x100] sm:$0xff] }
   0x8   :  { %v49_v28 = vld [vmem:[%s1793_s1 + $0x50] sm:$0xff]  ;;  %151 = vmatpush.bf16.msra.mxu0 %v1192_v16  ;;  %v50_v30 = vld [vmem:[%s1793_s1 + $0x58] sm:$0xff]  ;;  %v1242_v33 = vpack.c.bf16 %v954_v27, %v953_v26  ;;  %v944_v36 = vld [vmem:[%s1793_s1 + $0x108] sm:$0xff] }
   0x9   :  { %v57_v31 = vld [vmem:[%s1793_s1 + $0x90] sm:$0xff]  ;;  %v58_v32 = vld [vmem:[%s1793_s1 + $0x98] sm:$0xff]  ;;  %184 = vmatpush.bf16.msra.mxu1 %v1194_v17  ;;  %v1244_v34 = vpack.c.bf16 %v50_v30, %v49_v28  ;;  %v951_v37 = vld [vmem:[%s1793_s1 + $0x140] sm:$0xff]  ;;  %v1274_v44 = vpack.c.bf16 %v944_v36, %v943_v35 }
   0xa   :  { %221 = vmatpush.bf16.msra.mxu2 %v1206_v21  ;;  %v1256_v38 = vpack.c.bf16 %v58_v32, %v57_v31  ;;  %v952_v39 = vld [vmem:[%s1793_s1 + $0x148] sm:$0xff]  ;;  %v47_v40 = vld [vmem:[%s1793_s1 + $0x40] sm:$0xff]  ;;  %v920_v45 = vld [vmem:[%s1794_s0 + $0x18] sm:$0xff] }
   0xb   :  { %254 = vmatpush.bf16.msra.mxu3 %v1217_v25  ;;  %v48_v41 = vld [vmem:[%s1793_s1 + $0x48] sm:$0xff]  ;;  %v55_v42 = vld [vmem:[%s1793_s1 + $0x80] sm:$0xff]  ;;  %v1281_v46 = vpack.c.bf16 %v952_v39, %v951_v37  ;;  %v941_v49 = vld [vmem:[%s1793_s1 + $0xf0] sm:$0xff] }
   0xc   :  { %v56_v43 = vld [vmem:[%s1793_s1 + $0x88] sm:$0xff]  ;;  %152 = vmatpush.bf16.msra.mxu0 %v1229_v29  ;;  %v1283_v47 = vpack.c.bf16 %v48_v41, %v47_v40  ;;  %v942_v50 = vld [vmem:[%s1793_s1 + $0xf8] sm:$0xff]  ;;  %v45_v53 = vld [vmem:[%s1793_s1 + $0x30] sm:$0xff] }
   0xd   :  { %185 = vmatpush.bf16.msra.mxu1 %v1242_v33  ;;  %v1288_v48 = vld [vmem:[%s1794_s0 + $0x28] sm:$0xff]  ;;  %v1297_v51 = vpack.c.bf16 %v56_v43, %v55_v42  ;;  %v46_v54 = vld [vmem:[%s1793_s1 + $0x38] sm:$0xff]  ;;  %v1310_v56 = vpack.c.bf16 %v942_v50, %v941_v49  ;;  %v939_v59 = vld [vmem:[%s1793_s1 + $0xe0] sm:$0xff] }
   0xe   :  { %222 = vmatpush.bf16.msra.mxu2 %v1244_v34  ;;  %v16_v52 = vld [vmem:[%s1794_s0 + $0x8] sm:$0xff]  ;;  %v93_v55 = vpack.c.bf16 %v1288_v48, %v920_v45  ;;  %v1314_v58 = vpack.c.bf16 %v46_v54, %v45_v53  ;;  %v43_v61 = vld [vmem:[%s1793_s1 + $0x20] sm:$0xff]  ;;  %v937_v63 = vld [vmem:[%s1793_s1 + $0xd0] sm:$0xff] }
   0xf   :  { %255 = vmatpush.bf16.msra.mxu3 %v1256_v38  ;;  %v32_v57 = vpack.c.bf16 %v920_v45, %v16_v52  ;;  %v940_v60 = vld [vmem:[%s1793_s1 + $0xe8] sm:$0xff]  ;;  %v1005_v0 = vld [vmem:[%s1793_s1 + $0x230] sm:$0xff]  ;;  %v1006_v2 = vld [vmem:[%s1793_s1 + $0x238] sm:$0xff] }
  0x10   :  { %153 = vmatpush.bf16.msra.mxu0 %v1274_v44  ;;  %v44_v62 = vld [vmem:[%s1793_s1 + $0x28] sm:$0xff]  ;;  %v1337_v1 = vpack.c.bf16 %v940_v60, %v939_v59  ;;  %v997_v4 = vld [vmem:[%s1793_s1 + $0x1f0] sm:$0xff]  ;;  %v998_v5 = vld [vmem:[%s1793_s1 + $0x1f8] sm:$0xff]  ;;  %v1355_v10 = vpack.c.bf16 %v1006_v2, %v1005_v0 }
  0x11   :  { %186 = vmatpush.bf16.msra.mxu1 %v1281_v46  ;;  %v1350_v6 = vpack.c.bf16 %v44_v62, %v43_v61  ;;  %v938_v9 = vld [vmem:[%s1793_s1 + $0xd8] sm:$0xff]  ;;  %v1357_v11 = vpack.c.bf16 %v998_v5, %v997_v4  ;;  %v995_v13 = vld [vmem:[%s1793_s1 + $0x1e0] sm:$0xff]  ;;  %v996_v14 = vld [vmem:[%s1793_s1 + $0x1e8] sm:$0xff] }
  0x12   :  { %223 = vmatpush.bf16.msra.mxu2 %v1283_v47  ;;  %v41_v15 = vld [vmem:[%s1793_s1 + $0x10] sm:$0xff]  ;;  %v42_v18 = vld [vmem:[%s1793_s1 + $0x18] sm:$0xff]  ;;  %v1373_v19 = vpack.c.bf16 %v996_v14, %v995_v13  ;;  %v1003_v20 = vld [vmem:[%s1793_s1 + $0x220] sm:$0xff]  ;;  %v1382_v23 = vpack.c.bf16 %v938_v9, %v937_v63 }
  0x13   :  { %256 = vmatpush.bf16.msra.mxu3 %v1297_v51  ;;  %v1004_v22 = vld [vmem:[%s1793_s1 + $0x228] sm:$0xff]  ;;  %v993_v26 = vld [vmem:[%s1793_s1 + $0x1d0] sm:$0xff]  ;;  %v994_v27 = vld [vmem:[%s1793_s1 + $0x1d8] sm:$0xff]  ;;  %v1393_v28 = vpack.c.bf16 %v42_v18, %v41_v15 }
  0x14   :  { %959 = vmatmul.msk.bf16.vlgmr.msra.gmra.mxu1 %vm137_vm0, %v93_v55  ;;  %154 = vmatpush.bf16.msra.mxu0 %v1310_v56  ;;  %v1384_v24 = vpack.c.bf16 %v1004_v22, %v1003_v20  ;;  %v935_v30 = vld [vmem:[%s1793_s1 + $0xc0] sm:$0xff]  ;;  %v936_v31 = vld [vmem:[%s1793_s1 + $0xc8] sm:$0xff]  ;;  %v919_v36 = vld [vmem:[%s1794_s0 + $0x10] sm:$0xff]  ;;  %v1412_v37 = vpack.c.bf16 %v994_v27, %v993_v26 }
  0x15   :  { %352 = vmatpush.bf16.msrb.mxu1 %v1357_v11  ;;  %v39_v32 = vld [vmem:[%s1793_s1] sm:$0xff]  ;;  %v40_v35 = vld [vmem:[%s1793_s1 + $0x8] sm:$0xff]  ;;  %v1415_v39 = vpack.c.bf16 %v936_v31, %v935_v30  ;;  %v924_v45 = vld [vmem:[%s1794_s0 + $0x38] sm:$0xff] }
  0x16   :  { %963 = vmatmul.msk.bf16.vlgmr.msra.gmra.mxu3 %vm137_vm0, %v32_v57  ;;  %224 = vmatpush.bf16.msra.mxu2 %v1314_v58  ;;  %v921_v40 = vld [vmem:[%s1794_s0 + $0x20] sm:$0xff]  ;;  %v992_v42 = vld [vmem:[%s1793_s1 + $0x1c8] sm:$0xff]  ;;  %v1427_v43 = vpack.c.bf16 %v40_v35, %v39_v32  ;;  %v1444_v57 = vpack.c.bf16 %v924_v45, %v1288_v48  ;;  %v989_v59 = vld [vmem:[%s1793_s1 + $0x1b0] sm:$0xff] }
  0x17   :  { %385 = vmatpush.bf16.msrb.mxu3 %v1355_v10  ;;  %v991_v41 = vld [vmem:[%s1793_s1 + $0x1c0] sm:$0xff]  ;;  %v926_v49 = vld [vmem:[%s1794_s0 + $0x48] sm:$0xff]  ;;  %v92_v52 = vpack.c.bf16 %v921_v40, %v919_v36  ;;  %v990_v60 = vld [vmem:[%s1793_s1 + $0x1b8] sm:$0xff] }
  0x18   :  { %155 = vmatpush.bf16.msra.mxu0 %v1337_v1  ;;  %v15_v50 = vld [vmem:[%s1794_s0] sm:$0xff]  ;;  %v1439_v53 = vpack.c.bf16 %v992_v42, %v991_v41  ;;  %v95_v54 = vpack.c.bf16 %v926_v49, %v924_v45  ;;  %v1456_v48 = vpack.c.bf16 %v990_v60, %v989_v59  ;;  %v988_v63 = vld [vmem:[%s1793_s1 + $0x1a8] sm:$0xff]  ;;  %v985_v2 = vld [vmem:[%s1793_s1 + $0x190] sm:$0xff] }
  0x19   :  { %353 = vmatpush.bf16.msrb.mxu1 %v1373_v19  ;;  %v31_v55 = vpack.c.bf16 %v919_v36, %v15_v50  ;;  %v987_v61 = vld [vmem:[%s1793_s1 + $0x1a0] sm:$0xff]  ;;  %v1000_v4 = vld [vmem:[%s1793_s1 + $0x208] sm:$0xff]  ;;  %v923_v9 = vld [vmem:[%s1794_s0 + $0x30] sm:$0xff] }
  0x1a   :  { %225 = vmatpush.bf16.msra.mxu2 %v1350_v6  ;;  %v999_v0 = vld [vmem:[%s1793_s1 + $0x200] sm:$0xff]  ;;  %v930_v18 = vld [vmem:[%s1794_s0 + $0x68] sm:$0xff]  ;;  %v33_v27 = vpack.c.bf16 %v923_v9, %v921_v40  ;;  %v1032_v31 = vld [vmem:[%s1794_s0 + $0xd8] sm:$0xff] }
  0x1b   :  { %386 = vmatpush.bf16.msrb.mxu3 %v1384_v24  ;;  %v336_v5 = vpack.c.bf16 %v1000_v4, %v999_v0  ;;  %v925_v14 = vld [vmem:[%s1794_s0 + $0x40] sm:$0xff]  ;;  %v1034_v32 = vld [vmem:[%s1794_s0 + $0xe8] sm:$0xff]  ;;  %v981_v40 = vld [vmem:[%s1794_s0 + $0x90] sm:$0xff] }
  0x1c   :  { %156 = vmatpush.bf16.msra.mxu0 %v1382_v23  ;;  %v983_v15 = vld [vmem:[%s1793_s1 + $0x180] sm:$0xff]  ;;  %v94_v20 = vpack.c.bf16 %v925_v14, %v923_v9  ;;  %v550_v36 = vpack.c.bf16 %v1034_v32, %v1032_v31  ;;  %v1036_v41 = vld [vmem:[%s1794_s0 + $0xf8] sm:$0xff]  ;;  %v1612_v42 = vld [vmem:[%s1794_s0 + $0x108] sm:$0xff] }
  0x1d   :  { %354 = vmatpush.bf16.msrb.mxu1 %v1412_v37  ;;  %v552_v50 = vpack.c.bf16 %v1612_v42, %v1036_v41  ;;  %v1011_v59 = vld [vmem:[%s1794_s0 + $0xa0] sm:$0xff]  ;;  %v1012_v60 = vld [vmem:[%s1794_s0 + $0xa8] sm:$0xff] }
  0x1e   :  { %226 = vmatpush.bf16.msra.mxu2 %v1393_v28 }
  0x20   :  { %157 = vmatpush.bf16.msra.mxu0 %v1415_v39 }
  0x21   :  { %355 = vmatpush.bf16.msrb.mxu1 %v1439_v53 }
  0x22   :  { %227 = vmatpush.bf16.msra.mxu2 %v1427_v43 }
  0x23   :  { %158 = vmatmul.bf16.vlgmr.msra.gmra.mxu0 %v92_v52 }
  0x24   :  { %603 = vmatpush.bf16.msrb.mxu0 %v1154_v3  ;;  %960 = vmatmul.msk.bf16.gmra.mxu1 %vm137_vm0, %v95_v54  ;;  %v1001_v3 = vld [vmem:[%s1793_s1 + $0x210] sm:$0xff]  ;;  %v1628_v54 = vld [vmem:[%s1794_s0 + $0x120] sm:$0xff] }
  0x25   :  { %228 = vmatmul.bf16.vlgmr.msra.gmra.mxu2 %v31_v55  ;;  %356 = vmatpush.bf16.msrb.mxu1 %v1456_v48  ;;  %v1040_v55 = vld [vmem:[%s1794_s0 + $0x118] sm:$0xff] }
  0x26   :  { %636 = vmatpush.bf16.msrb.mxu2 %v1165_v7  ;;  %964 = vmatmul.msk.bf16.gmra.mxu3 %vm137_vm0, %v1444_v57  ;;  %v1002_v7 = vld [vmem:[%s1793_s1 + $0x218] sm:$0xff] }
  0x27   :  { %v337_v62 = vpack.c.bf16 %v1002_v7, %v1001_v3 }
  0x28   :  { %604 = vmatpush.bf16.msrb.mxu0 %v1192_v16  ;;  %v1475_v16 = vpack.c.bf16 %v988_v63, %v987_v61 }
  0x29   :  { %387 = vmatpush.bf16.msrb.mxu3 %v337_v62 }
  0x2a   :  { %637 = vmatpush.bf16.msrb.mxu2 %v1194_v17  ;;  %v986_v17 = vld [vmem:[%s1793_s1 + $0x198] sm:$0xff]  ;;  %357 = vmatpush.bf16.msrb.mxu1 %v1475_v16 }
  0x2b   :  { %v1495_v13 = vpack.c.bf16 %v986_v17, %v985_v2 }
  0x2c   :  { %605 = vmatpush.bf16.msrb.mxu0 %v1229_v29  ;;  %v984_v29 = vld [vmem:[%s1793_s1 + $0x188] sm:$0xff] }
  0x2d   :  { %388 = vmatpush.bf16.msrb.mxu3 %v336_v5  ;;  %v328_v22 = vpack.c.bf16 %v984_v29, %v983_v15 }
  0x2e   :  { %638 = vmatpush.bf16.msrb.mxu2 %v1242_v33  ;;  %v928_v33 = vld [vmem:[%s1794_s0 + $0x58] sm:$0xff]  ;;  %358 = vmatpush.bf16.msrb.mxu1 %v1495_v13 }
  0x2f   :  { %v97_v26 = vpack.c.bf16 %v930_v18, %v928_v33  ;;  %v36_v30 = vpack.c.bf16 %v928_v33, %v926_v49 }
  0x30   :  { %606 = vmatpush.bf16.msrb.mxu0 %v1274_v44 }
  0x31   :  { %706 = vmatpush.bf16.msra.mxu3 %v1179_v12  ;;  %v927_v12 = vld [vmem:[%s1794_s0 + $0x50] sm:$0xff] }
  0x32   :  { %639 = vmatpush.bf16.msrb.mxu2 %v1281_v46  ;;  %359 = vmatpush.bf16.msrb.mxu1 %v328_v22  ;;  %v35_v46 = vpack.c.bf16 %v927_v12, %v925_v14 }
  0x33   :  { %163 = vmatmul.bf16.gmra.mxu0 %v94_v20 }
  0x34   :  { %607 = vmatpush.bf16.msrb.mxu0 %v1310_v56  ;;  %961 = vmatmul.msk.bf16.gmra.mxu1 %vm137_vm0, %v97_v26 }
  0x35   :  { %707 = vmatpush.bf16.msra.mxu3 %v1217_v25  ;;  %233 = vmatmul.bf16.gmra.mxu2 %v33_v27  ;;  %v929_v25 = vld [vmem:[%s1794_s0 + $0x60] sm:$0xff] }
  0x36   :  { %837 = vmatpush.bf16.msra.mxu2 %v1355_v10  ;;  %965 = vmatmul.msk.bf16.gmra.mxu3 %vm137_vm0, %v36_v30  ;;  %v1028_v10 = vld [vmem:[%s1794_s0 + $0xb8] sm:$0xff] }
  0x37   :  { %673 = vmatpush.bf16.msra.mxu1 %v1167_v8  ;;  %v932_v8 = vld [vmem:[%s1794_s0 + $0x78] sm:$0xff] }
  0x38   :  { %608 = vmatpush.bf16.msrb.mxu0 %v1337_v1 }
  0x39   :  { %708 = vmatpush.bf16.msra.mxu3 %v1256_v38  ;;  %v1540_v38 = vld [vmem:[%s1794_s0 + $0x88] sm:$0xff] }
  0x3a   :  { %838 = vmatpush.bf16.msra.mxu2 %v1384_v24  ;;  %v99_v44 = vpack.c.bf16 %v1540_v38, %v932_v8  ;;  %v1031_v24 = vld [vmem:[%s1794_s0 + $0xd0] sm:$0xff] }
  0x3b   :  { %674 = vmatpush.bf16.msra.mxu1 %v1206_v21  ;;  %v96_v21 = vpack.c.bf16 %v929_v25, %v927_v12 }
  0x3c   :  { %609 = vmatpush.bf16.msrb.mxu0 %v1382_v23 }
  0x3d   :  { %709 = vmatpush.bf16.msra.mxu3 %v1297_v51  ;;  %v38_v51 = vpack.c.bf16 %v932_v8, %v930_v18 }
  0x3e   :  { %839 = vmatpush.bf16.msra.mxu2 %v337_v62  ;;  %v487_v62 = vpack.c.bf16 %v1028_v10, %v1012_v60 }
  0x3f   :  { %675 = vmatpush.bf16.msra.mxu1 %v1244_v34  ;;  %v931_v34 = vld [vmem:[%s1794_s0 + $0x70] sm:$0xff] }
  0x40   :  { %610 = vmatpush.bf16.msrb.mxu0 %v1415_v39  ;;  %v37_v1 = vpack.c.bf16 %v931_v34, %v929_v25  ;;  %v1601_v39 = vld [vmem:[%s1794_s0 + $0x100] sm:$0xff] }
  0x42   :  { %840 = vmatpush.bf16.msra.mxu2 %v336_v5 }
  0x43   :  { %676 = vmatpush.bf16.msra.mxu1 %v1283_v47  ;;  %168 = vmatmul.bf16.gmra.mxu0 %v96_v21  ;;  %v933_v47 = vld [vmem:[%s1794_s0 + $0x80] sm:$0xff] }
  0x44   :  { %804 = vmatpush.bf16.msra.mxu0 %v1357_v11  ;;  %962 = vmatmul.msk.bf16.gmra.mxu1 %vm137_vm0, %v99_v44  ;;  %v98_v56 = vpack.c.bf16 %v933_v47, %v931_v34  ;;  %v1030_v11 = vld [vmem:[%s1794_s0 + $0xc8] sm:$0xff]  ;;  %v301_v49 = vpack.c.bf16 %v981_v40, %v933_v47 }
  0x45   :  { %238 = vmatmul.bf16.gmra.mxu2 %v35_v46  ;;  %v548_v23 = vpack.c.bf16 %v1030_v11, %v1028_v10  ;;  %v489_v4 = vpack.c.bf16 %v1032_v31, %v1030_v11 }
  0x46   :  { %966 = vmatmul.msk.bf16.gmra.mxu3 %vm137_vm0, %v38_v51 }
  0x47   :  { %677 = vmatpush.bf16.msra.mxu1 %v1314_v58  ;;  %v1027_v58 = vld [vmem:[%s1794_s0 + $0xb0] sm:$0xff] }
  0x48   :  { %805 = vmatpush.bf16.msra.mxu0 %v1373_v19  ;;  %v486_v7 = vpack.c.bf16 %v1027_v58, %v1011_v59 }
  0x4b   :  { %678 = vmatpush.bf16.msra.mxu1 %v1350_v6  ;;  %v1029_v6 = vld [vmem:[%s1794_s0 + $0xc0] sm:$0xff] }
  0x4c   :  { %806 = vmatpush.bf16.msra.mxu0 %v1412_v37  ;;  %v547_v19 = vpack.c.bf16 %v1029_v6, %v1027_v58  ;;  %v1035_v37 = vld [vmem:[%s1794_s0 + $0xf0] sm:$0xff]  ;;  %v488_v0 = vpack.c.bf16 %v1031_v24, %v1029_v6  ;;  %v493_v58 = vpack.c.bf16 %v1040_v55, %v1612_v42 }
  0x4d   :  { %v551_v45 = vpack.c.bf16 %v1601_v39, %v1035_v37 }
  0x4f   :  { %679 = vmatpush.bf16.msra.mxu1 %v1393_v28  ;;  %v1033_v28 = vld [vmem:[%s1794_s0 + $0xe0] sm:$0xff] }
  0x50   :  { %807 = vmatpush.bf16.msra.mxu0 %v1439_v53  ;;  %v549_v35 = vpack.c.bf16 %v1033_v28, %v1031_v24  ;;  %v1039_v53 = vld [vmem:[%s1794_s0 + $0x110] sm:$0xff] }
  0x51   :  { %v492_v47 = vpack.c.bf16 %v1039_v53, %v1601_v39 }
  0x53   :  { %680 = vmatpush.bf16.msra.mxu1 %v1427_v43  ;;  %173 = vmatmul.bf16.gmra.mxu0 %v98_v56  ;;  %v982_v43 = vld [vmem:[%s1794_s0 + $0x98] sm:$0xff] }
  0x54   :  { %808 = vmatpush.bf16.msra.mxu0 %v1456_v48  ;;  %360 = vmatmul.bf16.vlgmr.msrb.gmra.mxu1 %v33_v27  ;;  %v302_v52 = vpack.c.bf16 %v982_v43, %v1540_v38  ;;  %v553_v48 = vpack.c.bf16 %v1628_v54, %v1039_v53 }
  0x55   :  { %243 = vmatmul.bf16.gmra.mxu2 %v37_v1 }
  0x56   :  { %1007 = vmatmul.msk.bf16.vlgmr.msrb.gmra.mxu3 %vm137_vm0, %v1444_v57  ;;  %v1636_v57 = vld [vmem:[%s1794_s0 + $0x128] sm:$0xff] }
  0x57   :  { %v554_v3 = vpack.c.bf16 %v1636_v57, %v1040_v55 }
  0x58   :  { %809 = vmatpush.bf16.msra.mxu0 %v1475_v16 }
  0x5c   :  { %810 = vmatpush.bf16.msra.mxu0 %v1495_v13 }
  0x60   :  { %811 = vmatpush.bf16.msra.mxu0 %v328_v22  ;;  %v490_v22 = vpack.c.bf16 %v1035_v37, %v1033_v28 }
  0x63   :  { %611 = vmatmul.bf16.vlgmr.msrb.gmra.mxu0 %v547_v19 }
  0x64   :  { %365 = vmatmul.bf16.gmra.mxu1 %v35_v46 }
  0x65   :  { %1067 = vmatmul.msk.bf16.vlgmr.msrb.gmra.mxu2 %vm137_vm0, %v548_v23 }
  0x66   :  { %1008 = vmatmul.msk.bf16.gmra.mxu3 %vm137_vm0, %v36_v30  ;;  %v491_v30 = vpack.c.bf16 %v1036_v41, %v1034_v32  ;;  %v1089_v32 = vld [vmem:[%s1794_s0 + $0x130] sm:$0xff] }
  0x67   :  { %v754_v37 = vpack.c.bf16 %v1089_v32, %v1628_v54 }
  0x73   :  { %616 = vmatmul.bf16.gmra.mxu0 %v549_v35  ;;  %v1090_v35 = vld [vmem:[%s1794_s0 + $0x138] sm:$0xff] }
  0x74   :  { %370 = vmatmul.bf16.gmra.mxu1 %v37_v1  ;;  %v755_v41 = vpack.c.bf16 %v1090_v35, %v1636_v57  ;;  %v1695_v57 = vld [vmem:[%s1795_s2] ss:$0 sm:$0xff] }
  0x75   :  { %1068 = vmatmul.msk.bf16.gmra.mxu2 %vm137_vm0, %v550_v36 }
  0x76   :  { %1009 = vmatmul.msk.bf16.gmra.mxu3 %vm137_vm0, %v38_v51 }
  0x83   :  { %621 = vmatmul.bf16.gmra.mxu0 %v551_v45 }
  0x84   :  { %375 = vmatmul.bf16.gmra.mxu1 %v301_v49 }
  0x85   :  { %1069 = vmatmul.msk.bf16.gmra.mxu2 %vm137_vm0, %v552_v50 }
  0x86   :  { %1010 = vmatmul.msk.bf16.gmra.mxu3 %vm137_vm0, %v302_v52 }
  0x91   :  { %v188_v61 = vpop.f32.mrf.mxu1 }
  0x93   :  { %626 = vmatmul.bf16.gmra.mxu0 %v553_v48 }
  0x94   :  { %681 = vmatmul.bf16.vlgmr.msra.gmra.mxu1 %v486_v7 }
  0x95   :  { %1070 = vmatmul.msk.bf16.gmra.mxu2 %vm137_vm0, %v554_v3 }
  0x96   :  { %1071 = vmatmul.msk.bf16.vlgmr.msra.gmra.mxu3 %vm137_vm0, %v487_v62 }
  0x99   :  { %v258_v63 = vpop.f32.mrf.mxu3  ;;  %v1648_v16 = vpop.f32.mrf.mxu1 }
  0xa0   :  { %v159_v17 = vpop.f32.mrf.mxu0 }
  0xa1   :  { %v1650_v2 = vpop.f32.mrf.mxu3  ;;  %v193_v5 = vpop.f32.mrf.mxu1  ;;  %v189_v9 = vadd.f32 %v188_v61, %v159_v17 }
  0xa3   :  { %812 = vmatmul.bf16.vlgmr.msra.gmra.mxu0 %v488_v0 }
  0xa4   :  { %686 = vmatmul.bf16.gmra.mxu1 %v488_v0 }
  0xa5   :  { %1115 = vmatmul.msk.bf16.vlgmr.msra.gmra.mxu2 %vm137_vm0, %v489_v4 }
  0xa6   :  { %1072 = vmatmul.msk.bf16.gmra.mxu3 %vm137_vm0, %v489_v4 }
  0xa8   :  { %v229_v13 = vpop.f32.mrf.mxu2  ;;  %v161_v29 = vpop.f32.mrf.mxu0 }
  0xa9   :  { %v230_v14 = vadd.f32 %v229_v13, %v189_v9  ;;  %v263_v15 = vpop.f32.mrf.mxu3  ;;  %v1654_v33 = vpop.f32.mrf.mxu1  ;;  %v191_v54 = vadd.f32 %v1648_v16, %v161_v29 }
  0xab   :  { %v259_v18 = vadd.f32 %v258_v63, %v230_v14 }
  0xb0   :  { %v231_v20 = vpop.f32.mrf.mxu2  ;;  %v164_v27 = vpop.f32.mrf.mxu0 }
  0xb1   :  { %v1656_v26 = vpop.f32.mrf.mxu3  ;;  %v198_v12 = vpop.f32.mrf.mxu1  ;;  %v194_v25 = vadd.f32 %v193_v5, %v164_v27  ;;  %v232_v60 = vadd.f32 %v231_v20, %v191_v54 }
  0xb3   :  { %817 = vmatmul.bf16.gmra.mxu0 %v490_v22  ;;  %v261_v62 = vadd.f32 %v1650_v2, %v232_v60 }
  0xb4   :  { %691 = vmatmul.bf16.gmra.mxu1 %v490_v22 }
  0xb5   :  { %1116 = vmatmul.msk.bf16.gmra.mxu2 %vm137_vm0, %v491_v30 }
  0xb6   :  { %1073 = vmatmul.msk.bf16.gmra.mxu3 %vm137_vm0, %v491_v30 }
  0xb8   :  { %v234_v8 = vpop.f32.mrf.mxu2  ;;  %v166_v44 = vpop.f32.mrf.mxu0 }
  0xb9   :  { %v235_v38 = vadd.f32 %v234_v8, %v194_v25  ;;  %v268_v21 = vpop.f32.mrf.mxu3  ;;  %v1660_v46 = vpop.f32.mrf.mxu1  ;;  %v196_v22 = vadd.f32 %v1654_v33, %v166_v44 }
  0xbb   :  { %v264_v51 = vadd.f32 %v263_v15, %v235_v38 }
  0xc0   :  { %v236_v34 = vpop.f32.mrf.mxu2  ;;  %v169_v1 = vpop.f32.mrf.mxu0 }
  0xc1   :  { %v1663_v56 = vpop.f32.mrf.mxu3  ;;  %v203_v6 = vpop.f32.mrf.mxu1  ;;  %v199_v10 = vadd.f32 %v198_v12, %v169_v1  ;;  %v237_v27 = vadd.f32 %v236_v34, %v196_v22 }
  0xc3   :  { %822 = vmatmul.bf16.gmra.mxu0 %v492_v47  ;;  %v266_v38 = vadd.f32 %v1656_v26, %v237_v27 }
  0xc4   :  { %696 = vmatmul.bf16.gmra.mxu1 %v492_v47 }
  0xc5   :  { %1117 = vmatmul.msk.bf16.gmra.mxu2 %vm137_vm0, %v493_v58 }
  0xc6   :  { %1074 = vmatmul.msk.bf16.gmra.mxu3 %vm137_vm0, %v493_v58 }
  0xc8   :  { %v239_v11 = vpop.f32.mrf.mxu2  ;;  %v1668_v24 = vpop.f32.mrf.mxu0 }
  0xc9   :  { %v240_v19 = vadd.f32 %v239_v11, %v199_v10  ;;  %v273_v23 = vpop.f32.mrf.mxu3  ;;  %v1670_v28 = vpop.f32.mrf.mxu1 }
  0xcb   :  { %v1672_v31 = vadd.f32 %v268_v21, %v240_v19 }
  0xd0   :  { %v1680_v36 = vpop.f32.mrf.mxu2  ;;  %v174_v40 = vpop.f32.mrf.mxu0 }
  0xd1   :  { %v1683_v39 = vpop.f32.mrf.mxu3  ;;  %v361_v42 = vpop.f32.mrf.mxu1  ;;  %v204_v43 = vadd.f32 %v203_v6, %v174_v40 }
  0xd3   :  { %827 = vmatmul.bf16.gmra.mxu0 %v754_v37  ;;  %v201_v37 = vadd.f32 %v1660_v46, %v1668_v24 }
  0xd5   :  { %1118 = vmatmul.msk.bf16.gmra.mxu2 %vm137_vm0, %v755_v41  ;;  %v242_v41 = vadd.f32 %v1680_v36, %v201_v37 }
  0xd8   :  { %v244_v45 = vpop.f32.mrf.mxu2  ;;  %v1687_v52 = vpop.f32.mrf.mxu0 }
  0xd9   :  { %v245_v49 = vadd.f32 %v244_v45, %v204_v43  ;;  %v390_v50 = vpop.f32.mrf.mxu3  ;;  %v363_v53 = vpop.f32.mrf.mxu1 }
  0xda   :  { %v391_v59 = vadd.f32 %v390_v50, %v361_v42  ;;  %v271_v50 = vadd.f32 %v1663_v56, %v242_v41 }
  0xdb   :  { %v1689_v55 = vadd.f32 %v273_v23, %v245_v49 }
  0xdc   :  { %v410_v48 = vadd.f32 %v391_v59, %v259_v18 }
  0xde   :  { %v422_v17 = vadd.f32 %v1695_v57, %v410_v48 }
  0xe0   :  { %v1697_v3 = vpop.f32.mrf.mxu2  ;;  %v612_v61 = vpop.f32.mrf.mxu0  ;;  %v430_v5 = vmax.f32 %v422_v17, 0.0  ;;  %v206_v17 = vadd.f32 %v1670_v28, %v1687_v52 }
  0xe1   :  { %v392_v7 = vpop.f32.mrf.mxu3  ;;  %v366_v0 = vpop.f32.mrf.mxu1 }
  0xe2   :  { %v393_v63 = vadd.f32 %v392_v7, %v363_v53 }
  0xe4   :  { %v411_v4 = vadd.f32 %v393_v63, %v261_v62 }
  0xe6   :  { %v423_v16 = vadd.f32 %v1695_v57, %v411_v4 }
  0xe8   :  { %v431_v9 = vmax.f32 %v423_v16, 0.0  ;;  %v641_v13 = vpop.f32.mrf.mxu2  ;;  %v1704_v29 = vpop.f32.mrf.mxu0 }
  0xe9   :  { %v395_v14 = vpop.f32.mrf.mxu3  ;;  %v1702_v15 = vadd.f32 %v641_v13, %v612_v61  ;;  %v368_v20 = vpop.f32.mrf.mxu1 }
  0xea   :  { %v438_v18 = vmax.f32 %v430_v5, %v431_v9  ;;  %v396_v2 = vadd.f32 %v395_v14, %v366_v0  ;;  %v247_v5 = vadd.f32 %v1697_v3, %v206_v17 }
  0xec   :  { %442 = vst [vmem:[#allocation2] sm:$0xff] %v438_v18  ;;  %v412_v30 = vadd.f32 %v396_v2, %v264_v51 }
  0xee   :  { %v424_v6 = vadd.f32 %v1695_v57, %v412_v30 }
  0xf0   :  { %v1707_v12 = vpop.f32.mrf.mxu2  ;;  %v617_v8 = vpop.f32.mrf.mxu0  ;;  %v432_v44 = vmax.f32 %v424_v6, 0.0 }
  0xf1   :  { %v397_v25 = vpop.f32.mrf.mxu3  ;;  %v371_v47 = vpop.f32.mrf.mxu1 }
  0xf2   :  { %v398_v21 = vadd.f32 %v397_v25, %v368_v20  ;;  %v276_v20 = vadd.f32 %v1683_v39, %v247_v5 }
  0xf3   :  { %v446_v1 = vld [vmem:[#allocation2] ss:$2 sm:$0xf]  ;;  %v454_v58 = vld [vmem:[#allocation2 + $0x1] ss:$2 sm:$0xf] }
  0xf4   :  { %v413_v10 = vadd.f32 %v398_v21, %v266_v38  ;;  %v461_v11 = vmax.f32 %v446_v1, %v454_v58 }
  0xf6   :  { %v425_v33 = vadd.f32 %v1695_v57, %v413_v10  ;;  %465 = vst [vmem:[%s1796_s3] sm:$0xf] %v461_v11 }
  0xf8   :  { %v433_v51 = vmax.f32 %v425_v33, 0.0  ;;  %v646_v34 = vpop.f32.mrf.mxu2  ;;  %v1717_v26 = vpop.f32.mrf.mxu0 }
  0xf9   :  { %v400_v19 = vpop.f32.mrf.mxu3  ;;  %v1715_v23 = vadd.f32 %v646_v34, %v617_v8  ;;  %v373_v35 = vpop.f32.mrf.mxu1 }
  0xfa   :  { %v439_v32 = vmax.f32 %v432_v44, %v433_v51  ;;  %v401_v40 = vadd.f32 %v400_v19, %v371_v47 }
  0xfc   :  { %443 = vst [vmem:[#allocation2 + $0x8] sm:$0xff] %v439_v32  ;;  %v414_v42 = vadd.f32 %v401_v40, %v1672_v31  ;;  %v644_v40 = vadd.f32 %v1707_v12, %v1704_v29 }
  0xfe   :  { %v426_v48 = vadd.f32 %v1695_v57, %v414_v42 }
 0x100   :  { %v1723_v43 = vpop.f32.mrf.mxu2  ;;  %v622_v49 = vpop.f32.mrf.mxu0  ;;  %v434_v31 = vmax.f32 %v426_v48, 0.0 }
 0x101   :  { %v402_v45 = vpop.f32.mrf.mxu3  ;;  %v376_v54 = vpop.f32.mrf.mxu1 }
 0x102   :  { %v403_v53 = vadd.f32 %v402_v45, %v373_v35 }
 0x103   :  { %v448_v59 = vld [vmem:[#allocation2 + $0x8] ss:$2 sm:$0xf]  ;;  %v456_v60 = vld [vmem:[#allocation2 + $0x9] ss:$2 sm:$0xf] }
 0x104   :  { %v415_v7 = vadd.f32 %v403_v53, %v271_v50  ;;  %v462_v46 = vmax.f32 %v448_v59, %v456_v60 }
 0x106   :  { %v427_v24 = vadd.f32 %v1695_v57, %v415_v7  ;;  %466 = vst [vmem:[%s1796_s3 + $0x4] sm:$0xf] %v462_v46 }
 0x108   :  { %v435_v36 = vmax.f32 %v427_v24, 0.0  ;;  %v651_v61 = vpop.f32.mrf.mxu2  ;;  %v1733_v56 = vpop.f32.mrf.mxu0 }
 0x109   :  { %v405_v62 = vpop.f32.mrf.mxu3  ;;  %v1731_v63 = vadd.f32 %v651_v61, %v622_v49  ;;  %v378_v16 = vpop.f32.mrf.mxu1  ;;  %v1762_v49 = vld [vmem:[%s1795_s2] ss:$0 sm:$0xff] }
 0x10a   :  { %v440_v0 = vmax.f32 %v434_v31, %v435_v36  ;;  %v406_v4 = vadd.f32 %v405_v62, %v376_v54 }
 0x10c   :  { %444 = vst [vmem:[#allocation2 + $0x10] sm:$0xff] %v440_v0  ;;  %v416_v9 = vadd.f32 %v406_v4, %v1689_v55  ;;  %v649_v0 = vadd.f32 %v1723_v43, %v1717_v26 }
 0x10e   :  { %v428_v30 = vadd.f32 %v1695_v57, %v416_v9 }
 0x110   :  { %v1739_v13 = vpop.f32.mrf.mxu2  ;;  %v627_v18 = vpop.f32.mrf.mxu0  ;;  %v436_v55 = vmax.f32 %v428_v30, 0.0 }
 0x111   :  { %v407_v14 = vpop.f32.mrf.mxu3  ;;  %v682_v8 = vpop.f32.mrf.mxu1 }
 0x112   :  { %v408_v22 = vadd.f32 %v407_v14, %v378_v16  ;;  %v683_v32 = vadd.f32 %v682_v8, %v1702_v15 }
 0x113   :  { %v450_v2 = vld [vmem:[#allocation2 + $0x10] ss:$2 sm:$0xf]  ;;  %v458_v27 = vld [vmem:[#allocation2 + $0x11] ss:$2 sm:$0xf] }
 0x114   :  { %v417_v25 = vadd.f32 %v408_v22, %v276_v20  ;;  %v463_v28 = vmax.f32 %v450_v2, %v458_v27 }
 0x116   :  { %v429_v52 = vadd.f32 %v1695_v57, %v417_v25  ;;  %467 = vst [vmem:[%s1796_s3 + $0x8] sm:$0xf] %v463_v28 }
 0x118   :  { %v437_v3 = vmax.f32 %v429_v52, 0.0  ;;  %v656_v38 = vpop.f32.mrf.mxu2  ;;  %v1749_v47 = vpop.f32.mrf.mxu0 }
 0x119   :  { %v1747_v21 = vadd.f32 %v656_v38, %v627_v18  ;;  %v711_v39 = vpop.f32.mrf.mxu3  ;;  %v684_v58 = vpop.f32.mrf.mxu1 }
 0x11a   :  { %v441_v1 = vmax.f32 %v436_v55, %v437_v3  ;;  %v712_v41 = vadd.f32 %v711_v39, %v683_v32  ;;  %v685_v42 = vadd.f32 %v684_v58, %v644_v40  ;;  %v654_v58 = vadd.f32 %v1739_v13, %v1733_v56 }
 0x11c   :  { %445 = vst [vmem:[#allocation2 + $0x18] sm:$0xff] %v441_v1 }
 0x120   :  { %v1751_v6 = vpop.f32.mrf.mxu2  ;;  %v813_v10 = vpop.f32.mrf.mxu0 }
 0x121   :  { %v713_v57 = vpop.f32.mrf.mxu3  ;;  %v687_v19 = vpop.f32.mrf.mxu1 }
 0x122   :  { %v714_v53 = vadd.f32 %v713_v57, %v685_v42  ;;  %v688_v61 = vadd.f32 %v687_v19, %v1715_v23 }
 0x123   :  { %v452_v11 = vld [vmem:[#allocation2 + $0x18] ss:$2 sm:$0xf]  ;;  %v460_v33 = vld [vmem:[#allocation2 + $0x19] ss:$2 sm:$0xf] }
 0x124   :  { %v464_v44 = vmax.f32 %v452_v11, %v460_v33 }
 0x126   :  { %468 = vst [vmem:[%s1796_s3 + $0xc] sm:$0xf] %v464_v44 }
 0x128   :  { %v842_v51 = vpop.f32.mrf.mxu2  ;;  %v815_v34 = vpop.f32.mrf.mxu0 }
 0x129   :  { %v843_v35 = vadd.f32 %v842_v51, %v813_v10  ;;  %v716_v37 = vpop.f32.mrf.mxu3  ;;  %v689_v48 = vpop.f32.mrf.mxu1 }
 0x12a   :  { %v717_v17 = vadd.f32 %v716_v37, %v688_v61  ;;  %v690_v16 = vadd.f32 %v689_v48, %v649_v0 }
 0x12b   :  { %v862_v45 = vadd.f32 %v843_v35, %v712_v41 }
 0x12d   :  { %v874_v60 = vadd.f32 %v1762_v49, %v862_v45 }
 0x12f   :  { %v882_v29 = vmax.f32 %v874_v60, 0.0  ;;  %v659_v60 = vadd.f32 %v1751_v6, %v1749_v47 }
 0x130   :  { %v844_v50 = vpop.f32.mrf.mxu2  ;;  %v818_v59 = vpop.f32.mrf.mxu0 }
 0x131   :  { %v845_v54 = vadd.f32 %v844_v50, %v815_v34  ;;  %v718_v46 = vpop.f32.mrf.mxu3  ;;  %v692_v4 = vpop.f32.mrf.mxu1 }
 0x132   :  { %v719_v18 = vadd.f32 %v718_v46, %v690_v16  ;;  %v693_v38 = vadd.f32 %v692_v4, %v1731_v63 }
 0x133   :  { %v863_v15 = vadd.f32 %v845_v54, %v714_v53 }
 0x135   :  { %v875_v7 = vadd.f32 %v1762_v49, %v863_v15 }
 0x137   :  { %v883_v12 = vmax.f32 %v875_v7, 0.0 }
 0x138   :  { %v847_v24 = vpop.f32.mrf.mxu2  ;;  %v820_v36 = vpop.f32.mrf.mxu0 }
 0x139   :  { %v890_v31 = vmax.f32 %v882_v29, %v883_v12  ;;  %v848_v62 = vadd.f32 %v847_v24, %v818_v59  ;;  %v721_v9 = vpop.f32.mrf.mxu3  ;;  %v694_v52 = vpop.f32.mrf.mxu1 }
 0x13a   :  { %v722_v10 = vadd.f32 %v721_v9, %v693_v38  ;;  %v695_v57 = vadd.f32 %v694_v52, %v654_v58 }
 0x13b   :  { %894 = vst [vmem:[#allocation2] sm:$0xff] %v890_v31  ;;  %v864_v5 = vadd.f32 %v848_v62, %v717_v17 }
 0x13d   :  { %v876_v25 = vadd.f32 %v1762_v49, %v864_v5 }
 0x13f   :  { %v884_v43 = vmax.f32 %v876_v25, 0.0 }
 0x140   :  { %v849_v14 = vpop.f32.mrf.mxu2  ;;  %v823_v27 = vpop.f32.mrf.mxu0 }
 0x141   :  { %v850_v20 = vadd.f32 %v849_v14, %v820_v36  ;;  %v723_v3 = vpop.f32.mrf.mxu3  ;;  %v697_v32 = vpop.f32.mrf.mxu1 }
 0x142   :  { %v898_v22 = vld [vmem:[#allocation2] ss:$2 sm:$0xf]  ;;  %v902_v2 = vld [vmem:[#allocation2 + $0x1] ss:$2 sm:$0xf]  ;;  %v724_v44 = vadd.f32 %v723_v3, %v695_v57  ;;  %v698_v53 = vadd.f32 %v697_v32, %v1747_v21 }
 0x143   :  { %v906_v30 = vmax.f32 %v898_v22, %v902_v2  ;;  %v865_v23 = vadd.f32 %v850_v20, %v719_v18 }
 0x145   :  { %1119 = vst [vmem:[%s1796_s3 + $0x10] sm:$0xf] %v906_v30  ;;  %v877_v26 = vadd.f32 %v1762_v49, %v865_v23 }
 0x147   :  { %v885_v28 = vmax.f32 %v877_v26, 0.0 }
 0x148   :  { %v852_v8 = vpop.f32.mrf.mxu2  ;;  %v825_v1 = vpop.f32.mrf.mxu0 }
 0x149   :  { %v891_v55 = vmax.f32 %v884_v43, %v885_v28  ;;  %v853_v39 = vadd.f32 %v852_v8, %v823_v27  ;;  %v726_v63 = vpop.f32.mrf.mxu3  ;;  %v699_v59 = vpop.f32.mrf.mxu1 }
 0x14a   :  { %v727_v15 = vadd.f32 %v726_v63, %v698_v53  ;;  %v700_v7 = vadd.f32 %v699_v59, %v659_v60 }
 0x14b   :  { %895 = vst [vmem:[#allocation2 + $0x8] sm:$0xff] %v891_v55  ;;  %v866_v11 = vadd.f32 %v853_v39, %v722_v10 }
 0x14d   :  { %v878_v37 = vadd.f32 %v1762_v49, %v866_v11 }
 0x14f   :  { %v886_v41 = vmax.f32 %v878_v37, 0.0 }
 0x150   :  { %v854_v33 = vpop.f32.mrf.mxu2  ;;  %v828_v13 = vpop.f32.mrf.mxu0 }
 0x151   :  { %v855_v51 = vadd.f32 %v854_v33, %v825_v1  ;;  %v728_v48 = vpop.f32.mrf.mxu3 }
 0x152   :  { %v899_v34 = vld [vmem:[#allocation2 + $0x8] ss:$2 sm:$0xf]  ;;  %v903_v19 = vld [vmem:[#allocation2 + $0x9] ss:$2 sm:$0xf]  ;;  %v729_v24 = vadd.f32 %v728_v48, %v700_v7 }
 0x153   :  { %v907_v35 = vmax.f32 %v899_v34, %v903_v19  ;;  %v867_v40 = vadd.f32 %v855_v51, %v724_v44 }
 0x155   :  { %1120 = vst [vmem:[%s1796_s3 + $0x14] sm:$0xf] %v907_v35  ;;  %v879_v56 = vadd.f32 %v1762_v49, %v867_v40 }
 0x157   :  { %v887_v42 = vmax.f32 %v879_v56, 0.0 }
 0x158   :  { %v857_v45 = vpop.f32.mrf.mxu2  ;;  %v830_v29 = vpop.f32.mrf.mxu0 }
 0x159   :  { %v892_v50 = vmax.f32 %v886_v41, %v887_v42  ;;  %v858_v54 = vadd.f32 %v857_v45, %v828_v13 }
 0x15b   :  { %896 = vst [vmem:[#allocation2 + $0x10] sm:$0xff] %v892_v50  ;;  %v868_v46 = vadd.f32 %v858_v54, %v727_v15 }
 0x15d   :  { %v880_v0 = vadd.f32 %v1762_v49, %v868_v46 }
 0x15f   :  { %v888_v6 = vmax.f32 %v880_v0, 0.0 }
 0x160   :  { %v859_v12 = vpop.f32.mrf.mxu2 }
 0x161   :  { %v860_v31 = vadd.f32 %v859_v12, %v830_v29 }
 0x162   :  { %v900_v36 = vld [vmem:[#allocation2 + $0x10] ss:$2 sm:$0xf]  ;;  %v904_v61 = vld [vmem:[#allocation2 + $0x11] ss:$2 sm:$0xf] }
 0x163   :  { %v908_v62 = vmax.f32 %v900_v36, %v904_v61  ;;  %v869_v21 = vadd.f32 %v860_v31, %v729_v24 }
 0x165   :  { %1121 = vst [vmem:[%s1796_s3 + $0x18] sm:$0xf] %v908_v62  ;;  %v881_v47 = vadd.f32 %v1762_v49, %v869_v21 }
 0x167   :  { %v889_v17 = vmax.f32 %v881_v47, 0.0 }
 0x169   :  { %v893_v4 = vmax.f32 %v888_v6, %v889_v17 }
 0x16b   :  { %897 = vst [vmem:[#allocation2 + $0x18] sm:$0xff] %v893_v4 }
 0x172   :  { %v901_v16 = vld [vmem:[#allocation2 + $0x18] ss:$2 sm:$0xf]  ;;  %v905_v5 = vld [vmem:[#allocation2 + $0x19] ss:$2 sm:$0xf] }
 0x173   :  { %v909_v9 = vmax.f32 %v901_v16, %v905_v5 }
 0x175   :  { %1122 = vst [vmem:[%s1796_s3 + $0x1c] sm:$0xf] %v909_v9 }

// kernel: classifier_forward.5
= control target key start
LH: loop header
LB: loop body
LE: loop exit
PB: predicated region body
PF: predicated region fallthrough
CT: control target
= control target key end

     0   :  { %vm149_vm0 = vcmask 785408   ;;  %vm745_vm1 = vcmask 523264   ;;  %s2794_s1 = inlined_call_operand.vmem [shape: f32[3,96,64], index: 1, kind: input, shape index: {}]   ;;  %s2795_s0 = inlined_call_operand.vmem [shape: f32[2,18,16,96], index: 0, kind: input, shape index: {}]   ;;  %s2796_s2 = inlined_call_operand.vmem [shape: f32[1,64], index: 2, kind: input, shape index: {}]   ;;  %s2797_s3 = inlined_call_operand.vmem [shape: f32[2,8,8,64], index: 3, kind: output, shape index: {}]  }
   0x1   :  { %v1632_v0 = vld [vmem:[%s2794_s1 + $0xb0] sm:$0xff]  ;;  %v1633_v1 = vld [vmem:[%s2794_s1 + $0xb8] sm:$0xff]  ;;  %v1630_v5 = vld [vmem:[%s2794_s1 + $0xa0] sm:$0xff] }
   0x2   :  { %v73_v2 = vld [vmem:[%s2794_s1 + $0x50] sm:$0xff]  ;;  %v1945_v3 = vpack.c.bf16 %v1633_v1, %v1632_v0  ;;  %v74_v4 = vld [vmem:[%s2794_s1 + $0x58] sm:$0xff]  ;;  %v1631_v6 = vld [vmem:[%s2794_s1 + $0xa8] sm:$0xff] }
   0x3   :  { %v1956_v7 = vpack.c.bf16 %v74_v4, %v73_v2  ;;  %v71_v8 = vld [vmem:[%s2794_s1 + $0x40] sm:$0xff]  ;;  %v72_v9 = vld [vmem:[%s2794_s1 + $0x48] sm:$0xff]  ;;  %v1966_v10 = vpack.c.bf16 %v1631_v6, %v1630_v5  ;;  %v1628_v12 = vld [vmem:[%s2794_s1 + $0x90] sm:$0xff] }
   0x4   :  { %1902 = vmatpush.bf16.msra.mxu2 %v1945_v3  ;;  %200 = vmatpush.bf16.msra.mxu0 %v1945_v3  ;;  %v1970_v11 = vpack.c.bf16 %v72_v9, %v71_v8  ;;  %v1629_v13 = vld [vmem:[%s2794_s1 + $0x98] sm:$0xff]  ;;  %v69_v14 = vld [vmem:[%s2794_s1 + $0x30] sm:$0xff]  ;;  %v1626_v18 = vld [vmem:[%s2794_s1 + $0x80] sm:$0xff] }
   0x5   :  { %1908 = vmatpush.bf16.msra.mxu3 %v1956_v7  ;;  %337 = vmatpush.bf16.msra.mxu1 %v1956_v7  ;;  %v70_v15 = vld [vmem:[%s2794_s1 + $0x38] sm:$0xff]  ;;  %v1986_v16 = vpack.c.bf16 %v1629_v13, %v1628_v12  ;;  %v1627_v19 = vld [vmem:[%s2794_s1 + $0x88] sm:$0xff]  ;;  %v67_v20 = vld [vmem:[%s2794_s1 + $0x20] sm:$0xff] }
   0x6   :  { %v1990_v17 = vpack.c.bf16 %v70_v15, %v69_v14  ;;  %v68_v21 = vld [vmem:[%s2794_s1 + $0x28] sm:$0xff]  ;;  %v2006_v22 = vpack.c.bf16 %v1627_v19, %v1626_v18  ;;  %v1624_v24 = vld [vmem:[%s2794_s1 + $0x70] sm:$0xff]  ;;  %v1625_v25 = vld [vmem:[%s2794_s1 + $0x78] sm:$0xff] }
   0x7   :  { %v2010_v23 = vpack.c.bf16 %v68_v21, %v67_v20  ;;  %v65_v26 = vld [vmem:[%s2794_s1 + $0x10] sm:$0xff]  ;;  %v66_v27 = vld [vmem:[%s2794_s1 + $0x18] sm:$0xff]  ;;  %v2026_v28 = vpack.c.bf16 %v1625_v25, %v1624_v24  ;;  %v1622_v30 = vld [vmem:[%s2794_s1 + $0x60] sm:$0xff] }
   0x8   :  { %1903 = vmatpush.bf16.msra.mxu2 %v1966_v10  ;;  %201 = vmatpush.bf16.msra.mxu0 %v1966_v10  ;;  %v2030_v29 = vpack.c.bf16 %v66_v27, %v65_v26  ;;  %v1623_v31 = vld [vmem:[%s2794_s1 + $0x68] sm:$0xff]  ;;  %v63_v32 = vld [vmem:[%s2794_s1] sm:$0xff]  ;;  %v1708_v34 = vld [vmem:[%s2794_s1 + $0x110] sm:$0xff] }
   0x9   :  { %1909 = vmatpush.bf16.msra.mxu3 %v1970_v11  ;;  %338 = vmatpush.bf16.msra.mxu1 %v1970_v11  ;;  %v64_v33 = vld [vmem:[%s2794_s1 + $0x8] sm:$0xff]  ;;  %v1709_v35 = vld [vmem:[%s2794_s1 + $0x118] sm:$0xff]  ;;  %v1606_v36 = vld [vmem:[%s2795_s0 + $0x90] sm:$0xff]  ;;  %v143_v37 = vpack.c.bf16 %v1623_v31, %v1622_v30 }
   0xa   :  { %v1607_v38 = vld [vmem:[%s2795_s0 + $0x98] sm:$0xff]  ;;  %v1590_v39 = vld [vmem:[%s2795_s0 + $0x10] sm:$0xff]  ;;  %v75_v41 = vpack.c.bf16 %v64_v33, %v63_v32  ;;  %v31_v42 = vld [vmem:[%s2795_s0 + $0x80] sm:$0xff]  ;;  %v491_v44 = vpack.c.bf16 %v1709_v35, %v1708_v34 }
   0xb   :  { %v1591_v40 = vld [vmem:[%s2795_s0 + $0x18] sm:$0xff]  ;;  %v32_v43 = vld [vmem:[%s2795_s0 + $0x88] sm:$0xff]  ;;  %v15_v45 = vld [vmem:[%s2795_s0] sm:$0xff]  ;;  %v2084_v49 = vpack.c.bf16 %v1607_v38, %v1606_v36 }
   0xc   :  { %1904 = vmatpush.bf16.msra.mxu2 %v1986_v16  ;;  %202 = vmatpush.bf16.msra.mxu0 %v1986_v16  ;;  %v16_v46 = vld [vmem:[%s2795_s0 + $0x8] sm:$0xff]  ;;  %v1706_v47 = vld [vmem:[%s2794_s1 + $0x100] sm:$0xff]  ;;  %v114_v50 = vpack.c.bf16 %v1591_v40, %v1590_v39  ;;  %v2086_v51 = vpack.c.bf16 %v32_v43, %v31_v42  ;;  %v1704_v54 = vld [vmem:[%s2794_s1 + $0xf0] sm:$0xff] }
   0xd   :  { %1910 = vmatpush.bf16.msra.mxu3 %v1990_v17  ;;  %339 = vmatpush.bf16.msra.mxu1 %v1990_v17  ;;  %v1707_v48 = vld [vmem:[%s2794_s1 + $0x108] sm:$0xff]  ;;  %v47_v52 = vpack.c.bf16 %v16_v46, %v15_v45  ;;  %v1705_v55 = vld [vmem:[%s2794_s1 + $0xf8] sm:$0xff]  ;;  %v1608_v57 = vld [vmem:[%s2795_s0 + $0xa0] sm:$0xff] }
   0xe   :  { %v490_v53 = vpack.c.bf16 %v1707_v48, %v1706_v47  ;;  %v489_v56 = vpack.c.bf16 %v1705_v55, %v1704_v54  ;;  %v1609_v58 = vld [vmem:[%s2795_s0 + $0xa8] sm:$0xff]  ;;  %v1592_v59 = vld [vmem:[%s2795_s0 + $0x20] sm:$0xff]  ;;  %v1610_v63 = vld [vmem:[%s2795_s0 + $0xb0] sm:$0xff] }
   0xf   :  { %v1593_v60 = vld [vmem:[%s2795_s0 + $0x28] sm:$0xff]  ;;  %v2119_v61 = vpack.c.bf16 %v1609_v58, %v1608_v57  ;;  %v1611_v0 = vld [vmem:[%s2795_s0 + $0xb8] sm:$0xff]  ;;  %v1594_v1 = vld [vmem:[%s2795_s0 + $0x30] sm:$0xff] }
  0x10   :  { %1905 = vmatpush.bf16.msra.mxu2 %v2006_v22  ;;  %203 = vmatpush.bf16.msra.mxu0 %v2006_v22  ;;  %v2121_v62 = vpack.c.bf16 %v1593_v60, %v1592_v59  ;;  %v1595_v2 = vld [vmem:[%s2795_s0 + $0x38] sm:$0xff]  ;;  %v1702_v5 = vld [vmem:[%s2794_s1 + $0xe0] sm:$0xff]  ;;  %v1703_v6 = vld [vmem:[%s2794_s1 + $0xe8] sm:$0xff] }
  0x11   :  { %1911 = vmatpush.bf16.msra.mxu3 %v2010_v23  ;;  %340 = vmatpush.bf16.msra.mxu1 %v2010_v23  ;;  %v2147_v4 = vpack.c.bf16 %v1595_v2, %v1594_v1  ;;  %v1612_v8 = vld [vmem:[%s2795_s0 + $0xc0] sm:$0xff]  ;;  %v1613_v9 = vld [vmem:[%s2795_s0 + $0xc8] sm:$0xff]  ;;  %v1700_v14 = vld [vmem:[%s2794_s1 + $0xd0] sm:$0xff] }
  0x12   :  { %v2175_v12 = vpack.c.bf16 %v1613_v9, %v1612_v8  ;;  %v1701_v15 = vld [vmem:[%s2794_s1 + $0xd8] sm:$0xff]  ;;  %v1598_v19 = vld [vmem:[%s2795_s0 + $0x50] sm:$0xff]  ;;  %v1699_v24 = vld [vmem:[%s2794_s1 + $0xc8] sm:$0xff] }
  0x13   :  { %v1615_v18 = vld [vmem:[%s2795_s0 + $0xd8] sm:$0xff]  ;;  %v1616_v26 = vld [vmem:[%s2795_s0 + $0xe0] sm:$0xff]  ;;  %v1617_v27 = vld [vmem:[%s2795_s0 + $0xe8] sm:$0xff] }
  0x14   :  { %1906 = vmatpush.bf16.msra.mxu2 %v2026_v28  ;;  %204 = vmatpush.bf16.msra.mxu0 %v2026_v28  ;;  %v1599_v20 = vld [vmem:[%s2795_s0 + $0x58] sm:$0xff]  ;;  %v2235_v30 = vpack.c.bf16 %v1617_v27, %v1616_v26  ;;  %v1618_v32 = vld [vmem:[%s2795_s0 + $0xf0] sm:$0xff]  ;;  %v1620_v38 = vld [vmem:[%s2795_s0 + $0x100] sm:$0xff] }
  0x15   :  { %1912 = vmatpush.bf16.msra.mxu3 %v2030_v29  ;;  %341 = vmatpush.bf16.msra.mxu1 %v2030_v29  ;;  %v1619_v33 = vld [vmem:[%s2795_s0 + $0xf8] sm:$0xff]  ;;  %v1602_v34 = vld [vmem:[%s2795_s0 + $0x70] sm:$0xff]  ;;  %v1621_v39 = vld [vmem:[%s2795_s0 + $0x108] sm:$0xff] }
  0x16   :  { %v1603_v35 = vld [vmem:[%s2795_s0 + $0x78] sm:$0xff]  ;;  %v2259_v36 = vpack.c.bf16 %v1619_v33, %v1618_v32  ;;  %v129_v40 = vpack.c.bf16 %v1621_v39, %v1620_v38  ;;  %v1727_v42 = vld [vmem:[%s2795_s0 + $0x128] sm:$0xff]  ;;  %v1758_v43 = vld [vmem:[%s2795_s0 + $0x130] sm:$0xff] }
  0x17   :  { %v1834_v45 = vld [vmem:[%s2795_s0 + $0x140] sm:$0xff]  ;;  %v1835_v46 = vld [vmem:[%s2795_s0 + $0x148] sm:$0xff]  ;;  %v1841_v38 = vld [vmem:[%s2795_s0 + $0x178] sm:$0xff] }
  0x18   :  { %1907 = vmatpush.bf16.msra.mxu2 %v143_v37  ;;  %205 = vmatpush.bf16.msra.mxu0 %v143_v37 }
  0x19   :  { %1913 = vmatpush.bf16.msra.mxu3 %v75_v41  ;;  %342 = vmatpush.bf16.msra.mxu1 %v75_v41 }
  0x1b   :  { %1642 = vmatmul.msk.bf16.vlgmr.msra.gmra.mxu2 %vm149_vm0, %v2084_v49  ;;  %1634 = vmatmul.msk.bf16.vlgmr.msra.gmra.mxu0 %vm149_vm0, %v114_v50 }
  0x1c   :  { %542 = vmatpush.bf16.msrb.mxu2 %v491_v44  ;;  %1658 = vmatmul.msk.bf16.vlgmr.msra.gmra.mxu3 %vm149_vm0, %v2086_v51 }
  0x1d   :  { %993 = vmatpush.bf16.msrb.mxu3 %v1945_v3  ;;  %1130 = vmatpush.bf16.msrb.mxu0 %v1956_v7  ;;  %v2145_v3 = vpack.c.bf16 %v1611_v0, %v1610_v63  ;;  %v488_v7 = vpack.c.bf16 %v1703_v6, %v1702_v5  ;;  %v1837_v0 = vld [vmem:[%s2795_s0 + $0x158] sm:$0xff] }
  0x1e   :  { %1650 = vmatmul.msk.bf16.vlgmr.msra.gmra.mxu1 %vm149_vm0, %v47_v52  ;;  %v1250_v52 = vpack.c.bf16 %v1835_v46, %v1834_v45 }
  0x1f   :  { %1334 = vmatpush.bf16.msrb.mxu1 %v491_v44  ;;  %v1759_v44 = vld [vmem:[%s2795_s0 + $0x138] sm:$0xff] }
  0x20   :  { %543 = vmatpush.bf16.msrb.mxu2 %v490_v53  ;;  %v909_v48 = vpack.c.bf16 %v1759_v44, %v1758_v43 }
  0x21   :  { %994 = vmatpush.bf16.msrb.mxu3 %v1966_v10  ;;  %1131 = vmatpush.bf16.msrb.mxu0 %v1970_v11  ;;  %v1596_v10 = vld [vmem:[%s2795_s0 + $0x40] sm:$0xff]  ;;  %v1597_v11 = vld [vmem:[%s2795_s0 + $0x48] sm:$0xff] }
  0x22   :  { %v2177_v13 = vpack.c.bf16 %v1597_v11, %v1596_v10 }
  0x23   :  { %1335 = vmatpush.bf16.msrb.mxu1 %v490_v53 }
  0x24   :  { %544 = vmatpush.bf16.msrb.mxu2 %v489_v56 }
  0x25   :  { %995 = vmatpush.bf16.msrb.mxu3 %v1986_v16  ;;  %1132 = vmatpush.bf16.msrb.mxu0 %v1990_v17  ;;  %v487_v16 = vpack.c.bf16 %v1701_v15, %v1700_v14  ;;  %v1614_v17 = vld [vmem:[%s2795_s0 + $0xd0] sm:$0xff] }
  0x26   :  { %v2205_v21 = vpack.c.bf16 %v1615_v18, %v1614_v17  ;;  %v1839_v18 = vld [vmem:[%s2795_s0 + $0x168] sm:$0xff] }
  0x27   :  { %1336 = vmatpush.bf16.msrb.mxu1 %v489_v56 }
  0x28   :  { %545 = vmatpush.bf16.msrb.mxu2 %v488_v7 }
  0x29   :  { %996 = vmatpush.bf16.msrb.mxu3 %v2006_v22  ;;  %1133 = vmatpush.bf16.msrb.mxu0 %v2010_v23  ;;  %v2207_v22 = vpack.c.bf16 %v1599_v20, %v1598_v19  ;;  %v1698_v23 = vld [vmem:[%s2794_s1 + $0xc0] sm:$0xff] }
  0x2a   :  { %v486_v25 = vpack.c.bf16 %v1699_v24, %v1698_v23 }
  0x2b   :  { %1643 = vmatmul.msk.bf16.gmra.mxu2 %vm149_vm0, %v2119_v61  ;;  %1635 = vmatmul.msk.bf16.gmra.mxu0 %vm149_vm0, %v2121_v62 }
  0x2c   :  { %1659 = vmatmul.msk.bf16.gmra.mxu3 %vm149_vm0, %v2084_v49  ;;  %1337 = vmatpush.bf16.msrb.mxu1 %v488_v7 }
  0x2d   :  { %997 = vmatpush.bf16.msrb.mxu3 %v2026_v28  ;;  %1134 = vmatpush.bf16.msrb.mxu0 %v2030_v29  ;;  %v1600_v28 = vld [vmem:[%s2795_s0 + $0x60] sm:$0xff]  ;;  %v1601_v29 = vld [vmem:[%s2795_s0 + $0x68] sm:$0xff] }
  0x2e   :  { %1651 = vmatmul.msk.bf16.gmra.mxu1 %vm149_vm0, %v114_v50  ;;  %546 = vmatpush.bf16.msrb.mxu2 %v487_v16  ;;  %v2237_v31 = vpack.c.bf16 %v1601_v29, %v1600_v28 }
  0x30   :  { %1338 = vmatpush.bf16.msrb.mxu1 %v487_v16 }
  0x31   :  { %998 = vmatpush.bf16.msrb.mxu3 %v143_v37  ;;  %1135 = vmatpush.bf16.msrb.mxu0 %v75_v41  ;;  %v2261_v37 = vpack.c.bf16 %v1603_v35, %v1602_v34  ;;  %v1726_v41 = vld [vmem:[%s2795_s0 + $0x120] sm:$0xff] }
  0x32   :  { %547 = vmatpush.bf16.msrb.mxu2 %v486_v25  ;;  %v842_v47 = vpack.c.bf16 %v1727_v42, %v1726_v41 }
  0x34   :  { %1339 = vmatpush.bf16.msrb.mxu1 %v486_v25 }
  0x3b   :  { %1644 = vmatmul.msk.bf16.gmra.mxu2 %vm149_vm0, %v2145_v3  ;;  %1636 = vmatmul.msk.bf16.gmra.mxu0 %vm149_vm0, %v2147_v4 }
  0x3c   :  { %1660 = vmatmul.msk.bf16.gmra.mxu3 %vm149_vm0, %v2119_v61 }
  0x3e   :  { %1652 = vmatmul.msk.bf16.gmra.mxu1 %vm149_vm0, %v2121_v62 }
  0x4b   :  { %1645 = vmatmul.msk.bf16.gmra.mxu2 %vm149_vm0, %v2175_v12  ;;  %1637 = vmatmul.msk.bf16.gmra.mxu0 %vm149_vm0, %v2177_v13 }
  0x4c   :  { %1661 = vmatmul.msk.bf16.gmra.mxu3 %vm149_vm0, %v2145_v3 }
  0x4e   :  { %1653 = vmatmul.msk.bf16.gmra.mxu1 %vm149_vm0, %v2147_v4 }
  0x5b   :  { %1646 = vmatmul.msk.bf16.gmra.mxu2 %vm149_vm0, %v2205_v21  ;;  %1638 = vmatmul.msk.bf16.gmra.mxu0 %vm149_vm0, %v2207_v22 }
  0x5c   :  { %1662 = vmatmul.msk.bf16.gmra.mxu3 %vm149_vm0, %v2175_v12 }
  0x5e   :  { %1654 = vmatmul.msk.bf16.gmra.mxu1 %vm149_vm0, %v2177_v13 }
  0x6b   :  { %1647 = vmatmul.msk.bf16.gmra.mxu2 %vm149_vm0, %v2235_v30  ;;  %1639 = vmatmul.msk.bf16.gmra.mxu0 %vm149_vm0, %v2237_v31 }
  0x6c   :  { %1663 = vmatmul.msk.bf16.gmra.mxu3 %vm149_vm0, %v2205_v21 }
  0x6e   :  { %1655 = vmatmul.msk.bf16.gmra.mxu1 %vm149_vm0, %v2207_v22 }
  0x7b   :  { %1648 = vmatmul.msk.bf16.gmra.mxu2 %vm149_vm0, %v2259_v36  ;;  %1640 = vmatmul.msk.bf16.gmra.mxu0 %vm149_vm0, %v2261_v37 }
  0x7c   :  { %1664 = vmatmul.msk.bf16.gmra.mxu3 %vm149_vm0, %v2235_v30 }
  0x7e   :  { %1656 = vmatmul.msk.bf16.gmra.mxu1 %vm149_vm0, %v2237_v31 }
  0x8b   :  { %1649 = vmatmul.msk.bf16.gmra.mxu2 %vm149_vm0, %v129_v40  ;;  %1641 = vmatmul.msk.bf16.gmra.mxu0 %vm149_vm0, %v2086_v51 }
  0x8c   :  { %1665 = vmatmul.msk.bf16.gmra.mxu3 %vm149_vm0, %v2259_v36 }
  0x8e   :  { %1657 = vmatmul.msk.bf16.gmra.mxu1 %vm149_vm0, %v2261_v37 }
  0x98   :  { %v207_v50 = vpop.f32.mrf.mxu0 }
  0x9b   :  { %v344_v53 = vpop.f32.mrf.mxu1  ;;  %1710 = vmatmul.msk.bf16.vlgmr.msrb.gmra.mxu2 %vm149_vm0, %v2121_v62  ;;  %1818 = vmatmul.msk.bf16.vlgmr.msrb.gmra.mxu0 %vm149_vm0, %v842_v47  ;;  %v1836_v62 = vld [vmem:[%s2795_s0 + $0x150] sm:$0xff] }
  0x9c   :  { %v2304_v54 = vadd.f32 %v344_v53, %v207_v50  ;;  %1802 = vmatmul.msk.bf16.vlgmr.msrb.gmra.mxu3 %vm149_vm0, %v909_v48  ;;  %v1251_v6 = vpack.c.bf16 %v1837_v0, %v1836_v62 }
  0x9e   :  { %1878 = vmatmul.msk.bf16.vlgmr.msrb.gmra.mxu1 %vm149_vm0, %v1250_v52  ;;  %v247_v55 = vpop.f32.mrf.mxu2 }
  0x9f   :  { %v384_v56 = vpop.f32.mrf.mxu3 }
  0xa0   :  { %v2309_v57 = vadd.f32 %v384_v56, %v247_v55  ;;  %v209_v58 = vpop.f32.mrf.mxu0  ;;  %v1843_v55 = vld [vmem:[%s2795_s0 + $0x188] sm:$0xff] }
  0xa3   :  { %v346_v59 = vpop.f32.mrf.mxu1 }
  0xa4   :  { %v2311_v60 = vadd.f32 %v346_v59, %v209_v58 }
  0xa6   :  { %v249_v63 = vpop.f32.mrf.mxu2 }
  0xa7   :  { %v386_v1 = vpop.f32.mrf.mxu3 }
  0xa8   :  { %v2319_v2 = vadd.f32 %v386_v1, %v249_v63  ;;  %v212_v5 = vpop.f32.mrf.mxu0 }
  0xab   :  { %v349_v7 = vpop.f32.mrf.mxu1  ;;  %1711 = vmatmul.msk.bf16.gmra.mxu2 %vm149_vm0, %v2147_v4  ;;  %1819 = vmatmul.msk.bf16.gmra.mxu0 %vm149_vm0, %v909_v48  ;;  %v1838_v4 = vld [vmem:[%s2795_s0 + $0x160] sm:$0xff] }
  0xac   :  { %v2323_v8 = vadd.f32 %v349_v7, %v212_v5  ;;  %1803 = vmatmul.msk.bf16.gmra.mxu3 %vm149_vm0, %v1250_v52  ;;  %v1252_v24 = vpack.c.bf16 %v1839_v18, %v1838_v4 }
  0xae   :  { %1879 = vmatmul.msk.bf16.gmra.mxu1 %vm149_vm0, %v1251_v6  ;;  %v252_v9 = vpop.f32.mrf.mxu2 }
  0xaf   :  { %v389_v10 = vpop.f32.mrf.mxu3 }
  0xb0   :  { %v2328_v11 = vadd.f32 %v389_v10, %v252_v9  ;;  %v214_v14 = vpop.f32.mrf.mxu0 }
  0xb3   :  { %v351_v15 = vpop.f32.mrf.mxu1 }
  0xb4   :  { %v2330_v16 = vadd.f32 %v351_v15, %v214_v14  ;;  %v1845_v15 = vld [vmem:[%s2795_s0 + $0x198] sm:$0xff] }
  0xb6   :  { %v254_v17 = vpop.f32.mrf.mxu2 }
  0xb7   :  { %v391_v19 = vpop.f32.mrf.mxu3 }
  0xb8   :  { %v2338_v20 = vadd.f32 %v391_v19, %v254_v17  ;;  %v217_v23 = vpop.f32.mrf.mxu0 }
  0xbb   :  { %v354_v25 = vpop.f32.mrf.mxu1  ;;  %1712 = vmatmul.msk.bf16.gmra.mxu2 %vm149_vm0, %v2177_v13  ;;  %1820 = vmatmul.msk.bf16.gmra.mxu0 %vm149_vm0, %v1250_v52  ;;  %v1840_v13 = vld [vmem:[%s2795_s0 + $0x170] sm:$0xff] }
  0xbc   :  { %v2342_v26 = vadd.f32 %v354_v25, %v217_v23  ;;  %1804 = vmatmul.msk.bf16.gmra.mxu3 %vm149_vm0, %v1251_v6  ;;  %v1253_v42 = vpack.c.bf16 %v1841_v38, %v1840_v13  ;;  %v1847_v38 = vld [vmem:[%s2795_s0 + $0x1a8] sm:$0xff] }
  0xbe   :  { %1880 = vmatmul.msk.bf16.gmra.mxu1 %vm149_vm0, %v1252_v24  ;;  %v257_v27 = vpop.f32.mrf.mxu2 }
  0xbf   :  { %v394_v28 = vpop.f32.mrf.mxu3 }
  0xc0   :  { %v2347_v29 = vadd.f32 %v394_v28, %v257_v27  ;;  %v219_v32 = vpop.f32.mrf.mxu0 }
  0xc3   :  { %v356_v33 = vpop.f32.mrf.mxu1 }
  0xc4   :  { %v2349_v34 = vadd.f32 %v356_v33, %v219_v32 }
  0xc6   :  { %v259_v35 = vpop.f32.mrf.mxu2 }
  0xc7   :  { %v396_v39 = vpop.f32.mrf.mxu3 }
  0xc8   :  { %v2357_v40 = vadd.f32 %v396_v39, %v259_v35  ;;  %v222_v41 = vpop.f32.mrf.mxu0 }
  0xcb   :  { %v359_v43 = vpop.f32.mrf.mxu1  ;;  %1713 = vmatmul.msk.bf16.gmra.mxu2 %vm149_vm0, %v2207_v22  ;;  %1821 = vmatmul.msk.bf16.gmra.mxu0 %vm149_vm0, %v1251_v6  ;;  %v1842_v22 = vld [vmem:[%s2795_s0 + $0x180] sm:$0xff] }
  0xcc   :  { %v2361_v44 = vadd.f32 %v359_v43, %v222_v41  ;;  %1805 = vmatmul.msk.bf16.gmra.mxu3 %vm149_vm0, %v1252_v24  ;;  %v1254_v63 = vpack.c.bf16 %v1843_v55, %v1842_v22 }
  0xce   :  { %1881 = vmatmul.msk.bf16.gmra.mxu1 %vm149_vm0, %v1253_v42  ;;  %v262_v45 = vpop.f32.mrf.mxu2 }
  0xcf   :  { %v399_v46 = vpop.f32.mrf.mxu3 }
  0xd0   :  { %v2366_v47 = vadd.f32 %v399_v46, %v262_v45  ;;  %v224_v48 = vpop.f32.mrf.mxu0 }
  0xd3   :  { %v361_v50 = vpop.f32.mrf.mxu1 }
  0xd4   :  { %v2368_v52 = vadd.f32 %v361_v50, %v224_v48 }
  0xd6   :  { %v264_v53 = vpop.f32.mrf.mxu2 }
  0xd7   :  { %v401_v56 = vpop.f32.mrf.mxu3 }
  0xd8   :  { %v2376_v58 = vadd.f32 %v401_v56, %v264_v53  ;;  %v227_v59 = vpop.f32.mrf.mxu0 }
  0xdb   :  { %v364_v62 = vpop.f32.mrf.mxu1  ;;  %1714 = vmatmul.msk.bf16.gmra.mxu2 %vm149_vm0, %v2237_v31  ;;  %1822 = vmatmul.msk.bf16.gmra.mxu0 %vm149_vm0, %v1252_v24  ;;  %v1844_v31 = vld [vmem:[%s2795_s0 + $0x190] sm:$0xff] }
  0xdc   :  { %v2380_v0 = vadd.f32 %v364_v62, %v227_v59  ;;  %1806 = vmatmul.msk.bf16.gmra.mxu3 %vm149_vm0, %v1253_v42  ;;  %v1255_v19 = vpack.c.bf16 %v1845_v15, %v1844_v31 }
  0xde   :  { %1882 = vmatmul.msk.bf16.gmra.mxu1 %vm149_vm0, %v1254_v63  ;;  %v267_v1 = vpop.f32.mrf.mxu2 }
  0xdf   :  { %v404_v5 = vpop.f32.mrf.mxu3 }
  0xe0   :  { %v2385_v6 = vadd.f32 %v404_v5, %v267_v1  ;;  %v229_v7 = vpop.f32.mrf.mxu0 }
  0xe3   :  { %v366_v9 = vpop.f32.mrf.mxu1 }
  0xe4   :  { %v2387_v10 = vadd.f32 %v366_v9, %v229_v7 }
  0xe6   :  { %v269_v14 = vpop.f32.mrf.mxu2 }
  0xe7   :  { %v406_v17 = vpop.f32.mrf.mxu3 }
  0xe8   :  { %v2395_v4 = vadd.f32 %v406_v17, %v269_v14  ;;  %v232_v18 = vpop.f32.mrf.mxu0 }
  0xeb   :  { %v369_v23 = vpop.f32.mrf.mxu1  ;;  %1715 = vmatmul.msk.bf16.gmra.mxu2 %vm149_vm0, %v2261_v37  ;;  %1823 = vmatmul.msk.bf16.gmra.mxu0 %vm149_vm0, %v1253_v42  ;;  %v1846_v37 = vld [vmem:[%s2795_s0 + $0x1a0] sm:$0xff] }
  0xec   :  { %v2399_v24 = vadd.f32 %v369_v23, %v232_v18  ;;  %1807 = vmatmul.msk.bf16.gmra.mxu3 %vm149_vm0, %v1254_v63  ;;  %v1256_v43 = vpack.c.bf16 %v1847_v38, %v1846_v37 }
  0xee   :  { %1883 = vmatmul.msk.bf16.gmra.mxu1 %vm149_vm0, %v1255_v19  ;;  %v272_v25 = vpop.f32.mrf.mxu2 }
  0xef   :  { %v409_v27 = vpop.f32.mrf.mxu3 }
  0xf0   :  { %v2404_v28 = vadd.f32 %v409_v27, %v272_v25  ;;  %v234_v32 = vpop.f32.mrf.mxu0 }
  0xf3   :  { %v371_v33 = vpop.f32.mrf.mxu1 }
  0xf4   :  { %v2406_v35 = vadd.f32 %v371_v33, %v234_v32 }
  0xf6   :  { %v274_v13 = vpop.f32.mrf.mxu2 }
  0xf7   :  { %v411_v39 = vpop.f32.mrf.mxu3 }
  0xf8   :  { %v2414_v41 = vadd.f32 %v411_v39, %v274_v13  ;;  %v237_v42 = vpop.f32.mrf.mxu0 }
  0xfb   :  { %v374_v45 = vpop.f32.mrf.mxu1  ;;  %1716 = vmatmul.msk.bf16.gmra.mxu2 %vm149_vm0, %v2086_v51  ;;  %1824 = vmatmul.msk.bf16.gmra.mxu0 %vm149_vm0, %v1254_v63  ;;  %v1848_v51 = vld [vmem:[%s2795_s0 + $0x1b0] sm:$0xff]  ;;  %v1849_v63 = vld [vmem:[%s2795_s0 + $0x1b8] sm:$0xff] }
  0xfc   :  { %v2418_v46 = vadd.f32 %v374_v45, %v237_v42  ;;  %1808 = vmatmul.msk.bf16.gmra.mxu3 %vm149_vm0, %v1255_v19  ;;  %v1257_v7 = vpack.c.bf16 %v1849_v63, %v1848_v51 }
  0xfe   :  { %1884 = vmatmul.msk.bf16.gmra.mxu1 %vm149_vm0, %v1256_v43  ;;  %v277_v48 = vpop.f32.mrf.mxu2 }
  0xff   :  { %v414_v50 = vpop.f32.mrf.mxu3 }
 0x100   :  { %v2423_v53 = vadd.f32 %v414_v50, %v277_v48  ;;  %v239_v22 = vpop.f32.mrf.mxu0 }
 0x103   :  { %v376_v55 = vpop.f32.mrf.mxu1 }
 0x104   :  { %v2425_v56 = vadd.f32 %v376_v55, %v239_v22  ;;  %v1852_v22 = vld [vmem:[%s2795_s0 + $0x1d0] sm:$0xff]  ;;  %v1853_v55 = vld [vmem:[%s2795_s0 + $0x1d8] sm:$0xff] }
 0x106   :  { %v279_v59 = vpop.f32.mrf.mxu2 }
 0x107   :  { %v416_v62 = vpop.f32.mrf.mxu3 }
 0x108   :  { %v2433_v1 = vadd.f32 %v416_v62, %v279_v59  ;;  %v242_v5 = vpop.f32.mrf.mxu0  ;;  %v2471_v62 = vld [vmem:[%s2796_s2] ss:$0 sm:$0xff] }
 0x10b   :  { %v379_v9 = vpop.f32.mrf.mxu1  ;;  %1717 = vmatmul.msk.bf16.gmra.mxu2 %vm149_vm0, %v2084_v49  ;;  %1825 = vmatmul.msk.bf16.gmra.mxu0 %vm149_vm0, %v1255_v19  ;;  %v1850_v49 = vld [vmem:[%s2795_s0 + $0x1c0] sm:$0xff]  ;;  %v1851_v19 = vld [vmem:[%s2795_s0 + $0x1c8] sm:$0xff] }
 0x10c   :  { %v2437_v14 = vadd.f32 %v379_v9, %v242_v5  ;;  %1809 = vmatmul.msk.bf16.gmra.mxu3 %vm149_vm0, %v1256_v43  ;;  %v1258_v37 = vpack.c.bf16 %v1851_v19, %v1850_v49 }
 0x10e   :  { %1885 = vmatmul.msk.bf16.gmra.mxu1 %vm149_vm0, %v1257_v7  ;;  %v282_v31 = vpop.f32.mrf.mxu2 }
 0x10f   :  { %v419_v15 = vpop.f32.mrf.mxu3 }
 0x110   :  { %v2442_v17 = vadd.f32 %v419_v15, %v282_v31  ;;  %v244_v18 = vpop.f32.mrf.mxu0 }
 0x113   :  { %v381_v23 = vpop.f32.mrf.mxu1 }
 0x114   :  { %v2444_v25 = vadd.f32 %v381_v23, %v244_v18 }
 0x116   :  { %v284_v27 = vpop.f32.mrf.mxu2 }
 0x117   :  { %v421_v32 = vpop.f32.mrf.mxu3 }
 0x118   :  { %v2452_v33 = vadd.f32 %v421_v32, %v284_v27  ;;  %v1137_v13 = vpop.f32.mrf.mxu0 }
 0x11b   :  { %v1341_v38 = vpop.f32.mrf.mxu1  ;;  %1718 = vmatmul.msk.bf16.gmra.mxu2 %vm149_vm0, %v2119_v61  ;;  %1826 = vmatmul.msk.bf16.gmra.mxu0 %vm149_vm0, %v1256_v43  ;;  %v2465_v43 = vpack.c.bf16 %v1853_v55, %v1852_v22 }
 0x11c   :  { %1810 = vmatmul.msk.bf16.gmra.mxu3 %vm149_vm0, %v1257_v7 }
 0x11e   :  { %1886 = vmatmul.msk.bf16.gmra.mxu1 %vm149_vm0, %v1258_v37  ;;  %v549_v39 = vpop.f32.mrf.mxu2 }
 0x11f   :  { %v1000_v42 = vpop.f32.mrf.mxu3  ;;  %v629_v63 = vadd.f32 %v549_v39, %v2304_v54  ;;  %v1854_v39 = vld [vmem:[%s2795_s0 + $0x1e0] sm:$0xff] }
 0x120   :  { %v1139_v45 = vpop.f32.mrf.mxu0  ;;  %v1138_v22 = vadd.f32 %v1137_v13, %v1000_v42  ;;  %v2502_v42 = vld [vmem:[%s2796_s2] ss:$0 sm:$0xff] }
 0x121   :  { %v665_v9 = vadd.f32 %v2471_v62, %v629_v63 }
 0x122   :  { %v1421_v13 = vadd.f32 %v1341_v38, %v1138_v22  ;;  %v1856_v22 = vld [vmem:[%s2795_s0 + $0x1f0] sm:$0xff] }
 0x123   :  { %v1343_v48 = vpop.f32.mrf.mxu1  ;;  %v697_v27 = vmax.f32 %v665_v9, 0.0 }
 0x126   :  { %v551_v50 = vpop.f32.mrf.mxu2 }
 0x127   :  { %v1002_v61 = vpop.f32.mrf.mxu3 }
 0x128   :  { %v1142_v59 = vpop.f32.mrf.mxu0  ;;  %v1140_v63 = vadd.f32 %v1139_v45, %v1002_v61 }
 0x12a   :  { %v1422_v45 = vadd.f32 %v1343_v48, %v1140_v63 }
 0x12b   :  { %v1346_v51 = vpop.f32.mrf.mxu1  ;;  %1719 = vmatmul.msk.bf16.gmra.mxu2 %vm149_vm0, %v2145_v3  ;;  %1827 = vmatmul.msk.bf16.gmra.mxu0 %vm149_vm0, %v1257_v7  ;;  %v630_v3 = vadd.f32 %v551_v50, %v2311_v60 }
 0x12c   :  { %1811 = vmatmul.msk.bf16.gmra.mxu3 %vm149_vm0, %v1258_v37 }
 0x12d   :  { %v666_v55 = vadd.f32 %v2471_v62, %v630_v3 }
 0x12e   :  { %1887 = vmatmul.msk.bf16.gmra.mxu1 %vm149_vm0, %v2465_v43  ;;  %v554_v5 = vpop.f32.mrf.mxu2 }
 0x12f   :  { %v631_v54 = vadd.f32 %v554_v5, %v2323_v8  ;;  %v1005_v31 = vpop.f32.mrf.mxu3  ;;  %v1855_v8 = vld [vmem:[%s2795_s0 + $0x1e8] sm:$0xff] }
 0x130   :  { %v1144_v15 = vpop.f32.mrf.mxu0  ;;  %v1143_v19 = vadd.f32 %v1142_v59, %v1005_v31  ;;  %v2495_v31 = vpack.c.bf16 %v1855_v8, %v1854_v39 }
 0x131   :  { %v667_v18 = vadd.f32 %v2471_v62, %v631_v54 }
 0x132   :  { %v1423_v9 = vadd.f32 %v1346_v51, %v1143_v19 }
 0x133   :  { %v1348_v23 = vpop.f32.mrf.mxu1  ;;  %v699_v49 = vmax.f32 %v667_v18, 0.0 }
 0x134   :  { %v1459_v61 = vadd.f32 %v2502_v42, %v1423_v9 }
 0x135   :  { %v729_v7 = vmax.f32 %v697_v27, %v699_v49 }
 0x136   :  { %v556_v32 = vpop.f32.mrf.mxu2  ;;  %v1491_v49 = vmax.f32 %v1459_v61, 0.0 }
 0x137   :  { %746 = vst.msk [vmem:[#allocation2] sm:$0xff] %vm745_vm1, %v729_v7  ;;  %v632_v60 = vadd.f32 %v556_v32, %v2330_v16  ;;  %v1007_v50 = vpop.f32.mrf.mxu3  ;;  %v698_v16 = vmax.f32 %v666_v55, 0.0 }
 0x138   :  { %v1145_v5 = vadd.f32 %v1144_v15, %v1007_v50  ;;  %v2492_v59 = vpop.f32.mrf.mxu0 }
 0x139   :  { %v668_v54 = vadd.f32 %v2471_v62, %v632_v60 }
 0x13a   :  { %v1424_v18 = vadd.f32 %v1348_v23, %v1145_v5  ;;  %v1457_v23 = vadd.f32 %v2502_v42, %v1421_v13  ;;  %v1857_v5 = vld [vmem:[%s2795_s0 + $0x1f8] sm:$0xff] }
 0x13b   :  { %v2497_v27 = vpop.f32.mrf.mxu1  ;;  %v700_v3 = vmax.f32 %v668_v54, 0.0  ;;  %1720 = vmatmul.msk.bf16.gmra.mxu2 %vm149_vm0, %v2175_v12  ;;  %1828 = vmatmul.msk.bf16.gmra.mxu0 %vm149_vm0, %v1258_v37  ;;  %v1458_v37 = vadd.f32 %v2502_v42, %v1422_v45  ;;  %v2528_v13 = vpack.c.bf16 %v1857_v5, %v1856_v22 }
 0x13c   :  { %1812 = vmatmul.msk.bf16.gmra.mxu3 %vm149_vm0, %v2465_v43  ;;  %v1460_v38 = vadd.f32 %v2502_v42, %v1424_v18  ;;  %v1489_v32 = vmax.f32 %v1457_v23, 0.0 }
 0x13d   :  { %v730_v51 = vmax.f32 %v698_v16, %v700_v3  ;;  %v1490_v39 = vmax.f32 %v1458_v37, 0.0 }
 0x13e   :  { %1888 = vmatmul.msk.bf16.gmra.mxu1 %vm149_vm0, %v2495_v31  ;;  %v559_v15 = vpop.f32.mrf.mxu2  ;;  %v1492_v7 = vmax.f32 %v1460_v38, 0.0  ;;  %v1521_v8 = vmax.f32 %v1489_v32, %v1491_v49 }
 0x13f   :  { %747 = vst.msk [vmem:[#allocation2 + $0x8] sm:$0xff] %vm745_vm1, %v730_v51  ;;  %v1010_v12 = vpop.f32.mrf.mxu3  ;;  %v633_v3 = vadd.f32 %v559_v15, %v2342_v26 }
 0x140   :  { %v1149_v48 = vpop.f32.mrf.mxu0  ;;  %v1522_v50 = vmax.f32 %v1490_v39, %v1492_v7 }
 0x141   :  { %v669_v38 = vadd.f32 %v2471_v62, %v633_v3 }
 0x143   :  { %v1353_v19 = vpop.f32.mrf.mxu1  ;;  %v701_v49 = vmax.f32 %v669_v38, 0.0 }
 0x146   :  { %v762_v55 = vld [vmem:[#allocation2] ss:$2 sm:$0xff]  ;;  %v778_v60 = vld [vmem:[#allocation2 + $0x1] ss:$2 sm:$0xff]  ;;  %v561_v63 = vpop.f32.mrf.mxu2 }
 0x147   :  { %v793_v9 = vmax.f32 %v762_v55, %v778_v60  ;;  %1537 = vst.msk [vmem:[#allocation2] sm:$0xff] %vm745_vm1, %v1521_v8  ;;  %v1012_v54 = vpop.f32.mrf.mxu3  ;;  %v634_v7 = vadd.f32 %v561_v63, %v2349_v34  ;;  %v1859_v55 = vld [vmem:[%s2795_s0 + $0x208] sm:$0xff]  ;;  %v1148_v60 = vadd.f32 %v2492_v59, %v1010_v12 }
 0x148   :  { %1538 = vst.msk [vmem:[#allocation2 + $0x8] sm:$0xff] %vm745_vm1, %v1522_v50  ;;  %v1152_v18 = vpop.f32.mrf.mxu0  ;;  %v1150_v5 = vadd.f32 %v1149_v48, %v1012_v54 }
 0x149   :  { %801 = vst.msk [vmem:[%s2797_s3] sm:$0xff] %vm745_vm1, %v793_v9  ;;  %v670_v50 = vadd.f32 %v2471_v62, %v634_v7  ;;  %v1425_v59 = vadd.f32 %v2497_v27, %v1148_v60 }
 0x14b   :  { %v1356_v16 = vpop.f32.mrf.mxu1  ;;  %1721 = vmatmul.msk.bf16.gmra.mxu2 %vm149_vm0, %v2205_v21  ;;  %1829 = vmatmul.msk.bf16.gmra.mxu0 %vm149_vm0, %v2465_v43  ;;  %v702_v12 = vmax.f32 %v670_v50, 0.0 }
 0x14c   :  { %1813 = vmatmul.msk.bf16.gmra.mxu3 %vm149_vm0, %v2495_v31 }
 0x14e   :  { %1889 = vmatmul.msk.bf16.gmra.mxu1 %vm149_vm0, %v2528_v13  ;;  %v564_v45 = vpop.f32.mrf.mxu2 }
 0x14f   :  { %v1553_v61 = vld [vmem:[#allocation2] ss:$2 sm:$0xff]  ;;  %v1561_v51 = vld [vmem:[#allocation2 + $0x1] ss:$2 sm:$0xff]  ;;  %v635_v23 = vadd.f32 %v564_v45, %v2361_v44  ;;  %v1015_v26 = vpop.f32.mrf.mxu3 }
 0x150   :  { %v1569_v15 = vmax.f32 %v1553_v61, %v1561_v51  ;;  %v1154_v37 = vpop.f32.mrf.mxu0  ;;  %v1153_v8 = vadd.f32 %v1152_v18, %v1015_v26  ;;  %v1858_v44 = vld [vmem:[%s2795_s0 + $0x200] sm:$0xff]  ;;  %v1461_v26 = vadd.f32 %v2502_v42, %v1425_v59 }
 0x151   :  { %v671_v21 = vadd.f32 %v2471_v62, %v635_v23  ;;  %v2560_v61 = vpack.c.bf16 %v1859_v55, %v1858_v44  ;;  %v1861_v55 = vld [vmem:[%s2795_s0 + $0x218] sm:$0xff] }
 0x152   :  { %1894 = vst.msk [vmem:[%s2797_s3 + $0x40] sm:$0xff] %vm745_vm1, %v1569_v15  ;;  %v1427_v3 = vadd.f32 %v1356_v16, %v1153_v8 }
 0x153   :  { %v1358_v43 = vpop.f32.mrf.mxu1  ;;  %v703_v32 = vmax.f32 %v671_v21, 0.0 }
 0x154   :  { %v1463_v48 = vadd.f32 %v2502_v42, %v1427_v3 }
 0x155   :  { %v731_v39 = vmax.f32 %v701_v49, %v703_v32  ;;  %v1860_v32 = vld [vmem:[%s2795_s0 + $0x210] sm:$0xff] }
 0x156   :  { %v566_v22 = vpop.f32.mrf.mxu2  ;;  %v1495_v15 = vmax.f32 %v1463_v48, 0.0 }
 0x157   :  { %748 = vst.msk [vmem:[#allocation2 + $0x10] sm:$0xff] %vm745_vm1, %v731_v39  ;;  %v636_v34 = vadd.f32 %v566_v22, %v2368_v52  ;;  %v1017_v63 = vpop.f32.mrf.mxu3  ;;  %v1426_v52 = vadd.f32 %v1353_v19, %v1150_v5 }
 0x158   :  { %v1155_v9 = vadd.f32 %v1154_v37, %v1017_v63  ;;  %v2557_v18 = vpop.f32.mrf.mxu0  ;;  %v2592_v63 = vpack.c.bf16 %v1861_v55, %v1860_v32 }
 0x159   :  { %v672_v45 = vadd.f32 %v2471_v62, %v636_v34 }
 0x15a   :  { %v1428_v51 = vadd.f32 %v1358_v43, %v1155_v9  ;;  %v1493_v43 = vmax.f32 %v1461_v26, 0.0 }
 0x15b   :  { %v2562_v38 = vpop.f32.mrf.mxu1  ;;  %v704_v23 = vmax.f32 %v672_v45, 0.0  ;;  %1722 = vmatmul.msk.bf16.gmra.mxu2 %vm149_vm0, %v2235_v30  ;;  %1830 = vmatmul.msk.bf16.gmra.mxu0 %vm149_vm0, %v2495_v31  ;;  %v1462_v31 = vadd.f32 %v2502_v42, %v1426_v52 }
 0x15c   :  { %1814 = vmatmul.msk.bf16.gmra.mxu3 %vm149_vm0, %v2528_v13  ;;  %v1464_v27 = vadd.f32 %v2502_v42, %v1428_v51  ;;  %v1523_v7 = vmax.f32 %v1493_v43, %v1495_v15 }
 0x15d   :  { %v732_v54 = vmax.f32 %v702_v12, %v704_v23  ;;  %v1494_v49 = vmax.f32 %v1462_v31, 0.0 }
 0x15e   :  { %1890 = vmatmul.msk.bf16.gmra.mxu1 %vm149_vm0, %v2560_v61  ;;  %v569_v16 = vpop.f32.mrf.mxu2  ;;  %v1496_v37 = vmax.f32 %v1464_v27, 0.0 }
 0x15f   :  { %749 = vst.msk [vmem:[#allocation2 + $0x18] sm:$0xff] %vm745_vm1, %v732_v54  ;;  %v1020_v30 = vpop.f32.mrf.mxu3  ;;  %v637_v9 = vadd.f32 %v569_v16, %v2380_v0  ;;  %v1694_v16 = vld [vmem:[%s2795_s0 + $0x100] sm:$0xff] }
 0x160   :  { %v1159_v19 = vpop.f32.mrf.mxu0  ;;  %v1524_v22 = vmax.f32 %v1494_v49, %v1496_v37  ;;  %v1862_v37 = vld [vmem:[%s2795_s0 + $0x220] sm:$0xff]  ;;  %v1158_v43 = vadd.f32 %v2557_v18, %v1020_v30 }
 0x161   :  { %v673_v59 = vadd.f32 %v2471_v62, %v637_v9 }
 0x162   :  { %v1429_v18 = vadd.f32 %v2562_v38, %v1158_v43 }
 0x163   :  { %v2578_v21 = vpop.f32.mrf.mxu1  ;;  %v705_v48 = vmax.f32 %v673_v59, 0.0 }
 0x166   :  { %v764_v39 = vld [vmem:[#allocation2 + $0x10] ss:$2 sm:$0xff]  ;;  %v780_v8 = vld [vmem:[#allocation2 + $0x11] ss:$2 sm:$0xff]  ;;  %v571_v44 = vpop.f32.mrf.mxu2 }
 0x167   :  { %v794_v60 = vmax.f32 %v764_v39, %v780_v8  ;;  %1539 = vst.msk [vmem:[#allocation2 + $0x10] sm:$0xff] %vm745_vm1, %v1523_v7  ;;  %v1022_v50 = vpop.f32.mrf.mxu3  ;;  %v638_v54 = vadd.f32 %v571_v44, %v2387_v10  ;;  %v1863_v10 = vld [vmem:[%s2795_s0 + $0x228] sm:$0xff] }
 0x168   :  { %1540 = vst.msk [vmem:[#allocation2 + $0x18] sm:$0xff] %vm745_vm1, %v1524_v22  ;;  %v1162_v34 = vpop.f32.mrf.mxu0  ;;  %v1160_v8 = vadd.f32 %v1159_v19, %v1022_v50 }
 0x169   :  { %802 = vst.msk [vmem:[%s2797_s3 + $0x8] sm:$0xff] %vm745_vm1, %v794_v60  ;;  %v674_v49 = vadd.f32 %v2471_v62, %v638_v54 }
 0x16b   :  { %v1366_v5 = vpop.f32.mrf.mxu1  ;;  %1723 = vmatmul.msk.bf16.gmra.mxu2 %vm149_vm0, %v2259_v36  ;;  %1831 = vmatmul.msk.bf16.gmra.mxu0 %vm149_vm0, %v2528_v13  ;;  %v706_v30 = vmax.f32 %v674_v49, 0.0 }
 0x16c   :  { %1815 = vmatmul.msk.bf16.gmra.mxu3 %vm149_vm0, %v2560_v61 }
 0x16e   :  { %1891 = vmatmul.msk.bf16.gmra.mxu1 %vm149_vm0, %v2592_v63  ;;  %v574_v3 = vpop.f32.mrf.mxu2 }
 0x16f   :  { %v1554_v45 = vld [vmem:[#allocation2 + $0x10] ss:$2 sm:$0xff]  ;;  %v1562_v51 = vld [vmem:[#allocation2 + $0x11] ss:$2 sm:$0xff]  ;;  %v639_v12 = vadd.f32 %v574_v3, %v2399_v24  ;;  %v1025_v0 = vpop.f32.mrf.mxu3  ;;  %v1695_v24 = vld [vmem:[%s2795_s0 + $0x108] sm:$0xff] }
 0x170   :  { %v1570_v23 = vmax.f32 %v1554_v45, %v1562_v51  ;;  %v1164_v52 = vpop.f32.mrf.mxu0  ;;  %v1163_v31 = vadd.f32 %v1162_v34, %v1025_v0  ;;  %v471_v39 = vpack.c.bf16 %v1695_v24, %v1694_v16  ;;  %v1264_v34 = vpack.c.bf16 %v1863_v10, %v1862_v37 }
 0x171   :  { %v675_v36 = vadd.f32 %v2471_v62, %v639_v12  ;;  %v1465_v51 = vadd.f32 %v2502_v42, %v1429_v18 }
 0x172   :  { %1895 = vst.msk [vmem:[%s2797_s3 + $0x48] sm:$0xff] %vm745_vm1, %v1570_v23  ;;  %v1431_v55 = vadd.f32 %v1366_v5, %v1163_v31 }
 0x173   :  { %v1368_v13 = vpop.f32.mrf.mxu1  ;;  %v707_v27 = vmax.f32 %v675_v36, 0.0 }
 0x174   :  { %v1467_v19 = vadd.f32 %v2502_v42, %v1431_v55 }
 0x175   :  { %v733_v26 = vmax.f32 %v705_v48, %v707_v27  ;;  %v1697_v48 = vld [vmem:[%s2795_s0 + $0x118] sm:$0xff]  ;;  %v1864_v27 = vld [vmem:[%s2795_s0 + $0x230] sm:$0xff] }
 0x176   :  { %v576_v15 = vpop.f32.mrf.mxu2 }
 0x177   :  { %750 = vst.msk [vmem:[#allocation2 + $0x20] sm:$0xff] %vm745_vm1, %v733_v26  ;;  %v640_v7 = vadd.f32 %v576_v15, %v2406_v35  ;;  %v1027_v32 = vpop.f32.mrf.mxu3  ;;  %v1430_v35 = vadd.f32 %v2578_v21, %v1160_v8  ;;  %v1499_v21 = vmax.f32 %v1467_v19, 0.0  ;;  %v1865_v15 = vld [vmem:[%s2795_s0 + $0x238] sm:$0xff] }
 0x178   :  { %v1165_v22 = vadd.f32 %v1164_v52, %v1027_v32  ;;  %v2627_v44 = vpop.f32.mrf.mxu0  ;;  %v1497_v52 = vmax.f32 %v1465_v51, 0.0 }
 0x179   :  { %v676_v60 = vadd.f32 %v2471_v62, %v640_v7  ;;  %v1265_v7 = vpack.c.bf16 %v1865_v15, %v1864_v27 }
 0x17a   :  { %v1432_v9 = vadd.f32 %v1368_v13, %v1165_v22  ;;  %v1696_v13 = vld [vmem:[%s2795_s0 + $0x110] sm:$0xff]  ;;  %v1525_v54 = vmax.f32 %v1497_v52, %v1499_v21 }
 0x17b   :  { %v2630_v3 = vpop.f32.mrf.mxu1  ;;  %v708_v45 = vmax.f32 %v676_v60, 0.0  ;;  %1724 = vmatmul.msk.bf16.gmra.mxu2 %vm149_vm0, %v471_v39  ;;  %1832 = vmatmul.msk.bf16.gmra.mxu0 %vm149_vm0, %v2560_v61  ;;  %v1466_v61 = vadd.f32 %v2502_v42, %v1430_v35  ;;  %v472_v43 = vpack.c.bf16 %v1697_v48, %v1696_v13 }
 0x17c   :  { %1816 = vmatmul.msk.bf16.gmra.mxu3 %vm149_vm0, %v2592_v63  ;;  %v1468_v5 = vadd.f32 %v2502_v42, %v1432_v9 }
 0x17d   :  { %v734_v50 = vmax.f32 %v706_v30, %v708_v45  ;;  %v1498_v36 = vmax.f32 %v1466_v61, 0.0 }
 0x17e   :  { %1892 = vmatmul.msk.bf16.gmra.mxu1 %vm149_vm0, %v1264_v34  ;;  %v579_v38 = vpop.f32.mrf.mxu2  ;;  %v1500_v0 = vmax.f32 %v1468_v5, 0.0 }
 0x17f   :  { %751 = vst.msk [vmem:[#allocation2 + $0x28] sm:$0xff] %vm745_vm1, %v734_v50  ;;  %v1030_v59 = vpop.f32.mrf.mxu3  ;;  %v641_v39 = vadd.f32 %v579_v38, %v2418_v46 }
 0x180   :  { %v1169_v12 = vpop.f32.mrf.mxu0  ;;  %v1526_v26 = vmax.f32 %v1498_v36, %v1500_v0 }
 0x181   :  { %v677_v60 = vadd.f32 %v2471_v62, %v641_v39 }
 0x183   :  { %v1373_v23 = vpop.f32.mrf.mxu1 }
 0x186   :  { %v766_v16 = vld [vmem:[#allocation2 + $0x20] ss:$2 sm:$0xff]  ;;  %v782_v24 = vld [vmem:[#allocation2 + $0x21] ss:$2 sm:$0xff]  ;;  %v581_v31 = vpop.f32.mrf.mxu2 }
 0x187   :  { %v795_v37 = vmax.f32 %v766_v16, %v782_v24  ;;  %1541 = vst.msk [vmem:[#allocation2 + $0x20] sm:$0xff] %vm745_vm1, %v1525_v54  ;;  %v1032_v10 = vpop.f32.mrf.mxu3  ;;  %v642_v35 = vadd.f32 %v581_v31, %v2425_v56 }
 0x188   :  { %1542 = vst.msk [vmem:[#allocation2 + $0x28] sm:$0xff] %vm745_vm1, %v1526_v26  ;;  %v1172_v49 = vpop.f32.mrf.mxu0  ;;  %v1170_v0 = vadd.f32 %v1169_v12, %v1032_v10 }
 0x189   :  { %803 = vst.msk [vmem:[%s2797_s3 + $0x10] sm:$0xff] %vm745_vm1, %v795_v37  ;;  %v678_v51 = vadd.f32 %v2471_v62, %v642_v35 }
 0x18b   :  { %v1376_v32 = vpop.f32.mrf.mxu1  ;;  %1725 = vmatmul.msk.bf16.gmra.mxu2 %vm149_vm0, %v472_v43  ;;  %1833 = vmatmul.msk.bf16.gmra.mxu0 %vm149_vm0, %v2592_v63  ;;  %v710_v16 = vmax.f32 %v678_v51, 0.0 }
 0x18c   :  { %1817 = vmatmul.msk.bf16.gmra.mxu3 %vm149_vm0, %v1264_v34  ;;  %v709_v34 = vmax.f32 %v677_v60, 0.0 }
 0x18e   :  { %1893 = vmatmul.msk.bf16.gmra.mxu1 %vm149_vm0, %v1265_v7  ;;  %v584_v8 = vpop.f32.mrf.mxu2 }
 0x18f   :  { %v1555_v22 = vld [vmem:[#allocation2 + $0x20] ss:$2 sm:$0xff]  ;;  %v1563_v55 = vld [vmem:[#allocation2 + $0x21] ss:$2 sm:$0xff]  ;;  %v643_v9 = vadd.f32 %v584_v8, %v2437_v14  ;;  %v1035_v18 = vpop.f32.mrf.mxu3  ;;  %v1168_v14 = vadd.f32 %v2627_v44, %v1030_v59  ;;  %v1434_v44 = vadd.f32 %v1373_v23, %v1170_v0 }
 0x190   :  { %v1571_v30 = vmax.f32 %v1555_v22, %v1563_v55  ;;  %v1174_v45 = vpop.f32.mrf.mxu0  ;;  %v1173_v5 = vadd.f32 %v1172_v49, %v1035_v18 }
 0x191   :  { %v679_v46 = vadd.f32 %v2471_v62, %v643_v9  ;;  %v1433_v27 = vadd.f32 %v2630_v3, %v1168_v14  ;;  %v1470_v37 = vadd.f32 %v2502_v42, %v1434_v44 }
 0x192   :  { %1896 = vst.msk [vmem:[%s2797_s3 + $0x50] sm:$0xff] %vm745_vm1, %v1571_v30  ;;  %v1435_v13 = vadd.f32 %v1376_v32, %v1173_v5 }
 0x193   :  { %v1378_v63 = vpop.f32.mrf.mxu1  ;;  %v711_v19 = vmax.f32 %v679_v46, 0.0  ;;  %v1469_v12 = vadd.f32 %v2502_v42, %v1433_v27  ;;  %v1502_v32 = vmax.f32 %v1470_v37, 0.0 }
 0x194   :  { %v1471_v59 = vadd.f32 %v2502_v42, %v1435_v13 }
 0x195   :  { %v735_v50 = vmax.f32 %v709_v34, %v711_v19  ;;  %v1501_v7 = vmax.f32 %v1469_v12, 0.0 }
 0x196   :  { %v586_v38 = vpop.f32.mrf.mxu2  ;;  %v1503_v43 = vmax.f32 %v1471_v59, 0.0 }
 0x197   :  { %752 = vst.msk [vmem:[#allocation2 + $0x30] sm:$0xff] %vm745_vm1, %v735_v50  ;;  %v644_v61 = vadd.f32 %v586_v38, %v2444_v25  ;;  %v1037_v21 = vpop.f32.mrf.mxu3 }
 0x198   :  { %v1175_v52 = vadd.f32 %v1174_v45, %v1037_v21  ;;  %v1177_v36 = vpop.f32.mrf.mxu0  ;;  %v1527_v23 = vmax.f32 %v1501_v7, %v1503_v43 }
 0x199   :  { %v680_v48 = vadd.f32 %v2471_v62, %v644_v61 }
 0x19a   :  { %v1436_v56 = vadd.f32 %v1378_v63, %v1175_v52 }
 0x19b   :  { %v1381_v54 = vpop.f32.mrf.mxu1  ;;  %v712_v24 = vmax.f32 %v680_v48, 0.0 }
 0x19c   :  { %v1472_v31 = vadd.f32 %v2502_v42, %v1436_v56 }
 0x19d   :  { %v736_v26 = vmax.f32 %v710_v16, %v712_v24 }
 0x19e   :  { %v589_v25 = vpop.f32.mrf.mxu2  ;;  %v1504_v49 = vmax.f32 %v1472_v31, 0.0 }
 0x19f   :  { %753 = vst.msk [vmem:[#allocation2 + $0x38] sm:$0xff] %vm745_vm1, %v736_v26  ;;  %v1040_v15 = vpop.f32.mrf.mxu3  ;;  %v645_v45 = vadd.f32 %v589_v25, %v2309_v57 }
 0x1a0   :  { %v1179_v10 = vpop.f32.mrf.mxu0  ;;  %v1528_v22 = vmax.f32 %v1502_v32, %v1504_v49  ;;  %v1178_v48 = vadd.f32 %v1177_v36, %v1040_v15 }
 0x1a1   :  { %v681_v35 = vadd.f32 %v2471_v62, %v645_v45 }
 0x1a2   :  { %v1437_v25 = vadd.f32 %v1381_v54, %v1178_v48 }
 0x1a3   :  { %v1383_v3 = vpop.f32.mrf.mxu1  ;;  %v713_v61 = vmax.f32 %v681_v35, 0.0 }
 0x1a6   :  { %v768_v39 = vld [vmem:[#allocation2 + $0x30] ss:$2 sm:$0xff]  ;;  %v784_v8 = vld [vmem:[#allocation2 + $0x31] ss:$2 sm:$0xff]  ;;  %v591_v55 = vpop.f32.mrf.mxu2 }
 0x1a7   :  { %v796_v60 = vmax.f32 %v768_v39, %v784_v8  ;;  %1543 = vst.msk [vmem:[#allocation2 + $0x30] sm:$0xff] %vm745_vm1, %v1527_v23  ;;  %v1042_v9 = vpop.f32.mrf.mxu3  ;;  %v646_v57 = vadd.f32 %v591_v55, %v2319_v2 }
 0x1a8   :  { %1544 = vst.msk [vmem:[#allocation2 + $0x38] sm:$0xff] %vm745_vm1, %v1528_v22  ;;  %v1182_v18 = vpop.f32.mrf.mxu0  ;;  %v1180_v16 = vadd.f32 %v1179_v10, %v1042_v9 }
 0x1a9   :  { %804 = vst.msk [vmem:[%s2797_s3 + $0x18] sm:$0xff] %vm745_vm1, %v796_v60 }
 0x1aa   :  { %v1438_v43 = vadd.f32 %v1383_v3, %v1180_v16 }
 0x1ab   :  { %v1386_v30 = vpop.f32.mrf.mxu1 }
 0x1ac   :  { %v1474_v32 = vadd.f32 %v2502_v42, %v1438_v43 }
 0x1ae   :  { %v594_v46 = vpop.f32.mrf.mxu2  ;;  %v1506_v55 = vmax.f32 %v1474_v32, 0.0 }
 0x1af   :  { %v1556_v63 = vld [vmem:[#allocation2 + $0x30] ss:$2 sm:$0xff]  ;;  %v1564_v34 = vld [vmem:[#allocation2 + $0x31] ss:$2 sm:$0xff]  ;;  %v647_v19 = vadd.f32 %v594_v46, %v2328_v11  ;;  %v1045_v50 = vpop.f32.mrf.mxu3  ;;  %v682_v11 = vadd.f32 %v2471_v62, %v646_v57 }
 0x1b0   :  { %v1572_v5 = vmax.f32 %v1556_v63, %v1564_v34  ;;  %v1184_v38 = vpop.f32.mrf.mxu0  ;;  %v1183_v52 = vadd.f32 %v1182_v18, %v1045_v50 }
 0x1b1   :  { %v683_v14 = vadd.f32 %v2471_v62, %v647_v19  ;;  %v714_v12 = vmax.f32 %v682_v11, 0.0 }
 0x1b2   :  { %1897 = vst.msk [vmem:[%s2797_s3 + $0x58] sm:$0xff] %vm745_vm1, %v1572_v5  ;;  %v1439_v59 = vadd.f32 %v1386_v30, %v1183_v52 }
 0x1b3   :  { %v1388_v51 = vpop.f32.mrf.mxu1  ;;  %v715_v21 = vmax.f32 %v683_v14, 0.0 }
 0x1b4   :  { %v1475_v36 = vadd.f32 %v2502_v42, %v1439_v59 }
 0x1b5   :  { %v737_v0 = vmax.f32 %v713_v61, %v715_v21 }
 0x1b6   :  { %v596_v13 = vpop.f32.mrf.mxu2  ;;  %v1507_v39 = vmax.f32 %v1475_v36, 0.0 }
 0x1b7   :  { %754 = vst.msk [vmem:[#allocation2 + $0x40] sm:$0xff] %vm745_vm1, %v737_v0  ;;  %v648_v56 = vadd.f32 %v596_v13, %v2338_v20  ;;  %v1047_v27 = vpop.f32.mrf.mxu3  ;;  %v1473_v20 = vadd.f32 %v2502_v42, %v1437_v25 }
 0x1b8   :  { %v1185_v24 = vadd.f32 %v1184_v38, %v1047_v27  ;;  %v1187_v44 = vpop.f32.mrf.mxu0 }
 0x1b9   :  { %v684_v26 = vadd.f32 %v2471_v62, %v648_v56  ;;  %v1505_v22 = vmax.f32 %v1473_v20, 0.0 }
 0x1ba   :  { %v1440_v31 = vadd.f32 %v1388_v51, %v1185_v24 }
 0x1bb   :  { %v1391_v2 = vpop.f32.mrf.mxu1  ;;  %v716_v37 = vmax.f32 %v684_v26, 0.0  ;;  %v1529_v3 = vmax.f32 %v1505_v22, %v1507_v39 }
 0x1bc   :  { %v1476_v49 = vadd.f32 %v2502_v42, %v1440_v31 }
 0x1bd   :  { %v738_v15 = vmax.f32 %v714_v12, %v716_v37 }
 0x1be   :  { %v599_v7 = vpop.f32.mrf.mxu2  ;;  %v1508_v8 = vmax.f32 %v1476_v49, 0.0 }
 0x1bf   :  { %755 = vst.msk [vmem:[#allocation2 + $0x48] sm:$0xff] %vm745_vm1, %v738_v15  ;;  %v1050_v10 = vpop.f32.mrf.mxu3  ;;  %v649_v35 = vadd.f32 %v599_v7, %v2347_v29 }
 0x1c0   :  { %v1189_v23 = vpop.f32.mrf.mxu0  ;;  %v1530_v18 = vmax.f32 %v1506_v55, %v1508_v8  ;;  %v1188_v27 = vadd.f32 %v1187_v44, %v1050_v10 }
 0x1c1   :  { %v685_v38 = vadd.f32 %v2471_v62, %v649_v35 }
 0x1c2   :  { %v1441_v43 = vadd.f32 %v1391_v2, %v1188_v27 }
 0x1c3   :  { %v1393_v54 = vpop.f32.mrf.mxu1  ;;  %v717_v52 = vmax.f32 %v685_v38, 0.0 }
 0x1c6   :  { %v770_v60 = vld [vmem:[#allocation2 + $0x40] ss:$2 sm:$0xff]  ;;  %v786_v9 = vld [vmem:[#allocation2 + $0x41] ss:$2 sm:$0xff]  ;;  %v601_v30 = vpop.f32.mrf.mxu2 }
 0x1c7   :  { %v797_v45 = vmax.f32 %v770_v60, %v786_v9  ;;  %1545 = vst.msk [vmem:[#allocation2 + $0x40] sm:$0xff] %vm745_vm1, %v1529_v3  ;;  %v1052_v46 = vpop.f32.mrf.mxu3  ;;  %v650_v29 = vadd.f32 %v601_v30, %v2357_v40 }
 0x1c8   :  { %1546 = vst.msk [vmem:[#allocation2 + $0x48] sm:$0xff] %vm745_vm1, %v1530_v18  ;;  %v1192_v63 = vpop.f32.mrf.mxu0  ;;  %v1190_v59 = vadd.f32 %v1189_v23, %v1052_v46 }
 0x1c9   :  { %805 = vst.msk [vmem:[%s2797_s3 + $0x20] sm:$0xff] %vm745_vm1, %v797_v45 }
 0x1ca   :  { %v1442_v49 = vadd.f32 %v1393_v54, %v1190_v59 }
 0x1cb   :  { %v1396_v34 = vpop.f32.mrf.mxu1 }
 0x1cc   :  { %v1478_v23 = vadd.f32 %v2502_v42, %v1442_v49 }
 0x1ce   :  { %v604_v19 = vpop.f32.mrf.mxu2  ;;  %v1510_v3 = vmax.f32 %v1478_v23, 0.0 }
 0x1cf   :  { %v1557_v50 = vld [vmem:[#allocation2 + $0x40] ss:$2 sm:$0xff]  ;;  %v1565_v5 = vld [vmem:[#allocation2 + $0x41] ss:$2 sm:$0xff]  ;;  %v651_v14 = vadd.f32 %v604_v19, %v2366_v47  ;;  %v1055_v51 = vpop.f32.mrf.mxu3  ;;  %v686_v47 = vadd.f32 %v2471_v62, %v650_v29 }
 0x1d0   :  { %v1573_v61 = vmax.f32 %v1557_v50, %v1565_v5  ;;  %v1194_v57 = vpop.f32.mrf.mxu0  ;;  %v1193_v11 = vadd.f32 %v1192_v63, %v1055_v51 }
 0x1d1   :  { %v687_v21 = vadd.f32 %v2471_v62, %v651_v14  ;;  %v718_v36 = vmax.f32 %v686_v47, 0.0 }
 0x1d2   :  { %1898 = vst.msk [vmem:[%s2797_s3 + $0x60] sm:$0xff] %vm745_vm1, %v1573_v61  ;;  %v1443_v25 = vadd.f32 %v1396_v34, %v1193_v11 }
 0x1d3   :  { %v1398_v0 = vpop.f32.mrf.mxu1  ;;  %v719_v13 = vmax.f32 %v687_v21, 0.0 }
 0x1d4   :  { %v1479_v44 = vadd.f32 %v2502_v42, %v1443_v25 }
 0x1d5   :  { %v739_v48 = vmax.f32 %v717_v52, %v719_v13 }
 0x1d6   :  { %v606_v56 = vpop.f32.mrf.mxu2  ;;  %v1511_v8 = vmax.f32 %v1479_v44, 0.0 }
 0x1d7   :  { %756 = vst.msk [vmem:[#allocation2 + $0x50] sm:$0xff] %vm745_vm1, %v739_v48  ;;  %v652_v16 = vadd.f32 %v606_v56, %v2376_v58  ;;  %v1057_v24 = vpop.f32.mrf.mxu3  ;;  %v1477_v58 = vadd.f32 %v2502_v42, %v1441_v43 }
 0x1d8   :  { %v1195_v26 = vadd.f32 %v1194_v57, %v1057_v24  ;;  %v1197_v31 = vpop.f32.mrf.mxu0 }
 0x1d9   :  { %v688_v12 = vadd.f32 %v2471_v62, %v652_v16  ;;  %v1509_v55 = vmax.f32 %v1477_v58, 0.0 }
 0x1da   :  { %v1444_v37 = vadd.f32 %v1398_v0, %v1195_v26 }
 0x1db   :  { %v1401_v40 = vpop.f32.mrf.mxu1  ;;  %v720_v15 = vmax.f32 %v688_v12, 0.0  ;;  %v1531_v54 = vmax.f32 %v1509_v55, %v1511_v8 }
 0x1dc   :  { %v1480_v20 = vadd.f32 %v2502_v42, %v1444_v37 }
 0x1dd   :  { %v740_v7 = vmax.f32 %v718_v36, %v720_v15 }
 0x1de   :  { %v609_v10 = vpop.f32.mrf.mxu2  ;;  %v1512_v22 = vmax.f32 %v1480_v20, 0.0 }
 0x1df   :  { %757 = vst.msk [vmem:[#allocation2 + $0x58] sm:$0xff] %vm745_vm1, %v740_v7  ;;  %v1060_v32 = vpop.f32.mrf.mxu3  ;;  %v653_v35 = vadd.f32 %v609_v10, %v2385_v6 }
 0x1e0   :  { %v1199_v39 = vpop.f32.mrf.mxu0  ;;  %v1532_v18 = vmax.f32 %v1510_v3, %v1512_v22  ;;  %v1198_v56 = vadd.f32 %v1197_v31, %v1060_v32 }
 0x1e1   :  { %v689_v38 = vadd.f32 %v2471_v62, %v653_v35 }
 0x1e3   :  { %v1403_v2 = vpop.f32.mrf.mxu1  ;;  %v721_v52 = vmax.f32 %v689_v38, 0.0 }
 0x1e6   :  { %v772_v60 = vld [vmem:[#allocation2 + $0x50] ss:$2 sm:$0xff]  ;;  %v788_v9 = vld [vmem:[#allocation2 + $0x51] ss:$2 sm:$0xff]  ;;  %v611_v30 = vpop.f32.mrf.mxu2 }
 0x1e7   :  { %v798_v45 = vmax.f32 %v772_v60, %v788_v9  ;;  %1547 = vst.msk [vmem:[#allocation2 + $0x50] sm:$0xff] %vm745_vm1, %v1531_v54  ;;  %v1062_v46 = vpop.f32.mrf.mxu3  ;;  %v654_v6 = vadd.f32 %v611_v30, %v2395_v4  ;;  %v1445_v4 = vadd.f32 %v1401_v40, %v1198_v56 }
 0x1e8   :  { %1548 = vst.msk [vmem:[#allocation2 + $0x58] sm:$0xff] %vm745_vm1, %v1532_v18  ;;  %v1202_v63 = vpop.f32.mrf.mxu0  ;;  %v1200_v16 = vadd.f32 %v1199_v39, %v1062_v46 }
 0x1e9   :  { %806 = vst.msk [vmem:[%s2797_s3 + $0x28] sm:$0xff] %vm745_vm1, %v798_v45 }
 0x1ea   :  { %v1446_v15 = vadd.f32 %v1403_v2, %v1200_v16 }
 0x1eb   :  { %v1406_v34 = vpop.f32.mrf.mxu1 }
 0x1ec   :  { %v1482_v10 = vadd.f32 %v2502_v42, %v1446_v15 }
 0x1ee   :  { %v614_v19 = vpop.f32.mrf.mxu2  ;;  %v1514_v39 = vmax.f32 %v1482_v10, 0.0 }
 0x1ef   :  { %v1558_v50 = vld [vmem:[#allocation2 + $0x50] ss:$2 sm:$0xff]  ;;  %v1566_v5 = vld [vmem:[#allocation2 + $0x51] ss:$2 sm:$0xff]  ;;  %v655_v14 = vadd.f32 %v614_v19, %v2404_v28  ;;  %v1065_v51 = vpop.f32.mrf.mxu3  ;;  %v690_v28 = vadd.f32 %v2471_v62, %v654_v6 }
 0x1f0   :  { %v1574_v61 = vmax.f32 %v1558_v50, %v1566_v5  ;;  %v1204_v57 = vpop.f32.mrf.mxu0  ;;  %v1203_v48 = vadd.f32 %v1202_v63, %v1065_v51 }
 0x1f1   :  { %v691_v21 = vadd.f32 %v2471_v62, %v655_v14  ;;  %v722_v37 = vmax.f32 %v690_v28, 0.0 }
 0x1f2   :  { %1899 = vst.msk [vmem:[%s2797_s3 + $0x68] sm:$0xff] %vm745_vm1, %v1574_v61  ;;  %v1447_v59 = vadd.f32 %v1406_v34, %v1203_v48 }
 0x1f3   :  { %v1408_v0 = vpop.f32.mrf.mxu1  ;;  %v723_v29 = vmax.f32 %v691_v21, 0.0 }
 0x1f4   :  { %v1483_v31 = vadd.f32 %v2502_v42, %v1447_v59 }
 0x1f5   :  { %v741_v13 = vmax.f32 %v721_v52, %v723_v29 }
 0x1f6   :  { %v616_v11 = vpop.f32.mrf.mxu2  ;;  %v1515_v58 = vmax.f32 %v1483_v31, 0.0 }
 0x1f7   :  { %758 = vst.msk [vmem:[#allocation2 + $0x60] sm:$0xff] %vm745_vm1, %v741_v13  ;;  %v656_v27 = vadd.f32 %v616_v11, %v2414_v41  ;;  %v1067_v47 = vpop.f32.mrf.mxu3  ;;  %v1481_v41 = vadd.f32 %v2502_v42, %v1445_v4 }
 0x1f8   :  { %v1205_v24 = vadd.f32 %v1204_v57, %v1067_v47  ;;  %v1207_v25 = vpop.f32.mrf.mxu0 }
 0x1f9   :  { %v692_v26 = vadd.f32 %v2471_v62, %v656_v27  ;;  %v1513_v40 = vmax.f32 %v1481_v41, 0.0 }
 0x1fa   :  { %v1448_v12 = vadd.f32 %v1408_v0, %v1205_v24 }
 0x1fb   :  { %v724_v43 = vmax.f32 %v692_v26, 0.0  ;;  %v1411_v36 = vpop.f32.mrf.mxu1  ;;  %v1533_v8 = vmax.f32 %v1513_v40, %v1515_v58 }
 0x1fc   :  { %v1484_v44 = vadd.f32 %v2502_v42, %v1448_v12 }
 0x1fd   :  { %v742_v49 = vmax.f32 %v722_v37, %v724_v43 }
 0x1fe   :  { %v619_v7 = vpop.f32.mrf.mxu2  ;;  %v1516_v32 = vmax.f32 %v1484_v44, 0.0 }
 0x1ff   :  { %759 = vst.msk [vmem:[#allocation2 + $0x68] sm:$0xff] %vm745_vm1, %v742_v49  ;;  %v1070_v20 = vpop.f32.mrf.mxu3  ;;  %v657_v18 = vadd.f32 %v619_v7, %v2423_v53 }
 0x200   :  { %v1209_v23 = vpop.f32.mrf.mxu0  ;;  %v1534_v3 = vmax.f32 %v1514_v39, %v1516_v32  ;;  %v1208_v0 = vadd.f32 %v1207_v25, %v1070_v20 }
 0x201   :  { %v693_v34 = vadd.f32 %v2471_v62, %v657_v18 }
 0x202   :  { %v1449_v27 = vadd.f32 %v1411_v36, %v1208_v0 }
 0x203   :  { %v1413_v22 = vpop.f32.mrf.mxu1  ;;  %v725_v14 = vmax.f32 %v693_v34, 0.0 }
 0x204   :  { %v1485_v12 = vadd.f32 %v2502_v42, %v1449_v27 }
 0x206   :  { %v774_v2 = vld [vmem:[#allocation2 + $0x60] ss:$2 sm:$0xff]  ;;  %v790_v55 = vld [vmem:[#allocation2 + $0x61] ss:$2 sm:$0xff]  ;;  %v621_v54 = vpop.f32.mrf.mxu2 }
 0x207   :  { %v799_v60 = vmax.f32 %v774_v2, %v790_v55  ;;  %1549 = vst.msk [vmem:[#allocation2 + $0x60] sm:$0xff] %vm745_vm1, %v1533_v8  ;;  %v1072_v9 = vpop.f32.mrf.mxu3  ;;  %v658_v53 = vadd.f32 %v621_v54, %v2433_v1 }
 0x208   :  { %1550 = vst.msk [vmem:[#allocation2 + $0x68] sm:$0xff] %vm745_vm1, %v1534_v3  ;;  %v1212_v30 = vpop.f32.mrf.mxu0  ;;  %v1210_v13 = vadd.f32 %v1209_v23, %v1072_v9 }
 0x209   :  { %807 = vst.msk [vmem:[%s2797_s3 + $0x30] sm:$0xff] %vm745_vm1, %v799_v60 }
 0x20a   :  { %v1450_v24 = vadd.f32 %v1413_v22, %v1210_v13 }
 0x20b   :  { %v1416_v50 = vpop.f32.mrf.mxu1 }
 0x20e   :  { %v624_v45 = vpop.f32.mrf.mxu2 }
 0x20f   :  { %v1559_v46 = vld [vmem:[#allocation2 + $0x60] ss:$2 sm:$0xff]  ;;  %v1567_v63 = vld [vmem:[#allocation2 + $0x61] ss:$2 sm:$0xff]  ;;  %v659_v35 = vadd.f32 %v624_v45, %v2442_v17  ;;  %v1075_v19 = vpop.f32.mrf.mxu3  ;;  %v694_v17 = vadd.f32 %v2471_v62, %v658_v53 }
 0x210   :  { %v1575_v5 = vmax.f32 %v1559_v46, %v1567_v63  ;;  %v1213_v57 = vadd.f32 %v1212_v30, %v1075_v19  ;;  %v1214_v52 = vpop.f32.mrf.mxu0 }
 0x211   :  { %v695_v38 = vadd.f32 %v2471_v62, %v659_v35  ;;  %v726_v47 = vmax.f32 %v694_v17, 0.0 }
 0x212   :  { %1900 = vst.msk [vmem:[%s2797_s3 + $0x70] sm:$0xff] %vm745_vm1, %v1575_v5  ;;  %v1451_v11 = vadd.f32 %v1416_v50, %v1213_v57 }
 0x213   :  { %v727_v51 = vmax.f32 %v695_v38, 0.0  ;;  %v1418_v28 = vpop.f32.mrf.mxu1 }
 0x214   :  { %v1487_v59 = vadd.f32 %v2502_v42, %v1451_v11 }
 0x215   :  { %v743_v61 = vmax.f32 %v725_v14, %v727_v51 }
 0x216   :  { %v626_v21 = vpop.f32.mrf.mxu2  ;;  %v1519_v4 = vmax.f32 %v1487_v59, 0.0 }
 0x217   :  { %760 = vst.msk [vmem:[#allocation2 + $0x70] sm:$0xff] %vm745_vm1, %v743_v61  ;;  %v660_v6 = vadd.f32 %v626_v21, %v2452_v33  ;;  %v1077_v29 = vpop.f32.mrf.mxu3  ;;  %v1486_v33 = vadd.f32 %v2502_v42, %v1450_v24 }
 0x218   :  { %v1215_v48 = vadd.f32 %v1214_v52, %v1077_v29 }
 0x219   :  { %v696_v56 = vadd.f32 %v2471_v62, %v660_v6  ;;  %v1517_v62 = vmax.f32 %v1485_v12, 0.0  ;;  %v1518_v43 = vmax.f32 %v1486_v33, 0.0 }
 0x21a   :  { %v1452_v1 = vadd.f32 %v1418_v28, %v1215_v48 }
 0x21b   :  { %v728_v16 = vmax.f32 %v696_v56, 0.0  ;;  %v1535_v15 = vmax.f32 %v1517_v62, %v1519_v4 }
 0x21c   :  { %v1488_v25 = vadd.f32 %v2502_v42, %v1452_v1 }
 0x21d   :  { %v744_v26 = vmax.f32 %v726_v47, %v728_v16 }
 0x21e   :  { %v1520_v37 = vmax.f32 %v1488_v25, 0.0 }
 0x21f   :  { %761 = vst.msk [vmem:[#allocation2 + $0x78] sm:$0xff] %vm745_vm1, %v744_v26 }
 0x220   :  { %v1536_v49 = vmax.f32 %v1518_v43, %v1520_v37 }
 0x226   :  { %v776_v36 = vld [vmem:[#allocation2 + $0x70] ss:$2 sm:$0xff]  ;;  %v792_v31 = vld [vmem:[#allocation2 + $0x71] ss:$2 sm:$0xff] }
 0x227   :  { %v800_v44 = vmax.f32 %v776_v36, %v792_v31  ;;  %1551 = vst.msk [vmem:[#allocation2 + $0x70] sm:$0xff] %vm745_vm1, %v1535_v15 }
 0x228   :  { %1552 = vst.msk [vmem:[#allocation2 + $0x78] sm:$0xff] %vm745_vm1, %v1536_v49 }
 0x229   :  { %808 = vst.msk [vmem:[%s2797_s3 + $0x38] sm:$0xff] %vm745_vm1, %v800_v44 }
 0x22f   :  { %v1560_v7 = vld [vmem:[#allocation2 + $0x70] ss:$2 sm:$0xff]  ;;  %v1568_v42 = vld [vmem:[#allocation2 + $0x71] ss:$2 sm:$0xff] }
 0x230   :  { %v1576_v41 = vmax.f32 %v1560_v7, %v1568_v42 }
 0x232   :  { %1901 = vst.msk [vmem:[%s2797_s3 + $0x78] sm:$0xff] %vm745_vm1, %v1576_v41 }

// kernel: classifier_forward.4
= control target key start
LH: loop header
LB: loop body
LE: loop exit
PB: predicated region body
PF: predicated region fallthrough
CT: control target
= control target key end

     0   :  { %vm410_vm0 = vcmask 1044480   ;;  %vm411_vm1 = vcmask 1045504   ;;  %v2610_v2 = vmov 65535   ;;  %vm217_vm2 = vcmask 220160   ;;  %s4560_s1 = inlined_call_operand.vmem [shape: f32[1,27,32], index: 1, kind: input, shape index: {}]   ;;  %s4561_s0 = inlined_call_operand.vmem [shape: f32[2,32,32,27], index: 0, kind: input, shape index: {}]   ;;  %s4562_s2 = inlined_call_operand.vmem [shape: f32[1,32], index: 2, kind: input, shape index: {}]   ;;  %s4563_s3 = inlined_call_operand.vmem [shape: f32[2,16,16,32], index: 3, kind: output, shape index: {}]  }
   0x1   :  { %v209_v0 = vld [vmem:[%s4560_s1 + $0x10] sm:$0xff]  ;;  %v210_v1 = vld [vmem:[%s4560_s1 + $0x18] sm:$0x7]  ;;  %v412_v3 = vsel %vm410_vm0, 4294967295, %v2610_v2  ;;  %v207_v8 = vld [vmem:[%s4560_s1] sm:$0xff]  ;;  %vm938_vm3 = vcmask 261120  }
   0x2   :  { %v1390_v4 = vld [vmem:[%s4560_s1 + $0x18] sm:$0x7]  ;;  %v212_v5 = vpack.c.bf16 %v210_v1, %v209_v0  ;;  %v413_v6 = vsel %vm411_vm1, %v412_v3, 0  ;;  %v208_v9 = vld [vmem:[%s4560_s1 + $0x8] sm:$0xff]  ;;  %v15_v12 = vld [vmem:[%s4561_s0] sm:$0xff] }
   0x3   :  { %v1392_v7 = vpack.c.bf16 %v1390_v4, %v209_v0  ;;  %v16_v13 = vld [vmem:[%s4561_s0 + $0x8] sm:$0xff]  ;;  %v211_v14 = vpack.c.bf16 %v208_v9, %v207_v8  ;;  %v79_v15 = vld [vmem:[%s4561_s0 + $0x200] sm:$0xff]  ;;  %v17_v25 = vld [vmem:[%s4561_s0 + $0x10] sm:$0xff] }
   0x4   :  { %v415_v10 = vand.u32 %v413_v6, %v212_v5  ;;  %v80_v16 = vld [vmem:[%s4561_s0 + $0x208] sm:$0xff]  ;;  %v2374_v17 = vld [vmem:[%s4561_s0 + $0x400] sm:$0xff]  ;;  %v143_v21 = vpack.c.bf16 %v16_v13, %v15_v12  ;;  %v18_v26 = vld [vmem:[%s4561_s0 + $0x18] sm:$0xff] }
   0x5   :  { %v1590_v11 = vand.u32 %v1392_v7, %v413_v6  ;;  %v2375_v18 = vld [vmem:[%s4561_s0 + $0x408] sm:$0xff]  ;;  %v2438_v19 = vld [vmem:[%s4561_s0 + $0x600] sm:$0xff]  ;;  %v175_v22 = vpack.c.bf16 %v80_v16, %v79_v15  ;;  %v81_v27 = vld [vmem:[%s4561_s0 + $0x210] sm:$0xff]  ;;  %v144_v33 = vpack.c.bf16 %v18_v26, %v17_v25 }
   0x6   :  { %423 = vmatpush.bf16.msra.mxu0 %v415_v10  ;;  %2598 = vmatpush.bf16.msra.mxu2 %v415_v10  ;;  %v2439_v20 = vld [vmem:[%s4561_s0 + $0x608] sm:$0xff]  ;;  %v1323_v23 = vpack.c.bf16 %v2375_v18, %v2374_v17  ;;  %v82_v28 = vld [vmem:[%s4561_s0 + $0x218] sm:$0xff]  ;;  %v2376_v29 = vld [vmem:[%s4561_s0 + $0x410] sm:$0xff] }
   0x7   :  { %1598 = vmatpush.bf16.msra.mxu1 %v1590_v11  ;;  %2600 = vmatpush.bf16.msra.mxu3 %v1590_v11  ;;  %v1355_v24 = vpack.c.bf16 %v2439_v20, %v2438_v19  ;;  %v2377_v30 = vld [vmem:[%s4561_s0 + $0x418] sm:$0xff]  ;;  %v2440_v31 = vld [vmem:[%s4561_s0 + $0x610] sm:$0xff]  ;;  %v176_v34 = vpack.c.bf16 %v82_v28, %v81_v27  ;;  %v19_v37 = vld [vmem:[%s4561_s0 + $0x20] sm:$0xff] }
   0x8   :  { %v2441_v32 = vld [vmem:[%s4561_s0 + $0x618] sm:$0xff]  ;;  %v1324_v35 = vpack.c.bf16 %v2377_v30, %v2376_v29  ;;  %v20_v38 = vld [vmem:[%s4561_s0 + $0x28] sm:$0xff]  ;;  %v83_v39 = vld [vmem:[%s4561_s0 + $0x220] sm:$0xff] }
   0x9   :  { %v1356_v36 = vpack.c.bf16 %v2441_v32, %v2440_v31  ;;  %v84_v40 = vld [vmem:[%s4561_s0 + $0x228] sm:$0xff]  ;;  %v2378_v41 = vld [vmem:[%s4561_s0 + $0x420] sm:$0xff]  ;;  %v145_v45 = vpack.c.bf16 %v20_v38, %v19_v37  ;;  %v21_v49 = vld [vmem:[%s4561_s0 + $0x30] sm:$0xff] }
   0xa   :  { %424 = vmatpush.bf16.msra.mxu0 %v211_v14  ;;  %2599 = vmatpush.bf16.msra.mxu2 %v211_v14  ;;  %v2379_v42 = vld [vmem:[%s4561_s0 + $0x428] sm:$0xff]  ;;  %v2442_v43 = vld [vmem:[%s4561_s0 + $0x620] sm:$0xff]  ;;  %v177_v46 = vpack.c.bf16 %v84_v40, %v83_v39  ;;  %v22_v50 = vld [vmem:[%s4561_s0 + $0x38] sm:$0xff] }
   0xb   :  { %1599 = vmatpush.bf16.msra.mxu1 %v211_v14  ;;  %2601 = vmatpush.bf16.msra.mxu3 %v211_v14  ;;  %v2443_v44 = vld [vmem:[%s4561_s0 + $0x628] sm:$0xff]  ;;  %v1325_v47 = vpack.c.bf16 %v2379_v42, %v2378_v41  ;;  %v85_v51 = vld [vmem:[%s4561_s0 + $0x230] sm:$0xff]  ;;  %v86_v52 = vld [vmem:[%s4561_s0 + $0x238] sm:$0xff]  ;;  %v146_v57 = vpack.c.bf16 %v22_v50, %v21_v49 }
   0xc   :  { %v1357_v48 = vpack.c.bf16 %v2443_v44, %v2442_v43  ;;  %v2380_v53 = vld [vmem:[%s4561_s0 + $0x430] sm:$0xff]  ;;  %v2381_v54 = vld [vmem:[%s4561_s0 + $0x438] sm:$0xff]  ;;  %v178_v58 = vpack.c.bf16 %v86_v52, %v85_v51  ;;  %v23_v61 = vld [vmem:[%s4561_s0 + $0x40] sm:$0xff] }
   0xd   :  { %2310 = vmatmul.msk.bf16.vlgmr.msra.gmra.mxu0 %vm217_vm2, %v143_v21  ;;  %2342 = vmatmul.msk.bf16.vlgmr.msra.gmra.mxu2 %vm217_vm2, %v175_v22  ;;  %v2444_v55 = vld [vmem:[%s4561_s0 + $0x630] sm:$0xff]  ;;  %v2445_v56 = vld [vmem:[%s4561_s0 + $0x638] sm:$0xff]  ;;  %v1326_v59 = vpack.c.bf16 %v2381_v54, %v2380_v53  ;;  %v24_v62 = vld [vmem:[%s4561_s0 + $0x48] sm:$0xff] }
   0xe   :  { %2502 = vmatmul.msk.bf16.vlgmr.msra.gmra.mxu1 %vm217_vm2, %v1323_v23  ;;  %2534 = vmatmul.msk.bf16.vlgmr.msra.gmra.mxu3 %vm217_vm2, %v1355_v24  ;;  %v1358_v60 = vpack.c.bf16 %v2445_v56, %v2444_v55  ;;  %v87_v63 = vld [vmem:[%s4561_s0 + $0x240] sm:$0xff]  ;;  %v88_v0 = vld [vmem:[%s4561_s0 + $0x248] sm:$0xff]  ;;  %v147_v5 = vpack.c.bf16 %v24_v62, %v23_v61  ;;  %v25_v9 = vld [vmem:[%s4561_s0 + $0x50] sm:$0xff] }
   0xf   :  { %v2382_v1 = vld [vmem:[%s4561_s0 + $0x440] sm:$0xff]  ;;  %v2383_v2 = vld [vmem:[%s4561_s0 + $0x448] sm:$0xff]  ;;  %v179_v6 = vpack.c.bf16 %v88_v0, %v87_v63  ;;  %v26_v10 = vld [vmem:[%s4561_s0 + $0x58] sm:$0xff] }
  0x10   :  { %v2446_v3 = vld [vmem:[%s4561_s0 + $0x640] sm:$0xff]  ;;  %v2447_v4 = vld [vmem:[%s4561_s0 + $0x648] sm:$0xff]  ;;  %v1327_v7 = vpack.c.bf16 %v2383_v2, %v2382_v1  ;;  %v89_v11 = vld [vmem:[%s4561_s0 + $0x250] sm:$0xff]  ;;  %v148_v17 = vpack.c.bf16 %v26_v10, %v25_v9 }
  0x11   :  { %v1359_v8 = vpack.c.bf16 %v2447_v4, %v2446_v3  ;;  %v90_v12 = vld [vmem:[%s4561_s0 + $0x258] sm:$0xff]  ;;  %v2384_v13 = vld [vmem:[%s4561_s0 + $0x450] sm:$0xff]  ;;  %v27_v21 = vld [vmem:[%s4561_s0 + $0x60] sm:$0xff] }
  0x12   :  { %v2385_v14 = vld [vmem:[%s4561_s0 + $0x458] sm:$0xff]  ;;  %v2448_v15 = vld [vmem:[%s4561_s0 + $0x650] sm:$0xff]  ;;  %v180_v18 = vpack.c.bf16 %v90_v12, %v89_v11  ;;  %v28_v22 = vld [vmem:[%s4561_s0 + $0x68] sm:$0xff] }
  0x13   :  { %v2449_v16 = vld [vmem:[%s4561_s0 + $0x658] sm:$0xff]  ;;  %v1328_v19 = vpack.c.bf16 %v2385_v14, %v2384_v13  ;;  %v91_v23 = vld [vmem:[%s4561_s0 + $0x260] sm:$0xff]  ;;  %v92_v24 = vld [vmem:[%s4561_s0 + $0x268] sm:$0xff]  ;;  %v149_v29 = vpack.c.bf16 %v28_v22, %v27_v21 }
  0x14   :  { %v1360_v20 = vpack.c.bf16 %v2449_v16, %v2448_v15  ;;  %v2386_v25 = vld [vmem:[%s4561_s0 + $0x460] sm:$0xff]  ;;  %v2387_v26 = vld [vmem:[%s4561_s0 + $0x468] sm:$0xff]  ;;  %v181_v30 = vpack.c.bf16 %v92_v24, %v91_v23  ;;  %v2388_v37 = vld [vmem:[%s4561_s0 + $0x470] sm:$0xff] }
  0x15   :  { %v2450_v27 = vld [vmem:[%s4561_s0 + $0x660] sm:$0xff]  ;;  %v2451_v28 = vld [vmem:[%s4561_s0 + $0x668] sm:$0xff]  ;;  %v1329_v31 = vpack.c.bf16 %v2387_v26, %v2386_v25  ;;  %v2389_v38 = vld [vmem:[%s4561_s0 + $0x478] sm:$0xff] }
  0x16   :  { %v1361_v32 = vpack.c.bf16 %v2451_v28, %v2450_v27  ;;  %v2452_v39 = vld [vmem:[%s4561_s0 + $0x670] sm:$0xff]  ;;  %v2453_v40 = vld [vmem:[%s4561_s0 + $0x678] sm:$0xff]  ;;  %v1330_v43 = vpack.c.bf16 %v2389_v38, %v2388_v37  ;;  %v2390_v49 = vld [vmem:[%s4561_s0 + $0x480] sm:$0xff] }
  0x17   :  { %v1362_v44 = vpack.c.bf16 %v2453_v40, %v2452_v39  ;;  %v2391_v50 = vld [vmem:[%s4561_s0 + $0x488] sm:$0xff]  ;;  %v2454_v51 = vld [vmem:[%s4561_s0 + $0x680] sm:$0xff]  ;;  %v33_v63 = vld [vmem:[%s4561_s0 + $0x90] sm:$0xff] }
  0x18   :  { %v2455_v52 = vld [vmem:[%s4561_s0 + $0x688] sm:$0xff]  ;;  %v1331_v56 = vpack.c.bf16 %v2391_v50, %v2390_v49  ;;  %v34_v0 = vld [vmem:[%s4561_s0 + $0x98] sm:$0xff]  ;;  %v97_v1 = vld [vmem:[%s4561_s0 + $0x290] sm:$0xff] }
  0x19   :  { %v98_v2 = vld [vmem:[%s4561_s0 + $0x298] sm:$0xff]  ;;  %v2392_v3 = vld [vmem:[%s4561_s0 + $0x490] sm:$0xff]  ;;  %v152_v9 = vpack.c.bf16 %v34_v0, %v33_v63  ;;  %v36_v21 = vld [vmem:[%s4561_s0 + $0xa8] sm:$0xff] }
  0x1a   :  { %v2393_v4 = vld [vmem:[%s4561_s0 + $0x498] sm:$0xff]  ;;  %v184_v10 = vpack.c.bf16 %v98_v2, %v97_v1  ;;  %v99_v22 = vld [vmem:[%s4561_s0 + $0x2a0] sm:$0xff]  ;;  %v100_v23 = vld [vmem:[%s4561_s0 + $0x2a8] sm:$0xff] }
  0x1b   :  { %v1332_v12 = vpack.c.bf16 %v2393_v4, %v2392_v3  ;;  %v2394_v24 = vld [vmem:[%s4561_s0 + $0x4a0] sm:$0xff]  ;;  %v2395_v25 = vld [vmem:[%s4561_s0 + $0x4a8] sm:$0xff]  ;;  %v2397_v2 = vld [vmem:[%s4561_s0 + $0x4b8] sm:$0xff] }
  0x1c   :  { %v2458_v26 = vld [vmem:[%s4561_s0 + $0x6a0] sm:$0xff]  ;;  %v2459_v27 = vld [vmem:[%s4561_s0 + $0x6a8] sm:$0xff]  ;;  %v2460_v3 = vld [vmem:[%s4561_s0 + $0x6b0] sm:$0xff] }
  0x1d   :  { %2311 = vmatmul.msk.bf16.gmra.mxu0 %vm217_vm2, %v144_v33  ;;  %2343 = vmatmul.msk.bf16.gmra.mxu2 %vm217_vm2, %v176_v34  ;;  %v29_v33 = vld [vmem:[%s4561_s0 + $0x70] sm:$0xff]  ;;  %v30_v34 = vld [vmem:[%s4561_s0 + $0x78] sm:$0xff] }
  0x1e   :  { %2503 = vmatmul.msk.bf16.gmra.mxu1 %vm217_vm2, %v1324_v35  ;;  %2535 = vmatmul.msk.bf16.gmra.mxu3 %vm217_vm2, %v1356_v36  ;;  %v93_v35 = vld [vmem:[%s4561_s0 + $0x270] sm:$0xff]  ;;  %v94_v36 = vld [vmem:[%s4561_s0 + $0x278] sm:$0xff]  ;;  %v150_v41 = vpack.c.bf16 %v30_v34, %v29_v33  ;;  %v1333_v34 = vpack.c.bf16 %v2395_v25, %v2394_v24 }
  0x1f   :  { %v182_v42 = vpack.c.bf16 %v94_v36, %v93_v35  ;;  %v1365_v35 = vpack.c.bf16 %v2459_v27, %v2458_v26  ;;  %v2461_v4 = vld [vmem:[%s4561_s0 + $0x6b8] sm:$0xff] }
  0x20   :  { %v1366_v24 = vpack.c.bf16 %v2461_v4, %v2460_v3 }
  0x2d   :  { %2312 = vmatmul.msk.bf16.gmra.mxu0 %vm217_vm2, %v145_v45  ;;  %2344 = vmatmul.msk.bf16.gmra.mxu2 %vm217_vm2, %v177_v46  ;;  %v31_v45 = vld [vmem:[%s4561_s0 + $0x80] sm:$0xff]  ;;  %v32_v46 = vld [vmem:[%s4561_s0 + $0x88] sm:$0xff] }
  0x2e   :  { %2504 = vmatmul.msk.bf16.gmra.mxu1 %vm217_vm2, %v1325_v47  ;;  %2536 = vmatmul.msk.bf16.gmra.mxu3 %vm217_vm2, %v1357_v48  ;;  %v95_v47 = vld [vmem:[%s4561_s0 + $0x280] sm:$0xff]  ;;  %v96_v48 = vld [vmem:[%s4561_s0 + $0x288] sm:$0xff]  ;;  %v151_v53 = vpack.c.bf16 %v32_v46, %v31_v45 }
  0x2f   :  { %v183_v54 = vpack.c.bf16 %v96_v48, %v95_v47 }
  0x3d   :  { %2313 = vmatmul.msk.bf16.gmra.mxu0 %vm217_vm2, %v146_v57  ;;  %2345 = vmatmul.msk.bf16.gmra.mxu2 %vm217_vm2, %v178_v58  ;;  %v1363_v57 = vpack.c.bf16 %v2455_v52, %v2454_v51  ;;  %v2995_v51 = vld [vmem:[%s4562_s2] ss:$0 sm:$0xff] }
  0x3e   :  { %2505 = vmatmul.msk.bf16.gmra.mxu1 %vm217_vm2, %v1326_v59  ;;  %2537 = vmatmul.msk.bf16.gmra.mxu3 %vm217_vm2, %v1358_v60 }
  0x4d   :  { %2314 = vmatmul.msk.bf16.gmra.mxu0 %vm217_vm2, %v147_v5  ;;  %2346 = vmatmul.msk.bf16.gmra.mxu2 %vm217_vm2, %v179_v6  ;;  %v2456_v5 = vld [vmem:[%s4561_s0 + $0x690] sm:$0xff]  ;;  %v2457_v6 = vld [vmem:[%s4561_s0 + $0x698] sm:$0xff] }
  0x4e   :  { %2506 = vmatmul.msk.bf16.gmra.mxu1 %vm217_vm2, %v1327_v7  ;;  %2538 = vmatmul.msk.bf16.gmra.mxu3 %vm217_vm2, %v1359_v8  ;;  %v1364_v13 = vpack.c.bf16 %v2457_v6, %v2456_v5 }
  0x5d   :  { %2315 = vmatmul.msk.bf16.gmra.mxu0 %vm217_vm2, %v148_v17  ;;  %2347 = vmatmul.msk.bf16.gmra.mxu2 %vm217_vm2, %v180_v18 }
  0x5e   :  { %2507 = vmatmul.msk.bf16.gmra.mxu1 %vm217_vm2, %v1328_v19  ;;  %2539 = vmatmul.msk.bf16.gmra.mxu3 %vm217_vm2, %v1360_v20  ;;  %v2951_v19 = vld [vmem:[%s4562_s2] ss:$0 sm:$0xff] }
  0x5f   :  { %v35_v20 = vld [vmem:[%s4561_s0 + $0xa0] sm:$0xff] }
  0x6d   :  { %2316 = vmatmul.msk.bf16.gmra.mxu0 %vm217_vm2, %v149_v29  ;;  %2348 = vmatmul.msk.bf16.gmra.mxu2 %vm217_vm2, %v181_v30 }
  0x6e   :  { %2508 = vmatmul.msk.bf16.gmra.mxu1 %vm217_vm2, %v1329_v31  ;;  %2540 = vmatmul.msk.bf16.gmra.mxu3 %vm217_vm2, %v1361_v32  ;;  %v153_v31 = vpack.c.bf16 %v36_v21, %v35_v20  ;;  %v185_v32 = vpack.c.bf16 %v100_v23, %v99_v22 }
  0x7d   :  { %2317 = vmatmul.msk.bf16.gmra.mxu0 %vm217_vm2, %v150_v41  ;;  %2349 = vmatmul.msk.bf16.gmra.mxu2 %vm217_vm2, %v182_v42 }
  0x7e   :  { %2509 = vmatmul.msk.bf16.gmra.mxu1 %vm217_vm2, %v1330_v43  ;;  %2541 = vmatmul.msk.bf16.gmra.mxu3 %vm217_vm2, %v1362_v44 }
  0x8a   :  { %v426_v55 = vpop.f32.mrf.mxu0 }
  0x8b   :  { %v2894_v58 = vpop.f32.mrf.mxu1  ;;  %v427_v29 = vadd.f32 %v2951_v19, %v426_v55  ;;  %v37_v55 = vld [vmem:[%s4561_s0 + $0xb0] sm:$0xff] }
  0x8d   :  { %2318 = vmatmul.msk.bf16.gmra.mxu0 %vm217_vm2, %v151_v53  ;;  %2350 = vmatmul.msk.bf16.gmra.mxu2 %vm217_vm2, %v183_v54  ;;  %v746_v38 = vmax.f32 %v427_v29, 0.0 }
  0x8e   :  { %2510 = vmatmul.msk.bf16.gmra.mxu1 %vm217_vm2, %v1331_v56  ;;  %2542 = vmatmul.msk.bf16.gmra.mxu3 %vm217_vm2, %v1363_v57  ;;  %v38_v56 = vld [vmem:[%s4561_s0 + $0xb8] sm:$0xff]  ;;  %v101_v57 = vld [vmem:[%s4561_s0 + $0x2b0] sm:$0xff] }
  0x90   :  { %v586_v59 = vpop.f32.mrf.mxu2 }
  0x91   :  { %v2900_v60 = vpop.f32.mrf.mxu3  ;;  %v587_v40 = vadd.f32 %v2951_v19, %v586_v59  ;;  %v102_v59 = vld [vmem:[%s4561_s0 + $0x2b8] sm:$0xff] }
  0x92   :  { %v428_v61 = vpop.f32.mrf.mxu0 }
  0x93   :  { %v2902_v62 = vpop.f32.mrf.mxu1  ;;  %v429_v43 = vadd.f32 %v2951_v19, %v428_v61  ;;  %v810_v47 = vmax.f32 %v587_v40, 0.0  ;;  %v2396_v61 = vld [vmem:[%s4561_s0 + $0x4b0] sm:$0xff] }
  0x94   :  { %v1604_v20 = vadd.f32 %v2995_v51, %v2902_v62  ;;  %v1334_v23 = vpack.c.bf16 %v2397_v2, %v2396_v61 }
  0x95   :  { %v747_v52 = vmax.f32 %v429_v43, 0.0 }
  0x96   :  { %v1922_v62 = vmax.f32 %v1604_v20, 0.0  ;;  %v2463_v20 = vld [vmem:[%s4561_s0 + $0x6c8] sm:$0xff] }
  0x98   :  { %v2928_v7 = vpop.f32.mrf.mxu2 }
  0x99   :  { %v2930_v8 = vpop.f32.mrf.mxu3  ;;  %v589_v63 = vadd.f32 %v2951_v19, %v2928_v7  ;;  %v1602_v7 = vadd.f32 %v2995_v51, %v2894_v58 }
  0x9a   :  { %v2932_v11 = vpop.f32.mrf.mxu0 }
  0x9b   :  { %v2934_v14 = vpop.f32.mrf.mxu1  ;;  %v432_v21 = vadd.f32 %v2951_v19, %v2932_v11  ;;  %v811_v25 = vmax.f32 %v589_v63, 0.0  ;;  %v40_v63 = vld [vmem:[%s4561_s0 + $0xc8] sm:$0xff] }
  0x9d   :  { %2319 = vmatmul.msk.bf16.gmra.mxu0 %vm217_vm2, %v152_v9  ;;  %2351 = vmatmul.msk.bf16.gmra.mxu2 %vm217_vm2, %v184_v10  ;;  %v748_v11 = vmax.f32 %v432_v21, 0.0 }
  0x9e   :  { %2511 = vmatmul.msk.bf16.gmra.mxu1 %vm217_vm2, %v1332_v12  ;;  %2543 = vmatmul.msk.bf16.gmra.mxu3 %vm217_vm2, %v1364_v13  ;;  %v154_v12 = vpack.c.bf16 %v38_v56, %v37_v55  ;;  %v186_v13 = vpack.c.bf16 %v102_v59, %v101_v57  ;;  %v39_v56 = vld [vmem:[%s4561_s0 + $0xc0] sm:$0xff] }
  0xa0   :  { %v2940_v15 = vpop.f32.mrf.mxu2 }
  0xa1   :  { %v2942_v16 = vpop.f32.mrf.mxu3  ;;  %v592_v40 = vadd.f32 %v2951_v19, %v2940_v15 }
  0xa2   :  { %v2944_v17 = vpop.f32.mrf.mxu0 }
  0xa3   :  { %v2946_v18 = vpop.f32.mrf.mxu1  ;;  %v812_v55 = vmax.f32 %v592_v40, 0.0 }
  0xa8   :  { %v2977_v28 = vpop.f32.mrf.mxu2 }
  0xa9   :  { %v2980_v30 = vpop.f32.mrf.mxu3 }
  0xaa   :  { %v436_v33 = vpop.f32.mrf.mxu0 }
  0xab   :  { %v437_v36 = vadd.f32 %v2951_v19, %v436_v33  ;;  %v1611_v37 = vpop.f32.mrf.mxu1 }
  0xac   :  { %v1612_v0 = vadd.f32 %v2995_v51, %v1611_v37  ;;  %v1762_v37 = vadd.f32 %v2995_v51, %v2900_v60 }
  0xad   :  { %v750_v39 = vmax.f32 %v437_v36, 0.0  ;;  %2320 = vmatmul.msk.bf16.gmra.mxu0 %vm217_vm2, %v153_v31  ;;  %2352 = vmatmul.msk.bf16.gmra.mxu2 %vm217_vm2, %v185_v32  ;;  %v1921_v32 = vmax.f32 %v1602_v7, 0.0  ;;  %v594_v7 = vadd.f32 %v2951_v19, %v2977_v28 }
  0xae   :  { %2512 = vmatmul.msk.bf16.gmra.mxu1 %vm217_vm2, %v1333_v34  ;;  %2544 = vmatmul.msk.bf16.gmra.mxu3 %vm217_vm2, %v1365_v35  ;;  %v1925_v26 = vmax.f32 %v1612_v0, 0.0  ;;  %v1985_v15 = vmax.f32 %v1762_v37, 0.0  ;;  %v103_v0 = vld [vmem:[%s4561_s0 + $0x2c0] sm:$0xff] }
  0xaf   :  { %v874_v41 = vmax.f32 %v746_v38, %v750_v39  ;;  %v1764_v39 = vadd.f32 %v2995_v51, %v2930_v8 }
  0xb0   :  { %v596_v42 = vpop.f32.mrf.mxu2  ;;  %v2049_v38 = vmax.f32 %v1921_v32, %v1925_v26  ;;  %v155_v26 = vpack.c.bf16 %v40_v63, %v39_v56 }
  0xb1   :  { %939 = vst.msk [vmem:[#allocation2] sm:$0xff] %vm938_vm3, %v874_v41  ;;  %v597_v44 = vadd.f32 %v2951_v19, %v596_v42  ;;  %v1771_v45 = vpop.f32.mrf.mxu3 }
  0xb2   :  { %v438_v46 = vpop.f32.mrf.mxu0  ;;  %v1772_v33 = vadd.f32 %v2995_v51, %v1771_v45 }
  0xb3   :  { %v814_v48 = vmax.f32 %v597_v44, 0.0  ;;  %v439_v49 = vadd.f32 %v2951_v19, %v438_v46  ;;  %v1613_v50 = vpop.f32.mrf.mxu1  ;;  %v434_v46 = vadd.f32 %v2951_v19, %v2944_v17 }
  0xb4   :  { %v1614_v5 = vadd.f32 %v2995_v51, %v1613_v50 }
  0xb5   :  { %v906_v53 = vmax.f32 %v810_v47, %v814_v48  ;;  %v751_v54 = vmax.f32 %v439_v49, 0.0  ;;  %v1989_v47 = vmax.f32 %v1772_v33, 0.0  ;;  %v749_v57 = vmax.f32 %v434_v46, 0.0 }
  0xb6   :  { %v1926_v31 = vmax.f32 %v1614_v5, 0.0 }
  0xb7   :  { %971 = vst.msk [vmem:[#allocation2 + $0x100] sm:$0xff] %vm938_vm3, %v906_v53  ;;  %v875_v1 = vmax.f32 %v747_v52, %v751_v54  ;;  %v1986_v54 = vmax.f32 %v1764_v39, 0.0  ;;  %v2081_v59 = vmax.f32 %v1985_v15, %v1989_v47 }
  0xb8   :  { %v598_v6 = vpop.f32.mrf.mxu2  ;;  %v2050_v43 = vmax.f32 %v1922_v62, %v1926_v31  ;;  %v813_v62 = vmax.f32 %v594_v7, 0.0 }
  0xb9   :  { %940 = vst.msk [vmem:[#allocation2 + $0x8] sm:$0xff] %vm938_vm3, %v875_v1  ;;  %v599_v9 = vadd.f32 %v2951_v19, %v598_v6  ;;  %v1773_v10 = vpop.f32.mrf.mxu3  ;;  %v104_v1 = vld [vmem:[%s4561_s0 + $0x2c8] sm:$0xff]  ;;  %v2398_v6 = vld [vmem:[%s4561_s0 + $0x4c0] sm:$0xff] }
  0xba   :  { %v441_v22 = vpop.f32.mrf.mxu0  ;;  %v1774_v36 = vadd.f32 %v2995_v51, %v1773_v10 }
  0xbb   :  { %v815_v27 = vmax.f32 %v599_v9, 0.0  ;;  %v442_v58 = vadd.f32 %v2951_v19, %v441_v22  ;;  %v3035_v29 = vpop.f32.mrf.mxu1 }
  0xbc   :  { %v1990_v8 = vmax.f32 %v1774_v36, 0.0  ;;  %v1609_v36 = vadd.f32 %v2995_v51, %v2946_v18 }
  0xbd   :  { %v907_v34 = vmax.f32 %v811_v25, %v815_v27  ;;  %v752_v35 = vmax.f32 %v442_v58, 0.0  ;;  %2321 = vmatmul.msk.bf16.gmra.mxu0 %vm217_vm2, %v154_v12  ;;  %2353 = vmatmul.msk.bf16.gmra.mxu2 %vm217_vm2, %v186_v13  ;;  %v2399_v12 = vld [vmem:[%s4561_s0 + $0x4c8] sm:$0xff]  ;;  %v2462_v13 = vld [vmem:[%s4561_s0 + $0x6c0] sm:$0xff]  ;;  %v187_v27 = vpack.c.bf16 %v104_v1, %v103_v0 }
  0xbe   :  { %2513 = vmatmul.msk.bf16.gmra.mxu1 %vm217_vm2, %v1334_v23  ;;  %2545 = vmatmul.msk.bf16.gmra.mxu3 %vm217_vm2, %v1366_v24  ;;  %v2082_v4 = vmax.f32 %v1986_v54, %v1990_v8  ;;  %v1617_v23 = vadd.f32 %v2995_v51, %v3035_v29  ;;  %v1335_v33 = vpack.c.bf16 %v2399_v12, %v2398_v6  ;;  %v2465_v6 = vld [vmem:[%s4561_s0 + $0x6d8] sm:$0xff] }
  0xbf   :  { %972 = vst.msk [vmem:[#allocation2 + $0x108] sm:$0xff] %vm938_vm3, %v907_v34  ;;  %v876_v44 = vmax.f32 %v748_v11, %v752_v35  ;;  %v1367_v34 = vpack.c.bf16 %v2463_v20, %v2462_v13  ;;  %v1607_v35 = vadd.f32 %v2995_v51, %v2934_v14 }
  0xc0   :  { %v1003_v41 = vld [vmem:[#allocation2] ss:$2 sm:$0xff]  ;;  %v1067_v42 = vld [vmem:[#allocation2 + $0x1] ss:$2 sm:$0xff]  ;;  %v601_v45 = vpop.f32.mrf.mxu2  ;;  %v1927_v37 = vmax.f32 %v1617_v23, 0.0 }
  0xc1   :  { %v1130_v48 = vmax.f32 %v1003_v41, %v1067_v42  ;;  %2113 = vst.msk [vmem:[#allocation2] sm:$0xff] %vm938_vm3, %v2049_v38  ;;  %v602_v60 = vadd.f32 %v2951_v19, %v601_v45  ;;  %v1776_v49 = vpop.f32.mrf.mxu3  ;;  %v1923_v18 = vmax.f32 %v1607_v35, 0.0  ;;  %v1767_v41 = vadd.f32 %v2995_v51, %v2942_v16  ;;  %v43_v35 = vld [vmem:[%s4561_s0 + $0xe0] sm:$0xff] }
  0xc2   :  { %2114 = vst.msk [vmem:[#allocation2 + $0x8] sm:$0xff] %vm938_vm3, %v2050_v43  ;;  %v443_v50 = vpop.f32.mrf.mxu0  ;;  %v1777_v38 = vadd.f32 %v2995_v51, %v1776_v49  ;;  %v1769_v45 = vadd.f32 %v2995_v51, %v2980_v30 }
  0xc3   :  { %1162 = vst.msk [vmem:[%s4563_s3] sm:$0xff] %vm938_vm3, %v1130_v48  ;;  %v816_v52 = vmax.f32 %v602_v60, 0.0  ;;  %v444_v17 = vadd.f32 %v2951_v19, %v443_v50  ;;  %v1618_v53 = vpop.f32.mrf.mxu1  ;;  %v2051_v48 = vmax.f32 %v1923_v18, %v1927_v37  ;;  %v2402_v37 = vld [vmem:[%s4561_s0 + $0x4e0] sm:$0xff] }
  0xc4   :  { %941 = vst.msk [vmem:[#allocation2 + $0x10] sm:$0xff] %vm938_vm3, %v876_v44  ;;  %v1619_v31 = vadd.f32 %v2995_v51, %v1618_v53  ;;  %v1924_v44 = vmax.f32 %v1609_v36, 0.0  ;;  %v1991_v60 = vmax.f32 %v1777_v38, 0.0  ;;  %v1988_v54 = vmax.f32 %v1769_v45, 0.0  ;;  %v108_v36 = vld [vmem:[%s4561_s0 + $0x2e8] sm:$0xff] }
  0xc5   :  { %v753_v61 = vmax.f32 %v444_v17, 0.0  ;;  %v908_v5 = vmax.f32 %v812_v55, %v816_v52  ;;  %v1987_v17 = vmax.f32 %v1767_v41, 0.0  ;;  %v41_v55 = vld [vmem:[%s4561_s0 + $0xd0] sm:$0xff]  ;;  %v2403_v38 = vld [vmem:[%s4561_s0 + $0x4e8] sm:$0xff] }
  0xc6   :  { %v1035_v2 = vld [vmem:[#allocation2 + $0x100] ss:$2 sm:$0xff]  ;;  %v1099_v3 = vld [vmem:[#allocation2 + $0x101] ss:$2 sm:$0xff]  ;;  %v1928_v14 = vmax.f32 %v1619_v31, 0.0  ;;  %v1337_v45 = vpack.c.bf16 %v2403_v38, %v2402_v37 }
  0xc7   :  { %v1146_v9 = vmax.f32 %v1035_v2, %v1099_v3  ;;  %2145 = vst.msk [vmem:[#allocation2 + $0x100] sm:$0xff] %vm938_vm3, %v2081_v59  ;;  %v877_v10 = vmax.f32 %v749_v57, %v753_v61  ;;  %v2083_v56 = vmax.f32 %v1987_v17, %v1991_v60  ;;  %v42_v57 = vld [vmem:[%s4561_s0 + $0xd8] sm:$0xff]  ;;  %v105_v59 = vld [vmem:[%s4561_s0 + $0x2d0] sm:$0xff] }
  0xc8   :  { %2146 = vst.msk [vmem:[#allocation2 + $0x108] sm:$0xff] %vm938_vm3, %v2082_v4  ;;  %v603_v21 = vpop.f32.mrf.mxu2  ;;  %v2052_v50 = vmax.f32 %v1924_v44, %v1928_v14  ;;  %v106_v61 = vld [vmem:[%s4561_s0 + $0x2d8] sm:$0xff]  ;;  %v2400_v2 = vld [vmem:[%s4561_s0 + $0x4d0] sm:$0xff]  ;;  %v2467_v14 = vld [vmem:[%s4561_s0 + $0x6e8] sm:$0xff] }
  0xc9   :  { %v2177_v28 = vld [vmem:[#allocation2] ss:$2 sm:$0xff]  ;;  %v2209_v22 = vld [vmem:[#allocation2 + $0x1] ss:$2 sm:$0xff]  ;;  %1178 = vst.msk [vmem:[%s4563_s3 + $0x80] sm:$0xff] %vm938_vm3, %v1146_v9  ;;  %v604_v24 = vadd.f32 %v2951_v19, %v603_v21  ;;  %v1778_v25 = vpop.f32.mrf.mxu3  ;;  %v2401_v4 = vld [vmem:[%s4561_s0 + $0x4d8] sm:$0xff]  ;;  %v188_v12 = vpack.c.bf16 %v106_v61, %v105_v59 }
  0xca   :  { %v2241_v58 = vmax.f32 %v2177_v28, %v2209_v22  ;;  %973 = vst.msk [vmem:[#allocation2 + $0x110] sm:$0xff] %vm938_vm3, %v908_v5  ;;  %v3098_v32 = vpop.f32.mrf.mxu0  ;;  %v1779_v40 = vadd.f32 %v2995_v51, %v1778_v25  ;;  %v2464_v5 = vld [vmem:[%s4561_s0 + $0x6d0] sm:$0xff]  ;;  %v1336_v20 = vpack.c.bf16 %v2401_v4, %v2400_v2 }
  0xcb   :  { %942 = vst.msk [vmem:[#allocation2 + $0x18] sm:$0xff] %vm938_vm3, %v877_v10  ;;  %v817_v29 = vmax.f32 %v604_v24, 0.0  ;;  %v3103_v11 = vpop.f32.mrf.mxu1  ;;  %v156_v10 = vpack.c.bf16 %v42_v57, %v41_v55  ;;  %v1368_v21 = vpack.c.bf16 %v2465_v6, %v2464_v5  ;;  %v447_v18 = vadd.f32 %v2951_v19, %v3098_v32  ;;  %v109_v2 = vld [vmem:[%s4561_s0 + $0x2f0] sm:$0xff] }
  0xcc   :  { %2566 = vst.msk [vmem:[%s4563_s3 + $0x100] sm:$0xff] %vm938_vm3, %v2241_v58  ;;  %v1992_v15 = vmax.f32 %v1779_v40, 0.0  ;;  %v2404_v4 = vld [vmem:[%s4561_s0 + $0x4f0] sm:$0xff] }
  0xcd   :  { %v909_v39 = vmax.f32 %v813_v62, %v817_v29  ;;  %2322 = vmatmul.msk.bf16.gmra.mxu0 %vm217_vm2, %v155_v26  ;;  %2354 = vmatmul.msk.bf16.gmra.mxu2 %vm217_vm2, %v187_v27  ;;  %v44_v62 = vld [vmem:[%s4561_s0 + $0xe8] sm:$0xff]  ;;  %v107_v29 = vld [vmem:[%s4561_s0 + $0x2e0] sm:$0xff] }
  0xce   :  { %2514 = vmatmul.msk.bf16.gmra.mxu1 %vm217_vm2, %v1335_v33  ;;  %2546 = vmatmul.msk.bf16.gmra.mxu3 %vm217_vm2, %v1367_v34  ;;  %v2084_v1 = vmax.f32 %v1988_v54, %v1992_v15 }
  0xcf   :  { %v2193_v42 = vld [vmem:[#allocation2 + $0x100] ss:$2 sm:$0xff]  ;;  %v2225_v43 = vld [vmem:[#allocation2 + $0x101] ss:$2 sm:$0xff]  ;;  %974 = vst.msk [vmem:[#allocation2 + $0x118] sm:$0xff] %vm938_vm3, %v909_v39 }
  0xd0   :  { %v2257_v46 = vmax.f32 %v2193_v42, %v2225_v43  ;;  %v3122_v47 = vpop.f32.mrf.mxu2  ;;  %v2466_v39 = vld [vmem:[%s4561_s0 + $0x6e0] sm:$0xff]  ;;  %v157_v42 = vpack.c.bf16 %v44_v62, %v43_v35  ;;  %v189_v43 = vpack.c.bf16 %v108_v36, %v107_v29 }
  0xd1   :  { %v3124_v49 = vpop.f32.mrf.mxu3  ;;  %v607_v32 = vadd.f32 %v2951_v19, %v3122_v47  ;;  %v45_v47 = vld [vmem:[%s4561_s0 + $0xf0] sm:$0xff] }
  0xd2   :  { %2582 = vst.msk [vmem:[%s4563_s3 + $0x180] sm:$0xff] %vm938_vm3, %v2257_v46  ;;  %v1005_v16 = vld [vmem:[#allocation2 + $0x10] ss:$2 sm:$0xff]  ;;  %v1069_v8 = vld [vmem:[#allocation2 + $0x11] ss:$2 sm:$0xff]  ;;  %v3130_v52 = vpop.f32.mrf.mxu0  ;;  %v1369_v46 = vpack.c.bf16 %v2467_v14, %v2466_v39 }
  0xd3   :  { %v1131_v30 = vmax.f32 %v1005_v16, %v1069_v8  ;;  %2115 = vst.msk [vmem:[#allocation2 + $0x10] sm:$0xff] %vm938_vm3, %v2051_v48  ;;  %v3133_v53 = vpop.f32.mrf.mxu1  ;;  %v754_v16 = vmax.f32 %v447_v18, 0.0  ;;  %v449_v17 = vadd.f32 %v2951_v19, %v3130_v52  ;;  %v46_v52 = vld [vmem:[%s4561_s0 + $0xf8] sm:$0xff] }
  0xd4   :  { %2116 = vst.msk [vmem:[#allocation2 + $0x18] sm:$0xff] %vm938_vm3, %v2052_v50  ;;  %v1624_v35 = vadd.f32 %v2995_v51, %v3133_v53 }
  0xd5   :  { %1163 = vst.msk [vmem:[%s4563_s3 + $0x8] sm:$0xff] %vm938_vm3, %v1131_v30 }
  0xd6   :  { %v1037_v63 = vld [vmem:[#allocation2 + $0x110] ss:$2 sm:$0xff]  ;;  %v1101_v0 = vld [vmem:[#allocation2 + $0x111] ss:$2 sm:$0xff]  ;;  %v1930_v53 = vmax.f32 %v1624_v35, 0.0  ;;  %v2471_v35 = vld [vmem:[%s4561_s0 + $0x708] sm:$0xff] }
  0xd7   :  { %v1147_v3 = vmax.f32 %v1037_v63, %v1101_v0  ;;  %2147 = vst.msk [vmem:[#allocation2 + $0x110] sm:$0xff] %vm938_vm3, %v2083_v56  ;;  %v818_v56 = vmax.f32 %v607_v32, 0.0  ;;  %v755_v63 = vmax.f32 %v449_v17, 0.0 }
  0xd8   :  { %2148 = vst.msk [vmem:[#allocation2 + $0x118] sm:$0xff] %vm938_vm3, %v2084_v1  ;;  %v3166_v7 = vpop.f32.mrf.mxu2 }
  0xd9   :  { %1179 = vst.msk [vmem:[%s4563_s3 + $0x88] sm:$0xff] %vm938_vm3, %v1147_v3  ;;  %v3172_v9 = vpop.f32.mrf.mxu3  ;;  %v110_v3 = vld [vmem:[%s4561_s0 + $0x2f8] sm:$0xff]  ;;  %v609_v5 = vadd.f32 %v2951_v19, %v3166_v7 }
  0xda   :  { %v3174_v13 = vpop.f32.mrf.mxu0 }
  0xdb   :  { %v2178_v28 = vld [vmem:[#allocation2 + $0x10] ss:$2 sm:$0xff]  ;;  %v2210_v22 = vld [vmem:[#allocation2 + $0x11] ss:$2 sm:$0xff]  ;;  %v3176_v23 = vpop.f32.mrf.mxu1  ;;  %v452_v62 = vadd.f32 %v2951_v19, %v3174_v13  ;;  %v819_v38 = vmax.f32 %v609_v5, 0.0  ;;  %v48_v5 = vld [vmem:[%s4561_s0 + $0x108] sm:$0xff] }
  0xdc   :  { %v2242_v24 = vmax.f32 %v2178_v28, %v2210_v22  ;;  %v1622_v22 = vadd.f32 %v2995_v51, %v3103_v11 }
  0xdd   :  { %2323 = vmatmul.msk.bf16.gmra.mxu0 %vm217_vm2, %v156_v10  ;;  %2355 = vmatmul.msk.bf16.gmra.mxu2 %vm217_vm2, %v188_v12  ;;  %v2405_v12 = vld [vmem:[%s4561_s0 + $0x4f8] sm:$0xff]  ;;  %v756_v13 = vmax.f32 %v452_v62, 0.0 }
  0xde   :  { %2567 = vst.msk [vmem:[%s4563_s3 + $0x108] sm:$0xff] %vm938_vm3, %v2242_v24  ;;  %2515 = vmatmul.msk.bf16.gmra.mxu1 %vm217_vm2, %v1336_v20  ;;  %2547 = vmatmul.msk.bf16.gmra.mxu3 %vm217_vm2, %v1368_v21  ;;  %v2468_v20 = vld [vmem:[%s4561_s0 + $0x6f0] sm:$0xff]  ;;  %v2469_v21 = vld [vmem:[%s4561_s0 + $0x6f8] sm:$0xff]  ;;  %v1338_v36 = vpack.c.bf16 %v2405_v12, %v2404_v4 }
  0xdf   :  { %v2194_v25 = vld [vmem:[#allocation2 + $0x110] ss:$2 sm:$0xff]  ;;  %v2226_v26 = vld [vmem:[#allocation2 + $0x111] ss:$2 sm:$0xff]  ;;  %v1370_v37 = vpack.c.bf16 %v2469_v21, %v2468_v20 }
  0xe0   :  { %v2258_v27 = vmax.f32 %v2194_v25, %v2226_v26  ;;  %v3186_v58 = vpop.f32.mrf.mxu2  ;;  %v158_v26 = vpack.c.bf16 %v46_v52, %v45_v47  ;;  %v47_v52 = vld [vmem:[%s4561_s0 + $0x100] sm:$0xff] }
  0xe1   :  { %v3188_v31 = vpop.f32.mrf.mxu3  ;;  %v612_v32 = vadd.f32 %v2951_v19, %v3186_v58 }
  0xe2   :  { %2583 = vst.msk [vmem:[%s4563_s3 + $0x188] sm:$0xff] %vm938_vm3, %v2258_v27  ;;  %v3194_v33 = vpop.f32.mrf.mxu0  ;;  %v190_v27 = vpack.c.bf16 %v110_v3, %v109_v2 }
  0xe3   :  { %v3196_v34 = vpop.f32.mrf.mxu1  ;;  %v820_v47 = vmax.f32 %v612_v32, 0.0 }
  0xe8   :  { %v3222_v40 = vpop.f32.mrf.mxu2 }
  0xe9   :  { %v3226_v41 = vpop.f32.mrf.mxu3 }
  0xea   :  { %v456_v44 = vpop.f32.mrf.mxu0 }
  0xeb   :  { %v457_v48 = vadd.f32 %v2951_v19, %v456_v44  ;;  %v1631_v60 = vpop.f32.mrf.mxu1 }
  0xec   :  { %v1632_v6 = vadd.f32 %v2995_v51, %v1631_v60  ;;  %v1782_v60 = vadd.f32 %v2995_v51, %v3124_v49 }
  0xed   :  { %v758_v8 = vmax.f32 %v457_v48, 0.0  ;;  %2324 = vmatmul.msk.bf16.gmra.mxu0 %vm217_vm2, %v157_v42  ;;  %2356 = vmatmul.msk.bf16.gmra.mxu2 %vm217_vm2, %v189_v43  ;;  %v1929_v43 = vmax.f32 %v1622_v22, 0.0  ;;  %v614_v22 = vadd.f32 %v2951_v19, %v3222_v40 }
  0xee   :  { %2516 = vmatmul.msk.bf16.gmra.mxu1 %vm217_vm2, %v1337_v45  ;;  %2548 = vmatmul.msk.bf16.gmra.mxu3 %vm217_vm2, %v1369_v46  ;;  %v1933_v39 = vmax.f32 %v1632_v6, 0.0  ;;  %v1993_v58 = vmax.f32 %v1782_v60, 0.0  ;;  %v111_v6 = vld [vmem:[%s4561_s0 + $0x300] sm:$0xff] }
  0xef   :  { %v878_v50 = vmax.f32 %v754_v16, %v758_v8  ;;  %v1784_v8 = vadd.f32 %v2995_v51, %v3172_v9 }
  0xf0   :  { %v616_v15 = vpop.f32.mrf.mxu2  ;;  %v2053_v16 = vmax.f32 %v1929_v43, %v1933_v39  ;;  %v159_v39 = vpack.c.bf16 %v48_v5, %v47_v52 }
  0xf1   :  { %943 = vst.msk [vmem:[#allocation2 + $0x20] sm:$0xff] %vm938_vm3, %v878_v50  ;;  %v617_v30 = vadd.f32 %v2951_v19, %v616_v15  ;;  %v1791_v54 = vpop.f32.mrf.mxu3 }
  0xf2   :  { %v458_v55 = vpop.f32.mrf.mxu0  ;;  %v1792_v44 = vadd.f32 %v2995_v51, %v1791_v54 }
  0xf3   :  { %v822_v57 = vmax.f32 %v617_v30, 0.0  ;;  %v459_v59 = vadd.f32 %v2951_v19, %v458_v55  ;;  %v1633_v61 = vpop.f32.mrf.mxu1  ;;  %v454_v55 = vadd.f32 %v2951_v19, %v3194_v33 }
  0xf4   :  { %v1634_v28 = vadd.f32 %v2995_v51, %v1633_v61 }
  0xf5   :  { %v910_v0 = vmax.f32 %v818_v56, %v822_v57  ;;  %v759_v1 = vmax.f32 %v459_v59, 0.0  ;;  %v1997_v56 = vmax.f32 %v1792_v44, 0.0  ;;  %v757_v2 = vmax.f32 %v454_v55, 0.0 }
  0xf6   :  { %v1934_v42 = vmax.f32 %v1634_v28, 0.0 }
  0xf7   :  { %975 = vst.msk [vmem:[#allocation2 + $0x120] sm:$0xff] %vm938_vm3, %v910_v0  ;;  %v879_v10 = vmax.f32 %v755_v63, %v759_v1  ;;  %v1994_v1 = vmax.f32 %v1784_v8, 0.0  ;;  %v2085_v3 = vmax.f32 %v1993_v58, %v1997_v56 }
  0xf8   :  { %v618_v7 = vpop.f32.mrf.mxu2  ;;  %v2054_v17 = vmax.f32 %v1930_v53, %v1934_v42  ;;  %v821_v53 = vmax.f32 %v614_v22, 0.0 }
  0xf9   :  { %944 = vst.msk [vmem:[#allocation2 + $0x28] sm:$0xff] %vm938_vm3, %v879_v10  ;;  %v619_v24 = vadd.f32 %v2951_v19, %v618_v7  ;;  %v1793_v25 = vpop.f32.mrf.mxu3  ;;  %v112_v10 = vld [vmem:[%s4561_s0 + $0x308] sm:$0xff]  ;;  %v2406_v7 = vld [vmem:[%s4561_s0 + $0x500] sm:$0xff] }
  0xfa   :  { %v461_v29 = vpop.f32.mrf.mxu0  ;;  %v1794_v48 = vadd.f32 %v2995_v51, %v1793_v25 }
  0xfb   :  { %v823_v14 = vmax.f32 %v619_v24, 0.0  ;;  %v462_v11 = vadd.f32 %v2951_v19, %v461_v29  ;;  %v3278_v18 = vpop.f32.mrf.mxu1 }
  0xfc   :  { %v1998_v9 = vmax.f32 %v1794_v48, 0.0  ;;  %v1629_v48 = vadd.f32 %v2995_v51, %v3196_v34 }
  0xfd   :  { %v911_v45 = vmax.f32 %v819_v38, %v823_v14  ;;  %v760_v46 = vmax.f32 %v462_v11, 0.0  ;;  %2325 = vmatmul.msk.bf16.gmra.mxu0 %vm217_vm2, %v158_v26  ;;  %2357 = vmatmul.msk.bf16.gmra.mxu2 %vm217_vm2, %v190_v27  ;;  %v2407_v26 = vld [vmem:[%s4561_s0 + $0x508] sm:$0xff]  ;;  %v2470_v27 = vld [vmem:[%s4561_s0 + $0x700] sm:$0xff]  ;;  %v191_v14 = vpack.c.bf16 %v112_v10, %v111_v6 }
  0xfe   :  { %2517 = vmatmul.msk.bf16.gmra.mxu1 %vm217_vm2, %v1338_v36  ;;  %2549 = vmatmul.msk.bf16.gmra.mxu3 %vm217_vm2, %v1370_v37  ;;  %v2086_v21 = vmax.f32 %v1994_v1, %v1998_v9  ;;  %v1637_v36 = vadd.f32 %v2995_v51, %v3278_v18  ;;  %v1339_v44 = vpack.c.bf16 %v2407_v26, %v2406_v7  ;;  %v2473_v7 = vld [vmem:[%s4561_s0 + $0x718] sm:$0xff] }
  0xff   :  { %976 = vst.msk [vmem:[#allocation2 + $0x128] sm:$0xff] %vm938_vm3, %v911_v45  ;;  %v880_v30 = vmax.f32 %v756_v13, %v760_v46  ;;  %v1371_v45 = vpack.c.bf16 %v2471_v35, %v2470_v27  ;;  %v1627_v46 = vadd.f32 %v2995_v51, %v3176_v23 }
 0x100   :  { %v1007_v50 = vld [vmem:[#allocation2 + $0x20] ss:$2 sm:$0xff]  ;;  %v1071_v15 = vld [vmem:[#allocation2 + $0x21] ss:$2 sm:$0xff]  ;;  %v621_v54 = vpop.f32.mrf.mxu2  ;;  %v1935_v60 = vmax.f32 %v1637_v36, 0.0 }
 0x101   :  { %v1132_v57 = vmax.f32 %v1007_v50, %v1071_v15  ;;  %2117 = vst.msk [vmem:[#allocation2 + $0x20] sm:$0xff] %vm938_vm3, %v2053_v16  ;;  %v622_v49 = vadd.f32 %v2951_v19, %v621_v54  ;;  %v1796_v59 = vpop.f32.mrf.mxu3  ;;  %v1931_v34 = vmax.f32 %v1627_v46, 0.0  ;;  %v1787_v50 = vadd.f32 %v2995_v51, %v3188_v31  ;;  %v51_v46 = vld [vmem:[%s4561_s0 + $0x120] sm:$0xff] }
 0x102   :  { %2118 = vst.msk [vmem:[#allocation2 + $0x28] sm:$0xff] %vm938_vm3, %v2054_v17  ;;  %v463_v61 = vpop.f32.mrf.mxu0  ;;  %v1797_v16 = vadd.f32 %v2995_v51, %v1796_v59  ;;  %v1789_v54 = vadd.f32 %v2995_v51, %v3226_v41 }
 0x103   :  { %1164 = vst.msk [vmem:[%s4563_s3 + $0x10] sm:$0xff] %vm938_vm3, %v1132_v57  ;;  %v824_v63 = vmax.f32 %v622_v49, 0.0  ;;  %v464_v33 = vadd.f32 %v2951_v19, %v463_v61  ;;  %v1638_v0 = vpop.f32.mrf.mxu1  ;;  %v2055_v57 = vmax.f32 %v1931_v34, %v1935_v60  ;;  %v2410_v60 = vld [vmem:[%s4561_s0 + $0x520] sm:$0xff] }
 0x104   :  { %945 = vst.msk [vmem:[#allocation2 + $0x30] sm:$0xff] %vm938_vm3, %v880_v30  ;;  %v1639_v42 = vadd.f32 %v2995_v51, %v1638_v0  ;;  %v1932_v30 = vmax.f32 %v1629_v48, 0.0  ;;  %v1999_v49 = vmax.f32 %v1797_v16, 0.0  ;;  %v1996_v1 = vmax.f32 %v1789_v54, 0.0  ;;  %v116_v48 = vld [vmem:[%s4561_s0 + $0x328] sm:$0xff] }
 0x105   :  { %v761_v4 = vmax.f32 %v464_v33, 0.0  ;;  %v912_v28 = vmax.f32 %v820_v47, %v824_v63  ;;  %v1995_v33 = vmax.f32 %v1787_v50, 0.0  ;;  %v49_v47 = vld [vmem:[%s4561_s0 + $0x110] sm:$0xff]  ;;  %v2411_v16 = vld [vmem:[%s4561_s0 + $0x528] sm:$0xff] }
 0x106   :  { %v1039_v12 = vld [vmem:[#allocation2 + $0x120] ss:$2 sm:$0xff]  ;;  %v1103_v20 = vld [vmem:[#allocation2 + $0x121] ss:$2 sm:$0xff]  ;;  %v1936_v23 = vmax.f32 %v1639_v42, 0.0  ;;  %v1341_v54 = vpack.c.bf16 %v2411_v16, %v2410_v60 }
 0x107   :  { %v1148_v24 = vmax.f32 %v1039_v12, %v1103_v20  ;;  %2149 = vst.msk [vmem:[#allocation2 + $0x120] sm:$0xff] %vm938_vm3, %v2085_v3  ;;  %v881_v25 = vmax.f32 %v757_v2, %v761_v4  ;;  %v2087_v52 = vmax.f32 %v1995_v33, %v1999_v49  ;;  %v50_v2 = vld [vmem:[%s4561_s0 + $0x118] sm:$0xff]  ;;  %v113_v3 = vld [vmem:[%s4561_s0 + $0x310] sm:$0xff] }
 0x108   :  { %2150 = vst.msk [vmem:[#allocation2 + $0x128] sm:$0xff] %vm938_vm3, %v2086_v21  ;;  %v623_v62 = vpop.f32.mrf.mxu2  ;;  %v2056_v61 = vmax.f32 %v1932_v30, %v1936_v23  ;;  %v114_v4 = vld [vmem:[%s4561_s0 + $0x318] sm:$0xff]  ;;  %v2408_v12 = vld [vmem:[%s4561_s0 + $0x510] sm:$0xff]  ;;  %v2475_v23 = vld [vmem:[%s4561_s0 + $0x728] sm:$0xff] }
 0x109   :  { %v2179_v40 = vld [vmem:[#allocation2 + $0x20] ss:$2 sm:$0xff]  ;;  %v2211_v29 = vld [vmem:[#allocation2 + $0x21] ss:$2 sm:$0xff]  ;;  %1180 = vst.msk [vmem:[%s4563_s3 + $0x90] sm:$0xff] %vm938_vm3, %v1148_v24  ;;  %v624_v37 = vadd.f32 %v2951_v19, %v623_v62  ;;  %v1798_v38 = vpop.f32.mrf.mxu3  ;;  %v2409_v21 = vld [vmem:[%s4561_s0 + $0x518] sm:$0xff]  ;;  %v192_v26 = vpack.c.bf16 %v114_v4, %v113_v3 }
 0x10a   :  { %v2243_v11 = vmax.f32 %v2179_v40, %v2211_v29  ;;  %977 = vst.msk [vmem:[#allocation2 + $0x130] sm:$0xff] %vm938_vm3, %v912_v28  ;;  %v3341_v43 = vpop.f32.mrf.mxu0  ;;  %v1799_v32 = vadd.f32 %v2995_v51, %v1798_v38  ;;  %v2472_v28 = vld [vmem:[%s4561_s0 + $0x710] sm:$0xff]  ;;  %v1340_v35 = vpack.c.bf16 %v2409_v21, %v2408_v12 }
 0x10b   :  { %946 = vst.msk [vmem:[#allocation2 + $0x38] sm:$0xff] %vm938_vm3, %v881_v25  ;;  %v825_v18 = vmax.f32 %v624_v37, 0.0  ;;  %v3346_v13 = vpop.f32.mrf.mxu1  ;;  %v160_v25 = vpack.c.bf16 %v50_v2, %v49_v47  ;;  %v1372_v62 = vpack.c.bf16 %v2473_v7, %v2472_v28  ;;  %v467_v34 = vadd.f32 %v2951_v19, %v3341_v43  ;;  %v117_v12 = vld [vmem:[%s4561_s0 + $0x330] sm:$0xff] }
 0x10c   :  { %2568 = vst.msk [vmem:[%s4563_s3 + $0x110] sm:$0xff] %vm938_vm3, %v2243_v11  ;;  %v2000_v58 = vmax.f32 %v1799_v32, 0.0  ;;  %v2412_v21 = vld [vmem:[%s4561_s0 + $0x530] sm:$0xff] }
 0x10d   :  { %v913_v8 = vmax.f32 %v821_v53, %v825_v18  ;;  %2326 = vmatmul.msk.bf16.gmra.mxu0 %vm217_vm2, %v159_v39  ;;  %2358 = vmatmul.msk.bf16.gmra.mxu2 %vm217_vm2, %v191_v14  ;;  %v52_v53 = vld [vmem:[%s4561_s0 + $0x128] sm:$0xff]  ;;  %v115_v18 = vld [vmem:[%s4561_s0 + $0x320] sm:$0xff] }
 0x10e   :  { %2518 = vmatmul.msk.bf16.gmra.mxu1 %vm217_vm2, %v1339_v44  ;;  %2550 = vmatmul.msk.bf16.gmra.mxu3 %vm217_vm2, %v1371_v45  ;;  %v2088_v10 = vmax.f32 %v1996_v1, %v2000_v58 }
 0x10f   :  { %v2195_v15 = vld [vmem:[#allocation2 + $0x120] ss:$2 sm:$0xff]  ;;  %v2227_v17 = vld [vmem:[#allocation2 + $0x121] ss:$2 sm:$0xff]  ;;  %978 = vst.msk [vmem:[#allocation2 + $0x138] sm:$0xff] %vm938_vm3, %v913_v8 }
 0x110   :  { %v2259_v55 = vmax.f32 %v2195_v15, %v2227_v17  ;;  %v3365_v56 = vpop.f32.mrf.mxu2  ;;  %v2474_v8 = vld [vmem:[%s4561_s0 + $0x720] sm:$0xff]  ;;  %v161_v15 = vpack.c.bf16 %v52_v53, %v51_v46  ;;  %v193_v17 = vpack.c.bf16 %v116_v48, %v115_v18 }
 0x111   :  { %v3367_v59 = vpop.f32.mrf.mxu3  ;;  %v627_v43 = vadd.f32 %v2951_v19, %v3365_v56  ;;  %v53_v56 = vld [vmem:[%s4561_s0 + $0x130] sm:$0xff]  ;;  %v3521_v53 = vld [vmem:[%s4562_s2] ss:$0 sm:$0xff] }
 0x112   :  { %2584 = vst.msk [vmem:[%s4563_s3 + $0x190] sm:$0xff] %vm938_vm3, %v2259_v55  ;;  %v1009_v31 = vld [vmem:[#allocation2 + $0x30] ss:$2 sm:$0xff]  ;;  %v1073_v9 = vld [vmem:[#allocation2 + $0x31] ss:$2 sm:$0xff]  ;;  %v3373_v63 = vpop.f32.mrf.mxu0  ;;  %v1373_v55 = vpack.c.bf16 %v2475_v23, %v2474_v8 }
 0x113   :  { %v1133_v41 = vmax.f32 %v1009_v31, %v1073_v9  ;;  %2119 = vst.msk [vmem:[#allocation2 + $0x30] sm:$0xff] %vm938_vm3, %v2055_v57  ;;  %v3376_v0 = vpop.f32.mrf.mxu1  ;;  %v762_v31 = vmax.f32 %v467_v34, 0.0  ;;  %v469_v33 = vadd.f32 %v2951_v19, %v3373_v63  ;;  %v54_v63 = vld [vmem:[%s4561_s0 + $0x138] sm:$0xff] }
 0x114   :  { %2120 = vst.msk [vmem:[#allocation2 + $0x38] sm:$0xff] %vm938_vm3, %v2056_v61  ;;  %v1644_v46 = vadd.f32 %v2995_v51, %v3376_v0 }
 0x115   :  { %1165 = vst.msk [vmem:[%s4563_s3 + $0x18] sm:$0xff] %vm938_vm3, %v1133_v41 }
 0x116   :  { %v1041_v5 = vld [vmem:[#allocation2 + $0x130] ss:$2 sm:$0xff]  ;;  %v1105_v6 = vld [vmem:[#allocation2 + $0x131] ss:$2 sm:$0xff] }
 0x117   :  { %v1149_v20 = vmax.f32 %v1041_v5, %v1105_v6  ;;  %2151 = vst.msk [vmem:[#allocation2 + $0x130] sm:$0xff] %vm938_vm3, %v2087_v52  ;;  %v826_v52 = vmax.f32 %v627_v43, 0.0  ;;  %v763_v5 = vmax.f32 %v469_v33, 0.0 }
 0x118   :  { %2152 = vst.msk [vmem:[#allocation2 + $0x138] sm:$0xff] %vm938_vm3, %v2088_v10  ;;  %v3409_v22 = vpop.f32.mrf.mxu2 }
 0x119   :  { %1181 = vst.msk [vmem:[%s4563_s3 + $0x98] sm:$0xff] %vm938_vm3, %v1149_v20  ;;  %v3415_v24 = vpop.f32.mrf.mxu3  ;;  %v118_v20 = vld [vmem:[%s4561_s0 + $0x338] sm:$0xff]  ;;  %v629_v28 = vadd.f32 %v2951_v19, %v3409_v22 }
 0x11a   :  { %v3417_v27 = vpop.f32.mrf.mxu0 }
 0x11b   :  { %v2180_v40 = vld [vmem:[#allocation2 + $0x30] ss:$2 sm:$0xff]  ;;  %v2212_v29 = vld [vmem:[#allocation2 + $0x31] ss:$2 sm:$0xff]  ;;  %v3419_v36 = vpop.f32.mrf.mxu1  ;;  %v472_v18 = vadd.f32 %v3521_v53, %v3417_v27  ;;  %v827_v16 = vmax.f32 %v629_v28, 0.0  ;;  %v1938_v27 = vmax.f32 %v1644_v46, 0.0 }
 0x11c   :  { %v2244_v37 = vmax.f32 %v2180_v40, %v2212_v29  ;;  %v1642_v29 = vadd.f32 %v2995_v51, %v3346_v13  ;;  %v119_v28 = vld [vmem:[%s4561_s0 + $0x340] sm:$0xff] }
 0x11d   :  { %2327 = vmatmul.msk.bf16.gmra.mxu0 %vm217_vm2, %v160_v25  ;;  %2359 = vmatmul.msk.bf16.gmra.mxu2 %vm217_vm2, %v192_v26  ;;  %v2413_v26 = vld [vmem:[%s4561_s0 + $0x538] sm:$0xff] }
 0x11e   :  { %2569 = vst.msk [vmem:[%s4563_s3 + $0x118] sm:$0xff] %vm938_vm3, %v2244_v37  ;;  %2519 = vmatmul.msk.bf16.gmra.mxu1 %vm217_vm2, %v1340_v35  ;;  %2551 = vmatmul.msk.bf16.gmra.mxu3 %vm217_vm2, %v1372_v62  ;;  %v2476_v35 = vld [vmem:[%s4561_s0 + $0x730] sm:$0xff]  ;;  %v2477_v62 = vld [vmem:[%s4561_s0 + $0x738] sm:$0xff]  ;;  %v1342_v13 = vpack.c.bf16 %v2413_v26, %v2412_v21  ;;  %v1937_v0 = vmax.f32 %v1642_v29, 0.0  ;;  %v56_v21 = vld [vmem:[%s4561_s0 + $0x148] sm:$0xff] }
 0x11f   :  { %v2196_v38 = vld [vmem:[#allocation2 + $0x130] ss:$2 sm:$0xff]  ;;  %v2228_v39 = vld [vmem:[#allocation2 + $0x131] ss:$2 sm:$0xff]  ;;  %v1374_v60 = vpack.c.bf16 %v2477_v62, %v2476_v35 }
 0x120   :  { %v2260_v14 = vmax.f32 %v2196_v38, %v2228_v39  ;;  %v3429_v11 = vpop.f32.mrf.mxu2  ;;  %v162_v39 = vpack.c.bf16 %v54_v63, %v53_v56  ;;  %v55_v56 = vld [vmem:[%s4561_s0 + $0x140] sm:$0xff] }
 0x121   :  { %v3431_v42 = vpop.f32.mrf.mxu3  ;;  %v632_v43 = vadd.f32 %v3521_v53, %v3429_v11 }
 0x122   :  { %2585 = vst.msk [vmem:[%s4563_s3 + $0x198] sm:$0xff] %vm938_vm3, %v2260_v14  ;;  %v3437_v44 = vpop.f32.mrf.mxu0  ;;  %v194_v14 = vpack.c.bf16 %v118_v20, %v117_v12 }
 0x123   :  { %v3439_v45 = vpop.f32.mrf.mxu1 }
 0x128   :  { %v3465_v32 = vpop.f32.mrf.mxu2 }
 0x129   :  { %v3469_v50 = vpop.f32.mrf.mxu3 }
 0x12a   :  { %v476_v30 = vpop.f32.mrf.mxu0 }
 0x12b   :  { %v477_v57 = vadd.f32 %v2951_v19, %v476_v30  ;;  %v1651_v49 = vpop.f32.mrf.mxu1 }
 0x12c   :  { %v1652_v7 = vadd.f32 %v2995_v51, %v1651_v49  ;;  %v1802_v49 = vadd.f32 %v2995_v51, %v3367_v59 }
 0x12d   :  { %v766_v9 = vmax.f32 %v477_v57, 0.0  ;;  %2328 = vmatmul.msk.bf16.gmra.mxu0 %vm217_vm2, %v161_v15  ;;  %2360 = vmatmul.msk.bf16.gmra.mxu2 %vm217_vm2, %v193_v17 }
 0x12e   :  { %2520 = vmatmul.msk.bf16.gmra.mxu1 %vm217_vm2, %v1341_v54  ;;  %2552 = vmatmul.msk.bf16.gmra.mxu3 %vm217_vm2, %v1373_v55  ;;  %v1941_v8 = vmax.f32 %v1652_v7, 0.0  ;;  %v764_v55 = vmax.f32 %v472_v18, 0.0  ;;  %v2001_v11 = vmax.f32 %v1802_v49, 0.0  ;;  %v120_v7 = vld [vmem:[%s4561_s0 + $0x348] sm:$0xff] }
 0x12f   :  { %v882_v61 = vmax.f32 %v762_v31, %v766_v9  ;;  %v1804_v9 = vadd.f32 %v2995_v51, %v3415_v24 }
 0x130   :  { %v636_v58 = vpop.f32.mrf.mxu2  ;;  %v2057_v31 = vmax.f32 %v1937_v0, %v1941_v8  ;;  %v163_v8 = vpack.c.bf16 %v56_v21, %v55_v56 }
 0x131   :  { %947 = vst.msk [vmem:[#allocation2 + $0x40] sm:$0xff] %vm938_vm3, %v882_v61  ;;  %v637_v41 = vadd.f32 %v2951_v19, %v636_v58  ;;  %v1811_v1 = vpop.f32.mrf.mxu3 }
 0x132   :  { %v478_v47 = vpop.f32.mrf.mxu0  ;;  %v1812_v17 = vadd.f32 %v2995_v51, %v1811_v1 }
 0x133   :  { %v830_v2 = vmax.f32 %v637_v41, 0.0  ;;  %v479_v3 = vadd.f32 %v2951_v19, %v478_v47  ;;  %v1653_v4 = vpop.f32.mrf.mxu1  ;;  %v474_v47 = vadd.f32 %v3521_v53, %v3437_v44 }
 0x134   :  { %v1654_v40 = vadd.f32 %v2995_v51, %v1653_v4 }
 0x135   :  { %v914_v6 = vmax.f32 %v826_v52, %v830_v2  ;;  %v767_v10 = vmax.f32 %v479_v3, 0.0  ;;  %v2005_v52 = vmax.f32 %v1812_v17, 0.0  ;;  %v765_v63 = vmax.f32 %v474_v47, 0.0 }
 0x136   :  { %v1942_v15 = vmax.f32 %v1654_v40, 0.0  ;;  %v2414_v40 = vld [vmem:[%s4561_s0 + $0x540] sm:$0xff] }
 0x137   :  { %979 = vst.msk [vmem:[#allocation2 + $0x140] sm:$0xff] %vm938_vm3, %v914_v6  ;;  %v883_v25 = vmax.f32 %v763_v5, %v767_v10  ;;  %v2002_v6 = vmax.f32 %v1804_v9, 0.0  ;;  %v828_v10 = vmax.f32 %v632_v43, 0.0  ;;  %v2089_v12 = vmax.f32 %v2001_v11, %v2005_v52 }
 0x138   :  { %v638_v22 = vpop.f32.mrf.mxu2  ;;  %v2058_v33 = vmax.f32 %v1938_v27, %v1942_v15 }
 0x139   :  { %948 = vst.msk [vmem:[#allocation2 + $0x48] sm:$0xff] %vm938_vm3, %v883_v25  ;;  %v639_v37 = vadd.f32 %v2951_v19, %v638_v22  ;;  %v1813_v38 = vpop.f32.mrf.mxu3  ;;  %v634_v22 = vadd.f32 %v3521_v53, %v3465_v32 }
 0x13a   :  { %v481_v48 = vpop.f32.mrf.mxu0  ;;  %v1814_v57 = vadd.f32 %v2995_v51, %v1813_v38  ;;  %v2415_v38 = vld [vmem:[%s4561_s0 + $0x548] sm:$0xff] }
 0x13b   :  { %v831_v19 = vmax.f32 %v639_v37, 0.0  ;;  %v482_v23 = vadd.f32 %v3521_v53, %v481_v48  ;;  %v3526_v34 = vpop.f32.mrf.mxu1  ;;  %v3587_v48 = vld [vmem:[%s4562_s2] ss:$0 sm:$0xff]  ;;  %v1343_v17 = vpack.c.bf16 %v2415_v38, %v2414_v40  ;;  %v829_v27 = vmax.f32 %v634_v22, 0.0  ;;  %v2481_v40 = vld [vmem:[%s4561_s0 + $0x758] sm:$0xff] }
 0x13c   :  { %v2006_v51 = vmax.f32 %v1814_v57, 0.0  ;;  %v1649_v57 = vadd.f32 %v3587_v48, %v3439_v45 }
 0x13d   :  { %v915_v30 = vmax.f32 %v827_v16, %v831_v19  ;;  %v768_v54 = vmax.f32 %v482_v23, 0.0  ;;  %2329 = vmatmul.msk.bf16.gmra.mxu0 %vm217_vm2, %v162_v39  ;;  %2361 = vmatmul.msk.bf16.gmra.mxu2 %vm217_vm2, %v194_v14  ;;  %v2478_v39 = vld [vmem:[%s4561_s0 + $0x740] sm:$0xff]  ;;  %v2479_v14 = vld [vmem:[%s4561_s0 + $0x748] sm:$0xff]  ;;  %v195_v19 = vpack.c.bf16 %v120_v7, %v119_v28 }
 0x13e   :  { %2521 = vmatmul.msk.bf16.gmra.mxu1 %vm217_vm2, %v1342_v13  ;;  %2553 = vmatmul.msk.bf16.gmra.mxu3 %vm217_vm2, %v1374_v60  ;;  %v2090_v35 = vmax.f32 %v2002_v6, %v2006_v51  ;;  %v1657_v13 = vadd.f32 %v3587_v48, %v3526_v34 }
 0x13f   :  { %980 = vst.msk [vmem:[#allocation2 + $0x148] sm:$0xff] %vm938_vm3, %v915_v30  ;;  %v884_v41 = vmax.f32 %v764_v55, %v768_v54  ;;  %v1375_v30 = vpack.c.bf16 %v2479_v14, %v2478_v39  ;;  %v1647_v54 = vadd.f32 %v3587_v48, %v3419_v36 }
 0x140   :  { %v1011_v61 = vld [vmem:[#allocation2 + $0x40] ss:$2 sm:$0xff]  ;;  %v1075_v58 = vld [vmem:[#allocation2 + $0x41] ss:$2 sm:$0xff]  ;;  %v641_v1 = vpop.f32.mrf.mxu2  ;;  %v1943_v49 = vmax.f32 %v1657_v13, 0.0 }
 0x141   :  { %v1134_v2 = vmax.f32 %v1011_v61, %v1075_v58  ;;  %2121 = vst.msk [vmem:[#allocation2 + $0x40] sm:$0xff] %vm938_vm3, %v2057_v31  ;;  %v642_v59 = vadd.f32 %v3521_v53, %v641_v1  ;;  %v1816_v3 = vpop.f32.mrf.mxu3  ;;  %v1939_v45 = vmax.f32 %v1647_v54, 0.0  ;;  %v1807_v61 = vadd.f32 %v3587_v48, %v3431_v42  ;;  %v59_v54 = vld [vmem:[%s4561_s0 + $0x160] sm:$0xff] }
 0x142   :  { %2122 = vst.msk [vmem:[#allocation2 + $0x48] sm:$0xff] %vm938_vm3, %v2058_v33  ;;  %v483_v24 = vpop.f32.mrf.mxu0  ;;  %v1817_v31 = vadd.f32 %v3587_v48, %v1816_v3  ;;  %v1809_v1 = vadd.f32 %v3587_v48, %v3469_v50 }
 0x143   :  { %1166 = vst.msk [vmem:[%s4563_s3 + $0x20] sm:$0xff] %vm938_vm3, %v1134_v2  ;;  %v832_v4 = vmax.f32 %v642_v59, 0.0  ;;  %v484_v44 = vadd.f32 %v3521_v53, %v483_v24  ;;  %v1658_v5 = vpop.f32.mrf.mxu1  ;;  %v2059_v2 = vmax.f32 %v1939_v45, %v1943_v49  ;;  %v2418_v49 = vld [vmem:[%s4561_s0 + $0x560] sm:$0xff] }
 0x144   :  { %949 = vst.msk [vmem:[#allocation2 + $0x50] sm:$0xff] %vm938_vm3, %v884_v41  ;;  %v1659_v15 = vadd.f32 %v3587_v48, %v1658_v5  ;;  %v1940_v41 = vmax.f32 %v1649_v57, 0.0  ;;  %v2007_v59 = vmax.f32 %v1817_v31, 0.0  ;;  %v2004_v6 = vmax.f32 %v1809_v1, 0.0  ;;  %v124_v57 = vld [vmem:[%s4561_s0 + $0x368] sm:$0xff] }
 0x145   :  { %v769_v20 = vmax.f32 %v484_v44, 0.0  ;;  %v916_v62 = vmax.f32 %v828_v10, %v832_v4  ;;  %v2003_v44 = vmax.f32 %v1807_v61, 0.0  ;;  %v57_v10 = vld [vmem:[%s4561_s0 + $0x150] sm:$0xff]  ;;  %v2419_v31 = vld [vmem:[%s4561_s0 + $0x568] sm:$0xff] }
 0x146   :  { %v1043_v25 = vld [vmem:[#allocation2 + $0x140] ss:$2 sm:$0xff]  ;;  %v1107_v26 = vld [vmem:[#allocation2 + $0x141] ss:$2 sm:$0xff]  ;;  %v1944_v36 = vmax.f32 %v1659_v15, 0.0  ;;  %v1345_v1 = vpack.c.bf16 %v2419_v31, %v2418_v49 }
 0x147   :  { %v1150_v29 = vmax.f32 %v1043_v25, %v1107_v26  ;;  %2153 = vst.msk [vmem:[#allocation2 + $0x140] sm:$0xff] %vm938_vm3, %v2089_v12  ;;  %v885_v37 = vmax.f32 %v765_v63, %v769_v20  ;;  %v2091_v56 = vmax.f32 %v2003_v44, %v2007_v59  ;;  %v58_v63 = vld [vmem:[%s4561_s0 + $0x158] sm:$0xff]  ;;  %v121_v12 = vld [vmem:[%s4561_s0 + $0x350] sm:$0xff] }
 0x148   :  { %2154 = vst.msk [vmem:[#allocation2 + $0x148] sm:$0xff] %vm938_vm3, %v2090_v35  ;;  %v643_v46 = vpop.f32.mrf.mxu2  ;;  %v2060_v24 = vmax.f32 %v1940_v41, %v1944_v36  ;;  %v122_v20 = vld [vmem:[%s4561_s0 + $0x358] sm:$0xff]  ;;  %v2416_v25 = vld [vmem:[%s4561_s0 + $0x550] sm:$0xff]  ;;  %v2483_v36 = vld [vmem:[%s4561_s0 + $0x768] sm:$0xff] }
 0x149   :  { %v2181_v32 = vld [vmem:[#allocation2 + $0x40] ss:$2 sm:$0xff]  ;;  %v2213_v18 = vld [vmem:[#allocation2 + $0x41] ss:$2 sm:$0xff]  ;;  %1182 = vst.msk [vmem:[%s4563_s3 + $0xa0] sm:$0xff] %vm938_vm3, %v1150_v29  ;;  %v644_v60 = vadd.f32 %v3521_v53, %v643_v46  ;;  %v1818_v16 = vpop.f32.mrf.mxu3  ;;  %v2417_v35 = vld [vmem:[%s4561_s0 + $0x558] sm:$0xff]  ;;  %v196_v38 = vpack.c.bf16 %v122_v20, %v121_v12 }
 0x14a   :  { %v2245_v23 = vmax.f32 %v2181_v32, %v2213_v18  ;;  %981 = vst.msk [vmem:[#allocation2 + $0x150] sm:$0xff] %vm938_vm3, %v916_v62  ;;  %v3594_v0 = vpop.f32.mrf.mxu0  ;;  %v1819_v43 = vadd.f32 %v3587_v48, %v1818_v16  ;;  %v2480_v62 = vld [vmem:[%s4561_s0 + $0x750] sm:$0xff]  ;;  %v1344_v14 = vpack.c.bf16 %v2417_v35, %v2416_v25 }
 0x14b   :  { %950 = vst.msk [vmem:[#allocation2 + $0x58] sm:$0xff] %vm938_vm3, %v885_v37  ;;  %v833_v34 = vmax.f32 %v644_v60, 0.0  ;;  %v3599_v55 = vpop.f32.mrf.mxu1  ;;  %v164_v37 = vpack.c.bf16 %v58_v63, %v57_v10  ;;  %v1376_v46 = vpack.c.bf16 %v2481_v40, %v2480_v62  ;;  %v487_v45 = vadd.f32 %v3521_v53, %v3594_v0  ;;  %v125_v25 = vld [vmem:[%s4561_s0 + $0x370] sm:$0xff] }
 0x14c   :  { %2570 = vst.msk [vmem:[%s4563_s3 + $0x120] sm:$0xff] %vm938_vm3, %v2245_v23  ;;  %v2008_v11 = vmax.f32 %v1819_v43, 0.0  ;;  %v2420_v35 = vld [vmem:[%s4561_s0 + $0x570] sm:$0xff] }
 0x14d   :  { %v917_v9 = vmax.f32 %v829_v27, %v833_v34  ;;  %2330 = vmatmul.msk.bf16.gmra.mxu0 %vm217_vm2, %v163_v8  ;;  %2362 = vmatmul.msk.bf16.gmra.mxu2 %vm217_vm2, %v195_v19  ;;  %v60_v27 = vld [vmem:[%s4561_s0 + $0x168] sm:$0xff]  ;;  %v123_v34 = vld [vmem:[%s4561_s0 + $0x360] sm:$0xff] }
 0x14e   :  { %2522 = vmatmul.msk.bf16.gmra.mxu1 %vm217_vm2, %v1343_v17  ;;  %2554 = vmatmul.msk.bf16.gmra.mxu3 %vm217_vm2, %v1375_v30  ;;  %v2092_v7 = vmax.f32 %v2004_v6, %v2008_v11 }
 0x14f   :  { %v2197_v58 = vld [vmem:[#allocation2 + $0x140] ss:$2 sm:$0xff]  ;;  %v2229_v33 = vld [vmem:[#allocation2 + $0x141] ss:$2 sm:$0xff]  ;;  %982 = vst.msk [vmem:[#allocation2 + $0x158] sm:$0xff] %vm938_vm3, %v917_v9 }
 0x150   :  { %v2261_v47 = vmax.f32 %v2197_v58, %v2229_v33  ;;  %v3618_v52 = vpop.f32.mrf.mxu2  ;;  %v2482_v9 = vld [vmem:[%s4561_s0 + $0x760] sm:$0xff]  ;;  %v165_v58 = vpack.c.bf16 %v60_v27, %v59_v54  ;;  %v197_v33 = vpack.c.bf16 %v124_v57, %v123_v34 }
 0x151   :  { %v3620_v3 = vpop.f32.mrf.mxu3  ;;  %v647_v0 = vadd.f32 %v3521_v53, %v3618_v52  ;;  %v61_v52 = vld [vmem:[%s4561_s0 + $0x170] sm:$0xff] }
 0x152   :  { %2586 = vst.msk [vmem:[%s4563_s3 + $0x1a0] sm:$0xff] %vm938_vm3, %v2261_v47  ;;  %v1013_v42 = vld [vmem:[#allocation2 + $0x50] ss:$2 sm:$0xff]  ;;  %v1077_v51 = vld [vmem:[#allocation2 + $0x51] ss:$2 sm:$0xff]  ;;  %v3626_v4 = vpop.f32.mrf.mxu0  ;;  %v1377_v47 = vpack.c.bf16 %v2483_v36, %v2482_v9 }
 0x153   :  { %v1135_v50 = vmax.f32 %v1013_v42, %v1077_v51  ;;  %2123 = vst.msk [vmem:[#allocation2 + $0x50] sm:$0xff] %vm938_vm3, %v2059_v2  ;;  %v3629_v5 = vpop.f32.mrf.mxu1  ;;  %v770_v42 = vmax.f32 %v487_v45, 0.0  ;;  %v489_v44 = vadd.f32 %v3521_v53, %v3626_v4  ;;  %v62_v4 = vld [vmem:[%s4561_s0 + $0x178] sm:$0xff] }
 0x154   :  { %2124 = vst.msk [vmem:[#allocation2 + $0x58] sm:$0xff] %vm938_vm3, %v2060_v24  ;;  %v1664_v54 = vadd.f32 %v3587_v48, %v3629_v5 }
 0x155   :  { %1167 = vst.msk [vmem:[%s4563_s3 + $0x28] sm:$0xff] %vm938_vm3, %v1135_v50 }
 0x156   :  { %v1045_v21 = vld [vmem:[#allocation2 + $0x150] ss:$2 sm:$0xff]  ;;  %v1109_v28 = vld [vmem:[#allocation2 + $0x151] ss:$2 sm:$0xff]  ;;  %v1946_v5 = vmax.f32 %v1664_v54, 0.0  ;;  %v2487_v54 = vld [vmem:[%s4561_s0 + $0x788] sm:$0xff] }
 0x157   :  { %v1151_v26 = vmax.f32 %v1045_v21, %v1109_v28  ;;  %2155 = vst.msk [vmem:[#allocation2 + $0x150] sm:$0xff] %vm938_vm3, %v2091_v56  ;;  %v834_v56 = vmax.f32 %v647_v0, 0.0  ;;  %v771_v21 = vmax.f32 %v489_v44, 0.0 }
 0x158   :  { %2156 = vst.msk [vmem:[#allocation2 + $0x158] sm:$0xff] %vm938_vm3, %v2092_v7  ;;  %v3662_v22 = vpop.f32.mrf.mxu2 }
 0x159   :  { %1183 = vst.msk [vmem:[%s4563_s3 + $0xa8] sm:$0xff] %vm938_vm3, %v1151_v26  ;;  %v3668_v29 = vpop.f32.mrf.mxu3  ;;  %v126_v26 = vld [vmem:[%s4561_s0 + $0x378] sm:$0xff]  ;;  %v649_v62 = vadd.f32 %v3521_v53, %v3662_v22 }
 0x15a   :  { %v3670_v39 = vpop.f32.mrf.mxu0 }
 0x15b   :  { %v2182_v32 = vld [vmem:[#allocation2 + $0x50] ss:$2 sm:$0xff]  ;;  %v2214_v18 = vld [vmem:[#allocation2 + $0x51] ss:$2 sm:$0xff]  ;;  %v3672_v13 = vpop.f32.mrf.mxu1  ;;  %v492_v27 = vadd.f32 %v3521_v53, %v3670_v39  ;;  %v835_v31 = vmax.f32 %v649_v62, 0.0  ;;  %v64_v62 = vld [vmem:[%s4561_s0 + $0x188] sm:$0xff] }
 0x15c   :  { %v2246_v60 = vmax.f32 %v2182_v32, %v2214_v18  ;;  %v1662_v18 = vadd.f32 %v3587_v48, %v3599_v55 }
 0x15d   :  { %2331 = vmatmul.msk.bf16.gmra.mxu0 %vm217_vm2, %v164_v37  ;;  %2363 = vmatmul.msk.bf16.gmra.mxu2 %vm217_vm2, %v196_v38  ;;  %v2421_v38 = vld [vmem:[%s4561_s0 + $0x578] sm:$0xff]  ;;  %v772_v39 = vmax.f32 %v492_v27, 0.0 }
 0x15e   :  { %2571 = vst.msk [vmem:[%s4563_s3 + $0x128] sm:$0xff] %vm938_vm3, %v2246_v60  ;;  %2523 = vmatmul.msk.bf16.gmra.mxu1 %vm217_vm2, %v1344_v14  ;;  %2555 = vmatmul.msk.bf16.gmra.mxu3 %vm217_vm2, %v1376_v46  ;;  %v2484_v14 = vld [vmem:[%s4561_s0 + $0x770] sm:$0xff]  ;;  %v2485_v46 = vld [vmem:[%s4561_s0 + $0x778] sm:$0xff]  ;;  %v1346_v57 = vpack.c.bf16 %v2421_v38, %v2420_v35 }
 0x15f   :  { %v2198_v16 = vld [vmem:[#allocation2 + $0x150] ss:$2 sm:$0xff]  ;;  %v2230_v8 = vld [vmem:[#allocation2 + $0x151] ss:$2 sm:$0xff]  ;;  %v1378_v49 = vpack.c.bf16 %v2485_v46, %v2484_v14 }
 0x160   :  { %v2262_v19 = vmax.f32 %v2198_v16, %v2230_v8  ;;  %v3682_v23 = vpop.f32.mrf.mxu2  ;;  %v166_v8 = vpack.c.bf16 %v62_v4, %v61_v52  ;;  %v63_v4 = vld [vmem:[%s4561_s0 + $0x180] sm:$0xff] }
 0x161   :  { %v3684_v15 = vpop.f32.mrf.mxu3  ;;  %v652_v0 = vadd.f32 %v3521_v53, %v3682_v23 }
 0x162   :  { %2587 = vst.msk [vmem:[%s4563_s3 + $0x1a8] sm:$0xff] %vm938_vm3, %v2262_v19  ;;  %v3690_v17 = vpop.f32.mrf.mxu0  ;;  %v198_v19 = vpack.c.bf16 %v126_v26, %v125_v25 }
 0x163   :  { %v3692_v30 = vpop.f32.mrf.mxu1  ;;  %v836_v52 = vmax.f32 %v652_v0, 0.0 }
 0x168   :  { %v3718_v43 = vpop.f32.mrf.mxu2 }
 0x169   :  { %v3722_v61 = vpop.f32.mrf.mxu3 }
 0x16a   :  { %v496_v41 = vpop.f32.mrf.mxu0 }
 0x16b   :  { %v497_v2 = vadd.f32 %v3521_v53, %v496_v41  ;;  %v1671_v59 = vpop.f32.mrf.mxu1 }
 0x16c   :  { %v1672_v40 = vadd.f32 %v3587_v48, %v1671_v59  ;;  %v1822_v59 = vadd.f32 %v3587_v48, %v3620_v3 }
 0x16d   :  { %v774_v51 = vmax.f32 %v497_v2, 0.0  ;;  %2332 = vmatmul.msk.bf16.gmra.mxu0 %vm217_vm2, %v165_v58  ;;  %2364 = vmatmul.msk.bf16.gmra.mxu2 %vm217_vm2, %v197_v33  ;;  %v1945_v33 = vmax.f32 %v1662_v18, 0.0  ;;  %v654_v18 = vadd.f32 %v3521_v53, %v3718_v43 }
 0x16e   :  { %2524 = vmatmul.msk.bf16.gmra.mxu1 %vm217_vm2, %v1345_v1  ;;  %2556 = vmatmul.msk.bf16.gmra.mxu3 %vm217_vm2, %v1377_v47  ;;  %v1949_v9 = vmax.f32 %v1672_v40, 0.0  ;;  %v2009_v23 = vmax.f32 %v1822_v59, 0.0  ;;  %v127_v40 = vld [vmem:[%s4561_s0 + $0x380] sm:$0xff] }
 0x16f   :  { %v886_v24 = vmax.f32 %v770_v42, %v774_v51  ;;  %v1824_v51 = vadd.f32 %v3587_v48, %v3668_v29 }
 0x170   :  { %v656_v11 = vpop.f32.mrf.mxu2  ;;  %v2061_v42 = vmax.f32 %v1945_v33, %v1949_v9  ;;  %v167_v9 = vpack.c.bf16 %v64_v62, %v63_v4 }
 0x171   :  { %951 = vst.msk [vmem:[#allocation2 + $0x60] sm:$0xff] %vm938_vm3, %v886_v24  ;;  %v657_v50 = vadd.f32 %v3521_v53, %v656_v11  ;;  %v1831_v6 = vpop.f32.mrf.mxu3 }
 0x172   :  { %v498_v10 = vpop.f32.mrf.mxu0  ;;  %v1832_v41 = vadd.f32 %v3587_v48, %v1831_v6 }
 0x173   :  { %v838_v63 = vmax.f32 %v657_v50, 0.0  ;;  %v499_v12 = vadd.f32 %v3521_v53, %v498_v10  ;;  %v1673_v20 = vpop.f32.mrf.mxu1  ;;  %v494_v10 = vadd.f32 %v3521_v53, %v3690_v17 }
 0x174   :  { %v1674_v32 = vadd.f32 %v3587_v48, %v1673_v20 }
 0x175   :  { %v918_v28 = vmax.f32 %v834_v56, %v838_v63  ;;  %v775_v7 = vmax.f32 %v499_v12, 0.0  ;;  %v2013_v56 = vmax.f32 %v1832_v41, 0.0  ;;  %v773_v25 = vmax.f32 %v494_v10, 0.0 }
 0x176   :  { %v1950_v58 = vmax.f32 %v1674_v32, 0.0 }
 0x177   :  { %983 = vst.msk [vmem:[#allocation2 + $0x160] sm:$0xff] %vm938_vm3, %v918_v28  ;;  %v887_v37 = vmax.f32 %v771_v21, %v775_v7  ;;  %v2010_v7 = vmax.f32 %v1824_v51, 0.0  ;;  %v2093_v26 = vmax.f32 %v2009_v23, %v2013_v56 }
 0x178   :  { %v658_v22 = vpop.f32.mrf.mxu2  ;;  %v2062_v44 = vmax.f32 %v1946_v5, %v1950_v58  ;;  %v837_v5 = vmax.f32 %v654_v18, 0.0 }
 0x179   :  { %952 = vst.msk [vmem:[#allocation2 + $0x68] sm:$0xff] %vm938_vm3, %v887_v37  ;;  %v659_v60 = vadd.f32 %v3521_v53, %v658_v22  ;;  %v1833_v16 = vpop.f32.mrf.mxu3  ;;  %v128_v37 = vld [vmem:[%s4561_s0 + $0x388] sm:$0xff]  ;;  %v2422_v22 = vld [vmem:[%s4561_s0 + $0x580] sm:$0xff] }
 0x17a   :  { %v501_v34 = vpop.f32.mrf.mxu0  ;;  %v1834_v2 = vadd.f32 %v3587_v48, %v1833_v16 }
 0x17b   :  { %v839_v36 = vmax.f32 %v659_v60, 0.0  ;;  %v502_v55 = vadd.f32 %v3521_v53, %v501_v34  ;;  %v3774_v45 = vpop.f32.mrf.mxu1 }
 0x17c   :  { %v2014_v29 = vmax.f32 %v1834_v2, 0.0  ;;  %v1669_v2 = vadd.f32 %v3587_v48, %v3692_v30 }
 0x17d   :  { %v919_v1 = vmax.f32 %v835_v31, %v839_v36  ;;  %v776_v47 = vmax.f32 %v502_v55, 0.0  ;;  %2333 = vmatmul.msk.bf16.gmra.mxu0 %vm217_vm2, %v166_v8  ;;  %2365 = vmatmul.msk.bf16.gmra.mxu2 %vm217_vm2, %v198_v19  ;;  %v2423_v8 = vld [vmem:[%s4561_s0 + $0x588] sm:$0xff]  ;;  %v2486_v19 = vld [vmem:[%s4561_s0 + $0x780] sm:$0xff]  ;;  %v199_v36 = vpack.c.bf16 %v128_v37, %v127_v40 }
 0x17e   :  { %2525 = vmatmul.msk.bf16.gmra.mxu1 %vm217_vm2, %v1346_v57  ;;  %2557 = vmatmul.msk.bf16.gmra.mxu3 %vm217_vm2, %v1378_v49  ;;  %v2094_v46 = vmax.f32 %v2010_v7, %v2014_v29  ;;  %v1677_v57 = vadd.f32 %v3587_v48, %v3774_v45  ;;  %v1347_v41 = vpack.c.bf16 %v2423_v8, %v2422_v22  ;;  %v2489_v22 = vld [vmem:[%s4561_s0 + $0x798] sm:$0xff] }
 0x17f   :  { %984 = vst.msk [vmem:[#allocation2 + $0x168] sm:$0xff] %vm938_vm3, %v919_v1  ;;  %v888_v50 = vmax.f32 %v772_v39, %v776_v47  ;;  %v1379_v1 = vpack.c.bf16 %v2487_v54, %v2486_v19  ;;  %v1667_v47 = vadd.f32 %v3587_v48, %v3672_v13 }
 0x180   :  { %v1015_v24 = vld [vmem:[#allocation2 + $0x60] ss:$2 sm:$0xff]  ;;  %v1079_v11 = vld [vmem:[#allocation2 + $0x61] ss:$2 sm:$0xff]  ;;  %v661_v6 = vpop.f32.mrf.mxu2  ;;  %v1951_v59 = vmax.f32 %v1677_v57, 0.0 }
 0x181   :  { %v1136_v63 = vmax.f32 %v1015_v24, %v1079_v11  ;;  %2125 = vst.msk [vmem:[#allocation2 + $0x60] sm:$0xff] %vm938_vm3, %v2061_v42  ;;  %v662_v3 = vadd.f32 %v3521_v53, %v661_v6  ;;  %v1836_v12 = vpop.f32.mrf.mxu3  ;;  %v1947_v30 = vmax.f32 %v1667_v47, 0.0  ;;  %v1827_v24 = vadd.f32 %v3587_v48, %v3684_v15  ;;  %v67_v47 = vld [vmem:[%s4561_s0 + $0x1a0] sm:$0xff] }
 0x182   :  { %2126 = vst.msk [vmem:[#allocation2 + $0x68] sm:$0xff] %vm938_vm3, %v2062_v44  ;;  %v503_v20 = vpop.f32.mrf.mxu0  ;;  %v1837_v42 = vadd.f32 %v3587_v48, %v1836_v12  ;;  %v1829_v6 = vadd.f32 %v3587_v48, %v3722_v61 }
 0x183   :  { %1168 = vst.msk [vmem:[%s4563_s3 + $0x30] sm:$0xff] %vm938_vm3, %v1136_v63  ;;  %v840_v21 = vmax.f32 %v662_v3, 0.0  ;;  %v504_v17 = vadd.f32 %v3521_v53, %v503_v20  ;;  %v1678_v28 = vpop.f32.mrf.mxu1  ;;  %v2063_v63 = vmax.f32 %v1947_v30, %v1951_v59  ;;  %v2426_v59 = vld [vmem:[%s4561_s0 + $0x5a0] sm:$0xff] }
 0x184   :  { %953 = vst.msk [vmem:[#allocation2 + $0x70] sm:$0xff] %vm938_vm3, %v888_v50  ;;  %v1679_v58 = vadd.f32 %v3587_v48, %v1678_v28  ;;  %v1948_v50 = vmax.f32 %v1669_v2, 0.0  ;;  %v2015_v3 = vmax.f32 %v1837_v42, 0.0  ;;  %v2012_v7 = vmax.f32 %v1829_v6, 0.0  ;;  %v132_v2 = vld [vmem:[%s4561_s0 + $0x3a8] sm:$0xff] }
 0x185   :  { %v777_v35 = vmax.f32 %v504_v17, 0.0  ;;  %v920_v32 = vmax.f32 %v836_v52, %v840_v21  ;;  %v2011_v17 = vmax.f32 %v1827_v24, 0.0  ;;  %v65_v52 = vld [vmem:[%s4561_s0 + $0x190] sm:$0xff]  ;;  %v2427_v42 = vld [vmem:[%s4561_s0 + $0x5a8] sm:$0xff] }
 0x186   :  { %v1047_v38 = vld [vmem:[#allocation2 + $0x160] ss:$2 sm:$0xff]  ;;  %v1111_v14 = vld [vmem:[#allocation2 + $0x161] ss:$2 sm:$0xff]  ;;  %v1952_v13 = vmax.f32 %v1679_v58, 0.0  ;;  %v1349_v6 = vpack.c.bf16 %v2427_v42, %v2426_v59 }
 0x187   :  { %v1152_v60 = vmax.f32 %v1047_v38, %v1111_v14  ;;  %2157 = vst.msk [vmem:[#allocation2 + $0x160] sm:$0xff] %vm938_vm3, %v2093_v26  ;;  %v889_v16 = vmax.f32 %v773_v25, %v777_v35  ;;  %v2095_v4 = vmax.f32 %v2011_v17, %v2015_v3  ;;  %v66_v25 = vld [vmem:[%s4561_s0 + $0x198] sm:$0xff]  ;;  %v129_v26 = vld [vmem:[%s4561_s0 + $0x390] sm:$0xff] }
 0x188   :  { %2158 = vst.msk [vmem:[#allocation2 + $0x168] sm:$0xff] %vm938_vm3, %v2094_v46  ;;  %v663_v27 = vpop.f32.mrf.mxu2  ;;  %v2064_v20 = vmax.f32 %v1948_v50, %v1952_v13  ;;  %v130_v35 = vld [vmem:[%s4561_s0 + $0x398] sm:$0xff]  ;;  %v2424_v38 = vld [vmem:[%s4561_s0 + $0x590] sm:$0xff]  ;;  %v2491_v13 = vld [vmem:[%s4561_s0 + $0x7a8] sm:$0xff] }
 0x189   :  { %v2183_v43 = vld [vmem:[#allocation2 + $0x60] ss:$2 sm:$0xff]  ;;  %v2215_v34 = vld [vmem:[#allocation2 + $0x61] ss:$2 sm:$0xff]  ;;  %1184 = vst.msk [vmem:[%s4563_s3 + $0xb0] sm:$0xff] %vm938_vm3, %v1152_v60  ;;  %v664_v49 = vadd.f32 %v3521_v53, %v663_v27  ;;  %v1838_v31 = vpop.f32.mrf.mxu3  ;;  %v2425_v46 = vld [vmem:[%s4561_s0 + $0x598] sm:$0xff]  ;;  %v200_v8 = vpack.c.bf16 %v130_v35, %v129_v26 }
 0x18a   :  { %v2247_v55 = vmax.f32 %v2183_v43, %v2215_v34  ;;  %985 = vst.msk [vmem:[#allocation2 + $0x170] sm:$0xff] %vm938_vm3, %v920_v32  ;;  %v3837_v33 = vpop.f32.mrf.mxu0  ;;  %v1839_v0 = vadd.f32 %v3587_v48, %v1838_v31  ;;  %v2488_v32 = vld [vmem:[%s4561_s0 + $0x790] sm:$0xff]  ;;  %v1348_v54 = vpack.c.bf16 %v2425_v46, %v2424_v38 }
 0x18b   :  { %954 = vst.msk [vmem:[#allocation2 + $0x78] sm:$0xff] %vm938_vm3, %v889_v16  ;;  %v841_v45 = vmax.f32 %v664_v49, 0.0  ;;  %v3842_v39 = vpop.f32.mrf.mxu1  ;;  %v168_v16 = vpack.c.bf16 %v66_v25, %v65_v52  ;;  %v1380_v27 = vpack.c.bf16 %v2489_v22, %v2488_v32  ;;  %v507_v30 = vadd.f32 %v3521_v53, %v3837_v33  ;;  %v133_v38 = vld [vmem:[%s4561_s0 + $0x3b0] sm:$0xff] }
 0x18c   :  { %2572 = vst.msk [vmem:[%s4563_s3 + $0x130] sm:$0xff] %vm938_vm3, %v2247_v55  ;;  %v2016_v23 = vmax.f32 %v1839_v0, 0.0  ;;  %v2428_v46 = vld [vmem:[%s4561_s0 + $0x5b0] sm:$0xff] }
 0x18d   :  { %v921_v51 = vmax.f32 %v837_v5, %v841_v45  ;;  %2334 = vmatmul.msk.bf16.gmra.mxu0 %vm217_vm2, %v167_v9  ;;  %2366 = vmatmul.msk.bf16.gmra.mxu2 %vm217_vm2, %v199_v36  ;;  %v68_v5 = vld [vmem:[%s4561_s0 + $0x1a8] sm:$0xff]  ;;  %v131_v45 = vld [vmem:[%s4561_s0 + $0x3a0] sm:$0xff] }
 0x18e   :  { %2526 = vmatmul.msk.bf16.gmra.mxu1 %vm217_vm2, %v1347_v41  ;;  %2558 = vmatmul.msk.bf16.gmra.mxu3 %vm217_vm2, %v1379_v1  ;;  %v2096_v37 = vmax.f32 %v2012_v7, %v2016_v23 }
 0x18f   :  { %v2199_v11 = vld [vmem:[#allocation2 + $0x160] ss:$2 sm:$0xff]  ;;  %v2231_v44 = vld [vmem:[#allocation2 + $0x161] ss:$2 sm:$0xff]  ;;  %986 = vst.msk [vmem:[#allocation2 + $0x178] sm:$0xff] %vm938_vm3, %v921_v51 }
 0x190   :  { %v2263_v10 = vmax.f32 %v2199_v11, %v2231_v44  ;;  %v3861_v56 = vpop.f32.mrf.mxu2  ;;  %v2490_v51 = vld [vmem:[%s4561_s0 + $0x7a0] sm:$0xff]  ;;  %v169_v11 = vpack.c.bf16 %v68_v5, %v67_v47  ;;  %v201_v44 = vpack.c.bf16 %v132_v2, %v131_v45 }
 0x191   :  { %v3863_v12 = vpop.f32.mrf.mxu3  ;;  %v667_v33 = vadd.f32 %v3521_v53, %v3861_v56  ;;  %v69_v56 = vld [vmem:[%s4561_s0 + $0x1b0] sm:$0xff] }
 0x192   :  { %2588 = vst.msk [vmem:[%s4563_s3 + $0x1b0] sm:$0xff] %vm938_vm3, %v2263_v10  ;;  %v1017_v15 = vld [vmem:[#allocation2 + $0x70] ss:$2 sm:$0xff]  ;;  %v1081_v29 = vld [vmem:[#allocation2 + $0x71] ss:$2 sm:$0xff]  ;;  %v3869_v21 = vpop.f32.mrf.mxu0  ;;  %v1381_v10 = vpack.c.bf16 %v2491_v13, %v2490_v51 }
 0x193   :  { %v1137_v61 = vmax.f32 %v1017_v15, %v1081_v29  ;;  %2127 = vst.msk [vmem:[#allocation2 + $0x70] sm:$0xff] %vm938_vm3, %v2063_v63  ;;  %v3872_v28 = vpop.f32.mrf.mxu1  ;;  %v778_v15 = vmax.f32 %v507_v30, 0.0  ;;  %v509_v17 = vadd.f32 %v3521_v53, %v3869_v21  ;;  %v70_v21 = vld [vmem:[%s4561_s0 + $0x1b8] sm:$0xff] }
 0x194   :  { %2128 = vst.msk [vmem:[#allocation2 + $0x78] sm:$0xff] %vm938_vm3, %v2064_v20  ;;  %v1684_v47 = vadd.f32 %v3587_v48, %v3872_v28 }
 0x195   :  { %1169 = vst.msk [vmem:[%s4563_s3 + $0x38] sm:$0xff] %vm938_vm3, %v1137_v61 }
 0x196   :  { %v1049_v62 = vld [vmem:[#allocation2 + $0x170] ss:$2 sm:$0xff]  ;;  %v1113_v40 = vld [vmem:[#allocation2 + $0x171] ss:$2 sm:$0xff]  ;;  %v1954_v28 = vmax.f32 %v1684_v47, 0.0  ;;  %v2495_v47 = vld [vmem:[%s4561_s0 + $0x7c8] sm:$0xff] }
 0x197   :  { %v1153_v14 = vmax.f32 %v1049_v62, %v1113_v40  ;;  %2159 = vst.msk [vmem:[#allocation2 + $0x170] sm:$0xff] %vm938_vm3, %v2095_v4  ;;  %v842_v4 = vmax.f32 %v667_v33, 0.0  ;;  %v779_v62 = vmax.f32 %v509_v17, 0.0 }
 0x198   :  { %2160 = vst.msk [vmem:[#allocation2 + $0x178] sm:$0xff] %vm938_vm3, %v2096_v37  ;;  %v3905_v18 = vpop.f32.mrf.mxu2 }
 0x199   :  { %1185 = vst.msk [vmem:[%s4563_s3 + $0xb8] sm:$0xff] %vm938_vm3, %v1153_v14  ;;  %v3911_v60 = vpop.f32.mrf.mxu3  ;;  %v134_v14 = vld [vmem:[%s4561_s0 + $0x3b8] sm:$0xff]  ;;  %v669_v32 = vadd.f32 %v3521_v53, %v3905_v18 }
 0x19a   :  { %v3913_v19 = vpop.f32.mrf.mxu0 }
 0x19b   :  { %v2184_v43 = vld [vmem:[#allocation2 + $0x70] ss:$2 sm:$0xff]  ;;  %v2216_v34 = vld [vmem:[#allocation2 + $0x71] ss:$2 sm:$0xff]  ;;  %v3915_v57 = vpop.f32.mrf.mxu1  ;;  %v512_v5 = vadd.f32 %v3521_v53, %v3913_v19  ;;  %v843_v42 = vmax.f32 %v669_v32, 0.0  ;;  %v72_v32 = vld [vmem:[%s4561_s0 + $0x1c8] sm:$0xff] }
 0x19c   :  { %v2248_v49 = vmax.f32 %v2184_v43, %v2216_v34  ;;  %v1682_v34 = vadd.f32 %v3587_v48, %v3842_v39 }
 0x19d   :  { %2335 = vmatmul.msk.bf16.gmra.mxu0 %vm217_vm2, %v168_v16  ;;  %2367 = vmatmul.msk.bf16.gmra.mxu2 %vm217_vm2, %v200_v8  ;;  %v2429_v8 = vld [vmem:[%s4561_s0 + $0x5b8] sm:$0xff]  ;;  %v780_v19 = vmax.f32 %v512_v5, 0.0 }
 0x19e   :  { %2573 = vst.msk [vmem:[%s4563_s3 + $0x138] sm:$0xff] %vm938_vm3, %v2248_v49  ;;  %2527 = vmatmul.msk.bf16.gmra.mxu1 %vm217_vm2, %v1348_v54  ;;  %2559 = vmatmul.msk.bf16.gmra.mxu3 %vm217_vm2, %v1380_v27  ;;  %v2492_v54 = vld [vmem:[%s4561_s0 + $0x7b0] sm:$0xff]  ;;  %v2493_v27 = vld [vmem:[%s4561_s0 + $0x7b8] sm:$0xff]  ;;  %v1350_v2 = vpack.c.bf16 %v2429_v8, %v2428_v46 }
 0x19f   :  { %v2200_v31 = vld [vmem:[#allocation2 + $0x170] ss:$2 sm:$0xff]  ;;  %v2232_v9 = vld [vmem:[#allocation2 + $0x171] ss:$2 sm:$0xff]  ;;  %v1382_v59 = vpack.c.bf16 %v2493_v27, %v2492_v54 }
 0x1a0   :  { %v2264_v36 = vmax.f32 %v2200_v31, %v2232_v9  ;;  %v3925_v55 = vpop.f32.mrf.mxu2  ;;  %v170_v9 = vpack.c.bf16 %v70_v21, %v69_v56  ;;  %v71_v21 = vld [vmem:[%s4561_s0 + $0x1c0] sm:$0xff] }
 0x1a1   :  { %v3927_v58 = vpop.f32.mrf.mxu3  ;;  %v672_v33 = vadd.f32 %v3521_v53, %v3925_v55 }
 0x1a2   :  { %2589 = vst.msk [vmem:[%s4563_s3 + $0x1b8] sm:$0xff] %vm938_vm3, %v2264_v36  ;;  %v3933_v41 = vpop.f32.mrf.mxu0  ;;  %v202_v36 = vpack.c.bf16 %v134_v14, %v133_v38 }
 0x1a3   :  { %v3935_v1 = vpop.f32.mrf.mxu1  ;;  %v844_v56 = vmax.f32 %v672_v33, 0.0 }
 0x1a8   :  { %v3961_v0 = vpop.f32.mrf.mxu2 }
 0x1a9   :  { %v3965_v24 = vpop.f32.mrf.mxu3 }
 0x1aa   :  { %v516_v50 = vpop.f32.mrf.mxu0 }
 0x1ab   :  { %v517_v63 = vadd.f32 %v3521_v53, %v516_v50  ;;  %v1691_v3 = vpop.f32.mrf.mxu1 }
 0x1ac   :  { %v1692_v22 = vadd.f32 %v3587_v48, %v1691_v3  ;;  %v1842_v3 = vadd.f32 %v3587_v48, %v3863_v12 }
 0x1ad   :  { %v782_v29 = vmax.f32 %v517_v63, 0.0  ;;  %2336 = vmatmul.msk.bf16.gmra.mxu0 %vm217_vm2, %v169_v11  ;;  %2368 = vmatmul.msk.bf16.gmra.mxu2 %vm217_vm2, %v201_v44  ;;  %v1953_v44 = vmax.f32 %v1682_v34, 0.0  ;;  %v674_v34 = vadd.f32 %v3521_v53, %v3961_v0 }
 0x1ae   :  { %2528 = vmatmul.msk.bf16.gmra.mxu1 %vm217_vm2, %v1349_v6  ;;  %2560 = vmatmul.msk.bf16.gmra.mxu3 %vm217_vm2, %v1381_v10  ;;  %v1957_v51 = vmax.f32 %v1692_v22, 0.0  ;;  %v2017_v55 = vmax.f32 %v1842_v3, 0.0  ;;  %v135_v22 = vld [vmem:[%s4561_s0 + $0x3c0] sm:$0xff] }
 0x1af   :  { %v890_v20 = vmax.f32 %v778_v15, %v782_v29  ;;  %v1844_v29 = vadd.f32 %v3587_v48, %v3911_v60 }
 0x1b0   :  { %v676_v23 = vpop.f32.mrf.mxu2  ;;  %v2065_v15 = vmax.f32 %v1953_v44, %v1957_v51  ;;  %v171_v51 = vpack.c.bf16 %v72_v32, %v71_v21  ;;  %v74_v21 = vld [vmem:[%s4561_s0 + $0x1d8] sm:$0xff] }
 0x1b1   :  { %955 = vst.msk [vmem:[#allocation2 + $0x80] sm:$0xff] %vm938_vm3, %v890_v20  ;;  %v677_v61 = vadd.f32 %v3521_v53, %v676_v23  ;;  %v1851_v7 = vpop.f32.mrf.mxu3 }
 0x1b2   :  { %v518_v52 = vpop.f32.mrf.mxu0  ;;  %v1852_v50 = vadd.f32 %v3587_v48, %v1851_v7 }
 0x1b3   :  { %v846_v25 = vmax.f32 %v677_v61, 0.0  ;;  %v519_v26 = vadd.f32 %v3521_v53, %v518_v52  ;;  %v1693_v35 = vpop.f32.mrf.mxu1  ;;  %v514_v52 = vadd.f32 %v3521_v53, %v3933_v41 }
 0x1b4   :  { %v1694_v43 = vadd.f32 %v3587_v48, %v1693_v35 }
 0x1b5   :  { %v922_v40 = vmax.f32 %v842_v4, %v846_v25  ;;  %v783_v37 = vmax.f32 %v519_v26, 0.0  ;;  %v2021_v4 = vmax.f32 %v1852_v50, 0.0  ;;  %v781_v38 = vmax.f32 %v514_v52, 0.0 }
 0x1b6   :  { %v1958_v11 = vmax.f32 %v1694_v43, 0.0 }
 0x1b7   :  { %987 = vst.msk [vmem:[#allocation2 + $0x180] sm:$0xff] %vm938_vm3, %v922_v40  ;;  %v891_v16 = vmax.f32 %v779_v62, %v783_v37  ;;  %v2018_v37 = vmax.f32 %v1844_v29, 0.0  ;;  %v2097_v14 = vmax.f32 %v2017_v55, %v2021_v4 }
 0x1b8   :  { %v678_v18 = vpop.f32.mrf.mxu2  ;;  %v2066_v17 = vmax.f32 %v1954_v28, %v1958_v11 }
 0x1b9   :  { %956 = vst.msk [vmem:[#allocation2 + $0x88] sm:$0xff] %vm938_vm3, %v891_v16  ;;  %v679_v49 = vadd.f32 %v3521_v53, %v678_v18  ;;  %v1853_v31 = vpop.f32.mrf.mxu3  ;;  %v136_v16 = vld [vmem:[%s4561_s0 + $0x3c8] sm:$0xff]  ;;  %v2430_v18 = vld [vmem:[%s4561_s0 + $0x5c0] sm:$0xff] }
 0x1ba   :  { %v521_v45 = vpop.f32.mrf.mxu0  ;;  %v1854_v63 = vadd.f32 %v3587_v48, %v1853_v31 }
 0x1bb   :  { %v847_v13 = vmax.f32 %v679_v49, 0.0  ;;  %v522_v39 = vadd.f32 %v3521_v53, %v521_v45  ;;  %v4017_v30 = vpop.f32.mrf.mxu1 }
 0x1bc   :  { %v2022_v60 = vmax.f32 %v1854_v63, 0.0  ;;  %v1697_v45 = vadd.f32 %v3587_v48, %v4017_v30  ;;  %v1687_v30 = vadd.f32 %v3587_v48, %v3915_v57  ;;  %v1689_v63 = vadd.f32 %v3587_v48, %v3935_v1 }
 0x1bd   :  { %v923_v6 = vmax.f32 %v843_v42, %v847_v13  ;;  %v784_v10 = vmax.f32 %v522_v39, 0.0  ;;  %2337 = vmatmul.msk.bf16.gmra.mxu0 %vm217_vm2, %v170_v9  ;;  %2369 = vmatmul.msk.bf16.gmra.mxu2 %vm217_vm2, %v202_v36  ;;  %v2431_v9 = vld [vmem:[%s4561_s0 + $0x5c8] sm:$0xff]  ;;  %v2494_v36 = vld [vmem:[%s4561_s0 + $0x7c0] sm:$0xff]  ;;  %v203_v13 = vpack.c.bf16 %v136_v16, %v135_v22  ;;  %v2432_v16 = vld [vmem:[%s4561_s0 + $0x5d0] sm:$0xff] }
 0x1be   :  { %2529 = vmatmul.msk.bf16.gmra.mxu1 %vm217_vm2, %v1350_v2  ;;  %2561 = vmatmul.msk.bf16.gmra.mxu3 %vm217_vm2, %v1382_v59  ;;  %v2098_v27 = vmax.f32 %v2018_v37, %v2022_v60  ;;  %v4080_v2 = vld [vmem:[%s4562_s2] ss:$0 sm:$0xff]  ;;  %v1351_v50 = vpack.c.bf16 %v2431_v9, %v2430_v18  ;;  %v1959_v3 = vmax.f32 %v1697_v45, 0.0  ;;  %v1955_v1 = vmax.f32 %v1687_v30, 0.0  ;;  %v73_v37 = vld [vmem:[%s4561_s0 + $0x1d0] sm:$0xff]  ;;  %v76_v30 = vld [vmem:[%s4561_s0 + $0x1e8] sm:$0xff] }
 0x1bf   :  { %988 = vst.msk [vmem:[#allocation2 + $0x188] sm:$0xff] %vm938_vm3, %v923_v6  ;;  %v892_v61 = vmax.f32 %v780_v19, %v784_v10  ;;  %v1383_v6 = vpack.c.bf16 %v2495_v47, %v2494_v36  ;;  %v845_v10 = vmax.f32 %v674_v34, 0.0 }
 0x1c0   :  { %v1019_v20 = vld [vmem:[#allocation2 + $0x80] ss:$2 sm:$0xff]  ;;  %v1083_v23 = vld [vmem:[#allocation2 + $0x81] ss:$2 sm:$0xff]  ;;  %v681_v7 = vpop.f32.mrf.mxu2 }
 0x1c1   :  { %v1138_v25 = vmax.f32 %v1019_v20, %v1083_v23  ;;  %2129 = vst.msk [vmem:[#allocation2 + $0x80] sm:$0xff] %vm938_vm3, %v2065_v15  ;;  %v682_v12 = vadd.f32 %v3521_v53, %v681_v7  ;;  %v1856_v26 = vpop.f32.mrf.mxu3  ;;  %v1847_v20 = vadd.f32 %v3587_v48, %v3927_v58  ;;  %v1849_v7 = vadd.f32 %v3587_v48, %v3965_v24 }
 0x1c2   :  { %2130 = vst.msk [vmem:[#allocation2 + $0x88] sm:$0xff] %vm938_vm3, %v2066_v17  ;;  %v523_v35 = vpop.f32.mrf.mxu0  ;;  %v1857_v15 = vadd.f32 %v3587_v48, %v1856_v26 }
 0x1c3   :  { %1170 = vst.msk [vmem:[%s4563_s3 + $0x40] sm:$0xff] %vm938_vm3, %v1138_v25  ;;  %v848_v62 = vmax.f32 %v682_v12, 0.0  ;;  %v524_v41 = vadd.f32 %v3521_v53, %v523_v35  ;;  %v1698_v40 = vpop.f32.mrf.mxu1  ;;  %v2067_v25 = vmax.f32 %v1955_v1, %v1959_v3  ;;  %v2435_v3 = vld [vmem:[%s4561_s0 + $0x5e8] sm:$0xff] }
 0x1c4   :  { %957 = vst.msk [vmem:[#allocation2 + $0x90] sm:$0xff] %vm938_vm3, %v892_v61  ;;  %v1699_v11 = vadd.f32 %v3587_v48, %v1698_v40  ;;  %v1956_v61 = vmax.f32 %v1689_v63, 0.0  ;;  %v2023_v12 = vmax.f32 %v1857_v15, 0.0  ;;  %v2020_v40 = vmax.f32 %v1849_v7, 0.0  ;;  %v2434_v63 = vld [vmem:[%s4561_s0 + $0x5e0] sm:$0xff] }
 0x1c5   :  { %v785_v46 = vmax.f32 %v524_v41, 0.0  ;;  %v924_v43 = vmax.f32 %v844_v56, %v848_v62  ;;  %v2019_v41 = vmax.f32 %v1847_v20, 0.0  ;;  %v2498_v15 = vld [vmem:[%s4561_s0 + $0x7e0] sm:$0xff] }
 0x1c6   :  { %v1051_v8 = vld [vmem:[#allocation2 + $0x180] ss:$2 sm:$0xff]  ;;  %v1115_v54 = vld [vmem:[#allocation2 + $0x181] ss:$2 sm:$0xff]  ;;  %v1960_v57 = vmax.f32 %v1699_v11, 0.0 }
 0x1c7   :  { %v1154_v49 = vmax.f32 %v1051_v8, %v1115_v54  ;;  %2161 = vst.msk [vmem:[#allocation2 + $0x180] sm:$0xff] %vm938_vm3, %v2097_v14  ;;  %v893_v31 = vmax.f32 %v781_v38, %v785_v46  ;;  %v2099_v56 = vmax.f32 %v2019_v41, %v2023_v12  ;;  %v137_v38 = vld [vmem:[%s4561_s0 + $0x3d0] sm:$0xff]  ;;  %v138_v14 = vld [vmem:[%s4561_s0 + $0x3d8] sm:$0xff] }
 0x1c8   :  { %2162 = vst.msk [vmem:[#allocation2 + $0x188] sm:$0xff] %vm938_vm3, %v2098_v27  ;;  %v683_v5 = vpop.f32.mrf.mxu2  ;;  %v2068_v35 = vmax.f32 %v1956_v61, %v1960_v57  ;;  %v2433_v54 = vld [vmem:[%s4561_s0 + $0x5d8] sm:$0xff]  ;;  %v2496_v27 = vld [vmem:[%s4561_s0 + $0x7d0] sm:$0xff]  ;;  %v1353_v61 = vpack.c.bf16 %v2435_v3, %v2434_v63 }
 0x1c9   :  { %v2185_v53 = vld [vmem:[#allocation2 + $0x80] ss:$2 sm:$0xff]  ;;  %v2217_v0 = vld [vmem:[#allocation2 + $0x81] ss:$2 sm:$0xff]  ;;  %1186 = vst.msk [vmem:[%s4563_s3 + $0xc0] sm:$0xff] %vm938_vm3, %v1154_v49  ;;  %v684_v59 = vadd.f32 %v4080_v2, %v683_v5  ;;  %v1858_v42 = vpop.f32.mrf.mxu3  ;;  %v172_v49 = vpack.c.bf16 %v74_v21, %v73_v37  ;;  %v1352_v36 = vpack.c.bf16 %v2433_v54, %v2432_v16  ;;  %v142_v16 = vld [vmem:[%s4561_s0 + $0x3f8] sm:$0xff] }
 0x1ca   :  { %v2249_v39 = vmax.f32 %v2185_v53, %v2217_v0  ;;  %989 = vst.msk [vmem:[#allocation2 + $0x190] sm:$0xff] %vm938_vm3, %v924_v43  ;;  %v4085_v44 = vpop.f32.mrf.mxu0  ;;  %v1859_v33 = vadd.f32 %v3587_v48, %v1858_v42  ;;  %v2497_v43 = vld [vmem:[%s4561_s0 + $0x7d8] sm:$0xff] }
 0x1cb   :  { %958 = vst.msk [vmem:[#allocation2 + $0x98] sm:$0xff] %vm938_vm3, %v893_v31  ;;  %v849_v28 = vmax.f32 %v684_v59, 0.0  ;;  %v4090_v19 = vpop.f32.mrf.mxu1  ;;  %v204_v31 = vpack.c.bf16 %v138_v14, %v137_v38  ;;  %v1384_v47 = vpack.c.bf16 %v2497_v43, %v2496_v27  ;;  %v4247_v27 = vld [vmem:[%s4562_s2] ss:$0 sm:$0xff] }
 0x1cc   :  { %2574 = vst.msk [vmem:[%s4563_s3 + $0x140] sm:$0xff] %vm938_vm3, %v2249_v39  ;;  %v2024_v55 = vmax.f32 %v1859_v33, 0.0  ;;  %v527_v33 = vadd.f32 %v4080_v2, %v4085_v44 }
 0x1cd   :  { %v925_v29 = vmax.f32 %v845_v10, %v849_v28  ;;  %2338 = vmatmul.msk.bf16.gmra.mxu0 %vm217_vm2, %v171_v51  ;;  %2370 = vmatmul.msk.bf16.gmra.mxu2 %vm217_vm2, %v203_v13  ;;  %v139_v10 = vld [vmem:[%s4561_s0 + $0x3e0] sm:$0xff]  ;;  %v140_v28 = vld [vmem:[%s4561_s0 + $0x3e8] sm:$0xff] }
 0x1ce   :  { %2530 = vmatmul.msk.bf16.gmra.mxu1 %vm217_vm2, %v1351_v50  ;;  %2562 = vmatmul.msk.bf16.gmra.mxu3 %vm217_vm2, %v1383_v6  ;;  %v2100_v22 = vmax.f32 %v2020_v40, %v2024_v55  ;;  %v75_v6 = vld [vmem:[%s4561_s0 + $0x1e0] sm:$0xff]  ;;  %v786_v12 = vmax.f32 %v527_v33, 0.0 }
 0x1cf   :  { %v2201_v23 = vld [vmem:[#allocation2 + $0x180] ss:$2 sm:$0xff]  ;;  %v2233_v17 = vld [vmem:[#allocation2 + $0x181] ss:$2 sm:$0xff]  ;;  %990 = vst.msk [vmem:[#allocation2 + $0x198] sm:$0xff] %vm938_vm3, %v925_v29  ;;  %v173_v20 = vpack.c.bf16 %v76_v30, %v75_v6 }
 0x1d0   :  { %v2265_v52 = vmax.f32 %v2201_v23, %v2233_v17  ;;  %v4109_v4 = vpop.f32.mrf.mxu2  ;;  %v2499_v29 = vld [vmem:[%s4561_s0 + $0x7e8] sm:$0xff]  ;;  %v205_v23 = vpack.c.bf16 %v140_v28, %v139_v10 }
 0x1d1   :  { %v4111_v26 = vpop.f32.mrf.mxu3  ;;  %v1385_v7 = vpack.c.bf16 %v2499_v29, %v2498_v15  ;;  %v687_v44 = vadd.f32 %v4080_v2, %v4109_v4  ;;  %v77_v4 = vld [vmem:[%s4561_s0 + $0x1f0] sm:$0xff] }
 0x1d2   :  { %2590 = vst.msk [vmem:[%s4563_s3 + $0x1c0] sm:$0xff] %vm938_vm3, %v2265_v52  ;;  %v1021_v58 = vld [vmem:[#allocation2 + $0x90] ss:$2 sm:$0xff]  ;;  %v1085_v60 = vld [vmem:[#allocation2 + $0x91] ss:$2 sm:$0xff]  ;;  %v4117_v62 = vpop.f32.mrf.mxu0 }
 0x1d3   :  { %v1139_v48 = vmax.f32 %v1021_v58, %v1085_v60  ;;  %2131 = vst.msk [vmem:[#allocation2 + $0x90] sm:$0xff] %vm938_vm3, %v2067_v25  ;;  %v4120_v24 = vpop.f32.mrf.mxu1  ;;  %v529_v55 = vadd.f32 %v4080_v2, %v4117_v62  ;;  %v850_v37 = vmax.f32 %v687_v44, 0.0  ;;  %v78_v62 = vld [vmem:[%s4561_s0 + $0x1f8] sm:$0xff] }
 0x1d4   :  { %2132 = vst.msk [vmem:[#allocation2 + $0x98] sm:$0xff] %vm938_vm3, %v2068_v35  ;;  %v1704_v6 = vadd.f32 %v4247_v27, %v4120_v24 }
 0x1d5   :  { %1171 = vst.msk [vmem:[%s4563_s3 + $0x48] sm:$0xff] %vm938_vm3, %v1139_v48  ;;  %v787_v14 = vmax.f32 %v529_v55, 0.0 }
 0x1d6   :  { %v1053_v46 = vld [vmem:[#allocation2 + $0x190] ss:$2 sm:$0xff]  ;;  %v1117_v32 = vld [vmem:[#allocation2 + $0x191] ss:$2 sm:$0xff]  ;;  %v1962_v24 = vmax.f32 %v1704_v6, 0.0 }
 0x1d7   :  { %v1155_v8 = vmax.f32 %v1053_v46, %v1117_v32  ;;  %2163 = vst.msk [vmem:[#allocation2 + $0x190] sm:$0xff] %vm938_vm3, %v2099_v56 }
 0x1d8   :  { %2164 = vst.msk [vmem:[#allocation2 + $0x198] sm:$0xff] %vm938_vm3, %v2100_v22  ;;  %v4153_v18 = vpop.f32.mrf.mxu2  ;;  %v141_v22 = vld [vmem:[%s4561_s0 + $0x3f0] sm:$0xff] }
 0x1d9   :  { %1187 = vst.msk [vmem:[%s4563_s3 + $0xc8] sm:$0xff] %vm938_vm3, %v1155_v8  ;;  %v4159_v34 = vpop.f32.mrf.mxu3  ;;  %v2436_v8 = vld [vmem:[%s4561_s0 + $0x5f0] sm:$0xff]  ;;  %v689_v54 = vadd.f32 %v4080_v2, %v4153_v18  ;;  %v2501_v18 = vld [vmem:[%s4561_s0 + $0x7f8] sm:$0xff] }
 0x1da   :  { %v4161_v9 = vpop.f32.mrf.mxu0 }
 0x1db   :  { %v2186_v5 = vld [vmem:[#allocation2 + $0x90] ss:$2 sm:$0xff]  ;;  %v2218_v53 = vld [vmem:[#allocation2 + $0x91] ss:$2 sm:$0xff]  ;;  %v4163_v0 = vpop.f32.mrf.mxu1  ;;  %v532_v30 = vadd.f32 %v4080_v2, %v4161_v9  ;;  %v851_v3 = vmax.f32 %v689_v54, 0.0 }
 0x1dc   :  { %v2250_v45 = vmax.f32 %v2186_v5, %v2218_v53  ;;  %v1702_v53 = vadd.f32 %v4247_v27, %v4090_v19 }
 0x1dd   :  { %2339 = vmatmul.msk.bf16.gmra.mxu0 %vm217_vm2, %v172_v49  ;;  %2371 = vmatmul.msk.bf16.gmra.mxu2 %vm217_vm2, %v204_v31  ;;  %v2437_v31 = vld [vmem:[%s4561_s0 + $0x5f8] sm:$0xff]  ;;  %v788_v9 = vmax.f32 %v532_v30, 0.0  ;;  %v1707_v30 = vadd.f32 %v4247_v27, %v4163_v0 }
 0x1de   :  { %2575 = vst.msk [vmem:[%s4563_s3 + $0x148] sm:$0xff] %vm938_vm3, %v2250_v45  ;;  %2531 = vmatmul.msk.bf16.gmra.mxu1 %vm217_vm2, %v1352_v36  ;;  %2563 = vmatmul.msk.bf16.gmra.mxu3 %vm217_vm2, %v1384_v47  ;;  %v2500_v36 = vld [vmem:[%s4561_s0 + $0x7f0] sm:$0xff]  ;;  %v1354_v28 = vpack.c.bf16 %v2437_v31, %v2436_v8 }
 0x1df   :  { %v2202_v59 = vld [vmem:[#allocation2 + $0x190] ss:$2 sm:$0xff]  ;;  %v2234_v42 = vld [vmem:[#allocation2 + $0x191] ss:$2 sm:$0xff]  ;;  %v1386_v63 = vpack.c.bf16 %v2501_v18, %v2500_v36 }
 0x1e0   :  { %v2266_v51 = vmax.f32 %v2202_v59, %v2234_v42  ;;  %v4173_v13 = vpop.f32.mrf.mxu2  ;;  %v174_v42 = vpack.c.bf16 %v78_v62, %v77_v4 }
 0x1e1   :  { %v4175_v39 = vpop.f32.mrf.mxu3  ;;  %v692_v44 = vadd.f32 %v4080_v2, %v4173_v13 }
 0x1e2   :  { %2591 = vst.msk [vmem:[%s4563_s3 + $0x1c8] sm:$0xff] %vm938_vm3, %v2266_v51  ;;  %v4181_v11 = vpop.f32.mrf.mxu0  ;;  %v206_v51 = vpack.c.bf16 %v142_v16, %v141_v22 }
 0x1e3   :  { %v4183_v50 = vpop.f32.mrf.mxu1  ;;  %v852_v4 = vmax.f32 %v692_v44, 0.0 }
 0x1e8   :  { %v4209_v57 = vpop.f32.mrf.mxu2 }
 0x1e9   :  { %v4213_v1 = vpop.f32.mrf.mxu3  ;;  %v694_v31 = vadd.f32 %v4080_v2, %v4209_v57 }
 0x1ea   :  { %v536_v17 = vpop.f32.mrf.mxu0 }
 0x1eb   :  { %v537_v52 = vadd.f32 %v4080_v2, %v536_v17  ;;  %v1711_v25 = vpop.f32.mrf.mxu1 }
 0x1ec   :  { %v1712_v43 = vadd.f32 %v4247_v27, %v1711_v25  ;;  %v1862_v25 = vadd.f32 %v4247_v27, %v4111_v26 }
 0x1ed   :  { %v790_v58 = vmax.f32 %v537_v52, 0.0  ;;  %2340 = vmatmul.msk.bf16.gmra.mxu0 %vm217_vm2, %v173_v20  ;;  %2372 = vmatmul.msk.bf16.gmra.mxu2 %vm217_vm2, %v205_v23  ;;  %v1961_v23 = vmax.f32 %v1702_v53, 0.0 }
 0x1ee   :  { %2532 = vmatmul.msk.bf16.gmra.mxu1 %vm217_vm2, %v1353_v61  ;;  %2564 = vmatmul.msk.bf16.gmra.mxu3 %vm217_vm2, %v1385_v7  ;;  %v1965_v15 = vmax.f32 %v1712_v43, 0.0  ;;  %v2025_v13 = vmax.f32 %v1862_v25, 0.0 }
 0x1ef   :  { %v894_v60 = vmax.f32 %v786_v12, %v790_v58  ;;  %v1864_v58 = vadd.f32 %v4247_v27, %v4159_v34 }
 0x1f0   :  { %v696_v35 = vpop.f32.mrf.mxu2  ;;  %v2069_v12 = vmax.f32 %v1961_v23, %v1965_v15  ;;  %v1867_v23 = vadd.f32 %v4247_v27, %v4175_v39 }
 0x1f1   :  { %959 = vst.msk [vmem:[#allocation2 + $0xa0] sm:$0xff] %vm938_vm3, %v894_v60  ;;  %v697_v41 = vadd.f32 %v4080_v2, %v696_v35  ;;  %v1871_v48 = vpop.f32.mrf.mxu3 }
 0x1f2   :  { %v538_v40 = vpop.f32.mrf.mxu0  ;;  %v1872_v17 = vadd.f32 %v4247_v27, %v1871_v48 }
 0x1f3   :  { %v854_v56 = vmax.f32 %v697_v41, 0.0  ;;  %v539_v21 = vadd.f32 %v4080_v2, %v538_v40  ;;  %v1713_v38 = vpop.f32.mrf.mxu1  ;;  %v534_v40 = vadd.f32 %v4080_v2, %v4181_v11 }
 0x1f4   :  { %v1714_v47 = vadd.f32 %v4247_v27, %v1713_v38 }
 0x1f5   :  { %v926_v46 = vmax.f32 %v850_v37, %v854_v56  ;;  %v791_v32 = vmax.f32 %v539_v21, 0.0  ;;  %v2029_v37 = vmax.f32 %v1872_v17, 0.0  ;;  %v789_v62 = vmax.f32 %v534_v40, 0.0 }
 0x1f6   :  { %v1966_v20 = vmax.f32 %v1714_v47, 0.0 }
 0x1f7   :  { %991 = vst.msk [vmem:[#allocation2 + $0x1a0] sm:$0xff] %vm938_vm3, %v926_v46  ;;  %v895_v49 = vmax.f32 %v787_v14, %v791_v32  ;;  %v2026_v32 = vmax.f32 %v1864_v58, 0.0  ;;  %v2101_v22 = vmax.f32 %v2025_v13, %v2029_v37 }
 0x1f8   :  { %v698_v5 = vpop.f32.mrf.mxu2  ;;  %v2070_v55 = vmax.f32 %v1962_v24, %v1966_v20  ;;  %v1963_v20 = vmax.f32 %v1707_v30, 0.0 }
 0x1f9   :  { %960 = vst.msk [vmem:[#allocation2 + $0xa8] sm:$0xff] %vm938_vm3, %v895_v49  ;;  %v699_v45 = vadd.f32 %v4080_v2, %v698_v5  ;;  %v1873_v59 = vpop.f32.mrf.mxu3 }
 0x1fa   :  { %v541_v10 = vpop.f32.mrf.mxu0  ;;  %v1874_v52 = vadd.f32 %v4247_v27, %v1873_v59 }
 0x1fb   :  { %v855_v29 = vmax.f32 %v699_v45, 0.0  ;;  %v542_v19 = vadd.f32 %v4080_v2, %v541_v10  ;;  %v1716_v33 = vpop.f32.mrf.mxu1  ;;  %v853_v10 = vmax.f32 %v694_v31, 0.0 }
 0x1fc   :  { %v2030_v34 = vmax.f32 %v1874_v52, 0.0  ;;  %v1717_v45 = vadd.f32 %v4247_v27, %v1716_v33 }
 0x1fd   :  { %v927_v61 = vmax.f32 %v851_v3, %v855_v29  ;;  %v792_v7 = vmax.f32 %v542_v19, 0.0  ;;  %2341 = vmatmul.msk.bf16.gmra.mxu0 %vm217_vm2, %v174_v42  ;;  %2373 = vmatmul.msk.bf16.gmra.mxu2 %vm217_vm2, %v206_v51  ;;  %v1709_v3 = vadd.f32 %v4247_v27, %v4183_v50 }
 0x1fe   :  { %2533 = vmatmul.msk.bf16.gmra.mxu1 %vm217_vm2, %v1354_v28  ;;  %2565 = vmatmul.msk.bf16.gmra.mxu3 %vm217_vm2, %v1386_v63  ;;  %v2102_v43 = vmax.f32 %v2026_v32, %v2030_v34  ;;  %v1967_v15 = vmax.f32 %v1717_v45, 0.0 }
 0x1ff   :  { %992 = vst.msk [vmem:[#allocation2 + $0x1a8] sm:$0xff] %vm938_vm3, %v927_v61  ;;  %v896_v41 = vmax.f32 %v788_v9, %v792_v7  ;;  %v1964_v50 = vmax.f32 %v1709_v3, 0.0  ;;  %v1869_v7 = vadd.f32 %v4247_v27, %v4213_v1 }
 0x200   :  { %v1023_v60 = vld [vmem:[#allocation2 + $0xa0] ss:$2 sm:$0xff]  ;;  %v1087_v35 = vld [vmem:[#allocation2 + $0xa1] ss:$2 sm:$0xff]  ;;  %v701_v48 = vpop.f32.mrf.mxu2  ;;  %v2071_v52 = vmax.f32 %v1963_v20, %v1967_v15 }
 0x201   :  { %v1140_v56 = vmax.f32 %v1023_v60, %v1087_v35  ;;  %2133 = vst.msk [vmem:[#allocation2 + $0xa0] sm:$0xff] %vm938_vm3, %v2069_v12  ;;  %v702_v26 = vadd.f32 %v4080_v2, %v701_v48  ;;  %v1876_v21 = vpop.f32.mrf.mxu3  ;;  %v2028_v48 = vmax.f32 %v1869_v7, 0.0 }
 0x202   :  { %2134 = vst.msk [vmem:[#allocation2 + $0xa8] sm:$0xff] %vm938_vm3, %v2070_v55  ;;  %v543_v38 = vpop.f32.mrf.mxu0  ;;  %v1877_v29 = vadd.f32 %v4247_v27, %v1876_v21  ;;  %v2027_v55 = vmax.f32 %v1867_v23, 0.0 }
 0x203   :  { %1172 = vst.msk [vmem:[%s4563_s3 + $0x50] sm:$0xff] %vm938_vm3, %v1140_v56  ;;  %v856_v14 = vmax.f32 %v702_v26, 0.0  ;;  %v544_v11 = vadd.f32 %v4080_v2, %v543_v38  ;;  %v1718_v46 = vpop.f32.mrf.mxu1 }
 0x204   :  { %961 = vst.msk [vmem:[#allocation2 + $0xb0] sm:$0xff] %vm938_vm3, %v896_v41  ;;  %v1719_v51 = vadd.f32 %v4247_v27, %v1718_v46  ;;  %v2031_v25 = vmax.f32 %v1877_v29, 0.0 }
 0x205   :  { %v793_v16 = vmax.f32 %v544_v11, 0.0  ;;  %v928_v49 = vmax.f32 %v852_v4, %v856_v14 }
 0x206   :  { %v1055_v8 = vld [vmem:[#allocation2 + $0x1a0] ss:$2 sm:$0xff]  ;;  %v1119_v54 = vld [vmem:[#allocation2 + $0x1a1] ss:$2 sm:$0xff]  ;;  %v1968_v33 = vmax.f32 %v1719_v51, 0.0  ;;  %v2103_v40 = vmax.f32 %v2027_v55, %v2031_v25 }
 0x207   :  { %v1156_v36 = vmax.f32 %v1055_v8, %v1119_v54  ;;  %2165 = vst.msk [vmem:[#allocation2 + $0x1a0] sm:$0xff] %vm938_vm3, %v2101_v22  ;;  %v897_v18 = vmax.f32 %v789_v62, %v793_v16 }
 0x208   :  { %2166 = vst.msk [vmem:[#allocation2 + $0x1a8] sm:$0xff] %vm938_vm3, %v2102_v43  ;;  %v703_v47 = vpop.f32.mrf.mxu2  ;;  %v2072_v44 = vmax.f32 %v1964_v50, %v1968_v33 }
 0x209   :  { %v2187_v5 = vld [vmem:[#allocation2 + $0xa0] ss:$2 sm:$0xff]  ;;  %v2219_v53 = vld [vmem:[#allocation2 + $0xa1] ss:$2 sm:$0xff]  ;;  %1188 = vst.msk [vmem:[%s4563_s3 + $0xd0] sm:$0xff] %vm938_vm3, %v1156_v36  ;;  %v704_v59 = vadd.f32 %v4080_v2, %v703_v47  ;;  %v1878_v42 = vpop.f32.mrf.mxu3 }
 0x20a   :  { %v2251_v57 = vmax.f32 %v2187_v5, %v2219_v53  ;;  %993 = vst.msk [vmem:[#allocation2 + $0x1b0] sm:$0xff] %vm938_vm3, %v928_v49  ;;  %v4306_v6 = vpop.f32.mrf.mxu0  ;;  %v1879_v0 = vadd.f32 %v4247_v27, %v1878_v42 }
 0x20b   :  { %962 = vst.msk [vmem:[#allocation2 + $0xb8] sm:$0xff] %vm938_vm3, %v897_v18  ;;  %v857_v28 = vmax.f32 %v704_v59, 0.0  ;;  %v4311_v63 = vpop.f32.mrf.mxu1  ;;  %v547_v31 = vadd.f32 %v4080_v2, %v4306_v6 }
 0x20c   :  { %2576 = vst.msk [vmem:[%s4563_s3 + $0x150] sm:$0xff] %vm938_vm3, %v2251_v57  ;;  %v2032_v60 = vmax.f32 %v1879_v0, 0.0  ;;  %v1722_v7 = vadd.f32 %v4247_v27, %v4311_v63 }
 0x20d   :  { %v929_v19 = vmax.f32 %v853_v10, %v857_v28  ;;  %v794_v53 = vmax.f32 %v547_v31, 0.0 }
 0x20e   :  { %v2104_v26 = vmax.f32 %v2028_v48, %v2032_v60  ;;  %v1969_v48 = vmax.f32 %v1722_v7, 0.0 }
 0x20f   :  { %v2203_v17 = vld [vmem:[#allocation2 + $0x1a0] ss:$2 sm:$0xff]  ;;  %v2235_v61 = vld [vmem:[#allocation2 + $0x1a1] ss:$2 sm:$0xff]  ;;  %994 = vst.msk [vmem:[#allocation2 + $0x1b8] sm:$0xff] %vm938_vm3, %v929_v19 }
 0x210   :  { %v2267_v24 = vmax.f32 %v2203_v17, %v2235_v61  ;;  %v706_v9 = vpop.f32.mrf.mxu2 }
 0x211   :  { %v4326_v12 = vpop.f32.mrf.mxu3  ;;  %v707_v59 = vadd.f32 %v4080_v2, %v706_v9 }
 0x212   :  { %2592 = vst.msk [vmem:[%s4563_s3 + $0x1d0] sm:$0xff] %vm938_vm3, %v2267_v24  ;;  %v1025_v39 = vld [vmem:[#allocation2 + $0xb0] ss:$2 sm:$0xff]  ;;  %v1089_v58 = vld [vmem:[#allocation2 + $0xb1] ss:$2 sm:$0xff]  ;;  %v548_v35 = vpop.f32.mrf.mxu0 }
 0x213   :  { %v1141_v41 = vmax.f32 %v1025_v39, %v1089_v58  ;;  %2135 = vst.msk [vmem:[#allocation2 + $0xb0] sm:$0xff] %vm938_vm3, %v2071_v52  ;;  %v1723_v1 = vpop.f32.mrf.mxu1  ;;  %v549_v51 = vadd.f32 %v4080_v2, %v548_v35  ;;  %v858_v28 = vmax.f32 %v707_v59, 0.0 }
 0x214   :  { %2136 = vst.msk [vmem:[#allocation2 + $0xb8] sm:$0xff] %vm938_vm3, %v2072_v44  ;;  %v1724_v52 = vadd.f32 %v4247_v27, %v1723_v1  ;;  %v1882_v1 = vadd.f32 %v4247_v27, %v4326_v12 }
 0x215   :  { %1173 = vst.msk [vmem:[%s4563_s3 + $0x58] sm:$0xff] %vm938_vm3, %v1141_v41  ;;  %v795_v19 = vmax.f32 %v549_v51, 0.0 }
 0x216   :  { %v1057_v37 = vld [vmem:[#allocation2 + $0x1b0] ss:$2 sm:$0xff]  ;;  %v1121_v56 = vld [vmem:[#allocation2 + $0x1b1] ss:$2 sm:$0xff] }
 0x217   :  { %v1157_v21 = vmax.f32 %v1057_v37, %v1121_v56  ;;  %2167 = vst.msk [vmem:[#allocation2 + $0x1b0] sm:$0xff] %vm938_vm3, %v2103_v40  ;;  %v1970_v56 = vmax.f32 %v1724_v52, 0.0 }
 0x218   :  { %2168 = vst.msk [vmem:[#allocation2 + $0x1b8] sm:$0xff] %vm938_vm3, %v2104_v26  ;;  %v708_v34 = vpop.f32.mrf.mxu2 }
 0x219   :  { %1189 = vst.msk [vmem:[%s4563_s3 + $0xd8] sm:$0xff] %vm938_vm3, %v1157_v21  ;;  %v4344_v38 = vpop.f32.mrf.mxu3  ;;  %v709_v20 = vadd.f32 %v4080_v2, %v708_v34 }
 0x21a   :  { %v551_v13 = vpop.f32.mrf.mxu0 }
 0x21b   :  { %v2188_v14 = vld [vmem:[#allocation2 + $0xb0] ss:$2 sm:$0xff]  ;;  %v2220_v11 = vld [vmem:[#allocation2 + $0xb1] ss:$2 sm:$0xff]  ;;  %v4346_v46 = vpop.f32.mrf.mxu1  ;;  %v552_v25 = vadd.f32 %v4080_v2, %v551_v13  ;;  %v859_v58 = vmax.f32 %v709_v20, 0.0  ;;  %v1884_v13 = vadd.f32 %v4247_v27, %v4344_v38 }
 0x21c   :  { %v2252_v32 = vmax.f32 %v2188_v14, %v2220_v11 }
 0x21d   :  { %v796_v26 = vmax.f32 %v552_v25, 0.0 }
 0x21e   :  { %2577 = vst.msk [vmem:[%s4563_s3 + $0x158] sm:$0xff] %vm938_vm3, %v2252_v32 }
 0x21f   :  { %v2204_v4 = vld [vmem:[#allocation2 + $0x1b0] ss:$2 sm:$0xff]  ;;  %v2236_v62 = vld [vmem:[#allocation2 + $0x1b1] ss:$2 sm:$0xff] }
 0x220   :  { %v2268_v22 = vmax.f32 %v2204_v4, %v2236_v62  ;;  %v711_v16 = vpop.f32.mrf.mxu2 }
 0x221   :  { %v4352_v8 = vpop.f32.mrf.mxu3  ;;  %v712_v14 = vadd.f32 %v4080_v2, %v711_v16 }
 0x222   :  { %2593 = vst.msk [vmem:[%s4563_s3 + $0x1d8] sm:$0xff] %vm938_vm3, %v2268_v22  ;;  %v553_v54 = vpop.f32.mrf.mxu0 }
 0x223   :  { %v4358_v43 = vpop.f32.mrf.mxu1  ;;  %v554_v31 = vadd.f32 %v4080_v2, %v553_v54 }
 0x225   :  { %v797_v51 = vmax.f32 %v554_v31, 0.0 }
 0x228   :  { %v4360_v49 = vpop.f32.mrf.mxu2 }
 0x229   :  { %v4364_v36 = vpop.f32.mrf.mxu3 }
 0x22a   :  { %v556_v18 = vpop.f32.mrf.mxu0 }
 0x22b   :  { %v557_v47 = vadd.f32 %v4080_v2, %v556_v18  ;;  %v1731_v5 = vpop.f32.mrf.mxu1 }
 0x22c   :  { %v1732_v23 = vadd.f32 %v4247_v27, %v1731_v5 }
 0x22d   :  { %v798_v45 = vmax.f32 %v557_v47, 0.0 }
 0x22e   :  { %v1973_v44 = vmax.f32 %v1732_v23, 0.0 }
 0x22f   :  { %v898_v42 = vmax.f32 %v794_v53, %v798_v45  ;;  %v2033_v45 = vmax.f32 %v1882_v1, 0.0 }
 0x230   :  { %v716_v57 = vpop.f32.mrf.mxu2  ;;  %v2073_v34 = vmax.f32 %v1969_v48, %v1973_v44  ;;  %v1887_v48 = vadd.f32 %v4247_v27, %v4352_v8 }
 0x231   :  { %963 = vst.msk [vmem:[#allocation2 + $0xc0] sm:$0xff] %vm938_vm3, %v898_v42  ;;  %v717_v30 = vadd.f32 %v4080_v2, %v716_v57  ;;  %v1891_v10 = vpop.f32.mrf.mxu3  ;;  %v2034_v42 = vmax.f32 %v1884_v13, 0.0  ;;  %v860_v57 = vmax.f32 %v712_v14, 0.0 }
 0x232   :  { %v558_v6 = vpop.f32.mrf.mxu0  ;;  %v1892_v63 = vadd.f32 %v4247_v27, %v1891_v10 }
 0x233   :  { %v862_v3 = vmax.f32 %v717_v30, 0.0  ;;  %v559_v15 = vadd.f32 %v4080_v2, %v558_v6  ;;  %v1733_v29 = vpop.f32.mrf.mxu1 }
 0x234   :  { %v1734_v61 = vadd.f32 %v4247_v27, %v1733_v29  ;;  %v2037_v18 = vmax.f32 %v1892_v63, 0.0  ;;  %v714_v29 = vadd.f32 %v4080_v2, %v4360_v49 }
 0x235   :  { %v930_v33 = vmax.f32 %v858_v28, %v862_v3  ;;  %v799_v0 = vmax.f32 %v559_v15, 0.0 }
 0x236   :  { %v1974_v41 = vmax.f32 %v1734_v61, 0.0  ;;  %v2105_v30 = vmax.f32 %v2033_v45, %v2037_v18  ;;  %v861_v52 = vmax.f32 %v714_v29, 0.0 }
 0x237   :  { %995 = vst.msk [vmem:[#allocation2 + $0x1c0] sm:$0xff] %vm938_vm3, %v930_v33  ;;  %v899_v17 = vmax.f32 %v795_v19, %v799_v0 }
 0x238   :  { %v718_v50 = vpop.f32.mrf.mxu2  ;;  %v2074_v4 = vmax.f32 %v1970_v56, %v1974_v41 }
 0x239   :  { %964 = vst.msk [vmem:[#allocation2 + $0xc8] sm:$0xff] %vm938_vm3, %v899_v17  ;;  %v719_v24 = vadd.f32 %v4080_v2, %v718_v50  ;;  %v1893_v9 = vpop.f32.mrf.mxu3 }
 0x23a   :  { %v561_v39 = vpop.f32.mrf.mxu0  ;;  %v1894_v21 = vadd.f32 %v4247_v27, %v1893_v9  ;;  %v1727_v9 = vadd.f32 %v4247_v27, %v4346_v46 }
 0x23b   :  { %v863_v60 = vmax.f32 %v719_v24, 0.0  ;;  %v562_v35 = vadd.f32 %v4080_v2, %v561_v39  ;;  %v1736_v55 = vpop.f32.mrf.mxu1 }
 0x23c   :  { %v2038_v53 = vmax.f32 %v1894_v21, 0.0  ;;  %v1737_v17 = vadd.f32 %v4247_v27, %v1736_v55  ;;  %v1971_v41 = vmax.f32 %v1727_v9, 0.0 }
 0x23d   :  { %v931_v40 = vmax.f32 %v859_v58, %v863_v60  ;;  %v800_v37 = vmax.f32 %v562_v35, 0.0  ;;  %v1729_v58 = vadd.f32 %v4247_v27, %v4358_v43 }
 0x23e   :  { %v2106_v3 = vmax.f32 %v2034_v42, %v2038_v53  ;;  %v1975_v44 = vmax.f32 %v1737_v17, 0.0 }
 0x23f   :  { %996 = vst.msk [vmem:[#allocation2 + $0x1c8] sm:$0xff] %vm938_vm3, %v931_v40  ;;  %v900_v62 = vmax.f32 %v796_v26, %v800_v37  ;;  %v1972_v43 = vmax.f32 %v1729_v58, 0.0  ;;  %v1889_v37 = vadd.f32 %v4247_v27, %v4364_v36 }
 0x240   :  { %v1027_v11 = vld [vmem:[#allocation2 + $0xc0] ss:$2 sm:$0xff]  ;;  %v1091_v32 = vld [vmem:[#allocation2 + $0xc1] ss:$2 sm:$0xff]  ;;  %v721_v22 = vpop.f32.mrf.mxu2  ;;  %v2075_v21 = vmax.f32 %v1971_v41, %v1975_v44 }
 0x241   :  { %v1142_v47 = vmax.f32 %v1027_v11, %v1091_v32  ;;  %2137 = vst.msk [vmem:[#allocation2 + $0xc0] sm:$0xff] %vm938_vm3, %v2073_v34  ;;  %v722_v12 = vadd.f32 %v4080_v2, %v721_v22  ;;  %v1896_v5 = vpop.f32.mrf.mxu3  ;;  %v2036_v22 = vmax.f32 %v1889_v37, 0.0 }
 0x242   :  { %2138 = vst.msk [vmem:[#allocation2 + $0xc8] sm:$0xff] %vm938_vm3, %v2074_v4  ;;  %v563_v38 = vpop.f32.mrf.mxu0  ;;  %v1897_v60 = vadd.f32 %v4247_v27, %v1896_v5  ;;  %v2035_v4 = vmax.f32 %v1887_v48, 0.0 }
 0x243   :  { %1174 = vst.msk [vmem:[%s4563_s3 + $0x60] sm:$0xff] %vm938_vm3, %v1142_v47  ;;  %v864_v16 = vmax.f32 %v722_v12, 0.0  ;;  %v564_v54 = vadd.f32 %v4080_v2, %v563_v38  ;;  %v1738_v59 = vpop.f32.mrf.mxu1 }
 0x244   :  { %965 = vst.msk [vmem:[#allocation2 + $0xd0] sm:$0xff] %vm938_vm3, %v900_v62  ;;  %v1739_v7 = vadd.f32 %v4247_v27, %v1738_v59  ;;  %v2039_v1 = vmax.f32 %v1897_v60, 0.0 }
 0x245   :  { %v801_v10 = vmax.f32 %v564_v54, 0.0  ;;  %v932_v15 = vmax.f32 %v860_v57, %v864_v16 }
 0x246   :  { %v1059_v6 = vld [vmem:[#allocation2 + $0x1c0] ss:$2 sm:$0xff]  ;;  %v1123_v28 = vld [vmem:[#allocation2 + $0x1c1] ss:$2 sm:$0xff]  ;;  %v1976_v55 = vmax.f32 %v1739_v7, 0.0  ;;  %v2107_v31 = vmax.f32 %v2035_v4, %v2039_v1 }
 0x247   :  { %v1158_v19 = vmax.f32 %v1059_v6, %v1123_v28  ;;  %2169 = vst.msk [vmem:[#allocation2 + $0x1c0] sm:$0xff] %vm938_vm3, %v2105_v30  ;;  %v901_v33 = vmax.f32 %v797_v51, %v801_v10 }
 0x248   :  { %2170 = vst.msk [vmem:[#allocation2 + $0x1c8] sm:$0xff] %vm938_vm3, %v2106_v3  ;;  %v723_v0 = vpop.f32.mrf.mxu2  ;;  %v2076_v14 = vmax.f32 %v1972_v43, %v1976_v55 }
 0x249   :  { %v2189_v20 = vld [vmem:[#allocation2 + $0xc0] ss:$2 sm:$0xff]  ;;  %v2221_v23 = vld [vmem:[#allocation2 + $0xc1] ss:$2 sm:$0xff]  ;;  %1190 = vst.msk [vmem:[%s4563_s3 + $0xe0] sm:$0xff] %vm938_vm3, %v1158_v19  ;;  %v724_v61 = vadd.f32 %v4080_v2, %v723_v0  ;;  %v1898_v50 = vpop.f32.mrf.mxu3 }
 0x24a   :  { %v2253_v49 = vmax.f32 %v2189_v20, %v2221_v23  ;;  %997 = vst.msk [vmem:[#allocation2 + $0x1d0] sm:$0xff] %vm938_vm3, %v932_v15  ;;  %v4413_v24 = vpop.f32.mrf.mxu0  ;;  %v1899_v46 = vadd.f32 %v4247_v27, %v1898_v50 }
 0x24b   :  { %966 = vst.msk [vmem:[#allocation2 + $0xd8] sm:$0xff] %vm938_vm3, %v901_v33  ;;  %v865_v25 = vmax.f32 %v724_v61, 0.0  ;;  %v4418_v39 = vpop.f32.mrf.mxu1  ;;  %v567_v29 = vadd.f32 %v4080_v2, %v4413_v24 }
 0x24c   :  { %2578 = vst.msk [vmem:[%s4563_s3 + $0x160] sm:$0xff] %vm938_vm3, %v2253_v49  ;;  %v2040_v11 = vmax.f32 %v1899_v46, 0.0  ;;  %v1742_v37 = vadd.f32 %v4247_v27, %v4418_v39 }
 0x24d   :  { %v933_v35 = vmax.f32 %v861_v52, %v865_v25  ;;  %v802_v23 = vmax.f32 %v567_v29, 0.0 }
 0x24e   :  { %v2108_v12 = vmax.f32 %v2036_v22, %v2040_v11 }
 0x24f   :  { %v2205_v63 = vld [vmem:[#allocation2 + $0x1c0] ss:$2 sm:$0xff]  ;;  %v2237_v40 = vld [vmem:[#allocation2 + $0x1c1] ss:$2 sm:$0xff]  ;;  %998 = vst.msk [vmem:[#allocation2 + $0x1d8] sm:$0xff] %vm938_vm3, %v933_v35 }
 0x250   :  { %v2269_v56 = vmax.f32 %v2205_v63, %v2237_v40  ;;  %v726_v26 = vpop.f32.mrf.mxu2 }
 0x251   :  { %v4433_v34 = vpop.f32.mrf.mxu3  ;;  %v727_v61 = vadd.f32 %v4080_v2, %v726_v26 }
 0x252   :  { %2594 = vst.msk [vmem:[%s4563_s3 + $0x1e0] sm:$0xff] %vm938_vm3, %v2269_v56  ;;  %v1029_v8 = vld [vmem:[#allocation2 + $0xd0] ss:$2 sm:$0xff]  ;;  %v1093_v13 = vld [vmem:[#allocation2 + $0xd1] ss:$2 sm:$0xff]  ;;  %v568_v32 = vpop.f32.mrf.mxu0 }
 0x253   :  { %v1143_v62 = vmax.f32 %v1029_v8, %v1093_v13  ;;  %2139 = vst.msk [vmem:[#allocation2 + $0xd0] sm:$0xff] %vm938_vm3, %v2075_v21  ;;  %v1743_v36 = vpop.f32.mrf.mxu1  ;;  %v569_v7 = vadd.f32 %v4080_v2, %v568_v32  ;;  %v866_v25 = vmax.f32 %v727_v61, 0.0 }
 0x254   :  { %2140 = vst.msk [vmem:[#allocation2 + $0xd8] sm:$0xff] %vm938_vm3, %v2076_v14  ;;  %v1744_v21 = vadd.f32 %v4247_v27, %v1743_v36  ;;  %v1902_v36 = vadd.f32 %v4247_v27, %v4433_v34 }
 0x255   :  { %1175 = vst.msk [vmem:[%s4563_s3 + $0x68] sm:$0xff] %vm938_vm3, %v1143_v62  ;;  %v803_v35 = vmax.f32 %v569_v7, 0.0  ;;  %v1977_v62 = vmax.f32 %v1742_v37, 0.0 }
 0x256   :  { %v1061_v18 = vld [vmem:[#allocation2 + $0x1d0] ss:$2 sm:$0xff]  ;;  %v1125_v47 = vld [vmem:[#allocation2 + $0x1d1] ss:$2 sm:$0xff] }
 0x257   :  { %v1159_v5 = vmax.f32 %v1061_v18, %v1125_v47  ;;  %2171 = vst.msk [vmem:[#allocation2 + $0x1d0] sm:$0xff] %vm938_vm3, %v2107_v31  ;;  %v1978_v47 = vmax.f32 %v1744_v21, 0.0 }
 0x258   :  { %2172 = vst.msk [vmem:[#allocation2 + $0x1d8] sm:$0xff] %vm938_vm3, %v2108_v12  ;;  %v728_v53 = vpop.f32.mrf.mxu2 }
 0x259   :  { %1191 = vst.msk [vmem:[%s4563_s3 + $0xe8] sm:$0xff] %vm938_vm3, %v1159_v5  ;;  %v4451_v38 = vpop.f32.mrf.mxu3  ;;  %v729_v41 = vadd.f32 %v4080_v2, %v728_v53 }
 0x25a   :  { %v571_v45 = vpop.f32.mrf.mxu0 }
 0x25b   :  { %v2190_v16 = vld [vmem:[#allocation2 + $0xd0] ss:$2 sm:$0xff]  ;;  %v2222_v54 = vld [vmem:[#allocation2 + $0xd1] ss:$2 sm:$0xff]  ;;  %v4453_v59 = vpop.f32.mrf.mxu1  ;;  %v572_v1 = vadd.f32 %v4080_v2, %v571_v45  ;;  %v867_v13 = vmax.f32 %v729_v41, 0.0  ;;  %v1904_v45 = vadd.f32 %v4247_v27, %v4451_v38 }
 0x25c   :  { %v2254_v42 = vmax.f32 %v2190_v16, %v2222_v54  ;;  %v1747_v37 = vadd.f32 %v4247_v27, %v4453_v59 }
 0x25d   :  { %v804_v12 = vmax.f32 %v572_v1, 0.0 }
 0x25e   :  { %2579 = vst.msk [vmem:[%s4563_s3 + $0x168] sm:$0xff] %vm938_vm3, %v2254_v42 }
 0x25f   :  { %v2206_v57 = vld [vmem:[#allocation2 + $0x1d0] ss:$2 sm:$0xff]  ;;  %v2238_v51 = vld [vmem:[#allocation2 + $0x1d1] ss:$2 sm:$0xff] }
 0x260   :  { %v2270_v30 = vmax.f32 %v2206_v57, %v2238_v51  ;;  %v731_v10 = vpop.f32.mrf.mxu2 }
 0x261   :  { %v4459_v6 = vpop.f32.mrf.mxu3  ;;  %v732_v16 = vadd.f32 %v4080_v2, %v731_v10 }
 0x262   :  { %2595 = vst.msk [vmem:[%s4563_s3 + $0x1e8] sm:$0xff] %vm938_vm3, %v2270_v30  ;;  %v573_v28 = vpop.f32.mrf.mxu0 }
 0x263   :  { %v4465_v3 = vpop.f32.mrf.mxu1  ;;  %v574_v29 = vadd.f32 %v4080_v2, %v573_v28  ;;  %v2609_v28 = vld [vmem:[%s4562_s2] ss:$0 sm:$0xff] }
 0x264   :  { %v1749_v1 = vadd.f32 %v4247_v27, %v4465_v3 }
 0x266   :  { %v1980_v3 = vmax.f32 %v1749_v1, 0.0 }
 0x268   :  { %v4467_v15 = vpop.f32.mrf.mxu2 }
 0x269   :  { %v4471_v19 = vpop.f32.mrf.mxu3 }
 0x26a   :  { %v576_v33 = vpop.f32.mrf.mxu0 }
 0x26b   :  { %v577_v0 = vadd.f32 %v4080_v2, %v576_v33  ;;  %v1751_v20 = vpop.f32.mrf.mxu1 }
 0x26c   :  { %v1752_v48 = vadd.f32 %v4247_v27, %v1751_v20 }
 0x26d   :  { %v806_v17 = vmax.f32 %v577_v0, 0.0 }
 0x26e   :  { %v1981_v14 = vmax.f32 %v1752_v48, 0.0 }
 0x26f   :  { %v902_v50 = vmax.f32 %v802_v23, %v806_v17  ;;  %v2041_v17 = vmax.f32 %v1902_v36, 0.0 }
 0x270   :  { %v736_v49 = vpop.f32.mrf.mxu2  ;;  %v2077_v53 = vmax.f32 %v1977_v62, %v1981_v14 }
 0x271   :  { %967 = vst.msk [vmem:[#allocation2 + $0xe0] sm:$0xff] %vm938_vm3, %v902_v50  ;;  %v737_v9 = vadd.f32 %v4080_v2, %v736_v49  ;;  %v1911_v52 = vpop.f32.mrf.mxu3  ;;  %v2042_v50 = vmax.f32 %v1904_v45, 0.0  ;;  %v868_v49 = vmax.f32 %v732_v16, 0.0 }
 0x272   :  { %v578_v24 = vpop.f32.mrf.mxu0  ;;  %v1912_v22 = vadd.f32 %v4247_v27, %v1911_v52 }
 0x273   :  { %v870_v58 = vmax.f32 %v737_v9, 0.0  ;;  %v579_v44 = vadd.f32 %v4080_v2, %v578_v24  ;;  %v1753_v60 = vpop.f32.mrf.mxu1 }
 0x274   :  { %v1754_v40 = vadd.f32 %v4247_v27, %v1753_v60  ;;  %v2045_v33 = vmax.f32 %v1912_v22, 0.0 }
 0x275   :  { %v934_v55 = vmax.f32 %v866_v25, %v870_v58  ;;  %v807_v46 = vmax.f32 %v579_v44, 0.0  ;;  %v734_v44 = vadd.f32 %v2609_v28, %v4467_v15 }
 0x276   :  { %v1982_v4 = vmax.f32 %v1754_v40, 0.0  ;;  %v2109_v7 = vmax.f32 %v2041_v17, %v2045_v33 }
 0x277   :  { %999 = vst.msk [vmem:[#allocation2 + $0x1e0] sm:$0xff] %vm938_vm3, %v934_v55  ;;  %v903_v63 = vmax.f32 %v803_v35, %v807_v46 }
 0x278   :  { %v738_v43 = vpop.f32.mrf.mxu2  ;;  %v2078_v57 = vmax.f32 %v1978_v47, %v1982_v4  ;;  %v1907_v4 = vadd.f32 %v4247_v27, %v4459_v6 }
 0x279   :  { %968 = vst.msk [vmem:[#allocation2 + $0xe8] sm:$0xff] %vm938_vm3, %v903_v63  ;;  %v739_v56 = vadd.f32 %v4080_v2, %v738_v43  ;;  %v1913_v26 = vpop.f32.mrf.mxu3 }
 0x27a   :  { %v581_v8 = vpop.f32.mrf.mxu0  ;;  %v1914_v5 = vadd.f32 %v4247_v27, %v1913_v26 }
 0x27b   :  { %v871_v11 = vmax.f32 %v739_v56, 0.0  ;;  %v582_v32 = vadd.f32 %v4080_v2, %v581_v8  ;;  %v1756_v18 = vpop.f32.mrf.mxu1  ;;  %v869_v56 = vmax.f32 %v734_v44, 0.0 }
 0x27c   :  { %v2046_v23 = vmax.f32 %v1914_v5, 0.0  ;;  %v1757_v63 = vadd.f32 %v4247_v27, %v1756_v18 }
 0x27d   :  { %v935_v39 = vmax.f32 %v867_v13, %v871_v11  ;;  %v808_v31 = vmax.f32 %v582_v32, 0.0  ;;  %v1979_v32 = vmax.f32 %v1747_v37, 0.0 }
 0x27e   :  { %v2110_v25 = vmax.f32 %v2042_v50, %v2046_v23  ;;  %v1983_v8 = vmax.f32 %v1757_v63, 0.0 }
 0x27f   :  { %1000 = vst.msk [vmem:[#allocation2 + $0x1e8] sm:$0xff] %vm938_vm3, %v935_v39  ;;  %v904_v51 = vmax.f32 %v804_v12, %v808_v31  ;;  %v1909_v39 = vadd.f32 %v4247_v27, %v4471_v19 }
 0x280   :  { %v1031_v54 = vld [vmem:[#allocation2 + $0xe0] ss:$2 sm:$0xff]  ;;  %v1095_v42 = vld [vmem:[#allocation2 + $0xe1] ss:$2 sm:$0xff]  ;;  %v741_v30 = vpop.f32.mrf.mxu2  ;;  %v2079_v18 = vmax.f32 %v1979_v32, %v1983_v8 }
 0x281   :  { %v1144_v0 = vmax.f32 %v1031_v54, %v1095_v42  ;;  %2141 = vst.msk [vmem:[#allocation2 + $0xe0] sm:$0xff] %vm938_vm3, %v2077_v53  ;;  %v742_v34 = vadd.f32 %v4080_v2, %v741_v30  ;;  %v1916_v20 = vpop.f32.mrf.mxu3  ;;  %v805_v2 = vmax.f32 %v574_v29, 0.0  ;;  %v2043_v53 = vmax.f32 %v1907_v4, 0.0 }
 0x282   :  { %2142 = vst.msk [vmem:[#allocation2 + $0xe8] sm:$0xff] %vm938_vm3, %v2078_v57  ;;  %v583_v38 = vpop.f32.mrf.mxu0  ;;  %v1917_v13 = vadd.f32 %v4247_v27, %v1916_v20  ;;  %v2044_v16 = vmax.f32 %v1909_v39, 0.0 }
 0x283   :  { %1176 = vst.msk [vmem:[%s4563_s3 + $0x70] sm:$0xff] %vm938_vm3, %v1144_v0  ;;  %v872_v10 = vmax.f32 %v742_v34, 0.0  ;;  %v584_v61 = vadd.f32 %v2609_v28, %v583_v38  ;;  %v1758_v55 = vpop.f32.mrf.mxu1 }
 0x284   :  { %969 = vst.msk [vmem:[#allocation2 + $0xf0] sm:$0xff] %vm938_vm3, %v904_v51  ;;  %v1759_v15 = vadd.f32 %v4247_v27, %v1758_v55  ;;  %v2047_v47 = vmax.f32 %v1917_v13, 0.0 }
 0x285   :  { %v809_v9 = vmax.f32 %v584_v61, 0.0  ;;  %v936_v58 = vmax.f32 %v868_v49, %v872_v10 }
 0x286   :  { %v1063_v52 = vld [vmem:[#allocation2 + $0x1e0] ss:$2 sm:$0xff]  ;;  %v1127_v24 = vld [vmem:[#allocation2 + $0x1e1] ss:$2 sm:$0xff]  ;;  %v1984_v11 = vmax.f32 %v1759_v15, 0.0 }
 0x287   :  { %v1160_v60 = vmax.f32 %v1063_v52, %v1127_v24  ;;  %2173 = vst.msk [vmem:[#allocation2 + $0x1e0] sm:$0xff] %vm938_vm3, %v2109_v7  ;;  %v905_v35 = vmax.f32 %v805_v2, %v809_v9 }
 0x288   :  { %2174 = vst.msk [vmem:[#allocation2 + $0x1e8] sm:$0xff] %vm938_vm3, %v2110_v25  ;;  %v743_v46 = vpop.f32.mrf.mxu2  ;;  %v2080_v36 = vmax.f32 %v1980_v3, %v1984_v11 }
 0x289   :  { %v2191_v41 = vld [vmem:[#allocation2 + $0xe0] ss:$2 sm:$0xff]  ;;  %v2223_v48 = vld [vmem:[#allocation2 + $0xe1] ss:$2 sm:$0xff]  ;;  %1192 = vst.msk [vmem:[%s4563_s3 + $0xf0] sm:$0xff] %vm938_vm3, %v1160_v60  ;;  %v744_v40 = vadd.f32 %v2609_v28, %v743_v46  ;;  %v1918_v21 = vpop.f32.mrf.mxu3 }
 0x28a   :  { %v2255_v43 = vmax.f32 %v2191_v41, %v2223_v48  ;;  %1001 = vst.msk [vmem:[#allocation2 + $0x1f0] sm:$0xff] %vm938_vm3, %v936_v58  ;;  %v1919_v59 = vadd.f32 %v4247_v27, %v1918_v21  ;;  %v2111_v27 = vmax.f32 %v2043_v53, %v2047_v47 }
 0x28b   :  { %970 = vst.msk [vmem:[#allocation2 + $0xf8] sm:$0xff] %vm938_vm3, %v905_v35  ;;  %v873_v26 = vmax.f32 %v744_v40, 0.0 }
 0x28c   :  { %2580 = vst.msk [vmem:[%s4563_s3 + $0x170] sm:$0xff] %vm938_vm3, %v2255_v43  ;;  %v2048_v6 = vmax.f32 %v1919_v59, 0.0 }
 0x28d   :  { %v937_v14 = vmax.f32 %v869_v56, %v873_v26 }
 0x28e   :  { %v2112_v42 = vmax.f32 %v2044_v16, %v2048_v6 }
 0x28f   :  { %v2207_v62 = vld [vmem:[#allocation2 + $0x1e0] ss:$2 sm:$0xff]  ;;  %v2239_v22 = vld [vmem:[#allocation2 + $0x1e1] ss:$2 sm:$0xff]  ;;  %1002 = vst.msk [vmem:[#allocation2 + $0x1f8] sm:$0xff] %vm938_vm3, %v937_v14 }
 0x290   :  { %v2271_v31 = vmax.f32 %v2207_v62, %v2239_v22 }
 0x292   :  { %2596 = vst.msk [vmem:[%s4563_s3 + $0x1f0] sm:$0xff] %vm938_vm3, %v2271_v31  ;;  %v1033_v12 = vld [vmem:[#allocation2 + $0xf0] ss:$2 sm:$0xff]  ;;  %v1097_v5 = vld [vmem:[#allocation2 + $0xf1] ss:$2 sm:$0xff] }
 0x293   :  { %v1145_v45 = vmax.f32 %v1033_v12, %v1097_v5  ;;  %2143 = vst.msk [vmem:[#allocation2 + $0xf0] sm:$0xff] %vm938_vm3, %v2079_v18 }
 0x294   :  { %2144 = vst.msk [vmem:[#allocation2 + $0xf8] sm:$0xff] %vm938_vm3, %v2080_v36 }
 0x295   :  { %1177 = vst.msk [vmem:[%s4563_s3 + $0x78] sm:$0xff] %vm938_vm3, %v1145_v45 }
 0x296   :  { %v1065_v19 = vld [vmem:[#allocation2 + $0x1f0] ss:$2 sm:$0xff]  ;;  %v1129_v54 = vld [vmem:[#allocation2 + $0x1f1] ss:$2 sm:$0xff] }
 0x297   :  { %v1161_v57 = vmax.f32 %v1065_v19, %v1129_v54  ;;  %2175 = vst.msk [vmem:[#allocation2 + $0x1f0] sm:$0xff] %vm938_vm3, %v2111_v27 }
 0x298   :  { %2176 = vst.msk [vmem:[#allocation2 + $0x1f8] sm:$0xff] %vm938_vm3, %v2112_v42 }
 0x299   :  { %1193 = vst.msk [vmem:[%s4563_s3 + $0xf8] sm:$0xff] %vm938_vm3, %v1161_v57 }
 0x29b   :  { %v2192_v51 = vld [vmem:[#allocation2 + $0xf0] ss:$2 sm:$0xff]  ;;  %v2224_v30 = vld [vmem:[#allocation2 + $0xf1] ss:$2 sm:$0xff] }
 0x29c   :  { %v2256_v29 = vmax.f32 %v2192_v51, %v2224_v30 }
 0x29e   :  { %2581 = vst.msk [vmem:[%s4563_s3 + $0x178] sm:$0xff] %vm938_vm3, %v2256_v29 }
 0x29f   :  { %v2208_v33 = vld [vmem:[#allocation2 + $0x1f0] ss:$2 sm:$0xff]  ;;  %v2240_v0 = vld [vmem:[#allocation2 + $0x1f1] ss:$2 sm:$0xff] }
 0x2a0   :  { %v2272_v34 = vmax.f32 %v2208_v33, %v2240_v0 }
 0x2a2   :  { %2597 = vst.msk [vmem:[%s4563_s3 + $0x1f8] sm:$0xff] %vm938_vm3, %v2272_v34 }

// kernel: classifier_forward.7
= control target key start
LH: loop header
LB: loop body
LE: loop exit
PB: predicated region body
PF: predicated region fallthrough
CT: control target
= control target key end

     0   :  { %s6138_s0 = inlined_call_operand.vmem [shape: f32[2,2048], index: 0, kind: input, shape index: {}]   ;;  %s6139_s1 = inlined_call_operand.vmem [shape: f32[2048,512], index: 1, kind: input, shape index: {}]   ;;  %s6140_s2 = inlined_call_operand.vmem [shape: f32[1,512], index: 2, kind: input, shape index: {}]   ;;  %s6141_s3 = inlined_call_operand.vmem [shape: f32[512,5], index: 3, kind: input, shape index: {}]   ;;  %s6142_s4 = inlined_call_operand.vmem [shape: f32[1,5], index: 4, kind: input, shape index: {}]   ;;  %s6143_s5 = inlined_call_operand.hbm [shape: f32[2,5], index: 5, kind: output, shape index: {}]  }
   0x1   :  { %v138_v0 = vld [vmem:[%s6139_s1 + $0x1c0] sm:$0xff] }
   0x2   :  { %v142_v1 = vld [vmem:[%s6139_s1 + $0x1e0] sm:$0xff] }
   0x3   :  { %v202_v2 = vld [vmem:[%s6139_s1 + $0x3c0] sm:$0xff]  ;;  %v1134_v3 = vpack.c.bf16 %v142_v1, %v138_v0 }
   0x4   :  { %v206_v4 = vld [vmem:[%s6139_s1 + $0x3e0] sm:$0xff] }
   0x5   :  { %v266_v5 = vld [vmem:[%s6139_s1 + $0x5c0] sm:$0xff]  ;;  %v1166_v7 = vpack.c.bf16 %v206_v4, %v202_v2  ;;  %1628 = vmatpush.bf16.msra.mxu0 %v1134_v3 }
   0x6   :  { %v270_v6 = vld [vmem:[%s6139_s1 + $0x5e0] sm:$0xff] }
   0x7   :  { %v1198_v8 = vpack.c.bf16 %v270_v6, %v266_v5  ;;  %v330_v9 = vld [vmem:[%s6139_s1 + $0x7c0] sm:$0xff]  ;;  %1641 = vmatpush.bf16.msra.mxu1 %v1166_v7 }
   0x8   :  { %v334_v10 = vld [vmem:[%s6139_s1 + $0x7e0] sm:$0xff] }
   0x9   :  { %v130_v11 = vld [vmem:[%s6139_s1 + $0x180] sm:$0xff]  ;;  %v1230_v12 = vpack.c.bf16 %v334_v10, %v330_v9  ;;  %1654 = vmatpush.bf16.msra.mxu2 %v1198_v8 }
   0xa   :  { %v134_v13 = vld [vmem:[%s6139_s1 + $0x1a0] sm:$0xff] }
   0xb   :  { %v194_v14 = vld [vmem:[%s6139_s1 + $0x380] sm:$0xff]  ;;  %v1130_v16 = vpack.c.bf16 %v134_v13, %v130_v11  ;;  %1667 = vmatpush.bf16.msra.mxu3 %v1230_v12 }
   0xc   :  { %v198_v15 = vld [vmem:[%s6139_s1 + $0x3a0] sm:$0xff] }
   0xd   :  { %v1162_v17 = vpack.c.bf16 %v198_v15, %v194_v14  ;;  %v258_v18 = vld [vmem:[%s6139_s1 + $0x580] sm:$0xff]  ;;  %1629 = vmatpush.bf16.msra.mxu0 %v1130_v16 }
   0xe   :  { %v262_v19 = vld [vmem:[%s6139_s1 + $0x5a0] sm:$0xff] }
   0xf   :  { %v322_v20 = vld [vmem:[%s6139_s1 + $0x780] sm:$0xff]  ;;  %v1194_v21 = vpack.c.bf16 %v262_v19, %v258_v18  ;;  %1642 = vmatpush.bf16.msra.mxu1 %v1162_v17 }
  0x10   :  { %v326_v22 = vld [vmem:[%s6139_s1 + $0x7a0] sm:$0xff] }
  0x11   :  { %v122_v23 = vld [vmem:[%s6139_s1 + $0x140] sm:$0xff]  ;;  %v1226_v25 = vpack.c.bf16 %v326_v22, %v322_v20  ;;  %1655 = vmatpush.bf16.msra.mxu2 %v1194_v21 }
  0x12   :  { %v126_v24 = vld [vmem:[%s6139_s1 + $0x160] sm:$0xff] }
  0x13   :  { %v186_v26 = vld [vmem:[%s6139_s1 + $0x340] sm:$0xff]  ;;  %v1126_v29 = vpack.c.bf16 %v126_v24, %v122_v23  ;;  %1668 = vmatpush.bf16.msra.mxu3 %v1226_v25 }
  0x14   :  { %v190_v27 = vld [vmem:[%s6139_s1 + $0x360] sm:$0xff] }
  0x15   :  { %v250_v28 = vld [vmem:[%s6139_s1 + $0x540] sm:$0xff]  ;;  %v1158_v33 = vpack.c.bf16 %v190_v27, %v186_v26  ;;  %1630 = vmatpush.bf16.msra.mxu0 %v1126_v29 }
  0x16   :  { %v254_v30 = vld [vmem:[%s6139_s1 + $0x560] sm:$0xff] }
  0x17   :  { %v314_v31 = vld [vmem:[%s6139_s1 + $0x740] sm:$0xff]  ;;  %v1190_v34 = vpack.c.bf16 %v254_v30, %v250_v28  ;;  %1643 = vmatpush.bf16.msra.mxu1 %v1158_v33 }
  0x18   :  { %v318_v32 = vld [vmem:[%s6139_s1 + $0x760] sm:$0xff] }
  0x19   :  { %v114_v35 = vld [vmem:[%s6139_s1 + $0x100] sm:$0xff]  ;;  %v1222_v38 = vpack.c.bf16 %v318_v32, %v314_v31  ;;  %1656 = vmatpush.bf16.msra.mxu2 %v1190_v34 }
  0x1a   :  { %v118_v36 = vld [vmem:[%s6139_s1 + $0x120] sm:$0xff] }
  0x1b   :  { %v178_v37 = vld [vmem:[%s6139_s1 + $0x300] sm:$0xff]  ;;  %v1122_v44 = vpack.c.bf16 %v118_v36, %v114_v35  ;;  %1669 = vmatpush.bf16.msra.mxu3 %v1222_v38 }
  0x1c   :  { %v182_v39 = vld [vmem:[%s6139_s1 + $0x320] sm:$0xff] }
  0x1d   :  { %v242_v40 = vld [vmem:[%s6139_s1 + $0x500] sm:$0xff]  ;;  %v1154_v45 = vpack.c.bf16 %v182_v39, %v178_v37  ;;  %1631 = vmatpush.bf16.msra.mxu0 %v1122_v44 }
  0x1e   :  { %v246_v41 = vld [vmem:[%s6139_s1 + $0x520] sm:$0xff] }
  0x1f   :  { %v306_v42 = vld [vmem:[%s6139_s1 + $0x700] sm:$0xff]  ;;  %v1186_v46 = vpack.c.bf16 %v246_v41, %v242_v40  ;;  %1644 = vmatpush.bf16.msra.mxu1 %v1154_v45 }
  0x20   :  { %v310_v43 = vld [vmem:[%s6139_s1 + $0x720] sm:$0xff] }
  0x21   :  { %v106_v47 = vld [vmem:[%s6139_s1 + $0xc0] sm:$0xff]  ;;  %v1218_v50 = vpack.c.bf16 %v310_v43, %v306_v42  ;;  %1657 = vmatpush.bf16.msra.mxu2 %v1186_v46 }
  0x22   :  { %v110_v48 = vld [vmem:[%s6139_s1 + $0xe0] sm:$0xff] }
  0x23   :  { %v170_v49 = vld [vmem:[%s6139_s1 + $0x2c0] sm:$0xff]  ;;  %v1118_v56 = vpack.c.bf16 %v110_v48, %v106_v47  ;;  %1670 = vmatpush.bf16.msra.mxu3 %v1218_v50 }
  0x24   :  { %v174_v51 = vld [vmem:[%s6139_s1 + $0x2e0] sm:$0xff] }
  0x25   :  { %v234_v52 = vld [vmem:[%s6139_s1 + $0x4c0] sm:$0xff]  ;;  %v1150_v57 = vpack.c.bf16 %v174_v51, %v170_v49  ;;  %1632 = vmatpush.bf16.msra.mxu0 %v1118_v56 }
  0x26   :  { %v238_v53 = vld [vmem:[%s6139_s1 + $0x4e0] sm:$0xff] }
  0x27   :  { %v298_v54 = vld [vmem:[%s6139_s1 + $0x6c0] sm:$0xff]  ;;  %v1182_v58 = vpack.c.bf16 %v238_v53, %v234_v52  ;;  %1645 = vmatpush.bf16.msra.mxu1 %v1150_v57 }
  0x28   :  { %v302_v55 = vld [vmem:[%s6139_s1 + $0x6e0] sm:$0xff] }
  0x29   :  { %v98_v59 = vld [vmem:[%s6139_s1 + $0x80] sm:$0xff]  ;;  %v1214_v62 = vpack.c.bf16 %v302_v55, %v298_v54  ;;  %1658 = vmatpush.bf16.msra.mxu2 %v1182_v58 }
  0x2a   :  { %v102_v60 = vld [vmem:[%s6139_s1 + $0xa0] sm:$0xff] }
  0x2b   :  { %v162_v61 = vld [vmem:[%s6139_s1 + $0x280] sm:$0xff]  ;;  %v1114_v4 = vpack.c.bf16 %v102_v60, %v98_v59  ;;  %1671 = vmatpush.bf16.msra.mxu3 %v1214_v62 }
  0x2c   :  { %v166_v63 = vld [vmem:[%s6139_s1 + $0x2a0] sm:$0xff] }
  0x2d   :  { %v226_v0 = vld [vmem:[%s6139_s1 + $0x480] sm:$0xff]  ;;  %v1146_v5 = vpack.c.bf16 %v166_v63, %v162_v61  ;;  %1633 = vmatpush.bf16.msra.mxu0 %v1114_v4 }
  0x2e   :  { %v230_v1 = vld [vmem:[%s6139_s1 + $0x4a0] sm:$0xff] }
  0x2f   :  { %v290_v2 = vld [vmem:[%s6139_s1 + $0x680] sm:$0xff]  ;;  %v1178_v6 = vpack.c.bf16 %v230_v1, %v226_v0  ;;  %1646 = vmatpush.bf16.msra.mxu1 %v1146_v5 }
  0x30   :  { %v294_v3 = vld [vmem:[%s6139_s1 + $0x6a0] sm:$0xff] }
  0x31   :  { %v90_v7 = vld [vmem:[%s6139_s1 + $0x40] sm:$0xff]  ;;  %v1210_v10 = vpack.c.bf16 %v294_v3, %v290_v2  ;;  %1659 = vmatpush.bf16.msra.mxu2 %v1178_v6 }
  0x32   :  { %v94_v8 = vld [vmem:[%s6139_s1 + $0x60] sm:$0xff] }
  0x33   :  { %v154_v9 = vld [vmem:[%s6139_s1 + $0x240] sm:$0xff]  ;;  %v1110_v16 = vpack.c.bf16 %v94_v8, %v90_v7  ;;  %1672 = vmatpush.bf16.msra.mxu3 %v1210_v10 }
  0x34   :  { %v158_v11 = vld [vmem:[%s6139_s1 + $0x260] sm:$0xff] }
  0x35   :  { %v218_v12 = vld [vmem:[%s6139_s1 + $0x440] sm:$0xff]  ;;  %v1142_v19 = vpack.c.bf16 %v158_v11, %v154_v9  ;;  %1634 = vmatpush.bf16.msra.mxu0 %v1110_v16 }
  0x36   :  { %v222_v13 = vld [vmem:[%s6139_s1 + $0x460] sm:$0xff] }
  0x37   :  { %v282_v14 = vld [vmem:[%s6139_s1 + $0x640] sm:$0xff]  ;;  %v1174_v20 = vpack.c.bf16 %v222_v13, %v218_v12  ;;  %1647 = vmatpush.bf16.msra.mxu1 %v1142_v19 }
  0x38   :  { %v286_v15 = vld [vmem:[%s6139_s1 + $0x660] sm:$0xff] }
  0x39   :  { %v82_v17 = vld [vmem:[%s6139_s1] sm:$0xff]  ;;  %v1206_v24 = vpack.c.bf16 %v286_v15, %v282_v14  ;;  %1660 = vmatpush.bf16.msra.mxu2 %v1174_v20 }
  0x3a   :  { %v86_v18 = vld [vmem:[%s6139_s1 + $0x20] sm:$0xff] }
  0x3b   :  { %v146_v21 = vld [vmem:[%s6139_s1 + $0x200] sm:$0xff]  ;;  %v1106_v31 = vpack.c.bf16 %v86_v18, %v82_v17  ;;  %1673 = vmatpush.bf16.msra.mxu3 %v1206_v24 }
  0x3c   :  { %v150_v22 = vld [vmem:[%s6139_s1 + $0x220] sm:$0xff] }
  0x3d   :  { %v210_v23 = vld [vmem:[%s6139_s1 + $0x400] sm:$0xff]  ;;  %v1138_v35 = vpack.c.bf16 %v150_v22, %v146_v21  ;;  %1635 = vmatpush.bf16.msra.mxu0 %v1106_v31 }
  0x3e   :  { %v214_v25 = vld [vmem:[%s6139_s1 + $0x420] sm:$0xff] }
  0x3f   :  { %v274_v26 = vld [vmem:[%s6139_s1 + $0x600] sm:$0xff]  ;;  %v1170_v36 = vpack.c.bf16 %v214_v25, %v210_v23  ;;  %1648 = vmatpush.bf16.msra.mxu1 %v1138_v35 }
  0x40   :  { %v278_v27 = vld [vmem:[%s6139_s1 + $0x620] sm:$0xff] }
  0x41   :  { %v394_v28 = vld [vmem:[%s6139_s1 + $0x9c0] sm:$0xff]  ;;  %v1202_v39 = vpack.c.bf16 %v278_v27, %v274_v26  ;;  %1661 = vmatpush.bf16.msra.mxu2 %v1170_v36  ;;  %v23_v27 = vld [vmem:[%s6138_s0 + $0x10] sm:$0xff] }
  0x42   :  { %v398_v29 = vld [vmem:[%s6139_s1 + $0x9e0] sm:$0xff] }
  0x43   :  { %v458_v30 = vld [vmem:[%s6139_s1 + $0xbc0] sm:$0xff]  ;;  %v1262_v40 = vpack.c.bf16 %v398_v29, %v394_v28  ;;  %1674 = vmatpush.bf16.msra.mxu3 %v1202_v39 }
  0x44   :  { %v462_v32 = vld [vmem:[%s6139_s1 + $0xbe0] sm:$0xff] }
  0x45   :  { %v522_v33 = vld [vmem:[%s6139_s1 + $0xdc0] sm:$0xff]  ;;  %v1294_v41 = vpack.c.bf16 %v462_v32, %v458_v30  ;;  %1680 = vmatpush.bf16.msrb.mxu0 %v1262_v40 }
  0x46   :  { %v526_v34 = vld [vmem:[%s6139_s1 + $0xde0] sm:$0xff] }
  0x47   :  { %v586_v37 = vld [vmem:[%s6139_s1 + $0xfc0] sm:$0xff]  ;;  %v1326_v42 = vpack.c.bf16 %v526_v34, %v522_v33  ;;  %1693 = vmatpush.bf16.msrb.mxu1 %v1294_v41 }
  0x48   :  { %v590_v38 = vld [vmem:[%s6139_s1 + $0xfe0] sm:$0xff] }
  0x49   :  { %v386_v43 = vld [vmem:[%s6139_s1 + $0x980] sm:$0xff]  ;;  %v1358_v46 = vpack.c.bf16 %v590_v38, %v586_v37  ;;  %1706 = vmatpush.bf16.msrb.mxu2 %v1326_v42 }
  0x4a   :  { %v390_v44 = vld [vmem:[%s6139_s1 + $0x9a0] sm:$0xff] }
  0x4b   :  { %v450_v45 = vld [vmem:[%s6139_s1 + $0xb80] sm:$0xff]  ;;  %v1258_v52 = vpack.c.bf16 %v390_v44, %v386_v43  ;;  %1719 = vmatpush.bf16.msrb.mxu3 %v1358_v46 }
  0x4c   :  { %v454_v47 = vld [vmem:[%s6139_s1 + $0xba0] sm:$0xff] }
  0x4d   :  { %v514_v48 = vld [vmem:[%s6139_s1 + $0xd80] sm:$0xff]  ;;  %v1290_v53 = vpack.c.bf16 %v454_v47, %v450_v45  ;;  %1681 = vmatpush.bf16.msrb.mxu0 %v1258_v52 }
  0x4e   :  { %v518_v49 = vld [vmem:[%s6139_s1 + $0xda0] sm:$0xff] }
  0x4f   :  { %v578_v50 = vld [vmem:[%s6139_s1 + $0xf80] sm:$0xff]  ;;  %v1322_v54 = vpack.c.bf16 %v518_v49, %v514_v48  ;;  %1694 = vmatpush.bf16.msrb.mxu1 %v1290_v53  ;;  %v22_v53 = vld [vmem:[%s6138_s0 + $0x8] sm:$0xff] }
  0x50   :  { %v582_v51 = vld [vmem:[%s6139_s1 + $0xfa0] sm:$0xff]  ;;  %31 = vst [vmem:[#allocation1 + $0x20] ss:$4 sm:$0xff] %v22_v53 }
  0x51   :  { %v378_v55 = vld [vmem:[%s6139_s1 + $0x940] sm:$0xff]  ;;  %v1354_v58 = vpack.c.bf16 %v582_v51, %v578_v50  ;;  %1707 = vmatpush.bf16.msrb.mxu2 %v1322_v54 }
  0x52   :  { %v382_v56 = vld [vmem:[%s6139_s1 + $0x960] sm:$0xff] }
  0x53   :  { %v442_v57 = vld [vmem:[%s6139_s1 + $0xb40] sm:$0xff]  ;;  %v1254_v0 = vpack.c.bf16 %v382_v56, %v378_v55  ;;  %1720 = vmatpush.bf16.msrb.mxu3 %v1354_v58 }
  0x54   :  { %v446_v59 = vld [vmem:[%s6139_s1 + $0xb60] sm:$0xff] }
  0x55   :  { %v506_v60 = vld [vmem:[%s6139_s1 + $0xd40] sm:$0xff]  ;;  %v1286_v2 = vpack.c.bf16 %v446_v59, %v442_v57  ;;  %1682 = vmatpush.bf16.msrb.mxu0 %v1254_v0 }
  0x56   :  { %v510_v61 = vld [vmem:[%s6139_s1 + $0xd60] sm:$0xff] }
  0x57   :  { %v570_v62 = vld [vmem:[%s6139_s1 + $0xf40] sm:$0xff]  ;;  %v1318_v3 = vpack.c.bf16 %v510_v61, %v506_v60  ;;  %1695 = vmatpush.bf16.msrb.mxu1 %v1286_v2 }
  0x58   :  { %v574_v63 = vld [vmem:[%s6139_s1 + $0xf60] sm:$0xff] }
  0x59   :  { %v21_v1 = vld [vmem:[%s6138_s0] sm:$0xff]  ;;  %v1350_v7 = vpack.c.bf16 %v574_v63, %v570_v62  ;;  %1708 = vmatpush.bf16.msrb.mxu2 %v1318_v3 }
  0x5a   :  { %v370_v4 = vld [vmem:[%s6139_s1 + $0x900] sm:$0xff]  ;;  %29 = vst [vmem:[#allocation1] ss:$4 sm:$0xff] %v21_v1 }
  0x5b   :  { %v374_v5 = vld [vmem:[%s6139_s1 + $0x920] sm:$0xff]  ;;  %1721 = vmatpush.bf16.msrb.mxu3 %v1350_v7 }
  0x5c   :  { %v434_v6 = vld [vmem:[%s6139_s1 + $0xb00] sm:$0xff]  ;;  %v1250_v13 = vpack.c.bf16 %v374_v5, %v370_v4 }
  0x5d   :  { %v438_v8 = vld [vmem:[%s6139_s1 + $0xb20] sm:$0xff] }
  0x5e   :  { %v498_v9 = vld [vmem:[%s6139_s1 + $0xd00] sm:$0xff]  ;;  %v1282_v16 = vpack.c.bf16 %v438_v8, %v434_v6  ;;  %1683 = vmatpush.bf16.msrb.mxu0 %v1250_v13 }
  0x5f   :  { %v502_v10 = vld [vmem:[%s6139_s1 + $0xd20] sm:$0xff] }
  0x60   :  { %v562_v11 = vld [vmem:[%s6139_s1 + $0xf00] sm:$0xff]  ;;  %v1314_v17 = vpack.c.bf16 %v502_v10, %v498_v9  ;;  %1696 = vmatpush.bf16.msrb.mxu1 %v1282_v16  ;;  %v24_v16 = vld [vmem:[%s6138_s0 + $0x18] sm:$0xff] }
  0x61   :  { %v566_v12 = vld [vmem:[%s6139_s1 + $0xf20] sm:$0xff]  ;;  %v34_v31 = vld.sshfl [vmem:[#allocation1 + $0x10] sm:$0xff pattern:$0x73625140] }
  0x62   :  { %v362_v14 = vld [vmem:[%s6139_s1 + $0x8c0] sm:$0xff]  ;;  %v1346_v21 = vpack.c.bf16 %v566_v12, %v562_v11  ;;  %1709 = vmatpush.bf16.msrb.mxu2 %v1314_v17  ;;  %v3026_v34 = vpack.c.bf16 %v34_v31, %v34_v31  ;;  %v35_v36 = vld.sshfl [vmem:[#allocation1 + $0x18] sm:$0xff pattern:$0x73625140] }
  0x63   :  { %v366_v15 = vld [vmem:[%s6139_s1 + $0x8e0] sm:$0xff]  ;;  %v33_v37 = vld.sshfl [vmem:[#allocation1 + $0x8] sm:$0xff pattern:$0x73625140]  ;;  %v3039_v42 = vpack.c.bf16 %v35_v36, %v35_v36 }
  0x64   :  { %v426_v18 = vld [vmem:[%s6139_s1 + $0xac0] sm:$0xff]  ;;  %v1246_v28 = vpack.c.bf16 %v366_v15, %v362_v14  ;;  %1722 = vmatpush.bf16.msrb.mxu3 %v1346_v21  ;;  %v3041_v43 = vpack.c.bf16 %v33_v37, %v33_v37  ;;  %1662 = vmatmul.bf16.vlgmr.msra.gmra.mxu2 %v3026_v34 }
  0x65   :  { %v430_v19 = vld [vmem:[%s6139_s1 + $0xae0] sm:$0xff]  ;;  %1675 = vmatmul.bf16.vlgmr.msra.gmra.mxu3 %v3039_v42 }
  0x66   :  { %v490_v20 = vld [vmem:[%s6139_s1 + $0xcc0] sm:$0xff]  ;;  %v1278_v29 = vpack.c.bf16 %v430_v19, %v426_v18  ;;  %1684 = vmatpush.bf16.msrb.mxu0 %v1246_v28  ;;  %1649 = vmatmul.bf16.vlgmr.msra.gmra.mxu1 %v3041_v43  ;;  %v38_v19 = vld.sshfl [vmem:[#allocation1 + $0x30] sm:$0xff pattern:$0x73625140] }
  0x67   :  { %v494_v22 = vld [vmem:[%s6139_s1 + $0xce0] sm:$0xff]  ;;  %v3149_v36 = vpack.c.bf16 %v38_v19, %v38_v19 }
  0x68   :  { %v554_v23 = vld [vmem:[%s6139_s1 + $0xec0] sm:$0xff]  ;;  %v1310_v33 = vpack.c.bf16 %v494_v22, %v490_v20  ;;  %1697 = vmatpush.bf16.msrb.mxu1 %v1278_v29 }
  0x69   :  { %v558_v24 = vld [vmem:[%s6139_s1 + $0xee0] sm:$0xff] }
  0x6a   :  { %v354_v25 = vld [vmem:[%s6139_s1 + $0x880] sm:$0xff]  ;;  %v1342_v38 = vpack.c.bf16 %v558_v24, %v554_v23  ;;  %1710 = vmatpush.bf16.msrb.mxu2 %v1310_v33  ;;  %v39_v23 = vld.sshfl [vmem:[#allocation1 + $0x38] sm:$0xff pattern:$0x73625140] }
  0x6b   :  { %v358_v26 = vld [vmem:[%s6139_s1 + $0x8a0] sm:$0xff]  ;;  %v37_v24 = vld.sshfl [vmem:[#allocation1 + $0x28] sm:$0xff pattern:$0x73625140] }
  0x6c   :  { %v418_v30 = vld [vmem:[%s6139_s1 + $0xa80] sm:$0xff]  ;;  %v1242_v46 = vpack.c.bf16 %v358_v26, %v354_v25  ;;  %1723 = vmatpush.bf16.msrb.mxu3 %v1342_v38 }
  0x6d   :  { %v32_v32 = vld.sshfl [vmem:[#allocation1] sm:$0xff pattern:$0x73625140] }
  0x6e   :  { %v3028_v35 = vpack.c.bf16 %v32_v32, %v32_v32  ;;  %v422_v39 = vld [vmem:[%s6139_s1 + $0xaa0] sm:$0xff]  ;;  %40 = vst [vmem:[#allocation1] ss:$4 sm:$0xff] %v23_v27  ;;  %1685 = vmatpush.bf16.msrb.mxu0 %v1242_v46 }
  0x6f   :  { %v482_v40 = vld [vmem:[%s6139_s1 + $0xc80] sm:$0xff]  ;;  %v1274_v49 = vpack.c.bf16 %v422_v39, %v418_v30 }
  0x70   :  { %v486_v41 = vld [vmem:[%s6139_s1 + $0xca0] sm:$0xff]  ;;  %1636 = vmatmul.bf16.vlgmr.msra.gmra.mxu0 %v3028_v35 }
  0x71   :  { %v546_v44 = vld [vmem:[%s6139_s1 + $0xe80] sm:$0xff]  ;;  %v1306_v50 = vpack.c.bf16 %v486_v41, %v482_v40  ;;  %1698 = vmatpush.bf16.msrb.mxu1 %v1274_v49  ;;  %v3159_v40 = vpack.c.bf16 %v39_v23, %v39_v23 }
  0x72   :  { %v550_v45 = vld [vmem:[%s6139_s1 + $0xea0] sm:$0xff] }
  0x73   :  { %v346_v47 = vld [vmem:[%s6139_s1 + $0x840] sm:$0xff]  ;;  %v1338_v54 = vpack.c.bf16 %v550_v45, %v546_v44  ;;  %1711 = vmatpush.bf16.msrb.mxu2 %v1306_v50  ;;  %v3161_v44 = vpack.c.bf16 %v37_v24, %v37_v24 }
  0x74   :  { %v350_v48 = vld [vmem:[%s6139_s1 + $0x860] sm:$0xff] }
  0x75   :  { %v410_v51 = vld [vmem:[%s6139_s1 + $0xa40] sm:$0xff]  ;;  %v1238_v61 = vpack.c.bf16 %v350_v48, %v346_v47  ;;  %1724 = vmatpush.bf16.msrb.mxu3 %v1338_v54 }
  0x76   :  { %v414_v52 = vld [vmem:[%s6139_s1 + $0xa60] sm:$0xff] }
  0x77   :  { %v474_v55 = vld [vmem:[%s6139_s1 + $0xc40] sm:$0xff]  ;;  %v1270_v1 = vpack.c.bf16 %v414_v52, %v410_v51  ;;  %1686 = vmatpush.bf16.msrb.mxu0 %v1238_v61 }
  0x78   :  { %v478_v56 = vld [vmem:[%s6139_s1 + $0xc60] sm:$0xff] }
  0x79   :  { %v538_v57 = vld [vmem:[%s6139_s1 + $0xe40] sm:$0xff]  ;;  %v1302_v2 = vpack.c.bf16 %v478_v56, %v474_v55  ;;  %1699 = vmatpush.bf16.msrb.mxu1 %v1270_v1 }
  0x7a   :  { %v542_v58 = vld [vmem:[%s6139_s1 + $0xe60] sm:$0xff] }
  0x7b   :  { %v338_v59 = vld [vmem:[%s6139_s1 + $0x800] sm:$0xff]  ;;  %v1334_v6 = vpack.c.bf16 %v542_v58, %v538_v57  ;;  %1712 = vmatpush.bf16.msrb.mxu2 %v1302_v2 }
  0x7c   :  { %v342_v60 = vld [vmem:[%s6139_s1 + $0x820] sm:$0xff] }
  0x7d   :  { %v402_v62 = vld [vmem:[%s6139_s1 + $0xa00] sm:$0xff]  ;;  %v1234_v13 = vpack.c.bf16 %v342_v60, %v338_v59  ;;  %1725 = vmatpush.bf16.msrb.mxu3 %v1334_v6 }
  0x7e   :  { %v406_v63 = vld [vmem:[%s6139_s1 + $0xa20] sm:$0xff] }
  0x7f   :  { %v466_v0 = vld [vmem:[%s6139_s1 + $0xc00] sm:$0xff]  ;;  %v1266_v17 = vpack.c.bf16 %v406_v63, %v402_v62  ;;  %1687 = vmatpush.bf16.msrb.mxu0 %v1234_v13 }
  0x80   :  { %v470_v3 = vld [vmem:[%s6139_s1 + $0xc20] sm:$0xff] }
  0x81   :  { %v530_v4 = vld [vmem:[%s6139_s1 + $0xe00] sm:$0xff]  ;;  %v1298_v18 = vpack.c.bf16 %v470_v3, %v466_v0  ;;  %1700 = vmatpush.bf16.msrb.mxu1 %v1266_v17 }
  0x82   :  { %v534_v5 = vld [vmem:[%s6139_s1 + $0xe20] sm:$0xff] }
  0x83   :  { %v650_v7 = vld [vmem:[%s6139_s1 + $0x11c0] sm:$0xff]  ;;  %v1330_v21 = vpack.c.bf16 %v534_v5, %v530_v4  ;;  %1713 = vmatpush.bf16.msrb.mxu2 %v1298_v18 }
  0x84   :  { %v654_v8 = vld [vmem:[%s6139_s1 + $0x11e0] sm:$0xff]  ;;  %1701 = vmatmul.bf16.vlgmr.msrb.gmra.mxu1 %v3161_v44 }
  0x85   :  { %v714_v9 = vld [vmem:[%s6139_s1 + $0x13c0] sm:$0xff]  ;;  %v1390_v22 = vpack.c.bf16 %v654_v8, %v650_v7  ;;  %1726 = vmatpush.bf16.msrb.mxu3 %v1330_v21 }
  0x86   :  { %v718_v10 = vld [vmem:[%s6139_s1 + $0x13e0] sm:$0xff]  ;;  %1714 = vmatmul.bf16.vlgmr.msrb.gmra.mxu2 %v3149_v36 }
  0x87   :  { %v778_v11 = vld [vmem:[%s6139_s1 + $0x15c0] sm:$0xff]  ;;  %v1422_v25 = vpack.c.bf16 %v718_v10, %v714_v9  ;;  %1732 = vmatpush.bf16.msra.mxu0 %v1390_v22 }
  0x88   :  { %v782_v12 = vld [vmem:[%s6139_s1 + $0x15e0] sm:$0xff]  ;;  %1727 = vmatmul.bf16.vlgmr.msrb.gmra.mxu3 %v3159_v40 }
  0x89   :  { %v842_v14 = vld [vmem:[%s6139_s1 + $0x17c0] sm:$0xff]  ;;  %v1454_v26 = vpack.c.bf16 %v782_v12, %v778_v11  ;;  %1745 = vmatpush.bf16.msra.mxu1 %v1422_v25 }
  0x8a   :  { %v846_v15 = vld [vmem:[%s6139_s1 + $0x17e0] sm:$0xff] }
  0x8b   :  { %v36_v20 = vld.sshfl [vmem:[#allocation1 + $0x20] sm:$0xff pattern:$0x73625140]  ;;  %v1486_v30 = vpack.c.bf16 %v846_v15, %v842_v14  ;;  %1758 = vmatpush.bf16.msra.mxu2 %v1454_v26 }
  0x8c   :  { %v642_v27 = vld [vmem:[%s6139_s1 + $0x1180] sm:$0xff]  ;;  %41 = vst [vmem:[#allocation1 + $0x20] ss:$4 sm:$0xff] %v24_v16  ;;  %v3157_v39 = vpack.c.bf16 %v36_v20, %v36_v20 }
  0x8d   :  { %v646_v28 = vld [vmem:[%s6139_s1 + $0x11a0] sm:$0xff]  ;;  %1771 = vmatpush.bf16.msra.mxu3 %v1486_v30 }
  0x8e   :  { %v706_v29 = vld [vmem:[%s6139_s1 + $0x1380] sm:$0xff]  ;;  %v1386_v41 = vpack.c.bf16 %v646_v28, %v642_v27  ;;  %1688 = vmatmul.bf16.vlgmr.msrb.gmra.mxu0 %v3157_v39 }
  0x8f   :  { %v710_v31 = vld [vmem:[%s6139_s1 + $0x13a0] sm:$0xff] }
  0x90   :  { %v770_v32 = vld [vmem:[%s6139_s1 + $0x1580] sm:$0xff]  ;;  %v1418_v45 = vpack.c.bf16 %v710_v31, %v706_v29  ;;  %1733 = vmatpush.bf16.msra.mxu0 %v1386_v41 }
  0x91   :  { %v774_v33 = vld [vmem:[%s6139_s1 + $0x15a0] sm:$0xff] }
  0x92   :  { %v834_v37 = vld [vmem:[%s6139_s1 + $0x1780] sm:$0xff]  ;;  %v1450_v46 = vpack.c.bf16 %v774_v33, %v770_v32  ;;  %1746 = vmatpush.bf16.msra.mxu1 %v1418_v45 }
  0x93   :  { %v838_v38 = vld [vmem:[%s6139_s1 + $0x17a0] sm:$0xff] }
  0x94   :  { %v634_v47 = vld [vmem:[%s6139_s1 + $0x1140] sm:$0xff]  ;;  %v1482_v50 = vpack.c.bf16 %v838_v38, %v834_v37  ;;  %1759 = vmatpush.bf16.msra.mxu2 %v1450_v46 }
  0x95   :  { %v638_v48 = vld [vmem:[%s6139_s1 + $0x1160] sm:$0xff] }
  0x96   :  { %v698_v49 = vld [vmem:[%s6139_s1 + $0x1340] sm:$0xff]  ;;  %v1382_v56 = vpack.c.bf16 %v638_v48, %v634_v47  ;;  %1772 = vmatpush.bf16.msra.mxu3 %v1482_v50 }
  0x97   :  { %v702_v51 = vld [vmem:[%s6139_s1 + $0x1360] sm:$0xff] }
  0x98   :  { %v762_v52 = vld [vmem:[%s6139_s1 + $0x1540] sm:$0xff]  ;;  %v1414_v57 = vpack.c.bf16 %v702_v51, %v698_v49  ;;  %1734 = vmatpush.bf16.msra.mxu0 %v1382_v56 }
  0x99   :  { %v766_v53 = vld [vmem:[%s6139_s1 + $0x1560] sm:$0xff] }
  0x9a   :  { %v826_v54 = vld [vmem:[%s6139_s1 + $0x1740] sm:$0xff]  ;;  %v1446_v58 = vpack.c.bf16 %v766_v53, %v762_v52  ;;  %1747 = vmatpush.bf16.msra.mxu1 %v1414_v57 }
  0x9b   :  { %v830_v55 = vld [vmem:[%s6139_s1 + $0x1760] sm:$0xff] }
  0x9c   :  { %v626_v59 = vld [vmem:[%s6139_s1 + $0x1100] sm:$0xff]  ;;  %v1478_v62 = vpack.c.bf16 %v830_v55, %v826_v54  ;;  %1760 = vmatpush.bf16.msra.mxu2 %v1446_v58 }
  0x9d   :  { %v630_v60 = vld [vmem:[%s6139_s1 + $0x1120] sm:$0xff] }
  0x9e   :  { %v690_v61 = vld [vmem:[%s6139_s1 + $0x1300] sm:$0xff]  ;;  %v1378_v4 = vpack.c.bf16 %v630_v60, %v626_v59  ;;  %1773 = vmatpush.bf16.msra.mxu3 %v1478_v62 }
  0x9f   :  { %v694_v63 = vld [vmem:[%s6139_s1 + $0x1320] sm:$0xff] }
  0xa0   :  { %v754_v0 = vld [vmem:[%s6139_s1 + $0x1500] sm:$0xff]  ;;  %v1410_v5 = vpack.c.bf16 %v694_v63, %v690_v61  ;;  %1735 = vmatpush.bf16.msra.mxu0 %v1378_v4 }
  0xa1   :  { %v758_v1 = vld [vmem:[%s6139_s1 + $0x1520] sm:$0xff] }
  0xa2   :  { %v818_v2 = vld [vmem:[%s6139_s1 + $0x1700] sm:$0xff]  ;;  %v1442_v6 = vpack.c.bf16 %v758_v1, %v754_v0  ;;  %1748 = vmatpush.bf16.msra.mxu1 %v1410_v5 }
  0xa3   :  { %v822_v3 = vld [vmem:[%s6139_s1 + $0x1720] sm:$0xff] }
  0xa4   :  { %v618_v7 = vld [vmem:[%s6139_s1 + $0x10c0] sm:$0xff]  ;;  %v1474_v10 = vpack.c.bf16 %v822_v3, %v818_v2  ;;  %1761 = vmatpush.bf16.msra.mxu2 %v1442_v6 }
  0xa5   :  { %v622_v8 = vld [vmem:[%s6139_s1 + $0x10e0] sm:$0xff] }
  0xa6   :  { %v682_v9 = vld [vmem:[%s6139_s1 + $0x12c0] sm:$0xff]  ;;  %v1374_v16 = vpack.c.bf16 %v622_v8, %v618_v7  ;;  %1774 = vmatpush.bf16.msra.mxu3 %v1474_v10  ;;  %v44_v8 = vld.sshfl [vmem:[#allocation1 + $0x10] sm:$0xff pattern:$0x73625140] }
  0xa7   :  { %v686_v11 = vld [vmem:[%s6139_s1 + $0x12e0] sm:$0xff] }
  0xa8   :  { %v746_v12 = vld [vmem:[%s6139_s1 + $0x14c0] sm:$0xff]  ;;  %v1406_v17 = vpack.c.bf16 %v686_v11, %v682_v9  ;;  %1736 = vmatpush.bf16.msra.mxu0 %v1374_v16  ;;  %v43_v11 = vld.sshfl [vmem:[#allocation1 + $0x8] sm:$0xff pattern:$0x73625140] }
  0xa9   :  { %v750_v13 = vld [vmem:[%s6139_s1 + $0x14e0] sm:$0xff] }
  0xaa   :  { %v810_v14 = vld [vmem:[%s6139_s1 + $0x16c0] sm:$0xff]  ;;  %v1438_v18 = vpack.c.bf16 %v750_v13, %v746_v12  ;;  %1749 = vmatpush.bf16.msra.mxu1 %v1406_v17  ;;  %v45_v12 = vld.sshfl [vmem:[#allocation1 + $0x18] sm:$0xff pattern:$0x73625140] }
  0xab   :  { %v814_v15 = vld [vmem:[%s6139_s1 + $0x16e0] sm:$0xff] }
  0xac   :  { %v610_v19 = vld [vmem:[%s6139_s1 + $0x1080] sm:$0xff]  ;;  %v1470_v22 = vpack.c.bf16 %v814_v15, %v810_v14  ;;  %1762 = vmatpush.bf16.msra.mxu2 %v1438_v18 }
  0xad   :  { %v614_v20 = vld [vmem:[%s6139_s1 + $0x10a0] sm:$0xff] }
  0xae   :  { %v674_v21 = vld [vmem:[%s6139_s1 + $0x1280] sm:$0xff]  ;;  %v1370_v28 = vpack.c.bf16 %v614_v20, %v610_v19  ;;  %1775 = vmatpush.bf16.msra.mxu3 %v1470_v22 }
  0xaf   :  { %v678_v23 = vld [vmem:[%s6139_s1 + $0x12a0] sm:$0xff] }
  0xb0   :  { %v738_v24 = vld [vmem:[%s6139_s1 + $0x1480] sm:$0xff]  ;;  %v1402_v29 = vpack.c.bf16 %v678_v23, %v674_v21  ;;  %1737 = vmatpush.bf16.msra.mxu0 %v1370_v28  ;;  %v3355_v23 = vpack.c.bf16 %v44_v8, %v44_v8 }
  0xb1   :  { %v742_v25 = vld [vmem:[%s6139_s1 + $0x14a0] sm:$0xff] }
  0xb2   :  { %v802_v26 = vld [vmem:[%s6139_s1 + $0x1680] sm:$0xff]  ;;  %v1434_v30 = vpack.c.bf16 %v742_v25, %v738_v24  ;;  %1750 = vmatpush.bf16.msra.mxu1 %v1402_v29  ;;  %v3357_v24 = vpack.c.bf16 %v43_v11, %v43_v11 }
  0xb3   :  { %v806_v27 = vld [vmem:[%s6139_s1 + $0x16a0] sm:$0xff] }
  0xb4   :  { %v602_v31 = vld [vmem:[%s6139_s1 + $0x1040] sm:$0xff]  ;;  %v1466_v37 = vpack.c.bf16 %v806_v27, %v802_v26  ;;  %1763 = vmatpush.bf16.msra.mxu2 %v1434_v30  ;;  %v3365_v27 = vpack.c.bf16 %v45_v12, %v45_v12 }
  0xb5   :  { %v606_v32 = vld [vmem:[%s6139_s1 + $0x1060] sm:$0xff] }
  0xb6   :  { %v666_v33 = vld [vmem:[%s6139_s1 + $0x1240] sm:$0xff]  ;;  %v1366_v49 = vpack.c.bf16 %v606_v32, %v602_v31  ;;  %1776 = vmatpush.bf16.msra.mxu3 %v1466_v37 }
  0xb7   :  { %v670_v38 = vld [vmem:[%s6139_s1 + $0x1260] sm:$0xff] }
  0xb8   :  { %v730_v41 = vld [vmem:[%s6139_s1 + $0x1440] sm:$0xff]  ;;  %v1398_v53 = vpack.c.bf16 %v670_v38, %v666_v33  ;;  %1738 = vmatpush.bf16.msra.mxu0 %v1366_v49 }
  0xb9   :  { %v734_v45 = vld [vmem:[%s6139_s1 + $0x1460] sm:$0xff] }
  0xba   :  { %v794_v46 = vld [vmem:[%s6139_s1 + $0x1640] sm:$0xff]  ;;  %v1430_v54 = vpack.c.bf16 %v734_v45, %v730_v41  ;;  %1751 = vmatpush.bf16.msra.mxu1 %v1398_v53 }
  0xbb   :  { %v798_v47 = vld [vmem:[%s6139_s1 + $0x1660] sm:$0xff] }
  0xbc   :  { %v594_v48 = vld [vmem:[%s6139_s1 + $0x1000] sm:$0xff]  ;;  %v1462_v58 = vpack.c.bf16 %v798_v47, %v794_v46  ;;  %1764 = vmatpush.bf16.msra.mxu2 %v1430_v54 }
  0xbd   :  { %v598_v50 = vld [vmem:[%s6139_s1 + $0x1020] sm:$0xff] }
  0xbe   :  { %v658_v51 = vld [vmem:[%s6139_s1 + $0x1200] sm:$0xff]  ;;  %v1362_v1 = vpack.c.bf16 %v598_v50, %v594_v48  ;;  %1777 = vmatpush.bf16.msra.mxu3 %v1462_v58 }
  0xbf   :  { %v662_v52 = vld [vmem:[%s6139_s1 + $0x1220] sm:$0xff] }
  0xc0   :  { %v722_v55 = vld [vmem:[%s6139_s1 + $0x1400] sm:$0xff]  ;;  %v1394_v5 = vpack.c.bf16 %v662_v52, %v658_v51  ;;  %1739 = vmatpush.bf16.msra.mxu0 %v1362_v1 }
  0xc1   :  { %v726_v56 = vld [vmem:[%s6139_s1 + $0x1420] sm:$0xff] }
  0xc2   :  { %v786_v57 = vld [vmem:[%s6139_s1 + $0x1600] sm:$0xff]  ;;  %v1426_v6 = vpack.c.bf16 %v726_v56, %v722_v55  ;;  %1752 = vmatpush.bf16.msra.mxu1 %v1394_v5 }
  0xc3   :  { %v790_v59 = vld [vmem:[%s6139_s1 + $0x1620] sm:$0xff] }
  0xc4   :  { %v906_v60 = vld [vmem:[%s6139_s1 + $0x19c0] sm:$0xff]  ;;  %v1458_v9 = vpack.c.bf16 %v790_v59, %v786_v57  ;;  %1765 = vmatpush.bf16.msra.mxu2 %v1426_v6 }
  0xc5   :  { %v910_v61 = vld [vmem:[%s6139_s1 + $0x19e0] sm:$0xff]  ;;  %1753 = vmatmul.bf16.vlgmr.msra.gmra.mxu1 %v3357_v24 }
  0xc6   :  { %v970_v62 = vld [vmem:[%s6139_s1 + $0x1bc0] sm:$0xff]  ;;  %v1518_v10 = vpack.c.bf16 %v910_v61, %v906_v60  ;;  %1778 = vmatpush.bf16.msra.mxu3 %v1458_v9 }
  0xc7   :  { %v974_v63 = vld [vmem:[%s6139_s1 + $0x1be0] sm:$0xff]  ;;  %1766 = vmatmul.bf16.vlgmr.msra.gmra.mxu2 %v3355_v23 }
  0xc8   :  { %v1034_v0 = vld [vmem:[%s6139_s1 + $0x1dc0] sm:$0xff]  ;;  %v1550_v13 = vpack.c.bf16 %v974_v63, %v970_v62  ;;  %1784 = vmatpush.bf16.msrb.mxu0 %v1518_v10 }
  0xc9   :  { %v1038_v2 = vld [vmem:[%s6139_s1 + $0x1de0] sm:$0xff]  ;;  %1779 = vmatmul.bf16.vlgmr.msra.gmra.mxu3 %v3365_v27 }
  0xca   :  { %v1098_v3 = vld [vmem:[%s6139_s1 + $0x1fc0] sm:$0xff]  ;;  %v1582_v14 = vpack.c.bf16 %v1038_v2, %v1034_v0  ;;  %1797 = vmatpush.bf16.msrb.mxu1 %v1550_v13 }
  0xcb   :  { %v1102_v4 = vld [vmem:[%s6139_s1 + $0x1fe0] sm:$0xff] }
  0xcc   :  { %v42_v7 = vld.sshfl [vmem:[#allocation1] sm:$0xff pattern:$0x73625140]  ;;  %v1614_v18 = vpack.c.bf16 %v1102_v4, %v1098_v3  ;;  %1810 = vmatpush.bf16.msrb.mxu2 %v1582_v14 }
  0xcd   :  { %v898_v15 = vld [vmem:[%s6139_s1 + $0x1980] sm:$0xff]  ;;  %v3344_v19 = vpack.c.bf16 %v42_v7, %v42_v7 }
  0xce   :  { %v902_v16 = vld [vmem:[%s6139_s1 + $0x19a0] sm:$0xff]  ;;  %1823 = vmatpush.bf16.msrb.mxu3 %v1614_v18 }
  0xcf   :  { %v962_v17 = vld [vmem:[%s6139_s1 + $0x1b80] sm:$0xff]  ;;  %v1514_v28 = vpack.c.bf16 %v902_v16, %v898_v15  ;;  %1740 = vmatmul.bf16.vlgmr.msra.gmra.mxu0 %v3344_v19 }
  0xd0   :  { %v966_v20 = vld [vmem:[%s6139_s1 + $0x1ba0] sm:$0xff] }
  0xd1   :  { %v1026_v21 = vld [vmem:[%s6139_s1 + $0x1d80] sm:$0xff]  ;;  %v1546_v29 = vpack.c.bf16 %v966_v20, %v962_v17  ;;  %1785 = vmatpush.bf16.msrb.mxu0 %v1514_v28 }
  0xd2   :  { %v1030_v22 = vld [vmem:[%s6139_s1 + $0x1da0] sm:$0xff] }
  0xd3   :  { %v1090_v25 = vld [vmem:[%s6139_s1 + $0x1f80] sm:$0xff]  ;;  %v1578_v30 = vpack.c.bf16 %v1030_v22, %v1026_v21  ;;  %1798 = vmatpush.bf16.msrb.mxu1 %v1546_v29 }
  0xd4   :  { %v1094_v26 = vld [vmem:[%s6139_s1 + $0x1fa0] sm:$0xff] }
  0xd5   :  { %v890_v31 = vld [vmem:[%s6139_s1 + $0x1940] sm:$0xff]  ;;  %v1610_v37 = vpack.c.bf16 %v1094_v26, %v1090_v25  ;;  %1811 = vmatpush.bf16.msrb.mxu2 %v1578_v30 }
  0xd6   :  { %v894_v32 = vld [vmem:[%s6139_s1 + $0x1960] sm:$0xff] }
  0xd7   :  { %v954_v33 = vld [vmem:[%s6139_s1 + $0x1b40] sm:$0xff]  ;;  %v1510_v48 = vpack.c.bf16 %v894_v32, %v890_v31  ;;  %1824 = vmatpush.bf16.msrb.mxu3 %v1610_v37 }
  0xd8   :  { %v958_v38 = vld [vmem:[%s6139_s1 + $0x1b60] sm:$0xff] }
  0xd9   :  { %v1018_v41 = vld [vmem:[%s6139_s1 + $0x1d40] sm:$0xff]  ;;  %v1542_v49 = vpack.c.bf16 %v958_v38, %v954_v33  ;;  %1786 = vmatpush.bf16.msrb.mxu0 %v1510_v48 }
  0xda   :  { %v1022_v45 = vld [vmem:[%s6139_s1 + $0x1d60] sm:$0xff] }
  0xdb   :  { %v1082_v46 = vld [vmem:[%s6139_s1 + $0x1f40] sm:$0xff]  ;;  %v1574_v50 = vpack.c.bf16 %v1022_v45, %v1018_v41  ;;  %1799 = vmatpush.bf16.msrb.mxu1 %v1542_v49 }
  0xdc   :  { %v1086_v47 = vld [vmem:[%s6139_s1 + $0x1f60] sm:$0xff] }
  0xdd   :  { %v882_v51 = vld [vmem:[%s6139_s1 + $0x1900] sm:$0xff]  ;;  %v1606_v54 = vpack.c.bf16 %v1086_v47, %v1082_v46  ;;  %1812 = vmatpush.bf16.msrb.mxu2 %v1574_v50 }
  0xde   :  { %v886_v52 = vld [vmem:[%s6139_s1 + $0x1920] sm:$0xff] }
  0xdf   :  { %v946_v53 = vld [vmem:[%s6139_s1 + $0x1b00] sm:$0xff]  ;;  %v1506_v60 = vpack.c.bf16 %v886_v52, %v882_v51  ;;  %1825 = vmatpush.bf16.msrb.mxu3 %v1606_v54 }
  0xe0   :  { %v950_v55 = vld [vmem:[%s6139_s1 + $0x1b20] sm:$0xff] }
  0xe1   :  { %v1010_v56 = vld [vmem:[%s6139_s1 + $0x1d00] sm:$0xff]  ;;  %v1538_v61 = vpack.c.bf16 %v950_v55, %v946_v53  ;;  %1787 = vmatpush.bf16.msrb.mxu0 %v1506_v60 }
  0xe2   :  { %v1014_v57 = vld [vmem:[%s6139_s1 + $0x1d20] sm:$0xff] }
  0xe3   :  { %v1074_v58 = vld [vmem:[%s6139_s1 + $0x1f00] sm:$0xff]  ;;  %v1570_v62 = vpack.c.bf16 %v1014_v57, %v1010_v56  ;;  %1800 = vmatpush.bf16.msrb.mxu1 %v1538_v61 }
  0xe4   :  { %v1078_v59 = vld [vmem:[%s6139_s1 + $0x1f20] sm:$0xff] }
  0xe5   :  { %v874_v63 = vld [vmem:[%s6139_s1 + $0x18c0] sm:$0xff]  ;;  %v1602_v2 = vpack.c.bf16 %v1078_v59, %v1074_v58  ;;  %1813 = vmatpush.bf16.msrb.mxu2 %v1570_v62 }
  0xe6   :  { %v878_v0 = vld [vmem:[%s6139_s1 + $0x18e0] sm:$0xff] }
  0xe7   :  { %v938_v1 = vld [vmem:[%s6139_s1 + $0x1ac0] sm:$0xff]  ;;  %v1502_v8 = vpack.c.bf16 %v878_v0, %v874_v63  ;;  %1826 = vmatpush.bf16.msrb.mxu3 %v1602_v2 }
  0xe8   :  { %v942_v3 = vld [vmem:[%s6139_s1 + $0x1ae0] sm:$0xff] }
  0xe9   :  { %v1002_v4 = vld [vmem:[%s6139_s1 + $0x1cc0] sm:$0xff]  ;;  %v1534_v9 = vpack.c.bf16 %v942_v3, %v938_v1 }
  0xea   :  { %v1006_v5 = vld [vmem:[%s6139_s1 + $0x1ce0] sm:$0xff] }
  0xeb   :  { %v1066_v6 = vld [vmem:[%s6139_s1 + $0x1ec0] sm:$0xff]  ;;  %v1566_v10 = vpack.c.bf16 %v1006_v5, %v1002_v4 }
  0xec   :  { %v1070_v7 = vld [vmem:[%s6139_s1 + $0x1ee0] sm:$0xff] }
  0xed   :  { %v866_v11 = vld [vmem:[%s6139_s1 + $0x1880] sm:$0xff]  ;;  %v1598_v14 = vpack.c.bf16 %v1070_v7, %v1066_v6 }
  0xee   :  { %v870_v12 = vld [vmem:[%s6139_s1 + $0x18a0] sm:$0xff] }
  0xef   :  { %v930_v13 = vld [vmem:[%s6139_s1 + $0x1a80] sm:$0xff] }
  0xf0   :  { %v934_v15 = vld [vmem:[%s6139_s1 + $0x1aa0] sm:$0xff] }
  0xf1   :  { %v994_v16 = vld [vmem:[%s6139_s1 + $0x1c80] sm:$0xff] }
  0xf2   :  { %v998_v17 = vld [vmem:[%s6139_s1 + $0x1ca0] sm:$0xff] }
  0xf3   :  { %v1058_v18 = vld [vmem:[%s6139_s1 + $0x1e80] sm:$0xff] }
  0xf4   :  { %v1062_v20 = vld [vmem:[%s6139_s1 + $0x1ea0] sm:$0xff] }
  0xf5   :  { %10 = vsyncpa [#allocation3], 0  ;;  %1788 = vmatpush.bf16.msrb.mxu0 %v1502_v8  ;;  %v1498_v21 = vpack.c.bf16 %v870_v12, %v866_v11  ;;  %1801 = vmatpush.bf16.msrb.mxu1 %v1534_v9  ;;  %v1530_v22 = vpack.c.bf16 %v934_v15, %v930_v13  ;;  %v1562_v25 = vpack.c.bf16 %v998_v17, %v994_v16  ;;  %v858_v26 = vld [vmem:[%s6139_s1 + $0x1840] sm:$0xff]  ;;  %v139_v56 = vld [vmem:[%s6139_s1 + $0x1c8] sm:$0xff]  ;;  %s2668_s14 = smov [#allocation2]   ;;  %s2629_s18 = sshll.u32 %s6143_s5, 4  ;;  %s2630_s18 = int_to_ptr.hbm [resolvable:$true] %s2629_s18 }
  0xf6   :  { %1814 = vmatpush.bf16.msrb.mxu2 %v1566_v10  ;;  %v862_v28 = vld [vmem:[%s6139_s1 + $0x1860] sm:$0xff]  ;;  %1827 = vmatpush.bf16.msrb.mxu3 %v1598_v14  ;;  %v1594_v30 = vpack.c.bf16 %v1062_v20, %v1058_v18  ;;  %v143_v57 = vld [vmem:[%s6139_s1 + $0x1e8] sm:$0xff]  ;;  %v48_v7 = vld.sshfl [vmem:[#allocation1 + $0x30] sm:$0xff pattern:$0x73625140]  ;;  %s2627_s15 = sshll.u32 %s2668_s14, 4  ;;  %s2628_s15 = int_to_ptr.vmem [resolvable:$true] %s2627_s15 }
  0xf7   :  { %v922_v29 = vld [vmem:[%s6139_s1 + $0x1a40] sm:$0xff]  ;;  %v1494_v41 = vpack.c.bf16 %v862_v28, %v858_v26  ;;  %v203_v58 = vld [vmem:[%s6139_s1 + $0x3c8] sm:$0xff]  ;;  %v1135_v6 = vpack.c.bf16 %v143_v57, %v139_v56  ;;  %v49_v11 = vld.sshfl [vmem:[#allocation1 + $0x38] sm:$0xff pattern:$0x73625140]  ;;  %v3559_v20 = vpack.c.bf16 %v48_v7, %v48_v7  ;;  %vm2620_vm0 = vcmask 33792  }
  0xf8   :  { %v926_v31 = vld [vmem:[%s6139_s1 + $0x1a60] sm:$0xff]  ;;  %v207_v59 = vld [vmem:[%s6139_s1 + $0x3e8] sm:$0xff]  ;;  %v3569_v26 = vpack.c.bf16 %v49_v11, %v49_v11 }
  0xf9   :  { %v986_v32 = vld [vmem:[%s6139_s1 + $0x1c40] sm:$0xff]  ;;  %1789 = vmatpush.bf16.msrb.mxu0 %v1498_v21  ;;  %1802 = vmatpush.bf16.msrb.mxu1 %v1530_v22  ;;  %v1526_v48 = vpack.c.bf16 %v926_v31, %v922_v29  ;;  %v267_v61 = vld [vmem:[%s6139_s1 + $0x5c8] sm:$0xff]  ;;  %v1167_v9 = vpack.c.bf16 %v207_v59, %v203_v58 }
  0xfa   :  { %v990_v33 = vld [vmem:[%s6139_s1 + $0x1c60] sm:$0xff]  ;;  %1815 = vmatpush.bf16.msrb.mxu2 %v1562_v25  ;;  %1828 = vmatpush.bf16.msrb.mxu3 %v1594_v30  ;;  %v271_v62 = vld [vmem:[%s6139_s1 + $0x5e8] sm:$0xff] }
  0xfb   :  { %v1050_v37 = vld [vmem:[%s6139_s1 + $0x1e40] sm:$0xff]  ;;  %v1558_v49 = vpack.c.bf16 %v990_v33, %v986_v32  ;;  %v331_v63 = vld [vmem:[%s6139_s1 + $0x7c8] sm:$0xff]  ;;  %v1199_v10 = vpack.c.bf16 %v271_v62, %v267_v61 }
  0xfc   :  { %v1054_v38 = vld [vmem:[%s6139_s1 + $0x1e60] sm:$0xff]  ;;  %v335_v2 = vld [vmem:[%s6139_s1 + $0x7e8] sm:$0xff] }
  0xfd   :  { %v850_v45 = vld [vmem:[%s6139_s1 + $0x1800] sm:$0xff]  ;;  %v1590_v53 = vpack.c.bf16 %v1054_v38, %v1050_v37  ;;  %1790 = vmatpush.bf16.msrb.mxu0 %v1494_v41  ;;  %1803 = vmatpush.bf16.msrb.mxu1 %v1526_v48  ;;  %v131_v4 = vld [vmem:[%s6139_s1 + $0x188] sm:$0xff]  ;;  %v1231_v14 = vpack.c.bf16 %v335_v2, %v331_v63 }
  0xfe   :  { %v854_v46 = vld [vmem:[%s6139_s1 + $0x1820] sm:$0xff]  ;;  %1816 = vmatpush.bf16.msrb.mxu2 %v1558_v49  ;;  %v47_v8 = vld.sshfl [vmem:[#allocation1 + $0x28] sm:$0xff pattern:$0x73625140] }
  0xff   :  { %v914_v47 = vld [vmem:[%s6139_s1 + $0x1a00] sm:$0xff]  ;;  %v1490_v60 = vpack.c.bf16 %v854_v46, %v850_v45  ;;  %1829 = vmatpush.bf16.msrb.mxu3 %v1590_v53  ;;  %v135_v12 = vld [vmem:[%s6139_s1 + $0x1a8] sm:$0xff]  ;;  %v3561_v21 = vpack.c.bf16 %v47_v8, %v47_v8 }
 0x100   :  { %v918_v50 = vld [vmem:[%s6139_s1 + $0x1a20] sm:$0xff]  ;;  %v195_v13 = vld [vmem:[%s6139_s1 + $0x388] sm:$0xff]  ;;  %v1131_v28 = vpack.c.bf16 %v135_v12, %v131_v4 }
 0x101   :  { %v978_v51 = vld [vmem:[%s6139_s1 + $0x1c00] sm:$0xff]  ;;  %v1522_v0 = vpack.c.bf16 %v918_v50, %v914_v47  ;;  %1791 = vmatpush.bf16.msrb.mxu0 %v1490_v60  ;;  %v199_v16 = vld [vmem:[%s6139_s1 + $0x3a8] sm:$0xff] }
 0x102   :  { %v982_v52 = vld [vmem:[%s6139_s1 + $0x1c20] sm:$0xff]  ;;  %v259_v17 = vld [vmem:[%s6139_s1 + $0x588] sm:$0xff]  ;;  %v1163_v29 = vpack.c.bf16 %v199_v16, %v195_v13 }
 0x103   :  { %v1042_v54 = vld [vmem:[%s6139_s1 + $0x1e00] sm:$0xff]  ;;  %v1554_v1 = vpack.c.bf16 %v982_v52, %v978_v51  ;;  %v263_v18 = vld [vmem:[%s6139_s1 + $0x5a8] sm:$0xff]  ;;  %1804 = vmatpush.bf16.msrb.mxu1 %v1522_v0 }
 0x104   :  { %v1046_v55 = vld [vmem:[%s6139_s1 + $0x1e20] sm:$0xff]  ;;  %v323_v22 = vld [vmem:[%s6139_s1 + $0x788] sm:$0xff]  ;;  %v1195_v30 = vpack.c.bf16 %v263_v18, %v259_v17 }
 0x105   :  { %v46_v3 = vld.sshfl [vmem:[#allocation1 + $0x20] sm:$0xff pattern:$0x73625140]  ;;  %v1586_v5 = vpack.c.bf16 %v1046_v55, %v1042_v54  ;;  %1817 = vmatpush.bf16.msrb.mxu2 %v1554_v1  ;;  %v327_v25 = vld [vmem:[%s6139_s1 + $0x7a8] sm:$0xff]  ;;  %1836 = vmatpush.bf16.msra.mxu0 %v1135_v6 }
 0x106   :  { %v3548_v15 = vpack.c.bf16 %v46_v3, %v46_v3  ;;  %v123_v31 = vld [vmem:[%s6139_s1 + $0x148] sm:$0xff]  ;;  %v1227_v37 = vpack.c.bf16 %v327_v25, %v323_v22  ;;  %1805 = vmatmul.bf16.vlgmr.msrb.gmra.mxu1 %v3561_v21 }
 0x107   :  { %1830 = vmatpush.bf16.msrb.mxu3 %v1586_v5  ;;  %1849 = vmatpush.bf16.msra.mxu1 %v1167_v9  ;;  %v127_v32 = vld [vmem:[%s6139_s1 + $0x168] sm:$0xff] }
 0x108   :  { %v187_v33 = vld [vmem:[%s6139_s1 + $0x348] sm:$0xff]  ;;  %1792 = vmatmul.bf16.vlgmr.msrb.gmra.mxu0 %v3548_v15  ;;  %1818 = vmatmul.bf16.vlgmr.msrb.gmra.mxu2 %v3559_v20  ;;  %v1127_v48 = vpack.c.bf16 %v127_v32, %v123_v31 }
 0x109   :  { %1862 = vmatpush.bf16.msra.mxu2 %v1199_v10  ;;  %v191_v38 = vld [vmem:[%s6139_s1 + $0x368] sm:$0xff]  ;;  %1837 = vmatpush.bf16.msra.mxu0 %v1131_v28 }
 0x10a   :  { %v251_v41 = vld [vmem:[%s6139_s1 + $0x548] sm:$0xff]  ;;  %1831 = vmatmul.bf16.vlgmr.msrb.gmra.mxu3 %v3569_v26  ;;  %v1159_v49 = vpack.c.bf16 %v191_v38, %v187_v33 }
 0x10b   :  { %1875 = vmatpush.bf16.msra.mxu3 %v1231_v14  ;;  %v255_v45 = vld [vmem:[%s6139_s1 + $0x568] sm:$0xff]  ;;  %1850 = vmatpush.bf16.msra.mxu1 %v1163_v29 }
 0x10c   :  { %v315_v46 = vld [vmem:[%s6139_s1 + $0x748] sm:$0xff]  ;;  %v1191_v50 = vpack.c.bf16 %v255_v45, %v251_v41 }
 0x10d   :  { %v319_v47 = vld [vmem:[%s6139_s1 + $0x768] sm:$0xff]  ;;  %1863 = vmatpush.bf16.msra.mxu2 %v1195_v30  ;;  %1838 = vmatpush.bf16.msra.mxu0 %v1127_v48 }
 0x10e   :  { %v115_v51 = vld [vmem:[%s6139_s1 + $0x108] sm:$0xff]  ;;  %v1223_v54 = vpack.c.bf16 %v319_v47, %v315_v46 }
 0x10f   :  { %v119_v52 = vld [vmem:[%s6139_s1 + $0x128] sm:$0xff]  ;;  %1876 = vmatpush.bf16.msra.mxu3 %v1227_v37  ;;  %1851 = vmatpush.bf16.msra.mxu1 %v1159_v49 }
 0x110   :  { %v179_v53 = vld [vmem:[%s6139_s1 + $0x308] sm:$0xff]  ;;  %v1123_v60 = vpack.c.bf16 %v119_v52, %v115_v51 }
 0x111   :  { %v183_v55 = vld [vmem:[%s6139_s1 + $0x328] sm:$0xff]  ;;  %1864 = vmatpush.bf16.msra.mxu2 %v1191_v50 }
 0x112   :  { %v243_v56 = vld [vmem:[%s6139_s1 + $0x508] sm:$0xff]  ;;  %v1155_v61 = vpack.c.bf16 %v183_v55, %v179_v53  ;;  %1839 = vmatpush.bf16.msra.mxu0 %v1123_v60 }
 0x113   :  { %v247_v57 = vld [vmem:[%s6139_s1 + $0x528] sm:$0xff]  ;;  %1877 = vmatpush.bf16.msra.mxu3 %v1223_v54 }
 0x114   :  { %v307_v58 = vld [vmem:[%s6139_s1 + $0x708] sm:$0xff]  ;;  %v1187_v62 = vpack.c.bf16 %v247_v57, %v243_v56  ;;  %1852 = vmatpush.bf16.msra.mxu1 %v1155_v61 }
 0x115   :  { %v311_v59 = vld [vmem:[%s6139_s1 + $0x728] sm:$0xff] }
 0x116   :  { %v107_v63 = vld [vmem:[%s6139_s1 + $0xc8] sm:$0xff]  ;;  %v1219_v2 = vpack.c.bf16 %v311_v59, %v307_v58  ;;  %1865 = vmatpush.bf16.msra.mxu2 %v1187_v62 }
 0x117   :  { %v111_v0 = vld [vmem:[%s6139_s1 + $0xe8] sm:$0xff] }
 0x118   :  { %v171_v1 = vld [vmem:[%s6139_s1 + $0x2c8] sm:$0xff]  ;;  %v1119_v8 = vpack.c.bf16 %v111_v0, %v107_v63  ;;  %1878 = vmatpush.bf16.msra.mxu3 %v1219_v2 }
 0x119   :  { %v175_v3 = vld [vmem:[%s6139_s1 + $0x2e8] sm:$0xff] }
 0x11a   :  { %v235_v4 = vld [vmem:[%s6139_s1 + $0x4c8] sm:$0xff]  ;;  %v1151_v9 = vpack.c.bf16 %v175_v3, %v171_v1  ;;  %1840 = vmatpush.bf16.msra.mxu0 %v1119_v8 }
 0x11b   :  { %v239_v5 = vld [vmem:[%s6139_s1 + $0x4e8] sm:$0xff] }
 0x11c   :  { %v299_v6 = vld [vmem:[%s6139_s1 + $0x6c8] sm:$0xff]  ;;  %v1183_v10 = vpack.c.bf16 %v239_v5, %v235_v4  ;;  %1853 = vmatpush.bf16.msra.mxu1 %v1151_v9 }
 0x11d   :  { %v303_v7 = vld [vmem:[%s6139_s1 + $0x6e8] sm:$0xff] }
 0x11e   :  { %v99_v11 = vld [vmem:[%s6139_s1 + $0x88] sm:$0xff]  ;;  %v1215_v14 = vpack.c.bf16 %v303_v7, %v299_v6  ;;  %1866 = vmatpush.bf16.msra.mxu2 %v1183_v10 }
 0x11f   :  { %v103_v12 = vld [vmem:[%s6139_s1 + $0xa8] sm:$0xff] }
 0x120   :  { %v163_v13 = vld [vmem:[%s6139_s1 + $0x288] sm:$0xff]  ;;  %v1115_v28 = vpack.c.bf16 %v103_v12, %v99_v11  ;;  %1879 = vmatpush.bf16.msra.mxu3 %v1215_v14 }
 0x121   :  { %v167_v16 = vld [vmem:[%s6139_s1 + $0x2a8] sm:$0xff] }
 0x122   :  { %v227_v17 = vld [vmem:[%s6139_s1 + $0x488] sm:$0xff]  ;;  %v1147_v29 = vpack.c.bf16 %v167_v16, %v163_v13  ;;  %1841 = vmatpush.bf16.msra.mxu0 %v1115_v28 }
 0x123   :  { %v231_v18 = vld [vmem:[%s6139_s1 + $0x4a8] sm:$0xff] }
 0x124   :  { %v291_v22 = vld [vmem:[%s6139_s1 + $0x688] sm:$0xff]  ;;  %v1179_v30 = vpack.c.bf16 %v231_v18, %v227_v17  ;;  %1854 = vmatpush.bf16.msra.mxu1 %v1147_v29 }
 0x125   :  { %v295_v25 = vld [vmem:[%s6139_s1 + $0x6a8] sm:$0xff] }
 0x126   :  { %v91_v31 = vld [vmem:[%s6139_s1 + $0x48] sm:$0xff]  ;;  %v1211_v37 = vpack.c.bf16 %v295_v25, %v291_v22  ;;  %1867 = vmatpush.bf16.msra.mxu2 %v1179_v30 }
 0x127   :  { %v95_v32 = vld [vmem:[%s6139_s1 + $0x68] sm:$0xff] }
 0x128   :  { %v155_v33 = vld [vmem:[%s6139_s1 + $0x248] sm:$0xff]  ;;  %v1111_v48 = vpack.c.bf16 %v95_v32, %v91_v31  ;;  %1880 = vmatpush.bf16.msra.mxu3 %v1211_v37 }
 0x129   :  { %v159_v38 = vld [vmem:[%s6139_s1 + $0x268] sm:$0xff] }
 0x12a   :  { %v219_v41 = vld [vmem:[%s6139_s1 + $0x448] sm:$0xff]  ;;  %v1143_v51 = vpack.c.bf16 %v159_v38, %v155_v33  ;;  %1842 = vmatpush.bf16.msra.mxu0 %v1111_v48 }
 0x12b   :  { %v223_v45 = vld [vmem:[%s6139_s1 + $0x468] sm:$0xff] }
 0x12c   :  { %v283_v46 = vld [vmem:[%s6139_s1 + $0x648] sm:$0xff]  ;;  %v1175_v52 = vpack.c.bf16 %v223_v45, %v219_v41  ;;  %1855 = vmatpush.bf16.msra.mxu1 %v1143_v51 }
 0x12d   :  { %v287_v47 = vld [vmem:[%s6139_s1 + $0x668] sm:$0xff] }
 0x12e   :  { %v83_v49 = vld [vmem:[%s6139_s1 + $0x8] sm:$0xff]  ;;  %v1207_v56 = vpack.c.bf16 %v287_v47, %v283_v46  ;;  %1868 = vmatpush.bf16.msra.mxu2 %v1175_v52 }
 0x12f   :  { %v87_v50 = vld [vmem:[%s6139_s1 + $0x28] sm:$0xff] }
 0x130   :  { %v147_v53 = vld [vmem:[%s6139_s1 + $0x208] sm:$0xff]  ;;  %v1107_v63 = vpack.c.bf16 %v87_v50, %v83_v49  ;;  %1881 = vmatpush.bf16.msra.mxu3 %v1207_v56 }
 0x131   :  { %v151_v54 = vld [vmem:[%s6139_s1 + $0x228] sm:$0xff] }
 0x132   :  { %v211_v55 = vld [vmem:[%s6139_s1 + $0x408] sm:$0xff]  ;;  %v1139_v3 = vpack.c.bf16 %v151_v54, %v147_v53  ;;  %1843 = vmatpush.bf16.msra.mxu0 %v1107_v63 }
 0x133   :  { %v215_v57 = vld [vmem:[%s6139_s1 + $0x428] sm:$0xff] }
 0x134   :  { %v275_v58 = vld [vmem:[%s6139_s1 + $0x608] sm:$0xff]  ;;  %v1171_v4 = vpack.c.bf16 %v215_v57, %v211_v55  ;;  %1856 = vmatpush.bf16.msra.mxu1 %v1139_v3 }
 0x135   :  { %v279_v59 = vld [vmem:[%s6139_s1 + $0x628] sm:$0xff]  ;;  %1844 = vmatmul.bf16.vlgmr.msra.gmra.mxu0 %v3028_v35 }
 0x136   :  { %v395_v60 = vld [vmem:[%s6139_s1 + $0x9c8] sm:$0xff]  ;;  %v1203_v7 = vpack.c.bf16 %v279_v59, %v275_v58  ;;  %1869 = vmatpush.bf16.msra.mxu2 %v1171_v4 }
 0x137   :  { %v399_v61 = vld [vmem:[%s6139_s1 + $0x9e8] sm:$0xff]  ;;  %1857 = vmatmul.bf16.vlgmr.msra.gmra.mxu1 %v3041_v43 }
 0x138   :  { %v459_v62 = vld [vmem:[%s6139_s1 + $0xbc8] sm:$0xff]  ;;  %v1263_v8 = vpack.c.bf16 %v399_v61, %v395_v60  ;;  %1882 = vmatpush.bf16.msra.mxu3 %v1203_v7 }
 0x139   :  { %v463_v0 = vld [vmem:[%s6139_s1 + $0xbe8] sm:$0xff]  ;;  %1870 = vmatmul.bf16.vlgmr.msra.gmra.mxu2 %v3026_v34 }
 0x13a   :  { %v523_v1 = vld [vmem:[%s6139_s1 + $0xdc8] sm:$0xff]  ;;  %v1295_v9 = vpack.c.bf16 %v463_v0, %v459_v62  ;;  %1888 = vmatpush.bf16.msrb.mxu0 %v1263_v8 }
 0x13b   :  { %v527_v2 = vld [vmem:[%s6139_s1 + $0xde8] sm:$0xff]  ;;  %1883 = vmatmul.bf16.vlgmr.msra.gmra.mxu3 %v3039_v42 }
 0x13c   :  { %v587_v5 = vld [vmem:[%s6139_s1 + $0xfc8] sm:$0xff]  ;;  %v1327_v10 = vpack.c.bf16 %v527_v2, %v523_v1  ;;  %1901 = vmatpush.bf16.msrb.mxu1 %v1295_v9 }
 0x13d   :  { %v591_v6 = vld [vmem:[%s6139_s1 + $0xfe8] sm:$0xff] }
 0x13e   :  { %v387_v11 = vld [vmem:[%s6139_s1 + $0x988] sm:$0xff]  ;;  %v1359_v14 = vpack.c.bf16 %v591_v6, %v587_v5  ;;  %1914 = vmatpush.bf16.msrb.mxu2 %v1327_v10 }
 0x13f   :  { %v391_v12 = vld [vmem:[%s6139_s1 + $0x9a8] sm:$0xff] }
 0x140   :  { %v451_v13 = vld [vmem:[%s6139_s1 + $0xb88] sm:$0xff]  ;;  %v1259_v28 = vpack.c.bf16 %v391_v12, %v387_v11  ;;  %1927 = vmatpush.bf16.msrb.mxu3 %v1359_v14 }
 0x141   :  { %v455_v16 = vld [vmem:[%s6139_s1 + $0xba8] sm:$0xff] }
 0x142   :  { %v515_v17 = vld [vmem:[%s6139_s1 + $0xd88] sm:$0xff]  ;;  %v1291_v29 = vpack.c.bf16 %v455_v16, %v451_v13  ;;  %1889 = vmatpush.bf16.msrb.mxu0 %v1259_v28 }
 0x143   :  { %v519_v18 = vld [vmem:[%s6139_s1 + $0xda8] sm:$0xff] }
 0x144   :  { %v579_v22 = vld [vmem:[%s6139_s1 + $0xf88] sm:$0xff]  ;;  %v1323_v30 = vpack.c.bf16 %v519_v18, %v515_v17  ;;  %1902 = vmatpush.bf16.msrb.mxu1 %v1291_v29 }
 0x145   :  { %v583_v25 = vld [vmem:[%s6139_s1 + $0xfa8] sm:$0xff] }
 0x146   :  { %v379_v31 = vld [vmem:[%s6139_s1 + $0x948] sm:$0xff]  ;;  %v1355_v37 = vpack.c.bf16 %v583_v25, %v579_v22  ;;  %1915 = vmatpush.bf16.msrb.mxu2 %v1323_v30  ;;  %v1618_v22 = vld [vmem:[%s6140_s2] sm:$0xf] }
 0x147   :  { %v383_v32 = vld [vmem:[%s6139_s1 + $0x968] sm:$0xff] }
 0x148   :  { %v443_v33 = vld [vmem:[%s6139_s1 + $0xb48] sm:$0xff]  ;;  %v1255_v48 = vpack.c.bf16 %v383_v32, %v379_v31  ;;  %1928 = vmatpush.bf16.msrb.mxu3 %v1355_v37 }
 0x149   :  { %v447_v38 = vld [vmem:[%s6139_s1 + $0xb68] sm:$0xff] }
 0x14a   :  { %v507_v41 = vld [vmem:[%s6139_s1 + $0xd48] sm:$0xff]  ;;  %v1287_v49 = vpack.c.bf16 %v447_v38, %v443_v33  ;;  %1890 = vmatpush.bf16.msrb.mxu0 %v1255_v48  ;;  %v1620_v38 = vperm.slane %v1618_v22, 0 }
 0x14b   :  { %v511_v45 = vld [vmem:[%s6139_s1 + $0xd68] sm:$0xff] }
 0x14c   :  { %v571_v46 = vld [vmem:[%s6139_s1 + $0xf48] sm:$0xff]  ;;  %v1319_v50 = vpack.c.bf16 %v511_v45, %v507_v41  ;;  %1903 = vmatpush.bf16.msrb.mxu1 %v1287_v49 }
 0x14d   :  { %v575_v47 = vld [vmem:[%s6139_s1 + $0xf68] sm:$0xff] }
 0x14e   :  { %v371_v51 = vld [vmem:[%s6139_s1 + $0x908] sm:$0xff]  ;;  %v1351_v54 = vpack.c.bf16 %v575_v47, %v571_v46  ;;  %1916 = vmatpush.bf16.msrb.mxu2 %v1319_v50 }
 0x14f   :  { %v375_v52 = vld [vmem:[%s6139_s1 + $0x928] sm:$0xff] }
 0x150   :  { %v435_v53 = vld [vmem:[%s6139_s1 + $0xb08] sm:$0xff]  ;;  %v1251_v60 = vpack.c.bf16 %v375_v52, %v371_v51  ;;  %1929 = vmatpush.bf16.msrb.mxu3 %v1351_v54 }
 0x151   :  { %v439_v55 = vld [vmem:[%s6139_s1 + $0xb28] sm:$0xff] }
 0x152   :  { %v499_v56 = vld [vmem:[%s6139_s1 + $0xd08] sm:$0xff]  ;;  %v1283_v61 = vpack.c.bf16 %v439_v55, %v435_v53  ;;  %1891 = vmatpush.bf16.msrb.mxu0 %v1251_v60  ;;  %v1637_v53 = vpop.f32.mrf.mxu0 }
 0x153   :  { %v503_v57 = vld [vmem:[%s6139_s1 + $0xd28] sm:$0xff] }
 0x154   :  { %v563_v58 = vld [vmem:[%s6139_s1 + $0xf08] sm:$0xff]  ;;  %v1315_v62 = vpack.c.bf16 %v503_v57, %v499_v56  ;;  %1904 = vmatpush.bf16.msrb.mxu1 %v1283_v61 }
 0x155   :  { %v567_v59 = vld [vmem:[%s6139_s1 + $0xf28] sm:$0xff] }
 0x156   :  { %v363_v63 = vld [vmem:[%s6139_s1 + $0x8c8] sm:$0xff]  ;;  %v1347_v2 = vpack.c.bf16 %v567_v59, %v563_v58  ;;  %1917 = vmatpush.bf16.msrb.mxu2 %v1315_v62  ;;  %v1638_v59 = vadd.f32 %v1637_v53, %v1620_v38 }
 0x157   :  { %v367_v0 = vld [vmem:[%s6139_s1 + $0x8e8] sm:$0xff] }
 0x158   :  { %v427_v1 = vld [vmem:[%s6139_s1 + $0xac8] sm:$0xff]  ;;  %v1247_v8 = vpack.c.bf16 %v367_v0, %v363_v63  ;;  %1930 = vmatpush.bf16.msrb.mxu3 %v1347_v2 }
 0x159   :  { %v431_v3 = vld [vmem:[%s6139_s1 + $0xae8] sm:$0xff] }
 0x15a   :  { %v491_v4 = vld [vmem:[%s6139_s1 + $0xcc8] sm:$0xff]  ;;  %v1279_v10 = vpack.c.bf16 %v431_v3, %v427_v1  ;;  %1892 = vmatpush.bf16.msrb.mxu0 %v1247_v8  ;;  %v1650_v3 = vpop.f32.mrf.mxu1  ;;  %v1639_v38 = vpop.f32.mrf.mxu0 }
 0x15b   :  { %v495_v5 = vld [vmem:[%s6139_s1 + $0xce8] sm:$0xff]  ;;  %v1651_v8 = vadd.f32 %v1650_v3, %v1638_v59 }
 0x15c   :  { %v555_v6 = vld [vmem:[%s6139_s1 + $0xec8] sm:$0xff]  ;;  %v1311_v11 = vpack.c.bf16 %v495_v5, %v491_v4  ;;  %1905 = vmatpush.bf16.msrb.mxu1 %v1279_v10 }
 0x15d   :  { %v559_v7 = vld [vmem:[%s6139_s1 + $0xee8] sm:$0xff] }
 0x15e   :  { %v355_v9 = vld [vmem:[%s6139_s1 + $0x888] sm:$0xff]  ;;  %v1343_v16 = vpack.c.bf16 %v559_v7, %v555_v6  ;;  %1918 = vmatpush.bf16.msrb.mxu2 %v1311_v11 }
 0x15f   :  { %v359_v12 = vld [vmem:[%s6139_s1 + $0x8a8] sm:$0xff] }
 0x160   :  { %v419_v13 = vld [vmem:[%s6139_s1 + $0xa88] sm:$0xff]  ;;  %v1243_v29 = vpack.c.bf16 %v359_v12, %v355_v9  ;;  %1931 = vmatpush.bf16.msrb.mxu3 %v1343_v16  ;;  %v1663_v16 = vpop.f32.mrf.mxu2 }
 0x161   :  { %v423_v14 = vld [vmem:[%s6139_s1 + $0xaa8] sm:$0xff] }
 0x162   :  { %v483_v17 = vld [vmem:[%s6139_s1 + $0xc88] sm:$0xff]  ;;  %v1275_v30 = vpack.c.bf16 %v423_v14, %v419_v13  ;;  %1893 = vmatpush.bf16.msrb.mxu0 %v1243_v29  ;;  %v1664_v29 = vadd.f32 %v1663_v16, %v1651_v8  ;;  %v1652_v53 = vpop.f32.mrf.mxu1 }
 0x163   :  { %v487_v18 = vld [vmem:[%s6139_s1 + $0xca8] sm:$0xff] }
 0x164   :  { %v547_v25 = vld [vmem:[%s6139_s1 + $0xe88] sm:$0xff]  ;;  %v1307_v31 = vpack.c.bf16 %v487_v18, %v483_v17  ;;  %1906 = vmatpush.bf16.msrb.mxu1 %v1275_v30  ;;  %v1676_v30 = vpop.f32.mrf.mxu3 }
 0x165   :  { %v551_v28 = vld [vmem:[%s6139_s1 + $0xea8] sm:$0xff] }
 0x166   :  { %v347_v32 = vld [vmem:[%s6139_s1 + $0x848] sm:$0xff]  ;;  %v1339_v41 = vpack.c.bf16 %v551_v28, %v547_v25  ;;  %1919 = vmatpush.bf16.msrb.mxu2 %v1307_v31 }
 0x167   :  { %v351_v33 = vld [vmem:[%s6139_s1 + $0x868] sm:$0xff] }
 0x168   :  { %v411_v37 = vld [vmem:[%s6139_s1 + $0xa48] sm:$0xff]  ;;  %v1239_v50 = vpack.c.bf16 %v351_v33, %v347_v32  ;;  %1932 = vmatpush.bf16.msrb.mxu3 %v1339_v41 }
 0x169   :  { %v415_v45 = vld [vmem:[%s6139_s1 + $0xa68] sm:$0xff] }
 0x16a   :  { %v475_v46 = vld [vmem:[%s6139_s1 + $0xc48] sm:$0xff]  ;;  %v1271_v54 = vpack.c.bf16 %v415_v45, %v411_v37  ;;  %1894 = vmatpush.bf16.msrb.mxu0 %v1239_v50 }
 0x16b   :  { %v479_v47 = vld [vmem:[%s6139_s1 + $0xc68] sm:$0xff] }
 0x16c   :  { %v539_v48 = vld [vmem:[%s6139_s1 + $0xe48] sm:$0xff]  ;;  %v1303_v55 = vpack.c.bf16 %v479_v47, %v475_v46  ;;  %1907 = vmatpush.bf16.msrb.mxu1 %v1271_v54  ;;  %v1677_v46 = vadd.f32 %v1676_v30, %v1664_v29  ;;  %v1678_v3 = vpop.f32.mrf.mxu3 }
 0x16d   :  { %v543_v49 = vld [vmem:[%s6139_s1 + $0xe68] sm:$0xff] }
 0x16e   :  { %v339_v51 = vld [vmem:[%s6139_s1 + $0x808] sm:$0xff]  ;;  %v1335_v60 = vpack.c.bf16 %v543_v49, %v539_v48  ;;  %1920 = vmatpush.bf16.msrb.mxu2 %v1303_v55 }
 0x16f   :  { %v343_v52 = vld [vmem:[%s6139_s1 + $0x828] sm:$0xff] }
 0x170   :  { %v403_v56 = vld [vmem:[%s6139_s1 + $0xa08] sm:$0xff]  ;;  %v1235_v4 = vpack.c.bf16 %v343_v52, %v339_v51  ;;  %1933 = vmatpush.bf16.msrb.mxu3 %v1335_v60 }
 0x171   :  { %v407_v57 = vld [vmem:[%s6139_s1 + $0xa28] sm:$0xff] }
 0x172   :  { %v467_v58 = vld [vmem:[%s6139_s1 + $0xc08] sm:$0xff]  ;;  %v1267_v9 = vpack.c.bf16 %v407_v57, %v403_v56  ;;  %1895 = vmatpush.bf16.msrb.mxu0 %v1235_v4 }
 0x173   :  { %v471_v61 = vld [vmem:[%s6139_s1 + $0xc28] sm:$0xff] }
 0x174   :  { %v531_v62 = vld [vmem:[%s6139_s1 + $0xe08] sm:$0xff]  ;;  %v1299_v10 = vpack.c.bf16 %v471_v61, %v467_v58  ;;  %1908 = vmatpush.bf16.msrb.mxu1 %v1267_v9  ;;  %v1665_v61 = vpop.f32.mrf.mxu2 }
 0x175   :  { %v535_v63 = vld [vmem:[%s6139_s1 + $0xe28] sm:$0xff]  ;;  %1896 = vmatmul.bf16.vlgmr.msrb.gmra.mxu0 %v3157_v39 }
 0x176   :  { %v651_v0 = vld [vmem:[%s6139_s1 + $0x11c8] sm:$0xff]  ;;  %v1331_v13 = vpack.c.bf16 %v535_v63, %v531_v62  ;;  %1921 = vmatpush.bf16.msrb.mxu2 %v1299_v10 }
 0x177   :  { %v655_v1 = vld [vmem:[%s6139_s1 + $0x11e8] sm:$0xff]  ;;  %1909 = vmatmul.bf16.vlgmr.msrb.gmra.mxu1 %v3161_v44 }
 0x178   :  { %v715_v2 = vld [vmem:[%s6139_s1 + $0x13c8] sm:$0xff]  ;;  %v1391_v14 = vpack.c.bf16 %v655_v1, %v651_v0  ;;  %1934 = vmatpush.bf16.msrb.mxu3 %v1331_v13 }
 0x179   :  { %v719_v5 = vld [vmem:[%s6139_s1 + $0x13e8] sm:$0xff]  ;;  %1922 = vmatmul.bf16.vlgmr.msrb.gmra.mxu2 %v3149_v36 }
 0x17a   :  { %v779_v6 = vld [vmem:[%s6139_s1 + $0x15c8] sm:$0xff]  ;;  %v1423_v17 = vpack.c.bf16 %v719_v5, %v715_v2  ;;  %1940 = vmatpush.bf16.msra.mxu0 %v1391_v14 }
 0x17b   :  { %v783_v7 = vld [vmem:[%s6139_s1 + $0x15e8] sm:$0xff]  ;;  %1935 = vmatmul.bf16.vlgmr.msrb.gmra.mxu3 %v3159_v40 }
 0x17c   :  { %v843_v11 = vld [vmem:[%s6139_s1 + $0x17c8] sm:$0xff]  ;;  %v1455_v18 = vpack.c.bf16 %v783_v7, %v779_v6  ;;  %1953 = vmatpush.bf16.msra.mxu1 %v1423_v17 }
 0x17d   :  { %v847_v12 = vld [vmem:[%s6139_s1 + $0x17e8] sm:$0xff] }
 0x17e   :  { %v643_v22 = vld [vmem:[%s6139_s1 + $0x1188] sm:$0xff]  ;;  %v1487_v31 = vpack.c.bf16 %v847_v12, %v843_v11  ;;  %1966 = vmatpush.bf16.msra.mxu2 %v1455_v18  ;;  %v1689_v11 = vpop.f32.mrf.mxu0 }
 0x17f   :  { %v647_v25 = vld [vmem:[%s6139_s1 + $0x11a8] sm:$0xff]  ;;  %v1690_v18 = vadd.f32 %v1689_v11, %v1677_v46 }
 0x180   :  { %v707_v28 = vld [vmem:[%s6139_s1 + $0x1388] sm:$0xff]  ;;  %v1387_v47 = vpack.c.bf16 %v647_v25, %v643_v22  ;;  %1979 = vmatpush.bf16.msra.mxu3 %v1487_v31  ;;  %v1702_v22 = vpop.f32.mrf.mxu1 }
 0x181   :  { %v711_v32 = vld [vmem:[%s6139_s1 + $0x13a8] sm:$0xff] }
 0x182   :  { %v771_v33 = vld [vmem:[%s6139_s1 + $0x1588] sm:$0xff]  ;;  %v1419_v48 = vpack.c.bf16 %v711_v32, %v707_v28  ;;  %1941 = vmatpush.bf16.msra.mxu0 %v1387_v47 }
 0x183   :  { %v775_v37 = vld [vmem:[%s6139_s1 + $0x15a8] sm:$0xff] }
 0x184   :  { %v835_v41 = vld [vmem:[%s6139_s1 + $0x1788] sm:$0xff]  ;;  %v1451_v49 = vpack.c.bf16 %v775_v37, %v771_v33  ;;  %1954 = vmatpush.bf16.msra.mxu1 %v1419_v48  ;;  %v1703_v33 = vadd.f32 %v1702_v22, %v1690_v18  ;;  %v1715_v48 = vpop.f32.mrf.mxu2 }
 0x185   :  { %v839_v45 = vld [vmem:[%s6139_s1 + $0x17a8] sm:$0xff] }
 0x186   :  { %v635_v50 = vld [vmem:[%s6139_s1 + $0x1148] sm:$0xff]  ;;  %v1483_v54 = vpack.c.bf16 %v839_v45, %v835_v41  ;;  %1967 = vmatpush.bf16.msra.mxu2 %v1451_v49  ;;  %v1716_v53 = vadd.f32 %v1715_v48, %v1703_v33 }
 0x187   :  { %v639_v51 = vld [vmem:[%s6139_s1 + $0x1168] sm:$0xff] }
 0x188   :  { %v699_v52 = vld [vmem:[%s6139_s1 + $0x1348] sm:$0xff]  ;;  %v1383_v60 = vpack.c.bf16 %v639_v51, %v635_v50  ;;  %1980 = vmatpush.bf16.msra.mxu3 %v1483_v54  ;;  %v1728_v54 = vpop.f32.mrf.mxu3 }
 0x189   :  { %v703_v55 = vld [vmem:[%s6139_s1 + $0x1368] sm:$0xff] }
 0x18a   :  { %v763_v56 = vld [vmem:[%s6139_s1 + $0x1548] sm:$0xff]  ;;  %v1415_v62 = vpack.c.bf16 %v703_v55, %v699_v52  ;;  %1942 = vmatpush.bf16.msra.mxu0 %v1383_v60 }
 0x18b   :  { %v767_v57 = vld [vmem:[%s6139_s1 + $0x1568] sm:$0xff] }
 0x18c   :  { %v827_v58 = vld [vmem:[%s6139_s1 + $0x1748] sm:$0xff]  ;;  %v1447_v63 = vpack.c.bf16 %v767_v57, %v763_v56  ;;  %1955 = vmatpush.bf16.msra.mxu1 %v1415_v62 }
 0x18d   :  { %v831_v59 = vld [vmem:[%s6139_s1 + $0x1768] sm:$0xff] }
 0x18e   :  { %v627_v0 = vld [vmem:[%s6139_s1 + $0x1108] sm:$0xff]  ;;  %v1479_v4 = vpack.c.bf16 %v831_v59, %v827_v58  ;;  %1968 = vmatpush.bf16.msra.mxu2 %v1447_v63  ;;  %v4066_v58 = vadd.f32 %v1728_v54, %v1716_v53  ;;  %v1691_v59 = vpop.f32.mrf.mxu0 }
 0x18f   :  { %v631_v1 = vld [vmem:[%s6139_s1 + $0x1128] sm:$0xff] }
 0x190   :  { %v691_v2 = vld [vmem:[%s6139_s1 + $0x1308] sm:$0xff]  ;;  %v1379_v10 = vpack.c.bf16 %v631_v1, %v627_v0  ;;  %1981 = vmatpush.bf16.msra.mxu3 %v1479_v4  ;;  %v1704_v1 = vpop.f32.mrf.mxu1 }
 0x191   :  { %v695_v5 = vld [vmem:[%s6139_s1 + $0x1328] sm:$0xff] }
 0x192   :  { %v755_v6 = vld [vmem:[%s6139_s1 + $0x1508] sm:$0xff]  ;;  %v1411_v12 = vpack.c.bf16 %v695_v5, %v691_v2  ;;  %1943 = vmatpush.bf16.msra.mxu0 %v1379_v10 }
 0x193   :  { %v759_v7 = vld [vmem:[%s6139_s1 + $0x1528] sm:$0xff] }
 0x194   :  { %v819_v8 = vld [vmem:[%s6139_s1 + $0x1708] sm:$0xff]  ;;  %v1443_v13 = vpack.c.bf16 %v759_v7, %v755_v6  ;;  %1956 = vmatpush.bf16.msra.mxu1 %v1411_v12 }
 0x195   :  { %v823_v9 = vld [vmem:[%s6139_s1 + $0x1728] sm:$0xff] }
 0x196   :  { %v619_v14 = vld [vmem:[%s6139_s1 + $0x10c8] sm:$0xff]  ;;  %v1475_v25 = vpack.c.bf16 %v823_v9, %v819_v8  ;;  %1969 = vmatpush.bf16.msra.mxu2 %v1443_v13 }
 0x197   :  { %v623_v16 = vld [vmem:[%s6139_s1 + $0x10e8] sm:$0xff] }
 0x198   :  { %v683_v17 = vld [vmem:[%s6139_s1 + $0x12c8] sm:$0xff]  ;;  %v1375_v37 = vpack.c.bf16 %v623_v16, %v619_v14  ;;  %1982 = vmatpush.bf16.msra.mxu3 %v1475_v25 }
 0x199   :  { %v687_v28 = vld [vmem:[%s6139_s1 + $0x12e8] sm:$0xff] }
 0x19a   :  { %v747_v29 = vld [vmem:[%s6139_s1 + $0x14c8] sm:$0xff]  ;;  %v1407_v38 = vpack.c.bf16 %v687_v28, %v683_v17  ;;  %1944 = vmatpush.bf16.msra.mxu0 %v1375_v37  ;;  %v1717_v17 = vpop.f32.mrf.mxu2 }
 0x19b   :  { %v751_v30 = vld [vmem:[%s6139_s1 + $0x14e8] sm:$0xff] }
 0x19c   :  { %v811_v31 = vld [vmem:[%s6139_s1 + $0x16c8] sm:$0xff]  ;;  %v1439_v41 = vpack.c.bf16 %v751_v30, %v747_v29  ;;  %1957 = vmatpush.bf16.msra.mxu1 %v1407_v38  ;;  %v1730_v29 = vpop.f32.mrf.mxu3 }
 0x19d   :  { %v815_v32 = vld [vmem:[%s6139_s1 + $0x16e8] sm:$0xff]  ;;  %v1741_v29 = vpop.f32.mrf.mxu0 }
 0x19e   :  { %v611_v45 = vld [vmem:[%s6139_s1 + $0x1088] sm:$0xff]  ;;  %v1471_v49 = vpack.c.bf16 %v815_v32, %v811_v31  ;;  %1970 = vmatpush.bf16.msra.mxu2 %v1439_v41 }
 0x19f   :  { %v615_v46 = vld [vmem:[%s6139_s1 + $0x10a8] sm:$0xff] }
 0x1a0   :  { %v675_v47 = vld [vmem:[%s6139_s1 + $0x1288] sm:$0xff]  ;;  %v1371_v57 = vpack.c.bf16 %v615_v46, %v611_v45  ;;  %1983 = vmatpush.bf16.msra.mxu3 %v1471_v49 }
 0x1a1   :  { %v679_v50 = vld [vmem:[%s6139_s1 + $0x12a8] sm:$0xff] }
 0x1a2   :  { %v739_v51 = vld [vmem:[%s6139_s1 + $0x1488] sm:$0xff]  ;;  %v1403_v60 = vpack.c.bf16 %v679_v50, %v675_v47  ;;  %1945 = vmatpush.bf16.msra.mxu0 %v1371_v57 }
 0x1a3   :  { %v743_v52 = vld [vmem:[%s6139_s1 + $0x14a8] sm:$0xff] }
 0x1a4   :  { %v803_v55 = vld [vmem:[%s6139_s1 + $0x1688] sm:$0xff]  ;;  %v1435_v61 = vpack.c.bf16 %v743_v52, %v739_v51  ;;  %1958 = vmatpush.bf16.msra.mxu1 %v1403_v60 }
 0x1a5   :  { %v807_v56 = vld [vmem:[%s6139_s1 + $0x16a8] sm:$0xff] }
 0x1a6   :  { %v603_v62 = vld [vmem:[%s6139_s1 + $0x1048] sm:$0xff]  ;;  %v1467_v2 = vpack.c.bf16 %v807_v56, %v803_v55  ;;  %1971 = vmatpush.bf16.msra.mxu2 %v1435_v61 }
 0x1a7   :  { %v607_v63 = vld [vmem:[%s6139_s1 + $0x1068] sm:$0xff] }
 0x1a8   :  { %v667_v0 = vld [vmem:[%s6139_s1 + $0x1248] sm:$0xff]  ;;  %v1367_v8 = vpack.c.bf16 %v607_v63, %v603_v62  ;;  %1984 = vmatpush.bf16.msra.mxu3 %v1467_v2 }
 0x1a9   :  { %v671_v3 = vld [vmem:[%s6139_s1 + $0x1268] sm:$0xff] }
 0x1aa   :  { %v731_v4 = vld [vmem:[%s6139_s1 + $0x1448] sm:$0xff]  ;;  %v1399_v11 = vpack.c.bf16 %v671_v3, %v667_v0  ;;  %1946 = vmatpush.bf16.msra.mxu0 %v1367_v8 }
 0x1ab   :  { %v735_v5 = vld [vmem:[%s6139_s1 + $0x1468] sm:$0xff] }
 0x1ac   :  { %v795_v6 = vld [vmem:[%s6139_s1 + $0x1648] sm:$0xff]  ;;  %v1431_v12 = vpack.c.bf16 %v735_v5, %v731_v4  ;;  %1959 = vmatpush.bf16.msra.mxu1 %v1399_v11 }
 0x1ad   :  { %v799_v7 = vld [vmem:[%s6139_s1 + $0x1668] sm:$0xff] }
 0x1ae   :  { %v595_v9 = vld [vmem:[%s6139_s1 + $0x1008] sm:$0xff]  ;;  %v1463_v18 = vpack.c.bf16 %v799_v7, %v795_v6  ;;  %1972 = vmatpush.bf16.msra.mxu2 %v1431_v12 }
 0x1af   :  { %v599_v10 = vld [vmem:[%s6139_s1 + $0x1028] sm:$0xff] }
 0x1b0   :  { %v659_v13 = vld [vmem:[%s6139_s1 + $0x1208] sm:$0xff]  ;;  %v1363_v33 = vpack.c.bf16 %v599_v10, %v595_v9  ;;  %1985 = vmatpush.bf16.msra.mxu3 %v1463_v18 }
 0x1b1   :  { %v663_v14 = vld [vmem:[%s6139_s1 + $0x1228] sm:$0xff] }
 0x1b2   :  { %v723_v16 = vld [vmem:[%s6139_s1 + $0x1408] sm:$0xff]  ;;  %v1395_v45 = vpack.c.bf16 %v663_v14, %v659_v13  ;;  %1947 = vmatpush.bf16.msra.mxu0 %v1363_v33 }
 0x1b3   :  { %v727_v22 = vld [vmem:[%s6139_s1 + $0x1428] sm:$0xff] }
 0x1b4   :  { %v787_v25 = vld [vmem:[%s6139_s1 + $0x1608] sm:$0xff]  ;;  %v1427_v46 = vpack.c.bf16 %v727_v22, %v723_v16  ;;  %1960 = vmatpush.bf16.msra.mxu1 %v1395_v45 }
 0x1b5   :  { %v791_v28 = vld [vmem:[%s6139_s1 + $0x1628] sm:$0xff]  ;;  %1948 = vmatmul.bf16.vlgmr.msra.gmra.mxu0 %v3344_v19 }
 0x1b6   :  { %v907_v30 = vld [vmem:[%s6139_s1 + $0x19c8] sm:$0xff]  ;;  %v1459_v49 = vpack.c.bf16 %v791_v28, %v787_v25  ;;  %1973 = vmatpush.bf16.msra.mxu2 %v1427_v46 }
 0x1b7   :  { %v911_v31 = vld [vmem:[%s6139_s1 + $0x19e8] sm:$0xff]  ;;  %1961 = vmatmul.bf16.vlgmr.msra.gmra.mxu1 %v3357_v24 }
 0x1b8   :  { %v971_v32 = vld [vmem:[%s6139_s1 + $0x1bc8] sm:$0xff]  ;;  %v1519_v50 = vpack.c.bf16 %v911_v31, %v907_v30  ;;  %1986 = vmatpush.bf16.msra.mxu3 %v1459_v49 }
 0x1b9   :  { %v975_v37 = vld [vmem:[%s6139_s1 + $0x1be8] sm:$0xff]  ;;  %1974 = vmatmul.bf16.vlgmr.msra.gmra.mxu2 %v3355_v23 }
 0x1ba   :  { %v1035_v38 = vld [vmem:[%s6139_s1 + $0x1dc8] sm:$0xff]  ;;  %v1551_v51 = vpack.c.bf16 %v975_v37, %v971_v32  ;;  %1992 = vmatpush.bf16.msrb.mxu0 %v1519_v50  ;;  %v1742_v32 = vadd.f32 %v1741_v29, %v4066_v58  ;;  %v1754_v37 = vpop.f32.mrf.mxu1 }
 0x1bb   :  { %v1039_v41 = vld [vmem:[%s6139_s1 + $0x1de8] sm:$0xff]  ;;  %1987 = vmatmul.bf16.vlgmr.msra.gmra.mxu3 %v3365_v27 }
 0x1bc   :  { %v1099_v47 = vld [vmem:[%s6139_s1 + $0x1fc8] sm:$0xff]  ;;  %v1583_v52 = vpack.c.bf16 %v1039_v41, %v1035_v38  ;;  %2005 = vmatpush.bf16.msrb.mxu1 %v1551_v51 }
 0x1bd   :  { %v1103_v48 = vld [vmem:[%s6139_s1 + $0x1fe8] sm:$0xff] }
 0x1be   :  { %v899_v53 = vld [vmem:[%s6139_s1 + $0x1988] sm:$0xff]  ;;  %v1615_v56 = vpack.c.bf16 %v1103_v48, %v1099_v47  ;;  %2018 = vmatpush.bf16.msrb.mxu2 %v1583_v52  ;;  %v1755_v48 = vadd.f32 %v1754_v37, %v1742_v32 }
 0x1bf   :  { %v903_v54 = vld [vmem:[%s6139_s1 + $0x19a8] sm:$0xff] }
 0x1c0   :  { %v963_v55 = vld [vmem:[%s6139_s1 + $0x1b88] sm:$0xff]  ;;  %v1515_v63 = vpack.c.bf16 %v903_v54, %v899_v53  ;;  %2031 = vmatpush.bf16.msrb.mxu3 %v1615_v56 }
 0x1c1   :  { %v967_v57 = vld [vmem:[%s6139_s1 + $0x1ba8] sm:$0xff] }
 0x1c2   :  { %v1027_v59 = vld [vmem:[%s6139_s1 + $0x1d88] sm:$0xff]  ;;  %v1547_v0 = vpack.c.bf16 %v967_v57, %v963_v55  ;;  %1993 = vmatpush.bf16.msrb.mxu0 %v1515_v63 }
 0x1c3   :  { %v1031_v60 = vld [vmem:[%s6139_s1 + $0x1da8] sm:$0xff] }
 0x1c4   :  { %v1091_v61 = vld [vmem:[%s6139_s1 + $0x1f88] sm:$0xff]  ;;  %v1579_v1 = vpack.c.bf16 %v1031_v60, %v1027_v59  ;;  %2006 = vmatpush.bf16.msrb.mxu1 %v1547_v0 }
 0x1c5   :  { %v1095_v62 = vld [vmem:[%s6139_s1 + $0x1fa8] sm:$0xff] }
 0x1c6   :  { %v891_v2 = vld [vmem:[%s6139_s1 + $0x1948] sm:$0xff]  ;;  %v1611_v5 = vpack.c.bf16 %v1095_v62, %v1091_v61  ;;  %2019 = vmatpush.bf16.msrb.mxu2 %v1579_v1  ;;  %v1767_v62 = vpop.f32.mrf.mxu2 }
 0x1c7   :  { %v895_v3 = vld [vmem:[%s6139_s1 + $0x1968] sm:$0xff] }
 0x1c8   :  { %v955_v4 = vld [vmem:[%s6139_s1 + $0x1b48] sm:$0xff]  ;;  %v1511_v11 = vpack.c.bf16 %v895_v3, %v891_v2  ;;  %2032 = vmatpush.bf16.msrb.mxu3 %v1611_v5  ;;  %v1768_v2 = vadd.f32 %v1767_v62, %v1755_v48  ;;  %v1780_v3 = vpop.f32.mrf.mxu3 }
 0x1c9   :  { %v959_v6 = vld [vmem:[%s6139_s1 + $0x1b68] sm:$0xff] }
 0x1ca   :  { %v1019_v7 = vld [vmem:[%s6139_s1 + $0x1d48] sm:$0xff]  ;;  %v1543_v12 = vpack.c.bf16 %v959_v6, %v955_v4  ;;  %1994 = vmatpush.bf16.msrb.mxu0 %v1511_v11  ;;  %v1743_v6 = vpop.f32.mrf.mxu0 }
 0x1cb   :  { %v1023_v8 = vld [vmem:[%s6139_s1 + $0x1d68] sm:$0xff]  ;;  %v200_v6 = vld [vmem:[%s6139_s1 + $0x3b0] sm:$0xff] }
 0x1cc   :  { %v1083_v9 = vld [vmem:[%s6139_s1 + $0x1f48] sm:$0xff]  ;;  %v1575_v13 = vpack.c.bf16 %v1023_v8, %v1019_v7  ;;  %2007 = vmatpush.bf16.msrb.mxu1 %v1543_v12  ;;  %v1756_v8 = vpop.f32.mrf.mxu1 }
 0x1cd   :  { %v1087_v10 = vld [vmem:[%s6139_s1 + $0x1f68] sm:$0xff]  ;;  %v264_v8 = vld [vmem:[%s6139_s1 + $0x5b0] sm:$0xff] }
 0x1ce   :  { %v883_v14 = vld [vmem:[%s6139_s1 + $0x1908] sm:$0xff]  ;;  %v1607_v18 = vpack.c.bf16 %v1087_v10, %v1083_v9  ;;  %2020 = vmatpush.bf16.msrb.mxu2 %v1575_v13  ;;  %v4265_v9 = vadd.f32 %v1780_v3, %v1768_v2  ;;  %v1769_v48 = vpop.f32.mrf.mxu2  ;;  %v132_v2 = vld [vmem:[%s6139_s1 + $0x190] sm:$0xff] }
 0x1cf   :  { %v887_v16 = vld [vmem:[%s6139_s1 + $0x1928] sm:$0xff]  ;;  %v136_v3 = vld [vmem:[%s6139_s1 + $0x1b0] sm:$0xff] }
 0x1d0   :  { %v947_v17 = vld [vmem:[%s6139_s1 + $0x1b08] sm:$0xff]  ;;  %v1507_v33 = vpack.c.bf16 %v887_v16, %v883_v14  ;;  %2033 = vmatpush.bf16.msrb.mxu3 %v1607_v18  ;;  %v248_v48 = vld [vmem:[%s6139_s1 + $0x530] sm:$0xff] }
 0x1d1   :  { %v951_v22 = vld [vmem:[%s6139_s1 + $0x1b28] sm:$0xff] }
 0x1d2   :  { %v1011_v25 = vld [vmem:[%s6139_s1 + $0x1d08] sm:$0xff]  ;;  %v1539_v38 = vpack.c.bf16 %v951_v22, %v947_v17  ;;  %1995 = vmatpush.bf16.msrb.mxu0 %v1507_v33 }
 0x1d3   :  { %v1015_v28 = vld [vmem:[%s6139_s1 + $0x1d28] sm:$0xff] }
 0x1d4   :  { %v1075_v30 = vld [vmem:[%s6139_s1 + $0x1f08] sm:$0xff]  ;;  %v1571_v41 = vpack.c.bf16 %v1015_v28, %v1011_v25  ;;  %2008 = vmatpush.bf16.msrb.mxu1 %v1539_v38 }
 0x1d5   :  { %v1079_v31 = vld [vmem:[%s6139_s1 + $0x1f28] sm:$0xff] }
 0x1d6   :  { %v875_v45 = vld [vmem:[%s6139_s1 + $0x18c8] sm:$0xff]  ;;  %v1603_v58 = vpack.c.bf16 %v1079_v31, %v1075_v30  ;;  %2021 = vmatpush.bf16.msrb.mxu2 %v1571_v41 }
 0x1d7   :  { %v879_v46 = vld [vmem:[%s6139_s1 + $0x18e8] sm:$0xff] }
 0x1d8   :  { %v939_v47 = vld [vmem:[%s6139_s1 + $0x1ac8] sm:$0xff]  ;;  %v1503_v54 = vpack.c.bf16 %v879_v46, %v875_v45  ;;  %2034 = vmatpush.bf16.msrb.mxu3 %v1603_v58 }
 0x1d9   :  { %v943_v49 = vld [vmem:[%s6139_s1 + $0x1ae8] sm:$0xff] }
 0x1da   :  { %v1003_v50 = vld [vmem:[%s6139_s1 + $0x1cc8] sm:$0xff]  ;;  %v1535_v55 = vpack.c.bf16 %v943_v49, %v939_v47  ;;  %1996 = vmatpush.bf16.msrb.mxu0 %v1503_v54  ;;  %v140_v49 = vld [vmem:[%s6139_s1 + $0x1d0] sm:$0xff] }
 0x1db   :  { %v1007_v51 = vld [vmem:[%s6139_s1 + $0x1ce8] sm:$0xff]  ;;  %v208_v54 = vld [vmem:[%s6139_s1 + $0x3f0] sm:$0xff] }
 0x1dc   :  { %v1067_v52 = vld [vmem:[%s6139_s1 + $0x1ec8] sm:$0xff]  ;;  %v1567_v56 = vpack.c.bf16 %v1007_v51, %v1003_v50  ;;  %2009 = vmatpush.bf16.msrb.mxu1 %v1535_v55  ;;  %v144_v50 = vld [vmem:[%s6139_s1 + $0x1f0] sm:$0xff] }
 0x1dd   :  { %v1071_v53 = vld [vmem:[%s6139_s1 + $0x1ee8] sm:$0xff]  ;;  %v204_v51 = vld [vmem:[%s6139_s1 + $0x3d0] sm:$0xff] }
 0x1de   :  { %v867_v57 = vld [vmem:[%s6139_s1 + $0x1888] sm:$0xff]  ;;  %v1599_v61 = vpack.c.bf16 %v1071_v53, %v1067_v52  ;;  %2022 = vmatpush.bf16.msrb.mxu2 %v1567_v56  ;;  %v1782_v52 = vpop.f32.mrf.mxu3  ;;  %v268_v55 = vld [vmem:[%s6139_s1 + $0x5d0] sm:$0xff] }
 0x1df   :  { %v871_v59 = vld [vmem:[%s6139_s1 + $0x18a8] sm:$0xff]  ;;  %v272_v56 = vld [vmem:[%s6139_s1 + $0x5f0] sm:$0xff] }
 0x1e0   :  { %v931_v60 = vld [vmem:[%s6139_s1 + $0x1a88] sm:$0xff]  ;;  %v1499_v7 = vpack.c.bf16 %v871_v59, %v867_v57  ;;  %2035 = vmatpush.bf16.msrb.mxu3 %v1599_v61  ;;  %v336_v61 = vld [vmem:[%s6139_s1 + $0x7f0] sm:$0xff] }
 0x1e1   :  { %v935_v63 = vld [vmem:[%s6139_s1 + $0x1aa8] sm:$0xff] }
 0x1e2   :  { %v995_v0 = vld [vmem:[%s6139_s1 + $0x1c88] sm:$0xff]  ;;  %v1531_v10 = vpack.c.bf16 %v935_v63, %v931_v60  ;;  %1997 = vmatpush.bf16.msrb.mxu0 %v1499_v7  ;;  %v332_v60 = vld [vmem:[%s6139_s1 + $0x7d0] sm:$0xff]  ;;  %v1136_v63 = vpack.c.bf16 %v144_v50, %v140_v49  ;;  %v1793_v49 = vpop.f32.mrf.mxu0 }
 0x1e3   :  { %v999_v1 = vld [vmem:[%s6139_s1 + $0x1ca8] sm:$0xff]  ;;  %v260_v7 = vld [vmem:[%s6139_s1 + $0x590] sm:$0xff]  ;;  %v1794_v52 = vadd.f32 %v1793_v49, %v4265_v9 }
 0x1e4   :  { %v1059_v4 = vld [vmem:[%s6139_s1 + $0x1e88] sm:$0xff]  ;;  %v1563_v11 = vpack.c.bf16 %v999_v1, %v995_v0  ;;  %2010 = vmatpush.bf16.msrb.mxu1 %v1531_v10  ;;  %v1168_v0 = vpack.c.bf16 %v208_v54, %v204_v51  ;;  %v1200_v1 = vpack.c.bf16 %v272_v56, %v268_v55  ;;  %v324_v10 = vld [vmem:[%s6139_s1 + $0x790] sm:$0xff]  ;;  %v1806_v54 = vpop.f32.mrf.mxu1 }
 0x1e5   :  { %v1063_v5 = vld [vmem:[%s6139_s1 + $0x1ea8] sm:$0xff]  ;;  %v308_v50 = vld [vmem:[%s6139_s1 + $0x710] sm:$0xff] }
 0x1e6   :  { %v859_v12 = vld [vmem:[%s6139_s1 + $0x1848] sm:$0xff]  ;;  %v1595_v16 = vpack.c.bf16 %v1063_v5, %v1059_v4  ;;  %2023 = vmatpush.bf16.msrb.mxu2 %v1563_v11  ;;  %v196_v4 = vld [vmem:[%s6139_s1 + $0x390] sm:$0xff]  ;;  %v1232_v5 = vpack.c.bf16 %v336_v61, %v332_v60  ;;  %v1807_v61 = vadd.f32 %v1806_v54, %v1794_v52 }
 0x1e7   :  { %v863_v13 = vld [vmem:[%s6139_s1 + $0x1868] sm:$0xff]  ;;  %v328_v11 = vld [vmem:[%s6139_s1 + $0x7b0] sm:$0xff] }
 0x1e8   :  { %v923_v14 = vld [vmem:[%s6139_s1 + $0x1a48] sm:$0xff]  ;;  %v1495_v29 = vpack.c.bf16 %v863_v13, %v859_v12  ;;  %2036 = vmatpush.bf16.msrb.mxu3 %v1595_v16  ;;  %v1132_v12 = vpack.c.bf16 %v136_v3, %v132_v2  ;;  %v1164_v13 = vpack.c.bf16 %v200_v6, %v196_v4  ;;  %v124_v16 = vld [vmem:[%s6139_s1 + $0x150] sm:$0xff] }
 0x1e9   :  { %v927_v17 = vld [vmem:[%s6139_s1 + $0x1a68] sm:$0xff]  ;;  %v312_v51 = vld [vmem:[%s6139_s1 + $0x730] sm:$0xff] }
 0x1ea   :  { %v987_v18 = vld [vmem:[%s6139_s1 + $0x1c48] sm:$0xff]  ;;  %v1527_v32 = vpack.c.bf16 %v927_v17, %v923_v14  ;;  %1998 = vmatpush.bf16.msrb.mxu0 %v1495_v29  ;;  %v1196_v14 = vpack.c.bf16 %v264_v8, %v260_v7  ;;  %v128_v17 = vld [vmem:[%s6139_s1 + $0x170] sm:$0xff]  ;;  %v1220_v9 = vpack.c.bf16 %v312_v51, %v308_v50 }
 0x1eb   :  { %v991_v22 = vld [vmem:[%s6139_s1 + $0x1c68] sm:$0xff]  ;;  %v256_v29 = vld [vmem:[%s6139_s1 + $0x570] sm:$0xff] }
 0x1ec   :  { %v1051_v25 = vld [vmem:[%s6139_s1 + $0x1e48] sm:$0xff]  ;;  %v1559_v33 = vpack.c.bf16 %v991_v22, %v987_v18  ;;  %2011 = vmatpush.bf16.msrb.mxu1 %v1527_v32  ;;  %v188_v18 = vld [vmem:[%s6139_s1 + $0x350] sm:$0xff]  ;;  %v1228_v22 = vpack.c.bf16 %v328_v11, %v324_v10  ;;  %v1128_v32 = vpack.c.bf16 %v128_v17, %v124_v16  ;;  %v1819_v11 = vpop.f32.mrf.mxu2  ;;  %v1832_v17 = vpop.f32.mrf.mxu3 }
 0x1ed   :  { %v1055_v28 = vld [vmem:[%s6139_s1 + $0x1e68] sm:$0xff]  ;;  %v172_v60 = vld [vmem:[%s6139_s1 + $0x2d0] sm:$0xff]  ;;  %v1820_v16 = vadd.f32 %v1819_v11, %v1807_v61 }
 0x1ee   :  { %v851_v30 = vld [vmem:[%s6139_s1 + $0x1808] sm:$0xff]  ;;  %v1591_v45 = vpack.c.bf16 %v1055_v28, %v1051_v25  ;;  %2024 = vmatpush.bf16.msrb.mxu2 %v1559_v33  ;;  %v192_v25 = vld [vmem:[%s6139_s1 + $0x370] sm:$0xff] }
 0x1ef   :  { %v855_v31 = vld [vmem:[%s6139_s1 + $0x1828] sm:$0xff]  ;;  %v252_v28 = vld [vmem:[%s6139_s1 + $0x550] sm:$0xff]  ;;  %v1160_v33 = vpack.c.bf16 %v192_v25, %v188_v18  ;;  %v1795_v25 = vpop.f32.mrf.mxu0 }
 0x1f0   :  { %v915_v37 = vld [vmem:[%s6139_s1 + $0x1a08] sm:$0xff]  ;;  %v1491_v53 = vpack.c.bf16 %v855_v31, %v851_v30  ;;  %2037 = vmatpush.bf16.msrb.mxu3 %v1591_v45  ;;  %v316_v30 = vld [vmem:[%s6139_s1 + $0x750] sm:$0xff] }
 0x1f1   :  { %v919_v38 = vld [vmem:[%s6139_s1 + $0x1a28] sm:$0xff]  ;;  %v320_v31 = vld [vmem:[%s6139_s1 + $0x770] sm:$0xff] }
 0x1f2   :  { %v979_v41 = vld [vmem:[%s6139_s1 + $0x1c08] sm:$0xff]  ;;  %v1523_v57 = vpack.c.bf16 %v919_v38, %v915_v37  ;;  %1999 = vmatpush.bf16.msrb.mxu0 %v1491_v53  ;;  %v1192_v37 = vpack.c.bf16 %v256_v29, %v252_v28  ;;  %v116_v38 = vld [vmem:[%s6139_s1 + $0x110] sm:$0xff]  ;;  %v1808_v29 = vpop.f32.mrf.mxu1 }
 0x1f3   :  { %v983_v46 = vld [vmem:[%s6139_s1 + $0x1c28] sm:$0xff]  ;;  %v180_v45 = vld [vmem:[%s6139_s1 + $0x310] sm:$0xff] }
 0x1f4   :  { %v1043_v47 = vld [vmem:[%s6139_s1 + $0x1e08] sm:$0xff]  ;;  %v1555_v59 = vpack.c.bf16 %v983_v46, %v979_v41  ;;  %2012 = vmatpush.bf16.msrb.mxu1 %v1523_v57  ;;  %v120_v41 = vld [vmem:[%s6139_s1 + $0x130] sm:$0xff]  ;;  %v1224_v46 = vpack.c.bf16 %v320_v31, %v316_v30  ;;  %v4464_v30 = vadd.f32 %v1832_v17, %v1820_v16  ;;  %v1821_v61 = vpop.f32.mrf.mxu2 }
 0x1f5   :  { %v1047_v58 = vld [vmem:[%s6139_s1 + $0x1e28] sm:$0xff]  ;;  %2000 = vmatmul.bf16.vlgmr.msrb.gmra.mxu0 %v3548_v15  ;;  %v1124_v53 = vpack.c.bf16 %v120_v41, %v116_v38  ;;  %v108_v57 = vld [vmem:[%s6139_s1 + $0xd0] sm:$0xff] }
 0x1f6   :  { %v1587_v62 = vpack.c.bf16 %v1047_v58, %v1043_v47  ;;  %2025 = vmatpush.bf16.msrb.mxu2 %v1555_v59  ;;  %2044 = vmatpush.bf16.msra.mxu0 %v1136_v63  ;;  %v184_v47 = vld [vmem:[%s6139_s1 + $0x330] sm:$0xff] }
 0x1f7   :  { %2013 = vmatmul.bf16.vlgmr.msrb.gmra.mxu1 %v3561_v21  ;;  %v244_v58 = vld [vmem:[%s6139_s1 + $0x510] sm:$0xff]  ;;  %v1156_v55 = vpack.c.bf16 %v184_v47, %v180_v45 }
 0x1f8   :  { %2038 = vmatpush.bf16.msrb.mxu3 %v1587_v62  ;;  %2057 = vmatpush.bf16.msra.mxu1 %v1168_v0  ;;  %v1188_v56 = vpack.c.bf16 %v248_v48, %v244_v58  ;;  %v112_v59 = vld [vmem:[%s6139_s1 + $0xf0] sm:$0xff] }
 0x1f9   :  { %2026 = vmatmul.bf16.vlgmr.msrb.gmra.mxu2 %v3559_v20  ;;  %v176_v62 = vld [vmem:[%s6139_s1 + $0x2f0] sm:$0xff]  ;;  %v1120_v3 = vpack.c.bf16 %v112_v59, %v108_v57 }
 0x1fa   :  { %2070 = vmatpush.bf16.msra.mxu2 %v1200_v1  ;;  %2045 = vmatpush.bf16.msra.mxu0 %v1132_v12  ;;  %v236_v63 = vld [vmem:[%s6139_s1 + $0x4d0] sm:$0xff]  ;;  %v1152_v4 = vpack.c.bf16 %v176_v62, %v172_v60 }
 0x1fb   :  { %2039 = vmatmul.bf16.vlgmr.msrb.gmra.mxu3 %v3569_v26  ;;  %v240_v0 = vld [vmem:[%s6139_s1 + $0x4f0] sm:$0xff] }
 0x1fc   :  { %2083 = vmatpush.bf16.msra.mxu3 %v1232_v5  ;;  %2058 = vmatpush.bf16.msra.mxu1 %v1164_v13  ;;  %v300_v1 = vld [vmem:[%s6139_s1 + $0x6d0] sm:$0xff]  ;;  %v1184_v5 = vpack.c.bf16 %v240_v0, %v236_v63 }
 0x1fd   :  { %v304_v2 = vld [vmem:[%s6139_s1 + $0x6f0] sm:$0xff] }
 0x1fe   :  { %2071 = vmatpush.bf16.msra.mxu2 %v1196_v14  ;;  %2046 = vmatpush.bf16.msra.mxu0 %v1128_v32  ;;  %v100_v6 = vld [vmem:[%s6139_s1 + $0x90] sm:$0xff]  ;;  %v1216_v10 = vpack.c.bf16 %v304_v2, %v300_v1  ;;  %v1834_v1 = vpop.f32.mrf.mxu3 }
 0x1ff   :  { %v104_v7 = vld [vmem:[%s6139_s1 + $0xb0] sm:$0xff] }
 0x200   :  { %2084 = vmatpush.bf16.msra.mxu3 %v1228_v22  ;;  %2059 = vmatpush.bf16.msra.mxu1 %v1160_v33  ;;  %v164_v8 = vld [vmem:[%s6139_s1 + $0x290] sm:$0xff]  ;;  %v1116_v28 = vpack.c.bf16 %v104_v7, %v100_v6 }
 0x201   :  { %v168_v12 = vld [vmem:[%s6139_s1 + $0x2b0] sm:$0xff] }
 0x202   :  { %2072 = vmatpush.bf16.msra.mxu2 %v1192_v37  ;;  %2047 = vmatpush.bf16.msra.mxu0 %v1124_v53  ;;  %v228_v13 = vld [vmem:[%s6139_s1 + $0x490] sm:$0xff]  ;;  %v1148_v31 = vpack.c.bf16 %v168_v12, %v164_v8 }
 0x203   :  { %v232_v14 = vld [vmem:[%s6139_s1 + $0x4b0] sm:$0xff] }
 0x204   :  { %2085 = vmatpush.bf16.msra.mxu3 %v1224_v46  ;;  %2060 = vmatpush.bf16.msra.mxu1 %v1156_v55  ;;  %v292_v18 = vld [vmem:[%s6139_s1 + $0x690] sm:$0xff]  ;;  %v1180_v32 = vpack.c.bf16 %v232_v14, %v228_v13 }
 0x205   :  { %v296_v22 = vld [vmem:[%s6139_s1 + $0x6b0] sm:$0xff] }
 0x206   :  { %2073 = vmatpush.bf16.msra.mxu2 %v1188_v56  ;;  %2048 = vmatpush.bf16.msra.mxu0 %v1120_v3  ;;  %v92_v33 = vld [vmem:[%s6139_s1 + $0x50] sm:$0xff]  ;;  %v1212_v41 = vpack.c.bf16 %v296_v22, %v292_v18 }
 0x207   :  { %v96_v37 = vld [vmem:[%s6139_s1 + $0x70] sm:$0xff] }
 0x208   :  { %2086 = vmatpush.bf16.msra.mxu3 %v1220_v9  ;;  %2061 = vmatpush.bf16.msra.mxu1 %v1152_v4  ;;  %v156_v38 = vld [vmem:[%s6139_s1 + $0x250] sm:$0xff]  ;;  %v1112_v49 = vpack.c.bf16 %v96_v37, %v92_v33 }
 0x209   :  { %v160_v45 = vld [vmem:[%s6139_s1 + $0x270] sm:$0xff] }
 0x20a   :  { %2074 = vmatpush.bf16.msra.mxu2 %v1184_v5  ;;  %v220_v46 = vld [vmem:[%s6139_s1 + $0x450] sm:$0xff]  ;;  %2049 = vmatpush.bf16.msra.mxu0 %v1116_v28  ;;  %v1144_v52 = vpack.c.bf16 %v160_v45, %v156_v38 }
 0x20b   :  { %v224_v47 = vld [vmem:[%s6139_s1 + $0x470] sm:$0xff] }
 0x20c   :  { %2087 = vmatpush.bf16.msra.mxu3 %v1216_v10  ;;  %v284_v58 = vld [vmem:[%s6139_s1 + $0x650] sm:$0xff]  ;;  %2062 = vmatpush.bf16.msra.mxu1 %v1148_v31  ;;  %v1176_v53 = vpack.c.bf16 %v224_v47, %v220_v46 }
 0x20d   :  { %v288_v48 = vld [vmem:[%s6139_s1 + $0x670] sm:$0xff] }
 0x20e   :  { %v84_v50 = vld [vmem:[%s6139_s1 + $0x10] sm:$0xff]  ;;  %2075 = vmatpush.bf16.msra.mxu2 %v1180_v32  ;;  %v1208_v57 = vpack.c.bf16 %v288_v48, %v284_v58  ;;  %2050 = vmatpush.bf16.msra.mxu0 %v1112_v49 }
 0x20f   :  { %v88_v51 = vld [vmem:[%s6139_s1 + $0x30] sm:$0xff] }
 0x210   :  { %v148_v54 = vld [vmem:[%s6139_s1 + $0x210] sm:$0xff]  ;;  %2088 = vmatpush.bf16.msra.mxu3 %v1212_v41  ;;  %v1108_v2 = vpack.c.bf16 %v88_v51, %v84_v50  ;;  %2063 = vmatpush.bf16.msra.mxu1 %v1144_v52 }
 0x211   :  { %v152_v55 = vld [vmem:[%s6139_s1 + $0x230] sm:$0xff] }
 0x212   :  { %v212_v56 = vld [vmem:[%s6139_s1 + $0x410] sm:$0xff]  ;;  %2076 = vmatpush.bf16.msra.mxu2 %v1176_v53  ;;  %v1140_v6 = vpack.c.bf16 %v152_v55, %v148_v54  ;;  %2051 = vmatpush.bf16.msra.mxu0 %v1108_v2 }
 0x213   :  { %v216_v59 = vld [vmem:[%s6139_s1 + $0x430] sm:$0xff] }
 0x214   :  { %v276_v60 = vld [vmem:[%s6139_s1 + $0x610] sm:$0xff]  ;;  %v1172_v7 = vpack.c.bf16 %v216_v59, %v212_v56  ;;  %2089 = vmatpush.bf16.msra.mxu3 %v1208_v57  ;;  %2064 = vmatpush.bf16.msra.mxu1 %v1140_v6  ;;  %v2640_v59 = vld [vmem:[%s6140_s2] sm:$0xf] }
 0x215   :  { %v280_v9 = vld [vmem:[%s6139_s1 + $0x630] sm:$0xff]  ;;  %2052 = vmatmul.bf16.vlgmr.msra.gmra.mxu0 %v3028_v35 }
 0x216   :  { %v396_v62 = vld [vmem:[%s6139_s1 + $0x9d0] sm:$0xff]  ;;  %v1204_v11 = vpack.c.bf16 %v280_v9, %v276_v60  ;;  %2077 = vmatpush.bf16.msra.mxu2 %v1172_v7  ;;  %v1621_v60 = vperm.slane %v2640_v59, 1 }
 0x217   :  { %v400_v63 = vld [vmem:[%s6139_s1 + $0x9f0] sm:$0xff]  ;;  %2065 = vmatmul.bf16.vlgmr.msra.gmra.mxu1 %v3041_v43 }
 0x218   :  { %v460_v0 = vld [vmem:[%s6139_s1 + $0xbd0] sm:$0xff]  ;;  %v1264_v12 = vpack.c.bf16 %v400_v63, %v396_v62  ;;  %2090 = vmatpush.bf16.msra.mxu3 %v1204_v11  ;;  %v1858_v11 = vpop.f32.mrf.mxu1 }
 0x219   :  { %v464_v3 = vld [vmem:[%s6139_s1 + $0xbf0] sm:$0xff]  ;;  %2078 = vmatmul.bf16.vlgmr.msra.gmra.mxu2 %v3026_v34 }
 0x21a   :  { %v524_v4 = vld [vmem:[%s6139_s1 + $0xdd0] sm:$0xff]  ;;  %v1296_v13 = vpack.c.bf16 %v464_v3, %v460_v0  ;;  %2096 = vmatpush.bf16.msrb.mxu0 %v1264_v12  ;;  %v1845_v3 = vpop.f32.mrf.mxu0 }
 0x21b   :  { %v528_v5 = vld [vmem:[%s6139_s1 + $0xdf0] sm:$0xff]  ;;  %2091 = vmatmul.bf16.vlgmr.msra.gmra.mxu3 %v3039_v42 }
 0x21c   :  { %v588_v8 = vld [vmem:[%s6139_s1 + $0xfd0] sm:$0xff]  ;;  %v1328_v14 = vpack.c.bf16 %v528_v5, %v524_v4  ;;  %2109 = vmatpush.bf16.msrb.mxu1 %v1296_v13 }
 0x21d   :  { %v592_v10 = vld [vmem:[%s6139_s1 + $0xff0] sm:$0xff] }
 0x21e   :  { %v388_v16 = vld [vmem:[%s6139_s1 + $0x990] sm:$0xff]  ;;  %v1360_v22 = vpack.c.bf16 %v592_v10, %v588_v8  ;;  %2122 = vmatpush.bf16.msrb.mxu2 %v1328_v14  ;;  %v1846_v10 = vadd.f32 %v1845_v3, %v1621_v60 }
 0x21f   :  { %v392_v17 = vld [vmem:[%s6139_s1 + $0x9b0] sm:$0xff] }
 0x220   :  { %v452_v18 = vld [vmem:[%s6139_s1 + $0xb90] sm:$0xff]  ;;  %v1260_v33 = vpack.c.bf16 %v392_v17, %v388_v16  ;;  %2135 = vmatpush.bf16.msrb.mxu3 %v1360_v22  ;;  %v1859_v22 = vadd.f32 %v1858_v11, %v1846_v10  ;;  %v1860_v59 = vpop.f32.mrf.mxu1 }
 0x221   :  { %v456_v25 = vld [vmem:[%s6139_s1 + $0xbb0] sm:$0xff] }
 0x222   :  { %v516_v28 = vld [vmem:[%s6139_s1 + $0xd90] sm:$0xff]  ;;  %v1292_v37 = vpack.c.bf16 %v456_v25, %v452_v18  ;;  %2097 = vmatpush.bf16.msrb.mxu0 %v1260_v33 }
 0x223   :  { %v520_v29 = vld [vmem:[%s6139_s1 + $0xdb0] sm:$0xff] }
 0x224   :  { %v580_v31 = vld [vmem:[%s6139_s1 + $0xf90] sm:$0xff]  ;;  %v1324_v38 = vpack.c.bf16 %v520_v29, %v516_v28  ;;  %2110 = vmatpush.bf16.msrb.mxu1 %v1292_v37  ;;  %v1871_v37 = vpop.f32.mrf.mxu2 }
 0x225   :  { %v584_v32 = vld [vmem:[%s6139_s1 + $0xfb0] sm:$0xff] }
 0x226   :  { %v380_v41 = vld [vmem:[%s6139_s1 + $0x950] sm:$0xff]  ;;  %v1356_v47 = vpack.c.bf16 %v584_v32, %v580_v31  ;;  %2123 = vmatpush.bf16.msrb.mxu2 %v1324_v38 }
 0x227   :  { %v384_v45 = vld [vmem:[%s6139_s1 + $0x970] sm:$0xff] }
 0x228   :  { %v444_v46 = vld [vmem:[%s6139_s1 + $0xb50] sm:$0xff]  ;;  %v1256_v52 = vpack.c.bf16 %v384_v45, %v380_v41  ;;  %2136 = vmatpush.bf16.msrb.mxu3 %v1356_v47  ;;  %v1872_v47 = vadd.f32 %v1871_v37, %v1859_v22 }
 0x229   :  { %v448_v58 = vld [vmem:[%s6139_s1 + $0xb70] sm:$0xff] }
 0x22a   :  { %v508_v48 = vld [vmem:[%s6139_s1 + $0xd50] sm:$0xff]  ;;  %v1288_v53 = vpack.c.bf16 %v448_v58, %v444_v46  ;;  %2098 = vmatpush.bf16.msrb.mxu0 %v1256_v52  ;;  %v1884_v58 = vpop.f32.mrf.mxu3  ;;  %v1847_v52 = vpop.f32.mrf.mxu0 }
 0x22b   :  { %v512_v49 = vld [vmem:[%s6139_s1 + $0xd70] sm:$0xff] }
 0x22c   :  { %v572_v50 = vld [vmem:[%s6139_s1 + $0xf50] sm:$0xff]  ;;  %v1320_v54 = vpack.c.bf16 %v512_v49, %v508_v48  ;;  %2111 = vmatpush.bf16.msrb.mxu1 %v1288_v53  ;;  %v1873_v10 = vpop.f32.mrf.mxu2 }
 0x22d   :  { %v576_v51 = vld [vmem:[%s6139_s1 + $0xf70] sm:$0xff] }
 0x22e   :  { %v372_v55 = vld [vmem:[%s6139_s1 + $0x910] sm:$0xff]  ;;  %v1352_v9 = vpack.c.bf16 %v576_v51, %v572_v50  ;;  %2124 = vmatpush.bf16.msrb.mxu2 %v1320_v54  ;;  %v4665_v51 = vadd.f32 %v1884_v58, %v1872_v47 }
 0x22f   :  { %v376_v56 = vld [vmem:[%s6139_s1 + $0x930] sm:$0xff] }
 0x230   :  { %v436_v57 = vld [vmem:[%s6139_s1 + $0xb10] sm:$0xff]  ;;  %v1252_v2 = vpack.c.bf16 %v376_v56, %v372_v55  ;;  %2137 = vmatpush.bf16.msrb.mxu3 %v1352_v9 }
 0x231   :  { %v440_v61 = vld [vmem:[%s6139_s1 + $0xb30] sm:$0xff] }
 0x232   :  { %v500_v62 = vld [vmem:[%s6139_s1 + $0xd10] sm:$0xff]  ;;  %v1284_v4 = vpack.c.bf16 %v440_v61, %v436_v57  ;;  %2099 = vmatpush.bf16.msrb.mxu0 %v1252_v2 }
 0x233   :  { %v504_v63 = vld [vmem:[%s6139_s1 + $0xd30] sm:$0xff] }
 0x234   :  { %v564_v0 = vld [vmem:[%s6139_s1 + $0xf10] sm:$0xff]  ;;  %v1316_v5 = vpack.c.bf16 %v504_v63, %v500_v62  ;;  %2112 = vmatpush.bf16.msrb.mxu1 %v1284_v4 }
 0x235   :  { %v568_v1 = vld [vmem:[%s6139_s1 + $0xf30] sm:$0xff] }
 0x236   :  { %v364_v6 = vld [vmem:[%s6139_s1 + $0x8d0] sm:$0xff]  ;;  %v1348_v12 = vpack.c.bf16 %v568_v1, %v564_v0  ;;  %2125 = vmatpush.bf16.msrb.mxu2 %v1316_v5 }
 0x237   :  { %v368_v7 = vld [vmem:[%s6139_s1 + $0x8f0] sm:$0xff] }
 0x238   :  { %v428_v8 = vld [vmem:[%s6139_s1 + $0xad0] sm:$0xff]  ;;  %v1248_v25 = vpack.c.bf16 %v368_v7, %v364_v6  ;;  %2138 = vmatpush.bf16.msrb.mxu3 %v1348_v12 }
 0x239   :  { %v432_v13 = vld [vmem:[%s6139_s1 + $0xaf0] sm:$0xff] }
 0x23a   :  { %v492_v14 = vld [vmem:[%s6139_s1 + $0xcd0] sm:$0xff]  ;;  %v1280_v28 = vpack.c.bf16 %v432_v13, %v428_v8  ;;  %2100 = vmatpush.bf16.msrb.mxu0 %v1248_v25 }
 0x23b   :  { %v496_v16 = vld [vmem:[%s6139_s1 + $0xcf0] sm:$0xff] }
 0x23c   :  { %v556_v17 = vld [vmem:[%s6139_s1 + $0xed0] sm:$0xff]  ;;  %v1312_v29 = vpack.c.bf16 %v496_v16, %v492_v14  ;;  %2113 = vmatpush.bf16.msrb.mxu1 %v1280_v28  ;;  %v1886_v16 = vpop.f32.mrf.mxu3 }
 0x23d   :  { %v560_v18 = vld [vmem:[%s6139_s1 + $0xef0] sm:$0xff] }
 0x23e   :  { %v356_v31 = vld [vmem:[%s6139_s1 + $0x890] sm:$0xff]  ;;  %v1344_v38 = vpack.c.bf16 %v560_v18, %v556_v17  ;;  %2126 = vmatpush.bf16.msrb.mxu2 %v1312_v29 }
 0x23f   :  { %v360_v32 = vld [vmem:[%s6139_s1 + $0x8b0] sm:$0xff] }
 0x240   :  { %v420_v33 = vld [vmem:[%s6139_s1 + $0xa90] sm:$0xff]  ;;  %v1244_v50 = vpack.c.bf16 %v360_v32, %v356_v31  ;;  %2139 = vmatpush.bf16.msrb.mxu3 %v1344_v38 }
 0x241   :  { %v424_v41 = vld [vmem:[%s6139_s1 + $0xab0] sm:$0xff] }
 0x242   :  { %v484_v45 = vld [vmem:[%s6139_s1 + $0xc90] sm:$0xff]  ;;  %v1276_v53 = vpack.c.bf16 %v424_v41, %v420_v33  ;;  %2101 = vmatpush.bf16.msrb.mxu0 %v1244_v50 }
 0x243   :  { %v488_v46 = vld [vmem:[%s6139_s1 + $0xcb0] sm:$0xff] }
 0x244   :  { %v548_v48 = vld [vmem:[%s6139_s1 + $0xe90] sm:$0xff]  ;;  %v1308_v54 = vpack.c.bf16 %v488_v46, %v484_v45  ;;  %2114 = vmatpush.bf16.msrb.mxu1 %v1276_v53 }
 0x245   :  { %v552_v49 = vld [vmem:[%s6139_s1 + $0xeb0] sm:$0xff] }
 0x246   :  { %v348_v55 = vld [vmem:[%s6139_s1 + $0x850] sm:$0xff]  ;;  %v1340_v60 = vpack.c.bf16 %v552_v49, %v548_v48  ;;  %2127 = vmatpush.bf16.msrb.mxu2 %v1308_v54 }
 0x247   :  { %v352_v56 = vld [vmem:[%s6139_s1 + $0x870] sm:$0xff] }
 0x248   :  { %v412_v57 = vld [vmem:[%s6139_s1 + $0xa50] sm:$0xff]  ;;  %v1240_v1 = vpack.c.bf16 %v352_v56, %v348_v55  ;;  %2140 = vmatpush.bf16.msrb.mxu3 %v1340_v60 }
 0x249   :  { %v416_v9 = vld [vmem:[%s6139_s1 + $0xa70] sm:$0xff] }
 0x24a   :  { %v476_v61 = vld [vmem:[%s6139_s1 + $0xc50] sm:$0xff]  ;;  %v1272_v4 = vpack.c.bf16 %v416_v9, %v412_v57  ;;  %2102 = vmatpush.bf16.msrb.mxu0 %v1240_v1 }
 0x24b   :  { %v480_v62 = vld [vmem:[%s6139_s1 + $0xc70] sm:$0xff] }
 0x24c   :  { %v540_v63 = vld [vmem:[%s6139_s1 + $0xe50] sm:$0xff]  ;;  %v1304_v5 = vpack.c.bf16 %v480_v62, %v476_v61  ;;  %2115 = vmatpush.bf16.msrb.mxu1 %v1272_v4 }
 0x24d   :  { %v544_v0 = vld [vmem:[%s6139_s1 + $0xe70] sm:$0xff] }
 0x24e   :  { %v340_v2 = vld [vmem:[%s6139_s1 + $0x810] sm:$0xff]  ;;  %v1336_v11 = vpack.c.bf16 %v544_v0, %v540_v63  ;;  %2128 = vmatpush.bf16.msrb.mxu2 %v1304_v5 }
 0x24f   :  { %v344_v3 = vld [vmem:[%s6139_s1 + $0x830] sm:$0xff] }
 0x250   :  { %v404_v6 = vld [vmem:[%s6139_s1 + $0xa10] sm:$0xff]  ;;  %v1236_v25 = vpack.c.bf16 %v344_v3, %v340_v2  ;;  %2141 = vmatpush.bf16.msrb.mxu3 %v1336_v11 }
 0x251   :  { %v408_v7 = vld [vmem:[%s6139_s1 + $0xa30] sm:$0xff] }
 0x252   :  { %v468_v8 = vld [vmem:[%s6139_s1 + $0xc10] sm:$0xff]  ;;  %v1268_v32 = vpack.c.bf16 %v408_v7, %v404_v6  ;;  %2103 = vmatpush.bf16.msrb.mxu0 %v1236_v25  ;;  %v1897_v25 = vpop.f32.mrf.mxu0 }
 0x253   :  { %v472_v12 = vld [vmem:[%s6139_s1 + $0xc30] sm:$0xff] }
 0x254   :  { %v532_v13 = vld [vmem:[%s6139_s1 + $0xe10] sm:$0xff]  ;;  %v1300_v33 = vpack.c.bf16 %v472_v12, %v468_v8  ;;  %2116 = vmatpush.bf16.msrb.mxu1 %v1268_v32 }
 0x255   :  { %v536_v14 = vld [vmem:[%s6139_s1 + $0xe30] sm:$0xff]  ;;  %2104 = vmatmul.bf16.vlgmr.msrb.gmra.mxu0 %v3157_v39 }
 0x256   :  { %v652_v17 = vld [vmem:[%s6139_s1 + $0x11d0] sm:$0xff]  ;;  %v1332_v41 = vpack.c.bf16 %v536_v14, %v532_v13  ;;  %2129 = vmatpush.bf16.msrb.mxu2 %v1300_v33 }
 0x257   :  { %v656_v18 = vld [vmem:[%s6139_s1 + $0x11f0] sm:$0xff]  ;;  %2117 = vmatmul.bf16.vlgmr.msrb.gmra.mxu1 %v3161_v44 }
 0x258   :  { %v716_v22 = vld [vmem:[%s6139_s1 + $0x13d0] sm:$0xff]  ;;  %v1392_v45 = vpack.c.bf16 %v656_v18, %v652_v17  ;;  %2142 = vmatpush.bf16.msrb.mxu3 %v1332_v41 }
 0x259   :  { %v720_v28 = vld [vmem:[%s6139_s1 + $0x13f0] sm:$0xff]  ;;  %2130 = vmatmul.bf16.vlgmr.msrb.gmra.mxu2 %v3149_v36 }
 0x25a   :  { %v780_v29 = vld [vmem:[%s6139_s1 + $0x15d0] sm:$0xff]  ;;  %v1424_v46 = vpack.c.bf16 %v720_v28, %v716_v22  ;;  %2148 = vmatpush.bf16.msra.mxu0 %v1392_v45 }
 0x25b   :  { %v784_v31 = vld [vmem:[%s6139_s1 + $0x15f0] sm:$0xff]  ;;  %2143 = vmatmul.bf16.vlgmr.msrb.gmra.mxu3 %v3159_v40 }
 0x25c   :  { %v844_v37 = vld [vmem:[%s6139_s1 + $0x17d0] sm:$0xff]  ;;  %v1456_v47 = vpack.c.bf16 %v784_v31, %v780_v29  ;;  %2161 = vmatpush.bf16.msra.mxu1 %v1424_v46 }
 0x25d   :  { %v848_v38 = vld [vmem:[%s6139_s1 + $0x17f0] sm:$0xff] }
 0x25e   :  { %v644_v58 = vld [vmem:[%s6139_s1 + $0x1190] sm:$0xff]  ;;  %v1488_v50 = vpack.c.bf16 %v848_v38, %v844_v37  ;;  %2174 = vmatpush.bf16.msra.mxu2 %v1456_v47  ;;  %v1898_v37 = vadd.f32 %v1897_v25, %v4665_v51  ;;  %v1910_v38 = vpop.f32.mrf.mxu1 }
 0x25f   :  { %v648_v48 = vld [vmem:[%s6139_s1 + $0x11b0] sm:$0xff] }
 0x260   :  { %v708_v49 = vld [vmem:[%s6139_s1 + $0x1390] sm:$0xff]  ;;  %v1388_v57 = vpack.c.bf16 %v648_v48, %v644_v58  ;;  %2187 = vmatpush.bf16.msra.mxu3 %v1488_v50  ;;  %v1911_v48 = vadd.f32 %v1910_v38, %v1898_v37 }
 0x261   :  { %v712_v52 = vld [vmem:[%s6139_s1 + $0x13b0] sm:$0xff] }
 0x262   :  { %v772_v53 = vld [vmem:[%s6139_s1 + $0x1590] sm:$0xff]  ;;  %v1420_v59 = vpack.c.bf16 %v712_v52, %v708_v49  ;;  %2149 = vmatpush.bf16.msra.mxu0 %v1388_v57 }
 0x263   :  { %v776_v54 = vld [vmem:[%s6139_s1 + $0x15b0] sm:$0xff] }
 0x264   :  { %v836_v55 = vld [vmem:[%s6139_s1 + $0x1790] sm:$0xff]  ;;  %v1452_v60 = vpack.c.bf16 %v776_v54, %v772_v53  ;;  %2162 = vmatpush.bf16.msra.mxu1 %v1420_v59 }
 0x265   :  { %v840_v56 = vld [vmem:[%s6139_s1 + $0x17b0] sm:$0xff] }
 0x266   :  { %v636_v9 = vld [vmem:[%s6139_s1 + $0x1150] sm:$0xff]  ;;  %v1484_v63 = vpack.c.bf16 %v840_v56, %v836_v55  ;;  %2175 = vmatpush.bf16.msra.mxu2 %v1452_v60  ;;  %v1923_v56 = vpop.f32.mrf.mxu2 }
 0x267   :  { %v640_v61 = vld [vmem:[%s6139_s1 + $0x1170] sm:$0xff] }
 0x268   :  { %v700_v62 = vld [vmem:[%s6139_s1 + $0x1350] sm:$0xff]  ;;  %v1384_v5 = vpack.c.bf16 %v640_v61, %v636_v9  ;;  %2188 = vmatpush.bf16.msra.mxu3 %v1484_v63  ;;  %v1924_v61 = vadd.f32 %v1923_v56, %v1911_v48 }
 0x269   :  { %v704_v0 = vld [vmem:[%s6139_s1 + $0x1370] sm:$0xff] }
 0x26a   :  { %v764_v1 = vld [vmem:[%s6139_s1 + $0x1550] sm:$0xff]  ;;  %v1416_v6 = vpack.c.bf16 %v704_v0, %v700_v62  ;;  %2150 = vmatpush.bf16.msra.mxu0 %v1384_v5  ;;  %v1936_v62 = vpop.f32.mrf.mxu3 }
 0x26b   :  { %v768_v2 = vld [vmem:[%s6139_s1 + $0x1570] sm:$0xff] }
 0x26c   :  { %v828_v3 = vld [vmem:[%s6139_s1 + $0x1750] sm:$0xff]  ;;  %v1448_v7 = vpack.c.bf16 %v768_v2, %v764_v1  ;;  %2163 = vmatpush.bf16.msra.mxu1 %v1416_v6  ;;  %v4864_v2 = vadd.f32 %v1936_v62, %v1924_v61 }
 0x26d   :  { %v832_v4 = vld [vmem:[%s6139_s1 + $0x1770] sm:$0xff] }
 0x26e   :  { %v628_v8 = vld [vmem:[%s6139_s1 + $0x1110] sm:$0xff]  ;;  %v1480_v12 = vpack.c.bf16 %v832_v4, %v828_v3  ;;  %2176 = vmatpush.bf16.msra.mxu2 %v1448_v7  ;;  %v1899_v3 = vpop.f32.mrf.mxu0  ;;  %v1925_v37 = vpop.f32.mrf.mxu2 }
 0x26f   :  { %v632_v10 = vld [vmem:[%s6139_s1 + $0x1130] sm:$0xff] }
 0x270   :  { %v692_v11 = vld [vmem:[%s6139_s1 + $0x1310] sm:$0xff]  ;;  %v1380_v22 = vpack.c.bf16 %v632_v10, %v628_v8  ;;  %2189 = vmatpush.bf16.msra.mxu3 %v1480_v12  ;;  %v1912_v10 = vpop.f32.mrf.mxu1 }
 0x271   :  { %v696_v13 = vld [vmem:[%s6139_s1 + $0x1330] sm:$0xff] }
 0x272   :  { %v756_v14 = vld [vmem:[%s6139_s1 + $0x1510] sm:$0xff]  ;;  %v1412_v28 = vpack.c.bf16 %v696_v13, %v692_v11  ;;  %2151 = vmatpush.bf16.msra.mxu0 %v1380_v22 }
 0x273   :  { %v760_v16 = vld [vmem:[%s6139_s1 + $0x1530] sm:$0xff] }
 0x274   :  { %v820_v17 = vld [vmem:[%s6139_s1 + $0x1710] sm:$0xff]  ;;  %v1444_v29 = vpack.c.bf16 %v760_v16, %v756_v14  ;;  %2164 = vmatpush.bf16.msra.mxu1 %v1412_v28 }
 0x275   :  { %v824_v18 = vld [vmem:[%s6139_s1 + $0x1730] sm:$0xff] }
 0x276   :  { %v620_v31 = vld [vmem:[%s6139_s1 + $0x10d0] sm:$0xff]  ;;  %v1476_v41 = vpack.c.bf16 %v824_v18, %v820_v17  ;;  %2177 = vmatpush.bf16.msra.mxu2 %v1444_v29 }
 0x277   :  { %v624_v32 = vld [vmem:[%s6139_s1 + $0x10f0] sm:$0xff] }
 0x278   :  { %v684_v33 = vld [vmem:[%s6139_s1 + $0x12d0] sm:$0xff]  ;;  %v1376_v49 = vpack.c.bf16 %v624_v32, %v620_v31  ;;  %2190 = vmatpush.bf16.msra.mxu3 %v1476_v41 }
 0x279   :  { %v688_v45 = vld [vmem:[%s6139_s1 + $0x12f0] sm:$0xff] }
 0x27a   :  { %v748_v46 = vld [vmem:[%s6139_s1 + $0x14d0] sm:$0xff]  ;;  %v1408_v50 = vpack.c.bf16 %v688_v45, %v684_v33  ;;  %2152 = vmatpush.bf16.msra.mxu0 %v1376_v49 }
 0x27b   :  { %v752_v47 = vld [vmem:[%s6139_s1 + $0x14f0] sm:$0xff] }
 0x27c   :  { %v812_v58 = vld [vmem:[%s6139_s1 + $0x16d0] sm:$0xff]  ;;  %v1440_v52 = vpack.c.bf16 %v752_v47, %v748_v46  ;;  %2165 = vmatpush.bf16.msra.mxu1 %v1408_v50  ;;  %v1938_v47 = vpop.f32.mrf.mxu3 }
 0x27d   :  { %v816_v51 = vld [vmem:[%s6139_s1 + $0x16f0] sm:$0xff] }
 0x27e   :  { %v612_v53 = vld [vmem:[%s6139_s1 + $0x1090] sm:$0xff]  ;;  %v1472_v57 = vpack.c.bf16 %v816_v51, %v812_v58  ;;  %2178 = vmatpush.bf16.msra.mxu2 %v1440_v52 }
 0x27f   :  { %v616_v54 = vld [vmem:[%s6139_s1 + $0x10b0] sm:$0xff] }
 0x280   :  { %v676_v55 = vld [vmem:[%s6139_s1 + $0x1290] sm:$0xff]  ;;  %v1372_v1 = vpack.c.bf16 %v616_v54, %v612_v53  ;;  %2191 = vmatpush.bf16.msra.mxu3 %v1472_v57 }
 0x281   :  { %v680_v59 = vld [vmem:[%s6139_s1 + $0x12b0] sm:$0xff] }
 0x282   :  { %v740_v60 = vld [vmem:[%s6139_s1 + $0x1490] sm:$0xff]  ;;  %v1404_v4 = vpack.c.bf16 %v680_v59, %v676_v55  ;;  %2153 = vmatpush.bf16.msra.mxu0 %v1372_v1 }
 0x283   :  { %v744_v9 = vld [vmem:[%s6139_s1 + $0x14b0] sm:$0xff] }
 0x284   :  { %v804_v63 = vld [vmem:[%s6139_s1 + $0x1690] sm:$0xff]  ;;  %v1436_v5 = vpack.c.bf16 %v744_v9, %v740_v60  ;;  %2166 = vmatpush.bf16.msra.mxu1 %v1404_v4 }
 0x285   :  { %v808_v0 = vld [vmem:[%s6139_s1 + $0x16b0] sm:$0xff] }
 0x286   :  { %v604_v6 = vld [vmem:[%s6139_s1 + $0x1050] sm:$0xff]  ;;  %v1468_v11 = vpack.c.bf16 %v808_v0, %v804_v63  ;;  %2179 = vmatpush.bf16.msra.mxu2 %v1436_v5 }
 0x287   :  { %v608_v7 = vld [vmem:[%s6139_s1 + $0x1070] sm:$0xff] }
 0x288   :  { %v668_v8 = vld [vmem:[%s6139_s1 + $0x1250] sm:$0xff]  ;;  %v1368_v18 = vpack.c.bf16 %v608_v7, %v604_v6  ;;  %2192 = vmatpush.bf16.msra.mxu3 %v1468_v11 }
 0x289   :  { %v672_v12 = vld [vmem:[%s6139_s1 + $0x1270] sm:$0xff] }
 0x28a   :  { %v732_v13 = vld [vmem:[%s6139_s1 + $0x1450] sm:$0xff]  ;;  %v1400_v28 = vpack.c.bf16 %v672_v12, %v668_v8  ;;  %2154 = vmatpush.bf16.msra.mxu0 %v1368_v18 }
 0x28b   :  { %v736_v14 = vld [vmem:[%s6139_s1 + $0x1470] sm:$0xff] }
 0x28c   :  { %v796_v16 = vld [vmem:[%s6139_s1 + $0x1650] sm:$0xff]  ;;  %v1432_v29 = vpack.c.bf16 %v736_v14, %v732_v13  ;;  %2167 = vmatpush.bf16.msra.mxu1 %v1400_v28 }
 0x28d   :  { %v800_v17 = vld [vmem:[%s6139_s1 + $0x1670] sm:$0xff] }
 0x28e   :  { %v596_v22 = vld [vmem:[%s6139_s1 + $0x1010] sm:$0xff]  ;;  %v1464_v38 = vpack.c.bf16 %v800_v17, %v796_v16  ;;  %2180 = vmatpush.bf16.msra.mxu2 %v1432_v29 }
 0x28f   :  { %v600_v25 = vld [vmem:[%s6139_s1 + $0x1030] sm:$0xff] }
 0x290   :  { %v660_v31 = vld [vmem:[%s6139_s1 + $0x1210] sm:$0xff]  ;;  %v1364_v49 = vpack.c.bf16 %v600_v25, %v596_v22  ;;  %2193 = vmatpush.bf16.msra.mxu3 %v1464_v38 }
 0x291   :  { %v664_v32 = vld [vmem:[%s6139_s1 + $0x1230] sm:$0xff] }
 0x292   :  { %v724_v33 = vld [vmem:[%s6139_s1 + $0x1410] sm:$0xff]  ;;  %v1396_v54 = vpack.c.bf16 %v664_v32, %v660_v31  ;;  %2155 = vmatpush.bf16.msra.mxu0 %v1364_v49 }
 0x293   :  { %v728_v41 = vld [vmem:[%s6139_s1 + $0x1430] sm:$0xff] }
 0x294   :  { %v788_v45 = vld [vmem:[%s6139_s1 + $0x1610] sm:$0xff]  ;;  %v1428_v55 = vpack.c.bf16 %v728_v41, %v724_v33  ;;  %2168 = vmatpush.bf16.msra.mxu1 %v1396_v54 }
 0x295   :  { %v792_v46 = vld [vmem:[%s6139_s1 + $0x1630] sm:$0xff]  ;;  %2156 = vmatmul.bf16.vlgmr.msra.gmra.mxu0 %v3344_v19 }
 0x296   :  { %v908_v58 = vld [vmem:[%s6139_s1 + $0x19d0] sm:$0xff]  ;;  %v1460_v59 = vpack.c.bf16 %v792_v46, %v788_v45  ;;  %2181 = vmatpush.bf16.msra.mxu2 %v1428_v55 }
 0x297   :  { %v912_v51 = vld [vmem:[%s6139_s1 + $0x19f0] sm:$0xff]  ;;  %2169 = vmatmul.bf16.vlgmr.msra.gmra.mxu1 %v3357_v24 }
 0x298   :  { %v972_v48 = vld [vmem:[%s6139_s1 + $0x1bd0] sm:$0xff]  ;;  %v1520_v60 = vpack.c.bf16 %v912_v51, %v908_v58  ;;  %2194 = vmatpush.bf16.msra.mxu3 %v1460_v59  ;;  %v1949_v58 = vpop.f32.mrf.mxu0 }
 0x299   :  { %v976_v50 = vld [vmem:[%s6139_s1 + $0x1bf0] sm:$0xff]  ;;  %2182 = vmatmul.bf16.vlgmr.msra.gmra.mxu2 %v3355_v23  ;;  %v1950_v49 = vadd.f32 %v1949_v58, %v4864_v2 }
 0x29a   :  { %v1036_v52 = vld [vmem:[%s6139_s1 + $0x1dd0] sm:$0xff]  ;;  %v1552_v9 = vpack.c.bf16 %v976_v50, %v972_v48  ;;  %2200 = vmatpush.bf16.msrb.mxu0 %v1520_v60 }
 0x29b   :  { %v1040_v53 = vld [vmem:[%s6139_s1 + $0x1df0] sm:$0xff]  ;;  %2195 = vmatmul.bf16.vlgmr.msra.gmra.mxu3 %v3365_v27 }
 0x29c   :  { %v1100_v56 = vld [vmem:[%s6139_s1 + $0x1fd0] sm:$0xff]  ;;  %v1584_v61 = vpack.c.bf16 %v1040_v53, %v1036_v52  ;;  %2213 = vmatpush.bf16.msrb.mxu1 %v1552_v9  ;;  %v1962_v52 = vpop.f32.mrf.mxu1 }
 0x29d   :  { %v1104_v57 = vld [vmem:[%s6139_s1 + $0x1ff0] sm:$0xff]  ;;  %v1963_v59 = vadd.f32 %v1962_v52, %v1950_v49 }
 0x29e   :  { %v900_v62 = vld [vmem:[%s6139_s1 + $0x1990] sm:$0xff]  ;;  %v1616_v1 = vpack.c.bf16 %v1104_v57, %v1100_v56  ;;  %2226 = vmatpush.bf16.msrb.mxu2 %v1584_v61 }
 0x29f   :  { %v904_v63 = vld [vmem:[%s6139_s1 + $0x19b0] sm:$0xff] }
 0x2a0   :  { %v964_v0 = vld [vmem:[%s6139_s1 + $0x1b90] sm:$0xff]  ;;  %v1516_v8 = vpack.c.bf16 %v904_v63, %v900_v62  ;;  %2239 = vmatpush.bf16.msrb.mxu3 %v1616_v1 }
 0x2a1   :  { %v968_v3 = vld [vmem:[%s6139_s1 + $0x1bb0] sm:$0xff] }
 0x2a2   :  { %v1028_v4 = vld [vmem:[%s6139_s1 + $0x1d90] sm:$0xff]  ;;  %v1548_v10 = vpack.c.bf16 %v968_v3, %v964_v0  ;;  %2201 = vmatpush.bf16.msrb.mxu0 %v1516_v8  ;;  %v1975_v8 = vpop.f32.mrf.mxu2 }
 0x2a3   :  { %v1032_v5 = vld [vmem:[%s6139_s1 + $0x1db0] sm:$0xff] }
 0x2a4   :  { %v1092_v6 = vld [vmem:[%s6139_s1 + $0x1f90] sm:$0xff]  ;;  %v1580_v11 = vpack.c.bf16 %v1032_v5, %v1028_v4  ;;  %2214 = vmatpush.bf16.msrb.mxu1 %v1548_v10 }
 0x2a5   :  { %v1096_v7 = vld [vmem:[%s6139_s1 + $0x1fb0] sm:$0xff] }
 0x2a6   :  { %v892_v12 = vld [vmem:[%s6139_s1 + $0x1950] sm:$0xff]  ;;  %v1612_v16 = vpack.c.bf16 %v1096_v7, %v1092_v6  ;;  %2227 = vmatpush.bf16.msrb.mxu2 %v1580_v11 }
 0x2a7   :  { %v896_v13 = vld [vmem:[%s6139_s1 + $0x1970] sm:$0xff] }
 0x2a8   :  { %v956_v14 = vld [vmem:[%s6139_s1 + $0x1b50] sm:$0xff]  ;;  %v1512_v29 = vpack.c.bf16 %v896_v13, %v892_v12  ;;  %2240 = vmatpush.bf16.msrb.mxu3 %v1612_v16  ;;  %v1976_v13 = vadd.f32 %v1975_v8, %v1963_v59  ;;  %v337_v8 = vld [vmem:[%s6139_s1 + $0x7f8] sm:$0xff] }
 0x2a9   :  { %v960_v17 = vld [vmem:[%s6139_s1 + $0x1b70] sm:$0xff] }
 0x2aa   :  { %v1020_v18 = vld [vmem:[%s6139_s1 + $0x1d50] sm:$0xff]  ;;  %v1544_v31 = vpack.c.bf16 %v960_v17, %v956_v14  ;;  %2202 = vmatpush.bf16.msrb.mxu0 %v1512_v29  ;;  %v1988_v14 = vpop.f32.mrf.mxu3 }
 0x2ab   :  { %v1024_v22 = vld [vmem:[%s6139_s1 + $0x1d70] sm:$0xff] }
 0x2ac   :  { %v1084_v25 = vld [vmem:[%s6139_s1 + $0x1f50] sm:$0xff]  ;;  %v1576_v32 = vpack.c.bf16 %v1024_v22, %v1020_v18  ;;  %2215 = vmatpush.bf16.msrb.mxu1 %v1544_v31  ;;  %v1951_v18 = vpop.f32.mrf.mxu0 }
 0x2ad   :  { %v1088_v28 = vld [vmem:[%s6139_s1 + $0x1f70] sm:$0xff] }
 0x2ae   :  { %v884_v33 = vld [vmem:[%s6139_s1 + $0x1910] sm:$0xff]  ;;  %v1608_v41 = vpack.c.bf16 %v1088_v28, %v1084_v25  ;;  %2228 = vmatpush.bf16.msrb.mxu2 %v1576_v32  ;;  %v1964_v25 = vpop.f32.mrf.mxu1  ;;  %v5063_v28 = vadd.f32 %v1988_v14, %v1976_v13  ;;  %v133_v14 = vld [vmem:[%s6139_s1 + $0x198] sm:$0xff] }
 0x2af   :  { %v888_v37 = vld [vmem:[%s6139_s1 + $0x1930] sm:$0xff]  ;;  %v261_v25 = vld [vmem:[%s6139_s1 + $0x598] sm:$0xff] }
 0x2b0   :  { %v948_v38 = vld [vmem:[%s6139_s1 + $0x1b10] sm:$0xff]  ;;  %v1508_v50 = vpack.c.bf16 %v888_v37, %v884_v33  ;;  %2241 = vmatpush.bf16.msrb.mxu3 %v1608_v41 }
 0x2b1   :  { %v952_v45 = vld [vmem:[%s6139_s1 + $0x1b30] sm:$0xff] }
 0x2b2   :  { %v1012_v46 = vld [vmem:[%s6139_s1 + $0x1d10] sm:$0xff]  ;;  %v1540_v53 = vpack.c.bf16 %v952_v45, %v948_v38  ;;  %2203 = vmatpush.bf16.msrb.mxu0 %v1508_v50 }
 0x2b3   :  { %v1016_v47 = vld [vmem:[%s6139_s1 + $0x1d30] sm:$0xff] }
 0x2b4   :  { %v1076_v51 = vld [vmem:[%s6139_s1 + $0x1f10] sm:$0xff]  ;;  %v1572_v54 = vpack.c.bf16 %v1016_v47, %v1012_v46  ;;  %2216 = vmatpush.bf16.msrb.mxu1 %v1540_v53 }
 0x2b5   :  { %v1080_v48 = vld [vmem:[%s6139_s1 + $0x1f30] sm:$0xff] }
 0x2b6   :  { %v876_v55 = vld [vmem:[%s6139_s1 + $0x18d0] sm:$0xff]  ;;  %v1604_v2 = vpack.c.bf16 %v1080_v48, %v1076_v51  ;;  %2229 = vmatpush.bf16.msrb.mxu2 %v1572_v54 }
 0x2b7   :  { %v880_v56 = vld [vmem:[%s6139_s1 + $0x18f0] sm:$0xff] }
 0x2b8   :  { %v940_v57 = vld [vmem:[%s6139_s1 + $0x1ad0] sm:$0xff]  ;;  %v1504_v0 = vpack.c.bf16 %v880_v56, %v876_v55  ;;  %2242 = vmatpush.bf16.msrb.mxu3 %v1604_v2 }
 0x2b9   :  { %v944_v60 = vld [vmem:[%s6139_s1 + $0x1af0] sm:$0xff] }
 0x2ba   :  { %v1004_v9 = vld [vmem:[%s6139_s1 + $0x1cd0] sm:$0xff]  ;;  %v1536_v1 = vpack.c.bf16 %v944_v60, %v940_v57  ;;  %2204 = vmatpush.bf16.msrb.mxu0 %v1504_v0  ;;  %v1977_v60 = vpop.f32.mrf.mxu2 }
 0x2bb   :  { %v1008_v61 = vld [vmem:[%s6139_s1 + $0x1cf0] sm:$0xff]  ;;  %v245_v60 = vld [vmem:[%s6139_s1 + $0x518] sm:$0xff] }
 0x2bc   :  { %v1068_v62 = vld [vmem:[%s6139_s1 + $0x1ed0] sm:$0xff]  ;;  %v1568_v3 = vpack.c.bf16 %v1008_v61, %v1004_v9  ;;  %2217 = vmatpush.bf16.msrb.mxu1 %v1536_v1  ;;  %v141_v9 = vld [vmem:[%s6139_s1 + $0x1d8] sm:$0xff] }
 0x2bd   :  { %v1072_v63 = vld [vmem:[%s6139_s1 + $0x1ef0] sm:$0xff]  ;;  %v145_v61 = vld [vmem:[%s6139_s1 + $0x1f8] sm:$0xff] }
 0x2be   :  { %v868_v4 = vld [vmem:[%s6139_s1 + $0x1890] sm:$0xff]  ;;  %v1600_v7 = vpack.c.bf16 %v1072_v63, %v1068_v62  ;;  %2230 = vmatpush.bf16.msrb.mxu2 %v1568_v3  ;;  %v205_v62 = vld [vmem:[%s6139_s1 + $0x3d8] sm:$0xff]  ;;  %v1990_v63 = vpop.f32.mrf.mxu3 }
 0x2bf   :  { %v872_v5 = vld [vmem:[%s6139_s1 + $0x18b0] sm:$0xff]  ;;  %v209_v1 = vld [vmem:[%s6139_s1 + $0x3f8] sm:$0xff] }
 0x2c0   :  { %v932_v6 = vld [vmem:[%s6139_s1 + $0x1a90] sm:$0xff]  ;;  %v1500_v22 = vpack.c.bf16 %v872_v5, %v868_v4  ;;  %2243 = vmatpush.bf16.msrb.mxu3 %v1600_v7  ;;  %v269_v3 = vld [vmem:[%s6139_s1 + $0x5d8] sm:$0xff] }
 0x2c1   :  { %v936_v10 = vld [vmem:[%s6139_s1 + $0x1ab0] sm:$0xff]  ;;  %v273_v4 = vld [vmem:[%s6139_s1 + $0x5f8] sm:$0xff] }
 0x2c2   :  { %v996_v11 = vld [vmem:[%s6139_s1 + $0x1c90] sm:$0xff]  ;;  %v1532_v29 = vpack.c.bf16 %v936_v10, %v932_v6  ;;  %2205 = vmatpush.bf16.msrb.mxu0 %v1500_v22  ;;  %v333_v7 = vld [vmem:[%s6139_s1 + $0x7d8] sm:$0xff]  ;;  %v1201_v13 = vpack.c.bf16 %v273_v4, %v269_v3  ;;  %v2014_v3 = vpop.f32.mrf.mxu1 }
 0x2c3   :  { %v1000_v12 = vld [vmem:[%s6139_s1 + $0x1cb0] sm:$0xff]  ;;  %v1233_v18 = vpack.c.bf16 %v337_v8, %v333_v7  ;;  %v201_v22 = vld [vmem:[%s6139_s1 + $0x3b8] sm:$0xff] }
 0x2c4   :  { %v1060_v16 = vld [vmem:[%s6139_s1 + $0x1e90] sm:$0xff]  ;;  %v1564_v31 = vpack.c.bf16 %v1000_v12, %v996_v11  ;;  %2218 = vmatpush.bf16.msrb.mxu1 %v1532_v29  ;;  %v1137_v11 = vpack.c.bf16 %v145_v61, %v141_v9  ;;  %v1169_v12 = vpack.c.bf16 %v209_v1, %v205_v62  ;;  %v265_v29 = vld [vmem:[%s6139_s1 + $0x5b8] sm:$0xff]  ;;  %v2001_v61 = vpop.f32.mrf.mxu0 }
 0x2c5   :  { %v1064_v17 = vld [vmem:[%s6139_s1 + $0x1eb0] sm:$0xff]  ;;  %v249_v9 = vld [vmem:[%s6139_s1 + $0x538] sm:$0xff] }
 0x2c6   :  { %v860_v32 = vld [vmem:[%s6139_s1 + $0x1850] sm:$0xff]  ;;  %v1596_v38 = vpack.c.bf16 %v1064_v17, %v1060_v16  ;;  %2231 = vmatpush.bf16.msrb.mxu2 %v1564_v31  ;;  %v137_v16 = vld [vmem:[%s6139_s1 + $0x1b8] sm:$0xff] }
 0x2c7   :  { %v864_v33 = vld [vmem:[%s6139_s1 + $0x1870] sm:$0xff]  ;;  %v197_v17 = vld [vmem:[%s6139_s1 + $0x398] sm:$0xff] }
 0x2c8   :  { %v924_v37 = vld [vmem:[%s6139_s1 + $0x1a50] sm:$0xff]  ;;  %v1496_v51 = vpack.c.bf16 %v864_v33, %v860_v32  ;;  %2244 = vmatpush.bf16.msrb.mxu3 %v1596_v38  ;;  %v325_v31 = vld [vmem:[%s6139_s1 + $0x798] sm:$0xff]  ;;  %v1133_v33 = vpack.c.bf16 %v137_v16, %v133_v14  ;;  %v1197_v38 = vpack.c.bf16 %v265_v29, %v261_v25 }
 0x2c9   :  { %v928_v41 = vld [vmem:[%s6139_s1 + $0x1a70] sm:$0xff]  ;;  %v329_v32 = vld [vmem:[%s6139_s1 + $0x7b8] sm:$0xff] }
 0x2ca   :  { %v988_v45 = vld [vmem:[%s6139_s1 + $0x1c50] sm:$0xff]  ;;  %v1528_v50 = vpack.c.bf16 %v928_v41, %v924_v37  ;;  %2206 = vmatpush.bf16.msrb.mxu0 %v1496_v51  ;;  %v1165_v37 = vpack.c.bf16 %v201_v22, %v197_v17  ;;  %v125_v41 = vld [vmem:[%s6139_s1 + $0x158] sm:$0xff] }
 0x2cb   :  { %v992_v46 = vld [vmem:[%s6139_s1 + $0x1c70] sm:$0xff]  ;;  %v253_v51 = vld [vmem:[%s6139_s1 + $0x558] sm:$0xff] }
 0x2cc   :  { %v1052_v47 = vld [vmem:[%s6139_s1 + $0x1e50] sm:$0xff]  ;;  %v1560_v52 = vpack.c.bf16 %v992_v46, %v988_v45  ;;  %2219 = vmatpush.bf16.msrb.mxu1 %v1528_v50  ;;  %v129_v45 = vld [vmem:[%s6139_s1 + $0x178] sm:$0xff] }
 0x2cd   :  { %v1056_v58 = vld [vmem:[%s6139_s1 + $0x1e70] sm:$0xff]  ;;  %v189_v46 = vld [vmem:[%s6139_s1 + $0x358] sm:$0xff] }
 0x2ce   :  { %v852_v48 = vld [vmem:[%s6139_s1 + $0x1810] sm:$0xff]  ;;  %v1592_v56 = vpack.c.bf16 %v1056_v58, %v1052_v47  ;;  %2232 = vmatpush.bf16.msrb.mxu2 %v1560_v52  ;;  %v1229_v47 = vpack.c.bf16 %v329_v32, %v325_v31  ;;  %v193_v58 = vld [vmem:[%s6139_s1 + $0x378] sm:$0xff]  ;;  %v1129_v52 = vpack.c.bf16 %v129_v45, %v125_v41 }
 0x2cf   :  { %v856_v49 = vld [vmem:[%s6139_s1 + $0x1830] sm:$0xff]  ;;  %v321_v50 = vld [vmem:[%s6139_s1 + $0x778] sm:$0xff] }
 0x2d0   :  { %v916_v53 = vld [vmem:[%s6139_s1 + $0x1a10] sm:$0xff]  ;;  %v1492_v0 = vpack.c.bf16 %v856_v49, %v852_v48  ;;  %2245 = vmatpush.bf16.msrb.mxu3 %v1592_v56  ;;  %v257_v48 = vld [vmem:[%s6139_s1 + $0x578] sm:$0xff] }
 0x2d1   :  { %v920_v54 = vld [vmem:[%s6139_s1 + $0x1a30] sm:$0xff]  ;;  %v317_v49 = vld [vmem:[%s6139_s1 + $0x758] sm:$0xff] }
 0x2d2   :  { %v980_v55 = vld [vmem:[%s6139_s1 + $0x1c10] sm:$0xff]  ;;  %v1524_v5 = vpack.c.bf16 %v920_v54, %v916_v53  ;;  %2207 = vmatpush.bf16.msrb.mxu0 %v1492_v0  ;;  %v1161_v53 = vpack.c.bf16 %v193_v58, %v189_v46  ;;  %v1193_v54 = vpack.c.bf16 %v257_v48, %v253_v51  ;;  %v121_v56 = vld [vmem:[%s6139_s1 + $0x138] sm:$0xff]  ;;  %v2002_v0 = vadd.f32 %v2001_v61, %v5063_v28  ;;  %v2040_v46 = vpop.f32.mrf.mxu3  ;;  %v2003_v51 = vpop.f32.mrf.mxu0 }
 0x2d3   :  { %v984_v57 = vld [vmem:[%s6139_s1 + $0x1c30] sm:$0xff]  ;;  %v309_v62 = vld [vmem:[%s6139_s1 + $0x718] sm:$0xff] }
 0x2d4   :  { %v1044_v2 = vld [vmem:[%s6139_s1 + $0x1e10] sm:$0xff]  ;;  %v1556_v6 = vpack.c.bf16 %v984_v57, %v980_v55  ;;  %2220 = vmatpush.bf16.msrb.mxu1 %v1524_v5  ;;  %v117_v55 = vld [vmem:[%s6139_s1 + $0x118] sm:$0xff]  ;;  %v1189_v5 = vpack.c.bf16 %v249_v9, %v245_v60 }
 0x2d5   :  { %v1048_v59 = vld [vmem:[%s6139_s1 + $0x1e30] sm:$0xff]  ;;  %2208 = vmatmul.bf16.vlgmr.msrb.gmra.mxu0 %v3548_v15  ;;  %v181_v57 = vld [vmem:[%s6139_s1 + $0x318] sm:$0xff]  ;;  %v1125_v1 = vpack.c.bf16 %v121_v56, %v117_v55 }
 0x2d6   :  { %v1588_v10 = vpack.c.bf16 %v1048_v59, %v1044_v2  ;;  %2233 = vmatpush.bf16.msrb.mxu2 %v1556_v6  ;;  %2252 = vmatpush.bf16.msra.mxu0 %v1137_v11  ;;  %v1225_v2 = vpack.c.bf16 %v321_v50, %v317_v49  ;;  %v185_v59 = vld [vmem:[%s6139_s1 + $0x338] sm:$0xff]  ;;  %v2016_v49 = vpop.f32.mrf.mxu1 }
 0x2d7   :  { %2221 = vmatmul.bf16.vlgmr.msrb.gmra.mxu1 %v3561_v21  ;;  %v313_v63 = vld [vmem:[%s6139_s1 + $0x738] sm:$0xff]  ;;  %v1157_v4 = vpack.c.bf16 %v185_v59, %v181_v57 }
 0x2d8   :  { %2246 = vmatpush.bf16.msrb.mxu3 %v1588_v10  ;;  %2265 = vmatpush.bf16.msra.mxu1 %v1169_v12  ;;  %v109_v6 = vld [vmem:[%s6139_s1 + $0xd8] sm:$0xff]  ;;  %v1221_v28 = vpack.c.bf16 %v313_v63, %v309_v62  ;;  %v2015_v10 = vadd.f32 %v2014_v3, %v2002_v0 }
 0x2d9   :  { %2234 = vmatmul.bf16.vlgmr.msrb.gmra.mxu2 %v3559_v20  ;;  %v113_v7 = vld [vmem:[%s6139_s1 + $0xf8] sm:$0xff] }
 0x2da   :  { %2278 = vmatpush.bf16.msra.mxu2 %v1201_v13  ;;  %2253 = vmatpush.bf16.msra.mxu0 %v1133_v33  ;;  %v173_v8 = vld [vmem:[%s6139_s1 + $0x2d8] sm:$0xff]  ;;  %v1121_v17 = vpack.c.bf16 %v113_v7, %v109_v6  ;;  %v2027_v33 = vpop.f32.mrf.mxu2 }
 0x2db   :  { %2247 = vmatmul.bf16.vlgmr.msrb.gmra.mxu3 %v3569_v26  ;;  %v177_v11 = vld [vmem:[%s6139_s1 + $0x2f8] sm:$0xff]  ;;  %v2028_v45 = vadd.f32 %v2027_v33, %v2015_v10 }
 0x2dc   :  { %2291 = vmatpush.bf16.msra.mxu3 %v1233_v18  ;;  %2266 = vmatpush.bf16.msra.mxu1 %v1165_v37  ;;  %v237_v12 = vld [vmem:[%s6139_s1 + $0x4d8] sm:$0xff]  ;;  %v1153_v18 = vpack.c.bf16 %v177_v11, %v173_v8 }
 0x2dd   :  { %v241_v13 = vld [vmem:[%s6139_s1 + $0x4f8] sm:$0xff]  ;;  %v5262_v50 = vadd.f32 %v2040_v46, %v2028_v45 }
 0x2de   :  { %2279 = vmatpush.bf16.msra.mxu2 %v1197_v38  ;;  %2254 = vmatpush.bf16.msra.mxu0 %v1129_v52  ;;  %v301_v14 = vld [vmem:[%s6139_s1 + $0x6d8] sm:$0xff]  ;;  %v1185_v22 = vpack.c.bf16 %v241_v13, %v237_v12 }
 0x2df   :  { %v305_v16 = vld [vmem:[%s6139_s1 + $0x6f8] sm:$0xff] }
 0x2e0   :  { %2292 = vmatpush.bf16.msra.mxu3 %v1229_v47  ;;  %2267 = vmatpush.bf16.msra.mxu1 %v1161_v53  ;;  %v101_v25 = vld [vmem:[%s6139_s1 + $0x98] sm:$0xff]  ;;  %v1217_v32 = vpack.c.bf16 %v305_v16, %v301_v14  ;;  %v2042_v16 = vpop.f32.mrf.mxu3 }
 0x2e1   :  { %v105_v29 = vld [vmem:[%s6139_s1 + $0xb8] sm:$0xff] }
 0x2e2   :  { %2280 = vmatpush.bf16.msra.mxu2 %v1193_v54  ;;  %2255 = vmatpush.bf16.msra.mxu0 %v1125_v1  ;;  %v165_v31 = vld [vmem:[%s6139_s1 + $0x298] sm:$0xff]  ;;  %v1117_v48 = vpack.c.bf16 %v105_v29, %v101_v25  ;;  %v2029_v11 = vpop.f32.mrf.mxu2 }
 0x2e3   :  { %v169_v37 = vld [vmem:[%s6139_s1 + $0x2b8] sm:$0xff] }
 0x2e4   :  { %2293 = vmatpush.bf16.msra.mxu3 %v1225_v2  ;;  %2268 = vmatpush.bf16.msra.mxu1 %v1157_v4  ;;  %v229_v38 = vld [vmem:[%s6139_s1 + $0x498] sm:$0xff]  ;;  %v1149_v52 = vpack.c.bf16 %v169_v37, %v165_v31 }
 0x2e5   :  { %v233_v41 = vld [vmem:[%s6139_s1 + $0x4b8] sm:$0xff] }
 0x2e6   :  { %2281 = vmatpush.bf16.msra.mxu2 %v1189_v5  ;;  %v293_v47 = vld [vmem:[%s6139_s1 + $0x698] sm:$0xff]  ;;  %2256 = vmatpush.bf16.msra.mxu0 %v1121_v17  ;;  %v1181_v53 = vpack.c.bf16 %v233_v41, %v229_v38 }
 0x2e7   :  { %v297_v58 = vld [vmem:[%s6139_s1 + $0x6b8] sm:$0xff] }
 0x2e8   :  { %2294 = vmatpush.bf16.msra.mxu3 %v1221_v28  ;;  %2269 = vmatpush.bf16.msra.mxu1 %v1153_v18  ;;  %v93_v54 = vld [vmem:[%s6139_s1 + $0x58] sm:$0xff]  ;;  %v1213_v57 = vpack.c.bf16 %v297_v58, %v293_v47 }
 0x2e9   :  { %v97_v55 = vld [vmem:[%s6139_s1 + $0x78] sm:$0xff] }
 0x2ea   :  { %2282 = vmatpush.bf16.msra.mxu2 %v1185_v22  ;;  %v157_v56 = vld [vmem:[%s6139_s1 + $0x258] sm:$0xff]  ;;  %2257 = vmatpush.bf16.msra.mxu0 %v1117_v48  ;;  %v1113_v62 = vpack.c.bf16 %v97_v55, %v93_v54 }
 0x2eb   :  { %v161_v2 = vld [vmem:[%s6139_s1 + $0x278] sm:$0xff] }
 0x2ec   :  { %2295 = vmatpush.bf16.msra.mxu3 %v1217_v32  ;;  %v221_v59 = vld [vmem:[%s6139_s1 + $0x458] sm:$0xff]  ;;  %2270 = vmatpush.bf16.msra.mxu1 %v1149_v52  ;;  %v1145_v1 = vpack.c.bf16 %v161_v2, %v157_v56 }
 0x2ed   :  { %v225_v60 = vld [vmem:[%s6139_s1 + $0x478] sm:$0xff] }
 0x2ee   :  { %v285_v9 = vld [vmem:[%s6139_s1 + $0x658] sm:$0xff]  ;;  %2283 = vmatpush.bf16.msra.mxu2 %v1181_v53  ;;  %v1177_v3 = vpack.c.bf16 %v225_v60, %v221_v59  ;;  %2258 = vmatpush.bf16.msra.mxu0 %v1113_v62 }
 0x2ef   :  { %v289_v61 = vld [vmem:[%s6139_s1 + $0x678] sm:$0xff] }
 0x2f0   :  { %v85_v63 = vld [vmem:[%s6139_s1 + $0x18] sm:$0xff]  ;;  %2296 = vmatpush.bf16.msra.mxu3 %v1213_v57  ;;  %v1209_v7 = vpack.c.bf16 %v289_v61, %v285_v9  ;;  %2271 = vmatpush.bf16.msra.mxu1 %v1145_v1 }
 0x2f1   :  { %v89_v0 = vld [vmem:[%s6139_s1 + $0x38] sm:$0xff] }
 0x2f2   :  { %v149_v4 = vld [vmem:[%s6139_s1 + $0x218] sm:$0xff]  ;;  %v1109_v17 = vpack.c.bf16 %v89_v0, %v85_v63  ;;  %2284 = vmatpush.bf16.msra.mxu2 %v1177_v3 }
 0x2f3   :  { %v153_v5 = vld [vmem:[%s6139_s1 + $0x238] sm:$0xff] }
 0x2f4   :  { %v213_v6 = vld [vmem:[%s6139_s1 + $0x418] sm:$0xff]  ;;  %v1141_v29 = vpack.c.bf16 %v153_v5, %v149_v4  ;;  %2297 = vmatpush.bf16.msra.mxu3 %v1209_v7  ;;  %2259 = vmatpush.bf16.msra.mxu0 %v1109_v17 }
 0x2f5   :  { %v217_v8 = vld [vmem:[%s6139_s1 + $0x438] sm:$0xff] }
 0x2f6   :  { %v277_v28 = vld [vmem:[%s6139_s1 + $0x618] sm:$0xff]  ;;  %v1173_v31 = vpack.c.bf16 %v217_v8, %v213_v6  ;;  %2272 = vmatpush.bf16.msra.mxu1 %v1141_v29 }
 0x2f7   :  { %v281_v10 = vld [vmem:[%s6139_s1 + $0x638] sm:$0xff]  ;;  %2260 = vmatmul.bf16.vlgmr.msra.gmra.mxu0 %v3028_v35 }
 0x2f8   :  { %v397_v12 = vld [vmem:[%s6139_s1 + $0x9d8] sm:$0xff]  ;;  %v1205_v37 = vpack.c.bf16 %v281_v10, %v277_v28  ;;  %2285 = vmatpush.bf16.msra.mxu2 %v1173_v31  ;;  %v2066_v31 = vpop.f32.mrf.mxu1 }
 0x2f9   :  { %v401_v13 = vld [vmem:[%s6139_s1 + $0x9f8] sm:$0xff]  ;;  %2273 = vmatmul.bf16.vlgmr.msra.gmra.mxu1 %v3041_v43 }
 0x2fa   :  { %v461_v14 = vld [vmem:[%s6139_s1 + $0xbd8] sm:$0xff]  ;;  %v1265_v38 = vpack.c.bf16 %v401_v13, %v397_v12  ;;  %2298 = vmatpush.bf16.msra.mxu3 %v1205_v37 }
 0x2fb   :  { %v465_v18 = vld [vmem:[%s6139_s1 + $0xbf8] sm:$0xff]  ;;  %2286 = vmatmul.bf16.vlgmr.msra.gmra.mxu2 %v3026_v34 }
 0x2fc   :  { %v525_v22 = vld [vmem:[%s6139_s1 + $0xdd8] sm:$0xff]  ;;  %v1297_v41 = vpack.c.bf16 %v465_v18, %v461_v14  ;;  %2304 = vmatpush.bf16.msrb.mxu0 %v1265_v38  ;;  %v2053_v14 = vpop.f32.mrf.mxu0 }
 0x2fd   :  { %v529_v25 = vld [vmem:[%s6139_s1 + $0xdf8] sm:$0xff]  ;;  %2299 = vmatmul.bf16.vlgmr.msra.gmra.mxu3 %v3039_v42  ;;  %v5400_v42 = vld [vmem:[%s6140_s2] sm:$0xf] }
 0x2fe   :  { %v589_v32 = vld [vmem:[%s6139_s1 + $0xfd8] sm:$0xff]  ;;  %v1329_v45 = vpack.c.bf16 %v529_v25, %v525_v22  ;;  %2317 = vmatpush.bf16.msrb.mxu1 %v1297_v41  ;;  %v1622_v43 = vperm.slane %v5400_v42, 2 }
 0x2ff   :  { %v593_v33 = vld [vmem:[%s6139_s1 + $0xff8] sm:$0xff] }
 0x300   :  { %v389_v46 = vld [vmem:[%s6139_s1 + $0x998] sm:$0xff]  ;;  %v1361_v51 = vpack.c.bf16 %v593_v33, %v589_v32  ;;  %2330 = vmatpush.bf16.msrb.mxu2 %v1329_v45  ;;  %v2054_v29 = vadd.f32 %v2053_v14, %v1622_v43 }
 0x301   :  { %v393_v47 = vld [vmem:[%s6139_s1 + $0x9b8] sm:$0xff] }
 0x302   :  { %v453_v58 = vld [vmem:[%s6139_s1 + $0xb98] sm:$0xff]  ;;  %v1261_v55 = vpack.c.bf16 %v393_v47, %v389_v46  ;;  %2343 = vmatpush.bf16.msrb.mxu3 %v1361_v51  ;;  %v2067_v46 = vadd.f32 %v2066_v31, %v2054_v29 }
 0x303   :  { %v457_v48 = vld [vmem:[%s6139_s1 + $0xbb8] sm:$0xff] }
 0x304   :  { %v517_v49 = vld [vmem:[%s6139_s1 + $0xd98] sm:$0xff]  ;;  %v1293_v56 = vpack.c.bf16 %v457_v48, %v453_v58  ;;  %2305 = vmatpush.bf16.msrb.mxu0 %v1261_v55 }
 0x305   :  { %v521_v52 = vld [vmem:[%s6139_s1 + $0xdb8] sm:$0xff] }
 0x306   :  { %v581_v53 = vld [vmem:[%s6139_s1 + $0xf98] sm:$0xff]  ;;  %v1325_v57 = vpack.c.bf16 %v521_v52, %v517_v49  ;;  %2318 = vmatpush.bf16.msrb.mxu1 %v1293_v56 }
 0x307   :  { %v585_v54 = vld [vmem:[%s6139_s1 + $0xfb8] sm:$0xff] }
 0x308   :  { %v381_v2 = vld [vmem:[%s6139_s1 + $0x958] sm:$0xff]  ;;  %v1357_v9 = vpack.c.bf16 %v585_v54, %v581_v53  ;;  %2331 = vmatpush.bf16.msrb.mxu2 %v1325_v57  ;;  %v2079_v53 = vpop.f32.mrf.mxu2 }
 0x309   :  { %v385_v59 = vld [vmem:[%s6139_s1 + $0x978] sm:$0xff] }
 0x30a   :  { %v445_v60 = vld [vmem:[%s6139_s1 + $0xb58] sm:$0xff]  ;;  %v1257_v3 = vpack.c.bf16 %v385_v59, %v381_v2  ;;  %2344 = vmatpush.bf16.msrb.mxu3 %v1357_v9  ;;  %v2080_v2 = vadd.f32 %v2079_v53, %v2067_v46  ;;  %v2092_v59 = vpop.f32.mrf.mxu3 }
 0x30b   :  { %v449_v61 = vld [vmem:[%s6139_s1 + $0xb78] sm:$0xff] }
 0x30c   :  { %v509_v62 = vld [vmem:[%s6139_s1 + $0xd58] sm:$0xff]  ;;  %v1289_v4 = vpack.c.bf16 %v449_v61, %v445_v60  ;;  %2306 = vmatpush.bf16.msrb.mxu0 %v1257_v3 }
 0x30d   :  { %v513_v63 = vld [vmem:[%s6139_s1 + $0xd78] sm:$0xff] }
 0x30e   :  { %v573_v0 = vld [vmem:[%s6139_s1 + $0xf58] sm:$0xff]  ;;  %v1321_v34 = vpack.c.bf16 %v513_v63, %v509_v62  ;;  %2319 = vmatpush.bf16.msrb.mxu1 %v1289_v4  ;;  %v5466_v62 = vadd.f32 %v2092_v59, %v2080_v2  ;;  %v2055_v63 = vpop.f32.mrf.mxu0 }
 0x30f   :  { %v577_v1 = vld [vmem:[%s6139_s1 + $0xf78] sm:$0xff] }
 0x310   :  { %v373_v5 = vld [vmem:[%s6139_s1 + $0x918] sm:$0xff]  ;;  %v1353_v7 = vpack.c.bf16 %v577_v1, %v573_v0  ;;  %2332 = vmatpush.bf16.msrb.mxu2 %v1321_v34 }
 0x311   :  { %v377_v6 = vld [vmem:[%s6139_s1 + $0x938] sm:$0xff] }
 0x312   :  { %v437_v35 = vld [vmem:[%s6139_s1 + $0xb18] sm:$0xff]  ;;  %v1253_v13 = vpack.c.bf16 %v377_v6, %v373_v5  ;;  %2345 = vmatpush.bf16.msrb.mxu3 %v1353_v7  ;;  %v2068_v5 = vpop.f32.mrf.mxu1 }
 0x313   :  { %v441_v8 = vld [vmem:[%s6139_s1 + $0xb38] sm:$0xff] }
 0x314   :  { %v501_v28 = vld [vmem:[%s6139_s1 + $0xd18] sm:$0xff]  ;;  %v1285_v16 = vpack.c.bf16 %v441_v8, %v437_v35  ;;  %2307 = vmatpush.bf16.msrb.mxu0 %v1253_v13 }
 0x315   :  { %v505_v10 = vld [vmem:[%s6139_s1 + $0xd38] sm:$0xff] }
 0x316   :  { %v565_v11 = vld [vmem:[%s6139_s1 + $0xf18] sm:$0xff]  ;;  %v1317_v17 = vpack.c.bf16 %v505_v10, %v501_v28  ;;  %2320 = vmatpush.bf16.msrb.mxu1 %v1285_v16 }
 0x317   :  { %v569_v12 = vld [vmem:[%s6139_s1 + $0xf38] sm:$0xff] }
 0x318   :  { %v365_v18 = vld [vmem:[%s6139_s1 + $0x8d8] sm:$0xff]  ;;  %v1349_v32 = vpack.c.bf16 %v569_v12, %v565_v11  ;;  %2333 = vmatpush.bf16.msrb.mxu2 %v1317_v17 }
 0x319   :  { %v369_v22 = vld [vmem:[%s6139_s1 + $0x8f8] sm:$0xff] }
 0x31a   :  { %v429_v25 = vld [vmem:[%s6139_s1 + $0xad8] sm:$0xff]  ;;  %v1249_v47 = vpack.c.bf16 %v369_v22, %v365_v18  ;;  %2346 = vmatpush.bf16.msrb.mxu3 %v1349_v32  ;;  %v2081_v22 = vpop.f32.mrf.mxu2 }
 0x31b   :  { %v433_v33 = vld [vmem:[%s6139_s1 + $0xaf8] sm:$0xff] }
 0x31c   :  { %v493_v37 = vld [vmem:[%s6139_s1 + $0xcd8] sm:$0xff]  ;;  %v1281_v58 = vpack.c.bf16 %v433_v33, %v429_v25  ;;  %2308 = vmatpush.bf16.msrb.mxu0 %v1249_v47  ;;  %v2094_v33 = vpop.f32.mrf.mxu3 }
 0x31d   :  { %v497_v38 = vld [vmem:[%s6139_s1 + $0xcf8] sm:$0xff] }
 0x31e   :  { %v557_v41 = vld [vmem:[%s6139_s1 + $0xed8] sm:$0xff]  ;;  %v1313_v51 = vpack.c.bf16 %v497_v38, %v493_v37  ;;  %2321 = vmatpush.bf16.msrb.mxu1 %v1281_v58 }
 0x31f   :  { %v561_v45 = vld [vmem:[%s6139_s1 + $0xef8] sm:$0xff] }
 0x320   :  { %v357_v48 = vld [vmem:[%s6139_s1 + $0x898] sm:$0xff]  ;;  %v1345_v54 = vpack.c.bf16 %v561_v45, %v557_v41  ;;  %2334 = vmatpush.bf16.msrb.mxu2 %v1313_v51 }
 0x321   :  { %v361_v49 = vld [vmem:[%s6139_s1 + $0x8b8] sm:$0xff] }
 0x322   :  { %v421_v52 = vld [vmem:[%s6139_s1 + $0xa98] sm:$0xff]  ;;  %v1245_v61 = vpack.c.bf16 %v361_v49, %v357_v48  ;;  %2347 = vmatpush.bf16.msrb.mxu3 %v1345_v54 }
 0x323   :  { %v425_v55 = vld [vmem:[%s6139_s1 + $0xab8] sm:$0xff] }
 0x324   :  { %v485_v56 = vld [vmem:[%s6139_s1 + $0xc98] sm:$0xff]  ;;  %v1277_v0 = vpack.c.bf16 %v425_v55, %v421_v52  ;;  %2309 = vmatpush.bf16.msrb.mxu0 %v1245_v61 }
 0x325   :  { %v489_v57 = vld [vmem:[%s6139_s1 + $0xcb8] sm:$0xff] }
 0x326   :  { %v549_v60 = vld [vmem:[%s6139_s1 + $0xe98] sm:$0xff]  ;;  %v1309_v1 = vpack.c.bf16 %v489_v57, %v485_v56  ;;  %2322 = vmatpush.bf16.msrb.mxu1 %v1277_v0 }
 0x327   :  { %v553_v9 = vld [vmem:[%s6139_s1 + $0xeb8] sm:$0xff] }
 0x328   :  { %v349_v3 = vld [vmem:[%s6139_s1 + $0x858] sm:$0xff]  ;;  %v1341_v6 = vpack.c.bf16 %v553_v9, %v549_v60  ;;  %2335 = vmatpush.bf16.msrb.mxu2 %v1309_v1 }
 0x329   :  { %v353_v4 = vld [vmem:[%s6139_s1 + $0x878] sm:$0xff] }
 0x32a   :  { %v413_v34 = vld [vmem:[%s6139_s1 + $0xa58] sm:$0xff]  ;;  %v1241_v10 = vpack.c.bf16 %v353_v4, %v349_v3  ;;  %2348 = vmatpush.bf16.msrb.mxu3 %v1341_v6 }
 0x32b   :  { %v417_v35 = vld [vmem:[%s6139_s1 + $0xa78] sm:$0xff] }
 0x32c   :  { %v477_v43 = vld [vmem:[%s6139_s1 + $0xc58] sm:$0xff]  ;;  %v1273_v13 = vpack.c.bf16 %v417_v35, %v413_v34  ;;  %2310 = vmatpush.bf16.msrb.mxu0 %v1241_v10 }
 0x32d   :  { %v481_v7 = vld [vmem:[%s6139_s1 + $0xc78] sm:$0xff] }
 0x32e   :  { %v541_v8 = vld [vmem:[%s6139_s1 + $0xe58] sm:$0xff]  ;;  %v1305_v14 = vpack.c.bf16 %v481_v7, %v477_v43  ;;  %2323 = vmatpush.bf16.msrb.mxu1 %v1273_v13 }
 0x32f   :  { %v545_v28 = vld [vmem:[%s6139_s1 + $0xe78] sm:$0xff] }
 0x330   :  { %v341_v11 = vld [vmem:[%s6139_s1 + $0x818] sm:$0xff]  ;;  %v1337_v25 = vpack.c.bf16 %v545_v28, %v541_v8  ;;  %2336 = vmatpush.bf16.msrb.mxu2 %v1305_v14 }
 0x331   :  { %v345_v12 = vld [vmem:[%s6139_s1 + $0x838] sm:$0xff] }
 0x332   :  { %v405_v16 = vld [vmem:[%s6139_s1 + $0xa18] sm:$0xff]  ;;  %v1237_v45 = vpack.c.bf16 %v345_v12, %v341_v11  ;;  %2349 = vmatpush.bf16.msrb.mxu3 %v1337_v25 }
 0x333   :  { %v409_v17 = vld [vmem:[%s6139_s1 + $0xa38] sm:$0xff] }
 0x334   :  { %v469_v18 = vld [vmem:[%s6139_s1 + $0xc18] sm:$0xff]  ;;  %v1269_v51 = vpack.c.bf16 %v409_v17, %v405_v16  ;;  %2311 = vmatpush.bf16.msrb.mxu0 %v1237_v45  ;;  %v5627_v45 = vpop.f32.mrf.mxu1 }
 0x335   :  { %v473_v29 = vld [vmem:[%s6139_s1 + $0xc38] sm:$0xff] }
 0x336   :  { %v533_v31 = vld [vmem:[%s6139_s1 + $0xe18] sm:$0xff]  ;;  %v1301_v48 = vpack.c.bf16 %v473_v29, %v469_v18  ;;  %2324 = vmatpush.bf16.msrb.mxu1 %v1269_v51 }
 0x337   :  { %v537_v32 = vld [vmem:[%s6139_s1 + $0xe38] sm:$0xff]  ;;  %2312 = vmatmul.bf16.vlgmr.msrb.gmra.mxu0 %v3157_v39 }
 0x338   :  { %v653_v37 = vld [vmem:[%s6139_s1 + $0x11d8] sm:$0xff]  ;;  %v1333_v53 = vpack.c.bf16 %v537_v32, %v533_v31  ;;  %2337 = vmatpush.bf16.msrb.mxu2 %v1301_v48  ;;  %v5616_v31 = vpop.f32.mrf.mxu0 }
 0x339   :  { %v657_v38 = vld [vmem:[%s6139_s1 + $0x11f8] sm:$0xff]  ;;  %2325 = vmatmul.bf16.vlgmr.msrb.gmra.mxu1 %v3161_v44 }
 0x33a   :  { %v717_v41 = vld [vmem:[%s6139_s1 + $0x13d8] sm:$0xff]  ;;  %v1393_v54 = vpack.c.bf16 %v657_v38, %v653_v37  ;;  %2350 = vmatpush.bf16.msrb.mxu3 %v1333_v53 }
 0x33b   :  { %v721_v46 = vld [vmem:[%s6139_s1 + $0x13f8] sm:$0xff]  ;;  %2338 = vmatmul.bf16.vlgmr.msrb.gmra.mxu2 %v3149_v36 }
 0x33c   :  { %v781_v47 = vld [vmem:[%s6139_s1 + $0x15d8] sm:$0xff]  ;;  %v1425_v55 = vpack.c.bf16 %v721_v46, %v717_v41  ;;  %2356 = vmatpush.bf16.msra.mxu0 %v1393_v54 }
 0x33d   :  { %v785_v58 = vld [vmem:[%s6139_s1 + $0x15f8] sm:$0xff]  ;;  %2351 = vmatmul.bf16.vlgmr.msrb.gmra.mxu3 %v3159_v40 }
 0x33e   :  { %v845_v49 = vld [vmem:[%s6139_s1 + $0x17d8] sm:$0xff]  ;;  %v1457_v56 = vpack.c.bf16 %v785_v58, %v781_v47  ;;  %2369 = vmatpush.bf16.msra.mxu1 %v1425_v55 }
 0x33f   :  { %v849_v52 = vld [vmem:[%s6139_s1 + $0x17f8] sm:$0xff] }
 0x340   :  { %v645_v57 = vld [vmem:[%s6139_s1 + $0x1198] sm:$0xff]  ;;  %v1489_v60 = vpack.c.bf16 %v849_v52, %v845_v49  ;;  %2382 = vmatpush.bf16.msra.mxu2 %v1457_v56 }
 0x341   :  { %v649_v2 = vld [vmem:[%s6139_s1 + $0x11b8] sm:$0xff] }
 0x342   :  { %v709_v59 = vld [vmem:[%s6139_s1 + $0x1398] sm:$0xff]  ;;  %v1389_v3 = vpack.c.bf16 %v649_v2, %v645_v57  ;;  %2395 = vmatpush.bf16.msra.mxu3 %v1489_v60  ;;  %v5653_v2 = vpop.f32.mrf.mxu2 }
 0x343   :  { %v713_v9 = vld [vmem:[%s6139_s1 + $0x13b8] sm:$0xff] }
 0x344   :  { %v773_v61 = vld [vmem:[%s6139_s1 + $0x1598] sm:$0xff]  ;;  %v1421_v4 = vpack.c.bf16 %v713_v9, %v709_v59  ;;  %2357 = vmatpush.bf16.msra.mxu0 %v1389_v3 }
 0x345   :  { %v777_v63 = vld [vmem:[%s6139_s1 + $0x15b8] sm:$0xff] }
 0x346   :  { %v837_v0 = vld [vmem:[%s6139_s1 + $0x1798] sm:$0xff]  ;;  %v1453_v34 = vpack.c.bf16 %v777_v63, %v773_v61  ;;  %2370 = vmatpush.bf16.msra.mxu1 %v1421_v4  ;;  %v5664_v63 = vpop.f32.mrf.mxu3  ;;  %v2107_v4 = vpop.f32.mrf.mxu0 }
 0x347   :  { %v841_v1 = vld [vmem:[%s6139_s1 + $0x17b8] sm:$0xff] }
 0x348   :  { %v637_v5 = vld [vmem:[%s6139_s1 + $0x1158] sm:$0xff]  ;;  %v1485_v43 = vpack.c.bf16 %v841_v1, %v837_v0  ;;  %2383 = vmatpush.bf16.msra.mxu2 %v1453_v34 }
 0x349   :  { %v641_v6 = vld [vmem:[%s6139_s1 + $0x1178] sm:$0xff] }
 0x34a   :  { %v701_v35 = vld [vmem:[%s6139_s1 + $0x1358] sm:$0xff]  ;;  %v1385_v11 = vpack.c.bf16 %v641_v6, %v637_v5  ;;  %2396 = vmatpush.bf16.msra.mxu3 %v1485_v43 }
 0x34b   :  { %v705_v7 = vld [vmem:[%s6139_s1 + $0x1378] sm:$0xff] }
 0x34c   :  { %v765_v8 = vld [vmem:[%s6139_s1 + $0x1558] sm:$0xff]  ;;  %v1417_v12 = vpack.c.bf16 %v705_v7, %v701_v35  ;;  %2358 = vmatpush.bf16.msra.mxu0 %v1385_v11  ;;  %v2120_v7 = vpop.f32.mrf.mxu1 }
 0x34d   :  { %v769_v28 = vld [vmem:[%s6139_s1 + $0x1578] sm:$0xff] }
 0x34e   :  { %v829_v10 = vld [vmem:[%s6139_s1 + $0x1758] sm:$0xff]  ;;  %v1449_v13 = vpack.c.bf16 %v769_v28, %v765_v8  ;;  %2371 = vmatpush.bf16.msra.mxu1 %v1417_v12 }
 0x34f   :  { %v833_v36 = vld [vmem:[%s6139_s1 + $0x1778] sm:$0xff] }
 0x350   :  { %v629_v14 = vld [vmem:[%s6139_s1 + $0x1118] sm:$0xff]  ;;  %v1481_v40 = vpack.c.bf16 %v833_v36, %v829_v10  ;;  %2384 = vmatpush.bf16.msra.mxu2 %v1449_v13 }
 0x351   :  { %v633_v16 = vld [vmem:[%s6139_s1 + $0x1138] sm:$0xff] }
 0x352   :  { %v693_v39 = vld [vmem:[%s6139_s1 + $0x1318] sm:$0xff]  ;;  %v1381_v29 = vpack.c.bf16 %v633_v16, %v629_v14  ;;  %2397 = vmatpush.bf16.msra.mxu3 %v1481_v40 }
 0x353   :  { %v697_v44 = vld [vmem:[%s6139_s1 + $0x1338] sm:$0xff] }
 0x354   :  { %v757_v17 = vld [vmem:[%s6139_s1 + $0x1518] sm:$0xff]  ;;  %v1413_v32 = vpack.c.bf16 %v697_v44, %v693_v39  ;;  %2359 = vmatpush.bf16.msra.mxu0 %v1381_v29 }
 0x355   :  { %v761_v18 = vld [vmem:[%s6139_s1 + $0x1538] sm:$0xff] }
 0x356   :  { %v821_v22 = vld [vmem:[%s6139_s1 + $0x1718] sm:$0xff]  ;;  %v1445_v33 = vpack.c.bf16 %v761_v18, %v757_v17  ;;  %2372 = vmatpush.bf16.msra.mxu1 %v1413_v32 }
 0x357   :  { %v825_v25 = vld [vmem:[%s6139_s1 + $0x1738] sm:$0xff] }
 0x358   :  { %v621_v37 = vld [vmem:[%s6139_s1 + $0x10d8] sm:$0xff]  ;;  %v1477_v46 = vpack.c.bf16 %v825_v25, %v821_v22  ;;  %2385 = vmatpush.bf16.msra.mxu2 %v1445_v33  ;;  %v2133_v22 = vpop.f32.mrf.mxu2 }
 0x359   :  { %v625_v38 = vld [vmem:[%s6139_s1 + $0x10f8] sm:$0xff]  ;;  %v5814_v22 = vpop.f32.mrf.mxu0 }
 0x35a   :  { %v685_v41 = vld [vmem:[%s6139_s1 + $0x12d8] sm:$0xff]  ;;  %v1377_v52 = vpack.c.bf16 %v625_v38, %v621_v37  ;;  %2398 = vmatpush.bf16.msra.mxu3 %v1477_v46  ;;  %v2146_v37 = vpop.f32.mrf.mxu3 }
 0x35b   :  { %v689_v47 = vld [vmem:[%s6139_s1 + $0x12f8] sm:$0xff] }
 0x35c   :  { %v749_v58 = vld [vmem:[%s6139_s1 + $0x14d8] sm:$0xff]  ;;  %v1409_v53 = vpack.c.bf16 %v689_v47, %v685_v41  ;;  %2360 = vmatpush.bf16.msra.mxu0 %v1377_v52 }
 0x35d   :  { %v753_v51 = vld [vmem:[%s6139_s1 + $0x14f8] sm:$0xff] }
 0x35e   :  { %v813_v48 = vld [vmem:[%s6139_s1 + $0x16d8] sm:$0xff]  ;;  %v1441_v54 = vpack.c.bf16 %v753_v51, %v749_v58  ;;  %2373 = vmatpush.bf16.msra.mxu1 %v1409_v53 }
 0x35f   :  { %v817_v49 = vld [vmem:[%s6139_s1 + $0x16f8] sm:$0xff] }
 0x360   :  { %v613_v55 = vld [vmem:[%s6139_s1 + $0x1098] sm:$0xff]  ;;  %v1473_v59 = vpack.c.bf16 %v817_v49, %v813_v48  ;;  %2386 = vmatpush.bf16.msra.mxu2 %v1441_v54 }
 0x361   :  { %v617_v56 = vld [vmem:[%s6139_s1 + $0x10b8] sm:$0xff] }
 0x362   :  { %v677_v57 = vld [vmem:[%s6139_s1 + $0x1298] sm:$0xff]  ;;  %v1373_v3 = vpack.c.bf16 %v617_v56, %v613_v55  ;;  %2399 = vmatpush.bf16.msra.mxu3 %v1473_v59 }
 0x363   :  { %v681_v60 = vld [vmem:[%s6139_s1 + $0x12b8] sm:$0xff] }
 0x364   :  { %v741_v9 = vld [vmem:[%s6139_s1 + $0x1498] sm:$0xff]  ;;  %v1405_v34 = vpack.c.bf16 %v681_v60, %v677_v57  ;;  %2361 = vmatpush.bf16.msra.mxu0 %v1373_v3 }
 0x365   :  { %v745_v61 = vld [vmem:[%s6139_s1 + $0x14b8] sm:$0xff] }
 0x366   :  { %v805_v0 = vld [vmem:[%s6139_s1 + $0x1698] sm:$0xff]  ;;  %v1437_v5 = vpack.c.bf16 %v745_v61, %v741_v9  ;;  %2374 = vmatpush.bf16.msra.mxu1 %v1405_v34 }
 0x367   :  { %v809_v1 = vld [vmem:[%s6139_s1 + $0x16b8] sm:$0xff] }
 0x368   :  { %v605_v6 = vld [vmem:[%s6139_s1 + $0x1058] sm:$0xff]  ;;  %v1469_v8 = vpack.c.bf16 %v809_v1, %v805_v0  ;;  %2387 = vmatpush.bf16.msra.mxu2 %v1437_v5 }
 0x369   :  { %v609_v35 = vld [vmem:[%s6139_s1 + $0x1078] sm:$0xff] }
 0x36a   :  { %v669_v43 = vld [vmem:[%s6139_s1 + $0x1258] sm:$0xff]  ;;  %v1369_v13 = vpack.c.bf16 %v609_v35, %v605_v6  ;;  %2400 = vmatpush.bf16.msra.mxu3 %v1469_v8 }
 0x36b   :  { %v673_v28 = vld [vmem:[%s6139_s1 + $0x1278] sm:$0xff] }
 0x36c   :  { %v733_v10 = vld [vmem:[%s6139_s1 + $0x1458] sm:$0xff]  ;;  %v1401_v39 = vpack.c.bf16 %v673_v28, %v669_v43  ;;  %2362 = vmatpush.bf16.msra.mxu0 %v1369_v13 }
 0x36d   :  { %v737_v36 = vld [vmem:[%s6139_s1 + $0x1478] sm:$0xff] }
 0x36e   :  { %v797_v11 = vld [vmem:[%s6139_s1 + $0x1658] sm:$0xff]  ;;  %v1433_v40 = vpack.c.bf16 %v737_v36, %v733_v10  ;;  %2375 = vmatpush.bf16.msra.mxu1 %v1401_v39 }
 0x36f   :  { %v801_v12 = vld [vmem:[%s6139_s1 + $0x1678] sm:$0xff] }
 0x370   :  { %v597_v14 = vld [vmem:[%s6139_s1 + $0x1018] sm:$0xff]  ;;  %v1465_v25 = vpack.c.bf16 %v801_v12, %v797_v11  ;;  %2388 = vmatpush.bf16.msra.mxu2 %v1433_v40 }
 0x371   :  { %v601_v16 = vld [vmem:[%s6139_s1 + $0x1038] sm:$0xff] }
 0x372   :  { %v661_v44 = vld [vmem:[%s6139_s1 + $0x1218] sm:$0xff]  ;;  %v1365_v47 = vpack.c.bf16 %v601_v16, %v597_v14  ;;  %2401 = vmatpush.bf16.msra.mxu3 %v1465_v25 }
 0x373   :  { %v665_v17 = vld [vmem:[%s6139_s1 + $0x1238] sm:$0xff] }
 0x374   :  { %v725_v18 = vld [vmem:[%s6139_s1 + $0x1418] sm:$0xff]  ;;  %v1397_v49 = vpack.c.bf16 %v665_v17, %v661_v44  ;;  %2363 = vmatpush.bf16.msra.mxu0 %v1365_v47 }
 0x375   :  { %v729_v29 = vld [vmem:[%s6139_s1 + $0x1438] sm:$0xff] }
 0x376   :  { %v789_v32 = vld [vmem:[%s6139_s1 + $0x1618] sm:$0xff]  ;;  %v1429_v52 = vpack.c.bf16 %v729_v29, %v725_v18  ;;  %2376 = vmatpush.bf16.msra.mxu1 %v1397_v49 }
 0x377   :  { %v793_v33 = vld [vmem:[%s6139_s1 + $0x1638] sm:$0xff]  ;;  %2364 = vmatmul.bf16.vlgmr.msra.gmra.mxu0 %v3344_v19 }
 0x378   :  { %v909_v38 = vld [vmem:[%s6139_s1 + $0x19d8] sm:$0xff]  ;;  %v1461_v55 = vpack.c.bf16 %v793_v33, %v789_v32  ;;  %2389 = vmatpush.bf16.msra.mxu2 %v1429_v52  ;;  %v5822_v33 = vpop.f32.mrf.mxu1 }
 0x379   :  { %v913_v41 = vld [vmem:[%s6139_s1 + $0x19f8] sm:$0xff]  ;;  %2377 = vmatmul.bf16.vlgmr.msra.gmra.mxu1 %v3357_v24 }
 0x37a   :  { %v973_v46 = vld [vmem:[%s6139_s1 + $0x1bd8] sm:$0xff]  ;;  %v1521_v56 = vpack.c.bf16 %v913_v41, %v909_v38  ;;  %2402 = vmatpush.bf16.msra.mxu3 %v1461_v55 }
 0x37b   :  { %v977_v58 = vld [vmem:[%s6139_s1 + $0x1bf8] sm:$0xff]  ;;  %2390 = vmatmul.bf16.vlgmr.msra.gmra.mxu2 %v3355_v23 }
 0x37c   :  { %v1037_v51 = vld [vmem:[%s6139_s1 + $0x1dd8] sm:$0xff]  ;;  %v1553_v57 = vpack.c.bf16 %v977_v58, %v973_v46  ;;  %2408 = vmatpush.bf16.msrb.mxu0 %v1521_v56 }
 0x37d   :  { %v1041_v48 = vld [vmem:[%s6139_s1 + $0x1df8] sm:$0xff]  ;;  %2403 = vmatmul.bf16.vlgmr.msra.gmra.mxu3 %v3365_v27 }
 0x37e   :  { %v1101_v53 = vld [vmem:[%s6139_s1 + $0x1fd8] sm:$0xff]  ;;  %v1585_v59 = vpack.c.bf16 %v1041_v48, %v1037_v51  ;;  %2421 = vmatpush.bf16.msrb.mxu1 %v1553_v57 }
 0x37f   :  { %v1105_v54 = vld [vmem:[%s6139_s1 + $0x1ff8] sm:$0xff] }
 0x380   :  { %v901_v60 = vld [vmem:[%s6139_s1 + $0x1998] sm:$0xff]  ;;  %v1617_v0 = vpack.c.bf16 %v1105_v54, %v1101_v53  ;;  %2434 = vmatpush.bf16.msrb.mxu2 %v1585_v59 }
 0x381   :  { %v905_v9 = vld [vmem:[%s6139_s1 + $0x19b8] sm:$0xff] }
 0x382   :  { %v965_v61 = vld [vmem:[%s6139_s1 + $0x1b98] sm:$0xff]  ;;  %v1517_v6 = vpack.c.bf16 %v905_v9, %v901_v60  ;;  %2447 = vmatpush.bf16.msrb.mxu3 %v1617_v0 }
 0x383   :  { %v969_v1 = vld [vmem:[%s6139_s1 + $0x1bb8] sm:$0xff] }
 0x384   :  { %v1029_v3 = vld [vmem:[%s6139_s1 + $0x1d98] sm:$0xff]  ;;  %v1549_v35 = vpack.c.bf16 %v969_v1, %v965_v61  ;;  %2409 = vmatpush.bf16.msrb.mxu0 %v1517_v6  ;;  %v5857_v61 = vpop.f32.mrf.mxu2  ;;  %v2159_v6 = vpop.f32.mrf.mxu0 }
 0x385   :  { %v1033_v4 = vld [vmem:[%s6139_s1 + $0x1db8] sm:$0xff] }
 0x386   :  { %v1093_v34 = vld [vmem:[%s6139_s1 + $0x1f98] sm:$0xff]  ;;  %v1581_v43 = vpack.c.bf16 %v1033_v4, %v1029_v3  ;;  %2422 = vmatpush.bf16.msrb.mxu1 %v1549_v35  ;;  %v5868_v4 = vpop.f32.mrf.mxu3  ;;  %v2106_v35 = vadd.f32 %v5616_v31, %v5466_v62 }
 0x387   :  { %v1097_v5 = vld [vmem:[%s6139_s1 + $0x1fb8] sm:$0xff] }
 0x388   :  { %v893_v7 = vld [vmem:[%s6139_s1 + $0x1958] sm:$0xff]  ;;  %v1613_v10 = vpack.c.bf16 %v1097_v5, %v1093_v34  ;;  %2435 = vmatpush.bf16.msrb.mxu2 %v1581_v43 }
 0x389   :  { %v897_v8 = vld [vmem:[%s6139_s1 + $0x1978] sm:$0xff] }
 0x38a   :  { %v957_v28 = vld [vmem:[%s6139_s1 + $0x1b58] sm:$0xff]  ;;  %v1513_v14 = vpack.c.bf16 %v897_v8, %v893_v7  ;;  %2448 = vmatpush.bf16.msrb.mxu3 %v1613_v10  ;;  %v2172_v7 = vpop.f32.mrf.mxu1 }
 0x38b   :  { %v961_v36 = vld [vmem:[%s6139_s1 + $0x1b78] sm:$0xff] }
 0x38c   :  { %v1021_v11 = vld [vmem:[%s6139_s1 + $0x1d58] sm:$0xff]  ;;  %v1545_v16 = vpack.c.bf16 %v961_v36, %v957_v28  ;;  %2410 = vmatpush.bf16.msrb.mxu0 %v1513_v14 }
 0x38d   :  { %v1025_v12 = vld [vmem:[%s6139_s1 + $0x1d78] sm:$0xff] }
 0x38e   :  { %v1085_v19 = vld [vmem:[%s6139_s1 + $0x1f58] sm:$0xff]  ;;  %v1577_v39 = vpack.c.bf16 %v1025_v12, %v1021_v11  ;;  %2423 = vmatpush.bf16.msrb.mxu1 %v1545_v16  ;;  %v2119_v16 = vadd.f32 %v5627_v45, %v2106_v35 }
 0x38f   :  { %v1089_v13 = vld [vmem:[%s6139_s1 + $0x1f78] sm:$0xff] }
 0x390   :  { %v885_v23 = vld [vmem:[%s6139_s1 + $0x1918] sm:$0xff]  ;;  %v1609_v27 = vpack.c.bf16 %v1089_v13, %v1085_v19  ;;  %2436 = vmatpush.bf16.msrb.mxu2 %v1577_v39 }
 0x391   :  { %v889_v24 = vld [vmem:[%s6139_s1 + $0x1938] sm:$0xff] }
 0x392   :  { %v949_v40 = vld [vmem:[%s6139_s1 + $0x1b18] sm:$0xff]  ;;  %v1509_v32 = vpack.c.bf16 %v889_v24, %v885_v23  ;;  %2449 = vmatpush.bf16.msrb.mxu3 %v1609_v27 }
 0x393   :  { %v953_v44 = vld [vmem:[%s6139_s1 + $0x1b38] sm:$0xff] }
 0x394   :  { %v1013_v17 = vld [vmem:[%s6139_s1 + $0x1d18] sm:$0xff]  ;;  %v1541_v37 = vpack.c.bf16 %v953_v44, %v949_v40  ;;  %2411 = vmatpush.bf16.msrb.mxu0 %v1509_v32 }
 0x395   :  { %v1017_v18 = vld [vmem:[%s6139_s1 + $0x1d38] sm:$0xff] }
 0x396   :  { %v1077_v25 = vld [vmem:[%s6139_s1 + $0x1f18] sm:$0xff]  ;;  %v1573_v38 = vpack.c.bf16 %v1017_v18, %v1013_v17  ;;  %2424 = vmatpush.bf16.msrb.mxu1 %v1541_v37  ;;  %v2185_v37 = vpop.f32.mrf.mxu2 }
 0x397   :  { %v1081_v29 = vld [vmem:[%s6139_s1 + $0x1f38] sm:$0xff]  ;;  %v2473_v37 = vld [vmem:[%s6141_s3 + $0x28] sm:$0xff] }
 0x398   :  { %v877_v41 = vld [vmem:[%s6139_s1 + $0x18d8] sm:$0xff]  ;;  %v1605_v58 = vpack.c.bf16 %v1081_v29, %v1077_v25  ;;  %2437 = vmatpush.bf16.msrb.mxu2 %v1573_v38  ;;  %v2482_v38 = vld [vmem:[%s6141_s3 + $0x70] sm:$0xff] }
 0x399   :  { %v881_v46 = vld [vmem:[%s6139_s1 + $0x18f8] sm:$0xff] }
 0x39a   :  { %v941_v47 = vld [vmem:[%s6139_s1 + $0x1ad8] sm:$0xff]  ;;  %v1505_v54 = vpack.c.bf16 %v881_v46, %v877_v41  ;;  %2450 = vmatpush.bf16.msrb.mxu3 %v1605_v58  ;;  %v2498_v46 = vld [vmem:[%s6141_s3 + $0xf0] sm:$0xff]  ;;  %v2132_v58 = vadd.f32 %v5653_v2, %v2119_v16  ;;  %v2222_v16 = vpop.f32.mrf.mxu1 }
 0x39b   :  { %v945_v51 = vld [vmem:[%s6139_s1 + $0x1af8] sm:$0xff] }
 0x39c   :  { %v1005_v48 = vld [vmem:[%s6139_s1 + $0x1cd8] sm:$0xff]  ;;  %v1537_v55 = vpack.c.bf16 %v945_v51, %v941_v47  ;;  %2412 = vmatpush.bf16.msrb.mxu0 %v1505_v54  ;;  %v2198_v47 = vpop.f32.mrf.mxu3 }
 0x39d   :  { %v1009_v49 = vld [vmem:[%s6139_s1 + $0x1cf8] sm:$0xff]  ;;  %v2504_v47 = vld [vmem:[%s6141_s3 + $0x120] sm:$0xff] }
 0x39e   :  { %v1069_v52 = vld [vmem:[%s6139_s1 + $0x1ed8] sm:$0xff]  ;;  %v1569_v56 = vpack.c.bf16 %v1009_v49, %v1005_v48  ;;  %2425 = vmatpush.bf16.msrb.mxu1 %v1537_v55  ;;  %v2514_v49 = vld [vmem:[%s6141_s3 + $0x170] sm:$0xff] }
 0x39f   :  { %v1073_v53 = vld [vmem:[%s6139_s1 + $0x1ef8] sm:$0xff] }
 0x3a0   :  { %v869_v57 = vld [vmem:[%s6139_s1 + $0x1898] sm:$0xff]  ;;  %v1601_v9 = vpack.c.bf16 %v1073_v53, %v1069_v52  ;;  %2438 = vmatpush.bf16.msrb.mxu2 %v1569_v56 }
 0x3a1   :  { %v873_v59 = vld [vmem:[%s6139_s1 + $0x18b8] sm:$0xff] }
 0x3a2   :  { %v933_v60 = vld [vmem:[%s6139_s1 + $0x1a98] sm:$0xff]  ;;  %v1501_v43 = vpack.c.bf16 %v873_v59, %v869_v57  ;;  %2451 = vmatpush.bf16.msrb.mxu3 %v1601_v9  ;;  %v2480_v59 = vld [vmem:[%s6141_s3 + $0x60] sm:$0xff] }
 0x3a3   :  { %v937_v0 = vld [vmem:[%s6139_s1 + $0x1ab8] sm:$0xff]  ;;  %v2496_v9 = vld [vmem:[%s6141_s3 + $0xe0] sm:$0xff] }
 0x3a4   :  { %v997_v1 = vld [vmem:[%s6139_s1 + $0x1c98] sm:$0xff]  ;;  %v1533_v8 = vpack.c.bf16 %v937_v0, %v933_v60  ;;  %2413 = vmatpush.bf16.msrb.mxu0 %v1501_v43  ;;  %v2481_v60 = vld [vmem:[%s6141_s3 + $0x68] sm:$0xff]  ;;  %v2145_v0 = vadd.f32 %v5664_v63, %v2132_v58  ;;  %v2478_v43 = vld [vmem:[%s6141_s3 + $0x50] sm:$0xff] }
 0x3a5   :  { %v1001_v3 = vld [vmem:[%s6139_s1 + $0x1cb8] sm:$0xff]  ;;  %v2538_v63 = vpack.c.bf16 %v2481_v60, %v2480_v59  ;;  %v2505_v58 = vld [vmem:[%s6141_s3 + $0x128] sm:$0xff] }
 0x3a6   :  { %v1061_v34 = vld [vmem:[%s6139_s1 + $0x1e98] sm:$0xff]  ;;  %v1565_v28 = vpack.c.bf16 %v1001_v3, %v997_v1  ;;  %2426 = vmatpush.bf16.msrb.mxu1 %v1533_v8  ;;  %v2497_v1 = vld [vmem:[%s6141_s3 + $0xe8] sm:$0xff]  ;;  %v2512_v3 = vld [vmem:[%s6141_s3 + $0x160] sm:$0xff] }
 0x3a7   :  { %v1065_v5 = vld [vmem:[%s6139_s1 + $0x1eb8] sm:$0xff]  ;;  %v2546_v6 = vpack.c.bf16 %v2497_v1, %v2496_v9  ;;  %v2494_v8 = vld [vmem:[%s6141_s3 + $0xd0] sm:$0xff] }
 0x3a8   :  { %v861_v10 = vld [vmem:[%s6139_s1 + $0x1858] sm:$0xff]  ;;  %v1597_v62 = vpack.c.bf16 %v1065_v5, %v1061_v34  ;;  %2439 = vmatpush.bf16.msrb.mxu2 %v1565_v28  ;;  %v2513_v34 = vld [vmem:[%s6141_s3 + $0x168] sm:$0xff]  ;;  %v2158_v5 = vadd.f32 %v5814_v22, %v2145_v0  ;;  %v2510_v28 = vld [vmem:[%s6141_s3 + $0x150] sm:$0xff] }
 0x3a9   :  { %v865_v36 = vld [vmem:[%s6139_s1 + $0x1878] sm:$0xff]  ;;  %v2554_v35 = vpack.c.bf16 %v2513_v34, %v2512_v3  ;;  %v2502_v9 = vld [vmem:[%s6141_s3 + $0x110] sm:$0xff] }
 0x3aa   :  { %v925_v11 = vld [vmem:[%s6139_s1 + $0x1a58] sm:$0xff]  ;;  %v1497_v39 = vpack.c.bf16 %v865_v36, %v861_v10  ;;  %2452 = vmatpush.bf16.msrb.mxu3 %v1597_v62  ;;  %v2476_v62 = vld [vmem:[%s6141_s3 + $0x40] sm:$0xff] }
 0x3ab   :  { %v929_v31 = vld [vmem:[%s6139_s1 + $0x1a78] sm:$0xff] }
 0x3ac   :  { %v989_v12 = vld [vmem:[%s6139_s1 + $0x1c58] sm:$0xff]  ;;  %v1529_v40 = vpack.c.bf16 %v929_v31, %v925_v11  ;;  %2414 = vmatpush.bf16.msrb.mxu0 %v1497_v39  ;;  %v2477_v31 = vld [vmem:[%s6141_s3 + $0x48] sm:$0xff] }
 0x3ad   :  { %v993_v19 = vld [vmem:[%s6139_s1 + $0x1c78] sm:$0xff] }
 0x3ae   :  { %v1053_v13 = vld [vmem:[%s6139_s1 + $0x1e58] sm:$0xff]  ;;  %v1561_v27 = vpack.c.bf16 %v993_v19, %v989_v12  ;;  %2427 = vmatpush.bf16.msrb.mxu1 %v1529_v40  ;;  %v2508_v12 = vld [vmem:[%s6141_s3 + $0x140] sm:$0xff]  ;;  %v2509_v19 = vld [vmem:[%s6141_s3 + $0x148] sm:$0xff] }
 0x3af   :  { %v1057_v14 = vld [vmem:[%s6139_s1 + $0x1e78] sm:$0xff]  ;;  %v2490_v40 = vld [vmem:[%s6141_s3 + $0xb0] sm:$0xff] }
 0x3b0   :  { %v853_v23 = vld [vmem:[%s6139_s1 + $0x1818] sm:$0xff]  ;;  %v1593_v18 = vpack.c.bf16 %v1057_v14, %v1053_v13  ;;  %2440 = vmatpush.bf16.msrb.mxu2 %v1561_v27  ;;  %v2209_v13 = vpop.f32.mrf.mxu0  ;;  %v2536_v14 = vpack.c.bf16 %v2477_v31, %v2476_v62 }
 0x3b1   :  { %v857_v24 = vld [vmem:[%s6139_s1 + $0x1838] sm:$0xff] }
 0x3b2   :  { %v917_v44 = vld [vmem:[%s6139_s1 + $0x1a18] sm:$0xff]  ;;  %v1493_v51 = vpack.c.bf16 %v857_v24, %v853_v23  ;;  %2453 = vmatpush.bf16.msrb.mxu3 %v1593_v18  ;;  %v2474_v23 = vld [vmem:[%s6141_s3 + $0x30] sm:$0xff] }
 0x3b3   :  { %v921_v45 = vld [vmem:[%s6139_s1 + $0x1a38] sm:$0xff] }
 0x3b4   :  { %v981_v17 = vld [vmem:[%s6139_s1 + $0x1c18] sm:$0xff]  ;;  %v1525_v53 = vpack.c.bf16 %v921_v45, %v917_v44  ;;  %2415 = vmatpush.bf16.msrb.mxu0 %v1493_v51  ;;  %v2506_v45 = vld [vmem:[%s6141_s3 + $0x130] sm:$0xff]  ;;  %v2248_v51 = vpop.f32.mrf.mxu3 }
 0x3b5   :  { %v985_v25 = vld [vmem:[%s6139_s1 + $0x1c38] sm:$0xff] }
 0x3b6   :  { %v1045_v29 = vld [vmem:[%s6139_s1 + $0x1e18] sm:$0xff]  ;;  %v1557_v54 = vpack.c.bf16 %v985_v25, %v981_v17  ;;  %2428 = vmatpush.bf16.msrb.mxu1 %v1525_v53  ;;  %v2224_v53 = vpop.f32.mrf.mxu1 }
 0x3b7   :  { %v1049_v32 = vld [vmem:[%s6139_s1 + $0x1e38] sm:$0xff]  ;;  %2416 = vmatmul.bf16.vlgmr.msrb.gmra.mxu0 %v3548_v15  ;;  %v2171_v15 = vadd.f32 %v5822_v33, %v2158_v5  ;;  %v2493_v33 = vld [vmem:[%s6141_s3 + $0xc8] sm:$0xff]  ;;  %v2468_v5 = vld [vmem:[%s6141_s3] sm:$0xff] }
 0x3b8   :  { %v2483_v41 = vld [vmem:[%s6141_s3 + $0x78] sm:$0xff]  ;;  %v1589_v2 = vpack.c.bf16 %v1049_v32, %v1045_v29  ;;  %2441 = vmatpush.bf16.msrb.mxu2 %v1557_v54  ;;  %v2522_v53 = vld [vmem:[%s6141_s3 + $0x1b0] sm:$0xff] }
 0x3b9   :  { %v2499_v48 = vld [vmem:[%s6141_s3 + $0xf8] sm:$0xff]  ;;  %v2539_v55 = vpack.c.bf16 %v2483_v41, %v2482_v38  ;;  %2429 = vmatmul.bf16.vlgmr.msrb.gmra.mxu1 %v3561_v21  ;;  %v2488_v38 = vld [vmem:[%s6141_s3 + $0xa0] sm:$0xff]  ;;  %v2235_v41 = vpop.f32.mrf.mxu2 }
 0x3ba   :  { %v2515_v52 = vld [vmem:[%s6141_s3 + $0x178] sm:$0xff]  ;;  %v2547_v56 = vpack.c.bf16 %v2499_v48, %v2498_v46  ;;  %2454 = vmatpush.bf16.msrb.mxu3 %v1589_v2  ;;  %v2489_v46 = vld [vmem:[%s6141_s3 + $0xa8] sm:$0xff]  ;;  %v2211_v48 = vpop.f32.mrf.mxu0  ;;  %v2550_v2 = vpack.c.bf16 %v2505_v58, %v2504_v47 }
 0x3bb   :  { %v2555_v57 = vpack.c.bf16 %v2515_v52, %v2514_v49  ;;  %2568 = vmatpush.bf16.msra.mxu0 %v2539_v55  ;;  %v2479_v7 = vld [vmem:[%s6141_s3 + $0x58] sm:$0xff]  ;;  %2442 = vmatmul.bf16.vlgmr.msrb.gmra.mxu2 %v3559_v20  ;;  %v2492_v20 = vld [vmem:[%s6141_s3 + $0xc0] sm:$0xff]  ;;  %v2542_v54 = vpack.c.bf16 %v2489_v46, %v2488_v38  ;;  %v2470_v55 = vld [vmem:[%s6141_s3 + $0x10] sm:$0xff] }
 0x3bc   :  { %2581 = vmatpush.bf16.msra.mxu1 %v2547_v56  ;;  %v2495_v22 = vld [vmem:[%s6141_s3 + $0xd8] sm:$0xff]  ;;  %v2537_v21 = vpack.c.bf16 %v2479_v7, %v2478_v43  ;;  %v2544_v39 = vpack.c.bf16 %v2493_v33, %v2492_v20  ;;  %v2485_v43 = vld [vmem:[%s6141_s3 + $0x88] sm:$0xff]  ;;  %v2500_v7 = vld [vmem:[%s6141_s3 + $0x100] sm:$0xff]  ;;  %v1623_v33 = vperm.slane %v5400_v42, 3 }
 0x3bd   :  { %2594 = vmatpush.bf16.msra.mxu2 %v2555_v57  ;;  %v2511_v10 = vld [vmem:[%s6141_s3 + $0x158] sm:$0xff]  ;;  %2455 = vmatmul.bf16.vlgmr.msrb.gmra.mxu3 %v3569_v26  ;;  %v2545_v36 = vpack.c.bf16 %v2495_v22, %v2494_v8  ;;  %v2184_v26 = vadd.f32 %v5857_v61, %v2171_v15  ;;  %v2552_v61 = vpack.c.bf16 %v2509_v19, %v2508_v12  ;;  %v2486_v57 = vld [vmem:[%s6141_s3 + $0x90] sm:$0xff]  ;;  %v2501_v8 = vld [vmem:[%s6141_s3 + $0x108] sm:$0xff]  ;;  %v2460_v15 = vmax.f32 %v4464_v30, 0.0 }
 0x3be   :  { %v2553_v11 = vpack.c.bf16 %v2511_v10, %v2510_v28  ;;  %v2475_v24 = vld [vmem:[%s6141_s3 + $0x38] sm:$0xff]  ;;  %v2250_v28 = vpop.f32.mrf.mxu3  ;;  %v2274_v19 = vpop.f32.mrf.mxu1  ;;  %v2530_v42 = vld [vmem:[%s6141_s3 + $0x1f0] sm:$0xff]  ;;  %v2524_v48 = vld [vmem:[%s6141_s3 + $0x1c0] sm:$0xff] }
 0x3bf   :  { %2569 = vmatpush.bf16.msra.mxu0 %v2538_v63  ;;  %v2197_v27 = vadd.f32 %v5868_v4, %v2184_v26  ;;  %v2491_v44 = vld [vmem:[%s6141_s3 + $0xb8] sm:$0xff]  ;;  %v2535_v25 = vpack.c.bf16 %v2475_v24, %v2474_v23  ;;  %v2472_v4 = vld [vmem:[%s6141_s3 + $0x20] sm:$0xff]  ;;  %v2469_v63 = vld [vmem:[%s6141_s3 + $0x8] sm:$0xff]  ;;  %v2464_v31 = vpack.c.bf16 %v2460_v15, %v2460_v15 }
 0x3c0   :  { %2582 = vmatpush.bf16.msra.mxu1 %v2546_v6  ;;  %v2507_v17 = vld [vmem:[%s6141_s3 + $0x138] sm:$0xff]  ;;  %v2543_v29 = vpack.c.bf16 %v2491_v44, %v2490_v40  ;;  %v2534_v52 = vpack.c.bf16 %v2473_v37, %v2472_v4  ;;  %v2484_v6 = vld [vmem:[%s6141_s3 + $0x80] sm:$0xff]  ;;  %v2532_v10 = vpack.c.bf16 %v2469_v63, %v2468_v5  ;;  %v2529_v4 = vld [vmem:[%s6141_s3 + $0x1e8] sm:$0xff] }
 0x3c1   :  { %2595 = vmatpush.bf16.msra.mxu2 %v2554_v35  ;;  %v2210_v18 = vadd.f32 %v2209_v13, %v2197_v27  ;;  %v2551_v32 = vpack.c.bf16 %v2507_v17, %v2506_v45  ;;  %v2471_v56 = vld [vmem:[%s6141_s3 + $0x18] sm:$0xff]  ;;  %v2237_v22 = vpop.f32.mrf.mxu2  ;;  %v2526_v46 = vld [vmem:[%s6141_s3 + $0x1d0] sm:$0xff] }
 0x3c2   :  { %v2487_v60 = vld [vmem:[%s6141_s3 + $0x98] sm:$0xff]  ;;  %v2533_v1 = vpack.c.bf16 %v2471_v56, %v2470_v55  ;;  %v2261_v12 = vpop.f32.mrf.mxu0  ;;  %v2520_v56 = vld [vmem:[%s6141_s3 + $0x1a0] sm:$0xff] }
 0x3c3   :  { %2570 = vmatpush.bf16.msra.mxu0 %v2537_v21  ;;  %v2223_v49 = vadd.f32 %v2222_v16, %v2210_v18  ;;  %v2503_v0 = vld [vmem:[%s6141_s3 + $0x118] sm:$0xff]  ;;  %v2541_v3 = vpack.c.bf16 %v2487_v60, %v2486_v57  ;;  %v2540_v21 = vpack.c.bf16 %v2485_v43, %v2484_v6  ;;  %v2262_v30 = vadd.f32 %v2261_v12, %v1623_v33  ;;  %v2521_v57 = vld [vmem:[%s6141_s3 + $0x1a8] sm:$0xff]  ;;  %v2516_v6 = vld [vmem:[%s6141_s3 + $0x180] sm:$0xff] }
 0x3c4   :  { %2583 = vmatpush.bf16.msra.mxu1 %v2545_v36  ;;  %v2549_v34 = vpack.c.bf16 %v2503_v0, %v2502_v9  ;;  %v2548_v36 = vpack.c.bf16 %v2501_v8, %v2500_v7  ;;  %v2531_v18 = vld [vmem:[%s6141_s3 + $0x1f8] sm:$0xff]  ;;  %v2558_v60 = vpack.c.bf16 %v2521_v57, %v2520_v56  ;;  %v2518_v9 = vld [vmem:[%s6141_s3 + $0x190] sm:$0xff] }
 0x3c5   :  { %2596 = vmatpush.bf16.msra.mxu2 %v2553_v11  ;;  %v2236_v59 = vadd.f32 %v2235_v41, %v2223_v49  ;;  %v2461_v11 = vmax.f32 %v5262_v50, 0.0  ;;  %v2275_v13 = vadd.f32 %v2274_v19, %v2262_v30  ;;  %v2527_v47 = vld [vmem:[%s6141_s3 + $0x1d8] sm:$0xff]  ;;  %v2525_v49 = vld [vmem:[%s6141_s3 + $0x1c8] sm:$0xff] }
 0x3c6   :  { %v2276_v23 = vpop.f32.mrf.mxu1  ;;  %v2519_v0 = vld [vmem:[%s6141_s3 + $0x198] sm:$0xff] }
 0x3c7   :  { %2571 = vmatpush.bf16.msra.mxu0 %v2536_v14  ;;  %v2249_v35 = vadd.f32 %v2248_v51, %v2236_v59  ;;  %v2465_v20 = vpack.c.bf16 %v2461_v11, %v2461_v11  ;;  %v2561_v51 = vpack.c.bf16 %v2527_v47, %v2526_v46 }
 0x3c8   :  { %2584 = vmatpush.bf16.msra.mxu1 %v2544_v39  ;;  %v2300_v39 = vpop.f32.mrf.mxu3 }
 0x3c9   :  { %2597 = vmatpush.bf16.msra.mxu2 %v2552_v61  ;;  %v2462_v62 = vmax.f32 %v2249_v35, 0.0  ;;  %v2287_v14 = vpop.f32.mrf.mxu2  ;;  %v2517_v35 = vld [vmem:[%s6141_s3 + $0x188] sm:$0xff] }
 0x3ca   :  { %v2288_v16 = vadd.f32 %v2287_v14, %v2275_v13  ;;  %v2263_v61 = vpop.f32.mrf.mxu0  ;;  %v2556_v7 = vpack.c.bf16 %v2517_v35, %v2516_v6 }
 0x3cb   :  { %2572 = vmatpush.bf16.msra.mxu0 %v2535_v25  ;;  %v2466_v26 = vpack.c.bf16 %v2462_v62, %v2462_v62  ;;  %v2528_v25 = vld [vmem:[%s6141_s3 + $0x1e0] sm:$0xff] }
 0x3cc   :  { %2585 = vmatpush.bf16.msra.mxu1 %v2543_v29  ;;  %v2301_v50 = vadd.f32 %v2300_v39, %v2288_v16  ;;  %v2562_v38 = vpack.c.bf16 %v2529_v4, %v2528_v25 }
 0x3cd   :  { %2598 = vmatpush.bf16.msra.mxu2 %v2551_v32  ;;  %v2563_v32 = vpack.c.bf16 %v2531_v18, %v2530_v42 }
 0x3ce   :  { %v2326_v44 = vpop.f32.mrf.mxu1 }
 0x3cf   :  { %2573 = vmatpush.bf16.msra.mxu0 %v2534_v52  ;;  %2607 = vmatpush.bf16.msra.mxu3 %v2563_v32  ;;  %v2560_v52 = vpack.c.bf16 %v2525_v49, %v2524_v48 }
 0x3d0   :  { %2586 = vmatpush.bf16.msra.mxu1 %v2542_v54  ;;  %v2302_v40 = vpop.f32.mrf.mxu3  ;;  %v2523_v54 = vld [vmem:[%s6141_s3 + $0x1b8] sm:$0xff] }
 0x3d1   :  { %2599 = vmatpush.bf16.msra.mxu2 %v2550_v2  ;;  %v2289_v24 = vpop.f32.mrf.mxu2  ;;  %v2559_v2 = vpack.c.bf16 %v2523_v54, %v2522_v53 }
 0x3d2   :  { %v2313_v27 = vpop.f32.mrf.mxu0  ;;  %v2639_v24 = vld [vmem:[%s6142_s4] ss:$0 sm:$0xff] }
 0x3d3   :  { %2574 = vmatpush.bf16.msra.mxu0 %v2533_v1  ;;  %2608 = vmatpush.bf16.msra.mxu3 %v2562_v38  ;;  %v2557_v1 = vpack.c.bf16 %v2519_v0, %v2518_v9 }
 0x3d4   :  { %2587 = vmatpush.bf16.msra.mxu1 %v2541_v3  ;;  %v2314_v3 = vadd.f32 %v2313_v27, %v2301_v50 }
 0x3d5   :  { %2600 = vmatpush.bf16.msra.mxu2 %v2549_v34 }
 0x3d6   :  { %v2328_v37 = vpop.f32.mrf.mxu1  ;;  %v2327_v8 = vadd.f32 %v2326_v44, %v2314_v3 }
 0x3d7   :  { %2575 = vmatpush.bf16.msra.mxu0 %v2532_v10  ;;  %2609 = vmatpush.bf16.msra.mxu3 %v2561_v51 }
 0x3d8   :  { %2588 = vmatpush.bf16.msra.mxu1 %v2540_v21  ;;  %v2352_v17 = vpop.f32.mrf.mxu3 }
 0x3d9   :  { %2601 = vmatpush.bf16.msra.mxu2 %v2548_v36  ;;  %v2339_v45 = vpop.f32.mrf.mxu2 }
 0x3da   :  { %2576 = vmatmul.bf16.vlgmr.msra.gmra.mxu0 %v2464_v31  ;;  %v2315_v29 = vpop.f32.mrf.mxu0  ;;  %v2340_v22 = vadd.f32 %v2339_v45, %v2327_v8 }
 0x3db   :  { %2589 = vmatmul.bf16.vlgmr.msra.gmra.mxu1 %v2465_v20  ;;  %2610 = vmatpush.bf16.msra.mxu3 %v2560_v52 }
 0x3dc   :  { %2602 = vmatmul.bf16.vlgmr.msra.gmra.mxu2 %v2466_v26  ;;  %v2353_v15 = vadd.f32 %v2352_v17, %v2340_v22 }
 0x3df   :  { %2611 = vmatpush.bf16.msra.mxu3 %v2559_v2 }
 0x3e0   :  { %v2354_v58 = vpop.f32.mrf.mxu3 }
 0x3e1   :  { %v2341_v41 = vpop.f32.mrf.mxu2 }
 0x3e3   :  { %2612 = vmatpush.bf16.msra.mxu3 %v2558_v60 }
 0x3e7   :  { %2613 = vmatpush.bf16.msra.mxu3 %v2557_v1 }
 0x3eb   :  { %2614 = vmatpush.bf16.msra.mxu3 %v2556_v7 }
 0x3f4   :  { %v2365_v55 = vpop.f32.mrf.mxu0 }
 0x3f5   :  { %v2366_v21 = vadd.f32 %v2365_v55, %v2353_v15 }
 0x3f6   :  { %v2378_v59 = vpop.f32.mrf.mxu1 }
 0x3f7   :  { %v2379_v36 = vadd.f32 %v2378_v59, %v2366_v21 }
 0x3fc   :  { %v2367_v63 = vpop.f32.mrf.mxu0 }
 0x3fe   :  { %v2391_v34 = vpop.f32.mrf.mxu2  ;;  %v2380_v43 = vpop.f32.mrf.mxu1 }
 0x3ff   :  { %v2392_v11 = vadd.f32 %v2391_v34, %v2379_v36 }
 0x400   :  { %v2404_v5 = vpop.f32.mrf.mxu3 }
 0x401   :  { %v2405_v62 = vadd.f32 %v2404_v5, %v2392_v11 }
 0x406   :  { %v2393_v28 = vpop.f32.mrf.mxu2 }
 0x408   :  { %v2406_v10 = vpop.f32.mrf.mxu3 }
 0x434   :  { %v2417_v31 = vpop.f32.mrf.mxu0 }
 0x435   :  { %v2418_v26 = vadd.f32 %v2417_v31, %v2405_v62 }
 0x436   :  { %v2430_v20 = vpop.f32.mrf.mxu1 }
 0x437   :  { %v2431_v33 = vadd.f32 %v2430_v20, %v2418_v26 }
 0x43c   :  { %v2419_v13 = vpop.f32.mrf.mxu0 }
 0x43e   :  { %v2443_v12 = vpop.f32.mrf.mxu2  ;;  %v2432_v14 = vpop.f32.mrf.mxu1 }
 0x43f   :  { %v2444_v19 = vadd.f32 %v2443_v12, %v2431_v33 }
 0x440   :  { %v2456_v30 = vpop.f32.mrf.mxu3 }
 0x441   :  { %v2457_v16 = vadd.f32 %v2456_v30, %v2444_v19 }
 0x443   :  { %v2463_v39 = vmax.f32 %v2457_v16, 0.0 }
 0x445   :  { %v2467_v50 = vpack.c.bf16 %v2463_v39, %v2463_v39 }
 0x446   :  { %v2445_v61 = vpop.f32.mrf.mxu2 }
 0x447   :  { %2615 = vmatmul.bf16.vlgmr.msra.gmra.mxu3 %v2467_v50 }
 0x448   :  { %v2458_v23 = vpop.f32.mrf.mxu3 }
 0x457   :  { %v2577_v40 = vpop.f32.mrf.mxu0 }
 0x458   :  { %v2578_v27 = vadd.f32 %v2639_v24, %v2577_v40  ;;  %v2590_v44 = vpop.f32.mrf.mxu1 }
 0x45a   :  { %v2591_v45 = vadd.f32 %v2590_v44, %v2578_v27 }
 0x45f   :  { %v2603_v17 = vpop.f32.mrf.mxu2  ;;  %v2579_v18 = vpop.f32.mrf.mxu0 }
 0x460   :  { %v2604_v42 = vadd.f32 %v2603_v17, %v2591_v45  ;;  %v2592_v25 = vpop.f32.mrf.mxu1 }
 0x467   :  { %v2605_v29 = vpop.f32.mrf.mxu2 }
 0x4ca   :  { %v2616_v32 = vpop.f32.mrf.mxu3 }
 0x4cb   :  { %v2617_v4 = vadd.f32 %v2616_v32, %v2604_v42 }
 0x4cd   :  { %2621 = vst.msk [vmem:[#allocation2] sm:$0x3] %vm2620_vm0, %v2617_v4 }
 0x4ce   :  { %2632 = dma.vmem_to_hbm [thread:$0]  %s2628_s15, 32, %s2630_s18, [#allocation3]  }
 0x4d2   :  { %v2618_v37 = vpop.f32.mrf.mxu3 }
 0x4d3   :  { %2666 = dma.done.wait [#allocation3], 32  }
 0x4d4   :  { %2667 = vsyncadd [#allocation3], 4294967264 }
 0x4d5   :  { %2637 = vsyncpa [#allocation3], 1 }

</bundles_post_ra>
